<compile_context>
chip_gen: v7x
topology: tpu7x:2x2x1
jax: 0.10.0
libtpu: 0.0.40
codegen_flags: <defaults>
</compile_context>

<pallas_src>
import jax
import jax.numpy as jnp
from jax import lax
from jax.experimental import pallas as pl
from jax.experimental.pallas import tpu as pltpu

NC = 4
NDF = 32
MAX_ANIMATION_LENGTH = 3          # synthetic small value -> Cin = NC*(L+1) = 16
LEAKY_SLOPE = 0.2
BN_EPS = 1e-5

_CHANS = [NC * (MAX_ANIMATION_LENGTH + 1), NDF, NDF * 2, NDF * 4, NDF * 8, 1]
_CONV_CFG = [
    dict(stride=2, pad=1, leaky=True, softmax=False, bn=False),   # 16  -> 32
    dict(stride=2, pad=1, leaky=True, softmax=False, bn=True),    # 32  -> 64
    dict(stride=2, pad=1, leaky=True, softmax=False, bn=True),    # 64  -> 128
    dict(stride=2, pad=1, leaky=True, softmax=False, bn=True),    # 128 -> 256
    dict(stride=1, pad=0, leaky=False, softmax=True, bn=False),   # 256 -> 1
]

_TM_MAX = 512        # review: keep M tiles >= 512 rows when M allows (v6e/v7x)
_VMEM_LIMIT = 32 * 1024 * 1024   # explicit scoped-VMEM budget (headroom on v5e)


def _ceil_to(x, m):
    return ((x + m - 1) // m) * m


def _pick_tm(m):
    """M tile: 512 rows when possible, otherwise the whole (16-padded) M."""
    return min(_TM_MAX, _ceil_to(m, 16))


def _fused_conv_matmul(patches, w, bias, *, tm, leaky, do_softmax, valid_cout,
                       out_dtype):
    """y = act(patches @ w + bias), optional channel softmax.

    patches: (Mp, K)   bf16, Mp % tm == 0, Mp % 16 == 0, K % 128 == 0
    w:       (K, Cout) bf16, BN scale pre-folded (padded cols zero, last layer)
    bias:    (1, Cout) f32  BN shift (zero for non-BN layers / padded cols)

    The grid streams (tm, K) patch tiles (double-buffered, "parallel" so v7x
    megacore splits the M axis); W and bias use a constant index_map so they
    are DMA'd once and stay resident in VMEM.
    """
    Mp, K = patches.shape
    Cout = w.shape[1]
    assert Mp % tm == 0 and Mp % 16 == 0 and K % 128 == 0, (Mp, tm, K)

    def kernel(x_ref, w_ref, b_ref, o_ref):
        y = jnp.dot(x_ref[...], w_ref[...], preferred_element_type=jnp.float32)
        y = y + b_ref[...]
        if leaky:
            y = jnp.where(y >= 0.0, y, LEAKY_SLOPE * y)
        if do_softmax:
            if valid_cout == 1:
                # nn.Softmax over a single channel is identically 1.0
                # (non-finite inputs still propagate through exp(y - y)).
                y = jnp.exp(y - y)
            else:
                col = lax.broadcasted_iota(jnp.int32, y.shape, 1)
                valid = col < valid_cout
                ym = jnp.where(valid, y, -1e30)
                m = jnp.max(ym, axis=-1, keepdims=True)
                e = jnp.where(valid, jnp.exp(ym - m), 0.0)
                y = e / jnp.sum(e, axis=-1, keepdims=True)
        o_ref[...] = y.astype(o_ref.dtype)

    return pl.pallas_call(
        kernel,
        out_shape=jax.ShapeDtypeStruct((Mp, Cout), out_dtype),
        grid_spec=pltpu.PrefetchScalarGridSpec(
            num_scalar_prefetch=0,
            grid=(Mp // tm,),
            in_specs=[
                pl.BlockSpec((tm, K), lambda i: (i, 0)),     # streamed patches
                pl.BlockSpec((K, Cout), lambda i: (0, 0)),   # resident weights
                pl.BlockSpec((1, Cout), lambda i: (0, 0)),   # resident bias
            ],
            out_specs=pl.BlockSpec((tm, Cout), lambda i: (i, 0)),
        ),
        compiler_params=pltpu.CompilerParams(
            dimension_semantics=("parallel",),
            vmem_limit_bytes=_VMEM_LIMIT),
    )(patches, w, bias)


def _im2col(x, kh, kw, stride, pad):
    """x: (N, H, W, C) NHWC -> (N*Ho*Wo, kh*kw*C) patches (C fastest)."""
    # TODO(synk): replace this JAX-level im2col (stride^2=4x HBM inflation +
    # ~20 glue HLOs per layer) with in-kernel tap accumulation over the 16
    # (kh,kw) shifts, DMA-ing the NHWC activation tile once; that also enables
    # fusing the tiny tail layers (M=128/32/16 at batch 2) into one pallas_call.
    if pad > 0:
        x = jnp.pad(x, ((0, 0), (pad, pad), (pad, pad), (0, 0)))
    N, Hp, Wp, C = x.shape
    Ho = (Hp - kh) // stride + 1
    Wo = (Wp - kw) // stride + 1
    cols = []
    for i in range(kh):
        for j in range(kw):
            cols.append(
                lax.slice(
                    x,
                    (0, i, j, 0),
                    (N, i + stride * (Ho - 1) + 1, j + stride * (Wo - 1) + 1, C),
                    (1, stride, stride, 1),
                )
            )
    p = jnp.stack(cols, axis=3)  # (N, Ho, Wo, kh*kw, C)
    return p.reshape(N * Ho * Wo, kh * kw * C), (N, Ho, Wo)


def init_params(key):
    """Deterministic synthetic parameters, BN-folded, bf16-cast.

    w{l}: (16*Cin, Cout) bf16 with the eval-mode BN scale folded in.  No K
    padding is needed (16*Cin is already a multiple of 128 for every layer);
    only the final layer's Cout (=1) is padded to 128 (zero columns).
    b{l}: (1, Cout) f32 BN shift (zero for non-BN layers and padded columns).
    """
    keys = jax.random.split(key, 16)
    params = {}
    ki = 0
    for l in range(5):
        cin, cout = _CHANS[l], _CHANS[l + 1]
        w = 0.02 * jax.random.normal(keys[ki], (4, 4, cin, cout), jnp.float32)
        ki += 1
        if _CONV_CFG[l]["bn"]:
            gamma = 1.0 + 0.02 * jax.random.normal(keys[ki], (cout,), jnp.float32)
            ki += 1
            beta = 0.01 * jax.random.normal(keys[ki], (cout,), jnp.float32)
            ki += 1
            rmean = jnp.zeros((cout,), jnp.float32)
            rvar = jnp.ones((cout,), jnp.float32)
            scale = gamma / jnp.sqrt(rvar + BN_EPS)
            shift = beta - rmean * scale
        else:
            scale = jnp.ones((cout,), jnp.float32)
            shift = jnp.zeros((cout,), jnp.float32)
        w = w * scale[None, None, None, :]          # fold BN scale into the conv
        cout_pad = _ceil_to(cout, 128) if cout < 128 and l == 4 else cout
        wp = jnp.zeros((4, 4, cin, cout_pad), jnp.float32).at[..., :cout].set(w)
        params[f"w{l}"] = wp.reshape(4 * 4 * cin, cout_pad).astype(jnp.bfloat16)
        params[f"b{l}"] = (jnp.zeros((1, cout_pad), jnp.float32)
                           .at[0, :cout].set(shift))
    return params


@jax.jit
def multiclass_discriminator_forward(x_nchw, params):
    # TODO(synk): training-mode Dropout / batch-stat BatchNorm are stochastic /
    # stateful; eval-mode semantics are implemented (Dropout=identity, BN folded).
    x = jnp.transpose(x_nchw, (0, 2, 3, 1)).astype(jnp.bfloat16)  # NCHW -> NHWC
    N = x.shape[0]
    n_layers = len(_CONV_CFG)
    y = None
    for l, cfg in enumerate(_CONV_CFG):
        last = l == n_layers - 1
        if last:
            # Final 4x4 valid conv over a 4x4 map == matmul on the flattened
            # NHWC activation (row order (kh,kw,C) matches the weight reshape).
            Nl, Ho, Wo = N, 1, 1
            patches = x.reshape(N, 4 * 4 * x.shape[-1])
        else:
            patches, (Nl, Ho, Wo) = _im2col(x, 4, 4, cfg["stride"], cfg["pad"])
        M = patches.shape[0]
        tm = _pick_tm(M)                    # 512 rows when M allows
        Mp = _ceil_to(M, tm)                # multiple of 16 by construction
        if Mp != M:
            patches = jnp.pad(patches, ((0, Mp - M), (0, 0)))
        y = _fused_conv_matmul(
            patches,
            params[f"w{l}"],
            params[f"b{l}"],
            tm=tm,
            leaky=cfg["leaky"],
            do_softmax=cfg["softmax"],
            valid_cout=_CHANS[l + 1],
            out_dtype=jnp.float32 if last else jnp.bfloat16,
        )
        if not last:
            if Mp != M:
                y = y[:M]
            # Activations stay at their REAL channel count (32/64/128/256) so
            # the next layer's K is never inflated by padded lanes.
            x = y.reshape(Nl, Ho, Wo, y.shape[1])
    # Final layer: Ho = Wo = 1, real Cout = 1  ->  (N, 1, 1, 1); NCHW == NHWC.
    return y[:N, :1].reshape(N, 1, 1, 1)


if __name__ == "__main__":
    key = jax.random.PRNGKey(0)
    pkey, xkey = jax.random.split(key)
    params = init_params(pkey)
    cin = NC * (MAX_ANIMATION_LENGTH + 1)  # 16
    # Spatial must be 64x64 for the 4-stage stride-2 stack + final 4x4 valid conv.
    x = jax.random.normal(xkey, (2, cin, 64, 64), jnp.float32)  # NCHW like PyTorch
    out = multiclass_discriminator_forward(x, params)
    out = jax.block_until_ready(out)
    assert out.shape == (2, 1, 1, 1), out.shape
    assert bool(jnp.all(jnp.isfinite(out)))
    # Single-channel softmax is identically 1.0 for finite activations.
    assert bool(jnp.allclose(out, 1.0))
    print("KERNEL_OK")
</pallas_src>

<mosaic_0001>
module attributes {stable_mosaic.version = 11 : i64} {
  func.func @kernel(%arg0: i32, %arg1: memref<512x256xbf16, #tpu.memory_space<vmem>>, %arg2: memref<256x32xbf16, #tpu.memory_space<vmem>>, %arg3: memref<1x32xf32, #tpu.memory_space<vmem>>, %arg4: memref<512x32xbf16, #tpu.memory_space<vmem>>) attributes {dimension_semantics = [#tpu.dimension_semantics<parallel>], iteration_bounds = array<i64: 4>, scalar_prefetch = 0 : i64, scratch_operands = 0 : i64, tpu.core_type = #tpu.core_type<tc>, window_params = [{transform_indices = @transform_0, window_bounds = array<i64: 512, 256>}, {pipeline_mode = #tpu.pipeline_mode<synchronous>, transform_indices = @transform_1, window_bounds = array<i64: 256, 32>}, {pipeline_mode = #tpu.pipeline_mode<synchronous>, transform_indices = @transform_2, window_bounds = array<i64: 1, 32>}, {transform_indices = @transform_3, window_bounds = array<i64: 512, 32>}]} {
    %c0 = arith.constant 0 : index
    %c0_0 = arith.constant 0 : index
    %0 = vector.load %arg1[%c0, %c0_0] : memref<512x256xbf16, #tpu.memory_space<vmem>>, vector<512x256xbf16>
    %c0_1 = arith.constant 0 : index
    %c0_2 = arith.constant 0 : index
    %1 = vector.load %arg2[%c0_1, %c0_2] : memref<256x32xbf16, #tpu.memory_space<vmem>>, vector<256x32xbf16>
    %cst = arith.constant dense<0.000000e+00> : vector<512x32xf32>
    %2 = tpu.matmul %0, %1, %cst {dimension_numbers = #tpu.dot_dimension_numbers<[1], [0], [0], [1], [0, 0, 1, 1], [], []>} : vector<512x256xbf16>, vector<256x32xbf16>, vector<512x32xf32> -> vector<512x32xf32>
    %c0_3 = arith.constant 0 : index
    %c0_4 = arith.constant 0 : index
    %3 = vector.load %arg3[%c0_3, %c0_4] : memref<1x32xf32, #tpu.memory_space<vmem>>, vector<1x32xf32>
    %4 = vector.broadcast %3 : vector<1x32xf32> to vector<512x32xf32>
    %5 = arith.addf %2, %4 : vector<512x32xf32>
    %cst_5 = arith.constant 0.000000e+00 : f32
    %6 = vector.broadcast %cst_5 : f32 to vector<512x32xf32>
    %7 = arith.cmpf oge, %5, %6 : vector<512x32xf32>
    %cst_6 = arith.constant 2.000000e-01 : f32
    %8 = vector.broadcast %cst_6 : f32 to vector<512x32xf32>
    %9 = arith.mulf %8, %5 : vector<512x32xf32>
    %10 = arith.select %7, %5, %9 : vector<512x32xi1>, vector<512x32xf32>
    %11 = arith.truncf %10 : vector<512x32xf32> to vector<512x32xbf16>
    %c0_7 = arith.constant 0 : index
    %c0_8 = arith.constant 0 : index
    %12 = vector.load %arg4[%c0_7, %c0_8] : memref<512x32xbf16, #tpu.memory_space<vmem>>, vector<512x32xbf16>
    tpu.vector_store %arg4[%c0_7, %c0_8], %11 {strides = array<i32>} : memref<512x32xbf16, #tpu.memory_space<vmem>>, vector<512x32xbf16>,
    return
  }
  func.func @transform_0(%arg0: i32) -> (i32, i32) {
    %c0_i32 = arith.constant 0 : i32
    %c0_i32_0 = arith.constant 0 : i32
    return %arg0, %c0_i32 : i32, i32
  }
  func.func @transform_1(%arg0: i32) -> (i32, i32) {
    %c0_i32 = arith.constant 0 : i32
    %c0_i32_0 = arith.constant 0 : i32
    %c0_i32_1 = arith.constant 0 : i32
    return %c0_i32, %c0_i32_0 : i32, i32
  }
  func.func @transform_2(%arg0: i32) -> (i32, i32) {
    %c0_i32 = arith.constant 0 : i32
    %c0_i32_0 = arith.constant 0 : i32
    %c0_i32_1 = arith.constant 0 : i32
    return %c0_i32, %c0_i32_0 : i32, i32
  }
  func.func @transform_3(%arg0: i32) -> (i32, i32) {
    %c0_i32 = arith.constant 0 : i32
    %c0_i32_0 = arith.constant 0 : i32
    return %arg0, %c0_i32 : i32, i32
  }
}

module attributes {stable_mosaic.version = 11 : i64} {
  func.func @kernel(%arg0: i32, %arg1: memref<512x512xbf16, #tpu.memory_space<vmem>>, %arg2: memref<512x64xbf16, #tpu.memory_space<vmem>>, %arg3: memref<1x64xf32, #tpu.memory_space<vmem>>, %arg4: memref<512x64xbf16, #tpu.memory_space<vmem>>) attributes {dimension_semantics = [#tpu.dimension_semantics<parallel>], iteration_bounds = array<i64: 1>, scalar_prefetch = 0 : i64, scratch_operands = 0 : i64, tpu.core_type = #tpu.core_type<tc>, window_params = [{transform_indices = @transform_0, window_bounds = array<i64: 512, 512>}, {pipeline_mode = #tpu.pipeline_mode<synchronous>, transform_indices = @transform_1, window_bounds = array<i64: 512, 64>}, {pipeline_mode = #tpu.pipeline_mode<synchronous>, transform_indices = @transform_2, window_bounds = array<i64: 1, 64>}, {transform_indices = @transform_3, window_bounds = array<i64: 512, 64>}]} {
    %c0 = arith.constant 0 : index
    %c0_0 = arith.constant 0 : index
    %0 = vector.load %arg1[%c0, %c0_0] : memref<512x512xbf16, #tpu.memory_space<vmem>>, vector<512x512xbf16>
    %c0_1 = arith.constant 0 : index
    %c0_2 = arith.constant 0 : index
    %1 = vector.load %arg2[%c0_1, %c0_2] : memref<512x64xbf16, #tpu.memory_space<vmem>>, vector<512x64xbf16>
    %cst = arith.constant dense<0.000000e+00> : vector<512x64xf32>
    %2 = tpu.matmul %0, %1, %cst {dimension_numbers = #tpu.dot_dimension_numbers<[1], [0], [0], [1], [0, 0, 1, 1], [], []>} : vector<512x512xbf16>, vector<512x64xbf16>, vector<512x64xf32> -> vector<512x64xf32>
    %c0_3 = arith.constant 0 : index
    %c0_4 = arith.constant 0 : index
    %3 = vector.load %arg3[%c0_3, %c0_4] : memref<1x64xf32, #tpu.memory_space<vmem>>, vector<1x64xf32>
    %4 = vector.broadcast %3 : vector<1x64xf32> to vector<512x64xf32>
    %5 = arith.addf %2, %4 : vector<512x64xf32>
    %cst_5 = arith.constant 0.000000e+00 : f32
    %6 = vector.broadcast %cst_5 : f32 to vector<512x64xf32>
    %7 = arith.cmpf oge, %5, %6 : vector<512x64xf32>
    %cst_6 = arith.constant 2.000000e-01 : f32
    %8 = vector.broadcast %cst_6 : f32 to vector<512x64xf32>
    %9 = arith.mulf %8, %5 : vector<512x64xf32>
    %10 = arith.select %7, %5, %9 : vector<512x64xi1>, vector<512x64xf32>
    %11 = arith.truncf %10 : vector<512x64xf32> to vector<512x64xbf16>
    %c0_7 = arith.constant 0 : index
    %c0_8 = arith.constant 0 : index
    %12 = vector.load %arg4[%c0_7, %c0_8] : memref<512x64xbf16, #tpu.memory_space<vmem>>, vector<512x64xbf16>
    tpu.vector_store %arg4[%c0_7, %c0_8], %11 {strides = array<i32>} : memref<512x64xbf16, #tpu.memory_space<vmem>>, vector<512x64xbf16>,
    return
  }
  func.func @transform_0(%arg0: i32) -> (i32, i32) {
    %c0_i32 = arith.constant 0 : i32
    %c0_i32_0 = arith.constant 0 : i32
    return %arg0, %c0_i32 : i32, i32
  }
  func.func @transform_1(%arg0: i32) -> (i32, i32) {
    %c0_i32 = arith.constant 0 : i32
    %c0_i32_0 = arith.constant 0 : i32
    %c0_i32_1 = arith.constant 0 : i32
    return %c0_i32, %c0_i32_0 : i32, i32
  }
  func.func @transform_2(%arg0: i32) -> (i32, i32) {
    %c0_i32 = arith.constant 0 : i32
    %c0_i32_0 = arith.constant 0 : i32
    %c0_i32_1 = arith.constant 0 : i32
    return %c0_i32, %c0_i32_0 : i32, i32
  }
  func.func @transform_3(%arg0: i32) -> (i32, i32) {
    %c0_i32 = arith.constant 0 : i32
    %c0_i32_0 = arith.constant 0 : i32
    return %arg0, %c0_i32 : i32, i32
  }
}

module attributes {stable_mosaic.version = 11 : i64} {
  func.func @kernel(%arg0: i32, %arg1: memref<128x1024xbf16, #tpu.memory_space<vmem>>, %arg2: memref<1024x128xbf16, #tpu.memory_space<vmem>>, %arg3: memref<1x128xf32, #tpu.memory_space<vmem>>, %arg4: memref<128x128xbf16, #tpu.memory_space<vmem>>) attributes {dimension_semantics = [#tpu.dimension_semantics<parallel>], iteration_bounds = array<i64: 1>, scalar_prefetch = 0 : i64, scratch_operands = 0 : i64, tpu.core_type = #tpu.core_type<tc>, window_params = [{transform_indices = @transform_0, window_bounds = array<i64: 128, 1024>}, {pipeline_mode = #tpu.pipeline_mode<synchronous>, transform_indices = @transform_1, window_bounds = array<i64: 1024, 128>}, {pipeline_mode = #tpu.pipeline_mode<synchronous>, transform_indices = @transform_2, window_bounds = array<i64: 1, 128>}, {transform_indices = @transform_3, window_bounds = array<i64: 128, 128>}]} {
    %c0 = arith.constant 0 : index
    %c0_0 = arith.constant 0 : index
    %0 = vector.load %arg1[%c0, %c0_0] : memref<128x1024xbf16, #tpu.memory_space<vmem>>, vector<128x1024xbf16>
    %c0_1 = arith.constant 0 : index
    %c0_2 = arith.constant 0 : index
    %1 = vector.load %arg2[%c0_1, %c0_2] : memref<1024x128xbf16, #tpu.memory_space<vmem>>, vector<1024x128xbf16>
    %cst = arith.constant dense<0.000000e+00> : vector<128x128xf32>
    %2 = tpu.matmul %0, %1, %cst {dimension_numbers = #tpu.dot_dimension_numbers<[1], [0], [0], [1], [0, 0, 1, 1], [], []>} : vector<128x1024xbf16>, vector<1024x128xbf16>, vector<128x128xf32> -> vector<128x128xf32>
    %c0_3 = arith.constant 0 : index
    %c0_4 = arith.constant 0 : index
    %3 = vector.load %arg3[%c0_3, %c0_4] : memref<1x128xf32, #tpu.memory_space<vmem>>, vector<1x128xf32>
    %4 = vector.broadcast %3 : vector<1x128xf32> to vector<128x128xf32>
    %5 = arith.addf %2, %4 : vector<128x128xf32>
    %cst_5 = arith.constant 0.000000e+00 : f32
    %6 = vector.broadcast %cst_5 : f32 to vector<128x128xf32>
    %7 = arith.cmpf oge, %5, %6 : vector<128x128xf32>
    %cst_6 = arith.constant 2.000000e-01 : f32
    %8 = vector.broadcast %cst_6 : f32 to vector<128x128xf32>
    %9 = arith.mulf %8, %5 : vector<128x128xf32>
    %10 = arith.select %7, %5, %9 : vector<128x128xi1>, vector<128x128xf32>
    %11 = arith.truncf %10 : vector<128x128xf32> to vector<128x128xbf16>
    %c0_7 = arith.constant 0 : index
    %c0_8 = arith.constant 0 : index
    %12 = vector.load %arg4[%c0_7, %c0_8] : memref<128x128xbf16, #tpu.memory_space<vmem>>, vector<128x128xbf16>
    tpu.vector_store %arg4[%c0_7, %c0_8], %11 {strides = array<i32>} : memref<128x128xbf16, #tpu.memory_space<vmem>>, vector<128x128xbf16>,
    return
  }
  func.func @transform_0(%arg0: i32) -> (i32, i32) {
    %c0_i32 = arith.constant 0 : i32
    %c0_i32_0 = arith.constant 0 : i32
    return %arg0, %c0_i32 : i32, i32
  }
  func.func @transform_1(%arg0: i32) -> (i32, i32) {
    %c0_i32 = arith.constant 0 : i32
    %c0_i32_0 = arith.constant 0 : i32
    %c0_i32_1 = arith.constant 0 : i32
    return %c0_i32, %c0_i32_0 : i32, i32
  }
  func.func @transform_2(%arg0: i32) -> (i32, i32) {
    %c0_i32 = arith.constant 0 : i32
    %c0_i32_0 = arith.constant 0 : i32
    %c0_i32_1 = arith.constant 0 : i32
    return %c0_i32, %c0_i32_0 : i32, i32
  }
  func.func @transform_3(%arg0: i32) -> (i32, i32) {
    %c0_i32 = arith.constant 0 : i32
    %c0_i32_0 = arith.constant 0 : i32
    return %arg0, %c0_i32 : i32, i32
  }
}

module attributes {stable_mosaic.version = 11 : i64} {
  func.func @kernel(%arg0: i32, %arg1: memref<32x2048xbf16, #tpu.memory_space<vmem>>, %arg2: memref<2048x256xbf16, #tpu.memory_space<vmem>>, %arg3: memref<1x256xf32, #tpu.memory_space<vmem>>, %arg4: memref<32x256xbf16, #tpu.memory_space<vmem>>) attributes {dimension_semantics = [#tpu.dimension_semantics<parallel>], iteration_bounds = array<i64: 1>, scalar_prefetch = 0 : i64, scratch_operands = 0 : i64, tpu.core_type = #tpu.core_type<tc>, window_params = [{transform_indices = @transform_0, window_bounds = array<i64: 32, 2048>}, {pipeline_mode = #tpu.pipeline_mode<synchronous>, transform_indices = @transform_1, window_bounds = array<i64: 2048, 256>}, {pipeline_mode = #tpu.pipeline_mode<synchronous>, transform_indices = @transform_2, window_bounds = array<i64: 1, 256>}, {transform_indices = @transform_3, window_bounds = array<i64: 32, 256>}]} {
    %c0 = arith.constant 0 : index
    %c0_0 = arith.constant 0 : index
    %0 = vector.load %arg1[%c0, %c0_0] : memref<32x2048xbf16, #tpu.memory_space<vmem>>, vector<32x2048xbf16>
    %c0_1 = arith.constant 0 : index
    %c0_2 = arith.constant 0 : index
    %1 = vector.load %arg2[%c0_1, %c0_2] : memref<2048x256xbf16, #tpu.memory_space<vmem>>, vector<2048x256xbf16>
    %cst = arith.constant dense<0.000000e+00> : vector<32x256xf32>
    %2 = tpu.matmul %0, %1, %cst {dimension_numbers = #tpu.dot_dimension_numbers<[1], [0], [0], [1], [0, 0, 1, 1], [], []>} : vector<32x2048xbf16>, vector<2048x256xbf16>, vector<32x256xf32> -> vector<32x256xf32>
    %c0_3 = arith.constant 0 : index
    %c0_4 = arith.constant 0 : index
    %3 = vector.load %arg3[%c0_3, %c0_4] : memref<1x256xf32, #tpu.memory_space<vmem>>, vector<1x256xf32>
    %4 = vector.broadcast %3 : vector<1x256xf32> to vector<32x256xf32>
    %5 = arith.addf %2, %4 : vector<32x256xf32>
    %cst_5 = arith.constant 0.000000e+00 : f32
    %6 = vector.broadcast %cst_5 : f32 to vector<32x256xf32>
    %7 = arith.cmpf oge, %5, %6 : vector<32x256xf32>
    %cst_6 = arith.constant 2.000000e-01 : f32
    %8 = vector.broadcast %cst_6 : f32 to vector<32x256xf32>
    %9 = arith.mulf %8, %5 : vector<32x256xf32>
    %10 = arith.select %7, %5, %9 : vector<32x256xi1>, vector<32x256xf32>
    %11 = arith.truncf %10 : vector<32x256xf32> to vector<32x256xbf16>
    %c0_7 = arith.constant 0 : index
    %c0_8 = arith.constant 0 : index
    %12 = vector.load %arg4[%c0_7, %c0_8] : memref<32x256xbf16, #tpu.memory_space<vmem>>, vector<32x256xbf16>
    tpu.vector_store %arg4[%c0_7, %c0_8], %11 {strides = array<i32>} : memref<32x256xbf16, #tpu.memory_space<vmem>>, vector<32x256xbf16>,
    return
  }
  func.func @transform_0(%arg0: i32) -> (i32, i32) {
    %c0_i32 = arith.constant 0 : i32
    %c0_i32_0 = arith.constant 0 : i32
    return %arg0, %c0_i32 : i32, i32
  }
  func.func @transform_1(%arg0: i32) -> (i32, i32) {
    %c0_i32 = arith.constant 0 : i32
    %c0_i32_0 = arith.constant 0 : i32
    %c0_i32_1 = arith.constant 0 : i32
    return %c0_i32, %c0_i32_0 : i32, i32
  }
  func.func @transform_2(%arg0: i32) -> (i32, i32) {
    %c0_i32 = arith.constant 0 : i32
    %c0_i32_0 = arith.constant 0 : i32
    %c0_i32_1 = arith.constant 0 : i32
    return %c0_i32, %c0_i32_0 : i32, i32
  }
  func.func @transform_3(%arg0: i32) -> (i32, i32) {
    %c0_i32 = arith.constant 0 : i32
    %c0_i32_0 = arith.constant 0 : i32
    return %arg0, %c0_i32 : i32, i32
  }
}

module attributes {stable_mosaic.version = 11 : i64} {
  func.func @kernel(%arg0: i32, %arg1: memref<16x4096xbf16, #tpu.memory_space<vmem>>, %arg2: memref<4096x128xbf16, #tpu.memory_space<vmem>>, %arg3: memref<1x128xf32, #tpu.memory_space<vmem>>, %arg4: memref<16x128xf32, #tpu.memory_space<vmem>>) attributes {dimension_semantics = [#tpu.dimension_semantics<parallel>], iteration_bounds = array<i64: 1>, scalar_prefetch = 0 : i64, scratch_operands = 0 : i64, tpu.core_type = #tpu.core_type<tc>, window_params = [{transform_indices = @transform_0, window_bounds = array<i64: 16, 4096>}, {pipeline_mode = #tpu.pipeline_mode<synchronous>, transform_indices = @transform_1, window_bounds = array<i64: 4096, 128>}, {pipeline_mode = #tpu.pipeline_mode<synchronous>, transform_indices = @transform_2, window_bounds = array<i64: 1, 128>}, {transform_indices = @transform_3, window_bounds = array<i64: 16, 128>}]} {
    %c0 = arith.constant 0 : index
    %c0_0 = arith.constant 0 : index
    %0 = vector.load %arg1[%c0, %c0_0] : memref<16x4096xbf16, #tpu.memory_space<vmem>>, vector<16x4096xbf16>
    %c0_1 = arith.constant 0 : index
    %c0_2 = arith.constant 0 : index
    %1 = vector.load %arg2[%c0_1, %c0_2] : memref<4096x128xbf16, #tpu.memory_space<vmem>>, vector<4096x128xbf16>
    %cst = arith.constant dense<0.000000e+00> : vector<16x128xf32>
    %2 = tpu.matmul %0, %1, %cst {dimension_numbers = #tpu.dot_dimension_numbers<[1], [0], [0], [1], [0, 0, 1, 1], [], []>} : vector<16x4096xbf16>, vector<4096x128xbf16>, vector<16x128xf32> -> vector<16x128xf32>
    %c0_3 = arith.constant 0 : index
    %c0_4 = arith.constant 0 : index
    %3 = vector.load %arg3[%c0_3, %c0_4] : memref<1x128xf32, #tpu.memory_space<vmem>>, vector<1x128xf32>
    %4 = vector.broadcast %3 : vector<1x128xf32> to vector<16x128xf32>
    %5 = arith.addf %2, %4 : vector<16x128xf32>
    %6 = arith.subf %5, %5 : vector<16x128xf32>
    %7 = math.exp %6 : vector<16x128xf32>
    %c0_5 = arith.constant 0 : index
    %c0_6 = arith.constant 0 : index
    %8 = vector.load %arg4[%c0_5, %c0_6] : memref<16x128xf32, #tpu.memory_space<vmem>>, vector<16x128xf32>
    tpu.vector_store %arg4[%c0_5, %c0_6], %7 {strides = array<i32>} : memref<16x128xf32, #tpu.memory_space<vmem>>, vector<16x128xf32>,
    return
  }
  func.func @transform_0(%arg0: i32) -> (i32, i32) {
    %c0_i32 = arith.constant 0 : i32
    %c0_i32_0 = arith.constant 0 : i32
    return %arg0, %c0_i32 : i32, i32
  }
  func.func @transform_1(%arg0: i32) -> (i32, i32) {
    %c0_i32 = arith.constant 0 : i32
    %c0_i32_0 = arith.constant 0 : i32
    %c0_i32_1 = arith.constant 0 : i32
    return %c0_i32, %c0_i32_0 : i32, i32
  }
  func.func @transform_2(%arg0: i32) -> (i32, i32) {
    %c0_i32 = arith.constant 0 : i32
    %c0_i32_0 = arith.constant 0 : i32
    %c0_i32_1 = arith.constant 0 : i32
    return %c0_i32, %c0_i32_0 : i32, i32
  }
  func.func @transform_3(%arg0: i32) -> (i32, i32) {
    %c0_i32 = arith.constant 0 : i32
    %c0_i32_0 = arith.constant 0 : i32
    return %arg0, %c0_i32 : i32, i32
  }
}

</mosaic_0001>

<bundles_post_ra>
// kernel: multiclass_discriminator_forward.5
= control target key start
LH: loop header
LB: loop body
LE: loop exit
PB: predicated region body
PF: predicated region fallthrough
CT: control target
= control target key end

     0   :  { %s1959_s12 = smov 0   ;;  %s2325_s0 = inlined_call_operand.vmem [shape: bf16[2048,256], index: 0, kind: input, shape index: {}]   ;;  %s2326_s1 = inlined_call_operand.vmem [shape: bf16[256,32], index: 1, kind: input, shape index: {}]   ;;  %s2327_s2 = inlined_call_operand.vmem [shape: f32[1,32], index: 2, kind: input, shape index: {}]   ;;  %s2328_s3 = inlined_call_operand.vmem [shape: bf16[2048,32], index: 3, kind: output, shape index: {}]  }
   0x1 LB: > { %s1555_s13 = sadd.s32 4294967295, %s1936_s12   ;;  %p1559_p0 = scmp.ge.s32.totalorder %s1936_s12, 1  ;;  %s1936_s12 = sphi %s1959_s12, %s13_s12  }
   0x2   : > { %p139_p1 = scmp.lt.s32.totalorder %s1936_s12, 5 }
   0x4   : > { %p140_p2 = pnand %p1559_p0, %p139_p1 }
   0x5   : > { %v1818_v0 = vld [vmem:[%s2326_s1] sm:$0xff] (!%p140_p2)   ;;  %v1938_v1 = vmov (!%p140_p2), 0   ;;  %s1560_s16 = sshll.u32 (!%p140_p2), %s1555_s13, 6  ;;  %v1819_v2 = vld [vmem:[%s2326_s1 + $0x8] sm:$0xff] (!%p140_p2)   ;;  %v1820_v3 = vld [vmem:[%s2326_s1 + $0x10] sm:$0xff] (!%p140_p2)   ;;  %vm1434_vm2 = vcmask (!%p140_p2), 257024  }
   0x6   : > { %143 = sbr.rel (%p140_p2) target bundleno = 413 (0x19d), region = 32  ;;  %697 = vmatprep.subr.bf16.mxu0 (!%p140_p2), %v1938_v1  ;;  %1777 = vmatprep.subr.bf16.mxu1 (!%p140_p2), %v1938_v1  ;;  %p165_p3 = scmp.lt.s32.totalorder (!%p140_p2), %s1560_s16, 255  ;;  %v1821_v4 = vld [vmem:[%s2326_s1 + $0x18] sm:$0xff] (!%p140_p2)   ;;  %v1822_v5 = vld [vmem:[%s2326_s1 + $0x20] sm:$0xff] (!%p140_p2)   ;;  %v1823_v7 = vld [vmem:[%s2326_s1 + $0x28] sm:$0xff] (!%p140_p2)  }
   0x7   : > { %698 = vmatpush1.bf16.msra.mxu0 (!%p140_p2), %v1818_v0  ;;  %1793 = vmatpush1.bf16.msra.mxu1 (!%p140_p2), %v1818_v0  ;;  %v1824_v9 = vld [vmem:[%s2326_s1 + $0x30] sm:$0xff] (!%p140_p2)   ;;  %v1825_v10 = vld [vmem:[%s2326_s1 + $0x38] sm:$0xff] (!%p140_p2)   ;;  %v1826_v11 = vld [vmem:[%s2326_s1 + $0x40] sm:$0xff] (!%p140_p2)  }
   0x8   : > { %699 = vmatprep.subr.bf16.mxu0 (!%p140_p2), %v1938_v1  ;;  %1778 = vmatprep.subr.bf16.mxu1 (!%p140_p2), %v1938_v1  ;;  %v1827_v12 = vld [vmem:[%s2326_s1 + $0x48] sm:$0xff] (!%p140_p2)   ;;  %v1828_v13 = vld [vmem:[%s2326_s1 + $0x50] sm:$0xff] (!%p140_p2)   ;;  %v1829_v14 = vld [vmem:[%s2326_s1 + $0x58] sm:$0xff] (!%p140_p2)  }
   0x9   : > { %v1830_v15 = vld [vmem:[%s2326_s1 + $0x60] sm:$0xff] (!%p140_p2)   ;;  %v1831_v16 = vld [vmem:[%s2326_s1 + $0x68] sm:$0xff] (!%p140_p2)   ;;  %v1832_v17 = vld [vmem:[%s2326_s1 + $0x70] sm:$0xff] (!%p140_p2)  }
   0xa   : > { %v1833_v18 = vld [vmem:[%s2326_s1 + $0x78] sm:$0xff] (!%p140_p2)  }
   0xb   : > { %700 = vmatpush1.bf16.msra.mxu0 (!%p140_p2), %v1819_v2  ;;  %1794 = vmatpush1.bf16.msra.mxu1 (!%p140_p2), %v1819_v2 }
   0xc   : > { %701 = vmatprep.subr.bf16.mxu0 (!%p140_p2), %v1938_v1  ;;  %1779 = vmatprep.subr.bf16.mxu1 (!%p140_p2), %v1938_v1 }
   0xd   : > { %s2330_s16 = smov (!%p165_p3, %s1560_s16), 255 }
   0xe   : > { %s1712_s23 = sshll.u32 %s2330_s16, 3  ;;  %s1564_s29 = sshll.u32 %s2330_s16, 2 }
   0xf   : > { %702 = vmatpush1.bf16.msra.mxu0 %v1820_v3  ;;  %1795 = vmatpush1.bf16.msra.mxu1 %v1820_v3  ;;  %s1996_s28 = scalar_lea.vmem %s2325_s0, %s1712_s23  ;;  %s2132_s4 = scalar_lea.vmem %s2328_s3, %s1564_s29 }
  0x10   : > { %703 = vmatprep.subr.bf16.mxu0 %v1938_v1  ;;  %1780 = vmatprep.subr.bf16.mxu1 %v1938_v1  ;;  %v1836_v6 = vld [vmem:[%s1996_s28 + $0x4] ss:$8 sps:$4 sm:$0xff]   ;;  %v1834_v19 = vld [vmem:[%s1996_s28] ss:$8 sps:$4 sm:$0xff]   ;;  %v1840_v21 = vld [vmem:[%s1996_s28 + $0x14] ss:$8 sps:$4 sm:$0xff]  }
  0x11   : > { %v1839_v8 = vld [vmem:[%s1996_s28 + $0x104] ss:$8 sps:$4 sm:$0xff]   ;;  %729 = vmatprep.mubr.bf16.mxu0 %v1836_v6  ;;  %v1837_v20 = vld [vmem:[%s1996_s28 + $0x100] ss:$8 sps:$4 sm:$0xff]   ;;  %v1842_v22 = vld [vmem:[%s1996_s28 + $0x114] ss:$8 sps:$4 sm:$0xff]  }
  0x12   : > { %857 = vmatprep.mubr.bf16.mxu1 %v1839_v8  ;;  %v1844_v23 = vld [vmem:[%s1996_s28 + $0x10] ss:$8 sps:$4 sm:$0xff]   ;;  %v1846_v25 = vld [vmem:[%s1996_s28 + $0x24] ss:$8 sps:$4 sm:$0xff]   ;;  %v1850_v27 = vld [vmem:[%s1996_s28 + $0x20] ss:$8 sps:$4 sm:$0xff]  }
  0x13   : > { %704 = vmatpush1.bf16.msra.mxu0 %v1821_v4  ;;  %1796 = vmatpush1.bf16.msra.mxu1 %v1821_v4  ;;  %v1845_v24 = vld [vmem:[%s1996_s28 + $0x110] ss:$8 sps:$4 sm:$0xff]   ;;  %v1848_v26 = vld [vmem:[%s1996_s28 + $0x124] ss:$8 sps:$4 sm:$0xff]   ;;  %v1851_v28 = vld [vmem:[%s1996_s28 + $0x120] ss:$8 sps:$4 sm:$0xff]  }
  0x14   : > { %705 = vmatprep.subr.bf16.mxu0 %v1938_v1  ;;  %1781 = vmatprep.subr.bf16.mxu1 %v1938_v1  ;;  %v1852_v29 = vld [vmem:[%s1996_s28 + $0x34] ss:$8 sps:$4 sm:$0xff]   ;;  %v1856_v31 = vld [vmem:[%s1996_s28 + $0x30] ss:$8 sps:$4 sm:$0xff]   ;;  %v1858_v33 = vld [vmem:[%s1996_s28 + $0x44] ss:$8 sps:$4 sm:$0xff]  }
  0x15   : > { %v1854_v30 = vld [vmem:[%s1996_s28 + $0x134] ss:$8 sps:$4 sm:$0xff]   ;;  %v1857_v32 = vld [vmem:[%s1996_s28 + $0x130] ss:$8 sps:$4 sm:$0xff]   ;;  %v1860_v34 = vld [vmem:[%s1996_s28 + $0x144] ss:$8 sps:$4 sm:$0xff]  }
  0x16   : > { %v1862_v35 = vld [vmem:[%s1996_s28 + $0x40] ss:$8 sps:$4 sm:$0xff]   ;;  %v1864_v37 = vld [vmem:[%s1996_s28 + $0x54] ss:$8 sps:$4 sm:$0xff]   ;;  %v1868_v39 = vld [vmem:[%s1996_s28 + $0x50] ss:$8 sps:$4 sm:$0xff]  }
  0x17   : > { %706 = vmatpush1.bf16.msra.mxu0 %v1822_v5  ;;  %1797 = vmatpush1.bf16.msra.mxu1 %v1822_v5  ;;  %v1863_v36 = vld [vmem:[%s1996_s28 + $0x140] ss:$8 sps:$4 sm:$0xff]   ;;  %v1866_v38 = vld [vmem:[%s1996_s28 + $0x154] ss:$8 sps:$4 sm:$0xff]   ;;  %v1869_v40 = vld [vmem:[%s1996_s28 + $0x150] ss:$8 sps:$4 sm:$0xff]  }
  0x18   : > { %707 = vmatprep.subr.bf16.mxu0 %v1938_v1  ;;  %1782 = vmatprep.subr.bf16.mxu1 %v1938_v1  ;;  %v1870_v41 = vld [vmem:[%s1996_s28 + $0x64] ss:$8 sps:$4 sm:$0xff]   ;;  %v1874_v43 = vld [vmem:[%s1996_s28 + $0x60] ss:$8 sps:$4 sm:$0xff]   ;;  %v1876_v45 = vld [vmem:[%s1996_s28 + $0x74] ss:$8 sps:$4 sm:$0xff]  }
  0x19   : > { %v1872_v42 = vld [vmem:[%s1996_s28 + $0x164] ss:$8 sps:$4 sm:$0xff]   ;;  %v1875_v44 = vld [vmem:[%s1996_s28 + $0x160] ss:$8 sps:$4 sm:$0xff]   ;;  %v1878_v46 = vld [vmem:[%s1996_s28 + $0x174] ss:$8 sps:$4 sm:$0xff]  }
  0x1a   : > { %v1880_v47 = vld [vmem:[%s1996_s28 + $0x70] ss:$8 sps:$4 sm:$0xff]   ;;  %v1882_v49 = vld [vmem:[%s1996_s28 + $0x84] ss:$8 sps:$4 sm:$0xff]   ;;  %v1886_v51 = vld [vmem:[%s1996_s28 + $0x80] ss:$8 sps:$4 sm:$0xff]  }
  0x1b   : > { %708 = vmatpush1.bf16.msra.mxu0 %v1823_v7  ;;  %1798 = vmatpush1.bf16.msra.mxu1 %v1823_v7  ;;  %v1881_v48 = vld [vmem:[%s1996_s28 + $0x170] ss:$8 sps:$4 sm:$0xff]   ;;  %v1884_v50 = vld [vmem:[%s1996_s28 + $0x184] ss:$8 sps:$4 sm:$0xff]   ;;  %v1887_v52 = vld [vmem:[%s1996_s28 + $0x180] ss:$8 sps:$4 sm:$0xff]  }
  0x1c   : > { %709 = vmatprep.subr.bf16.mxu0 %v1938_v1  ;;  %1783 = vmatprep.subr.bf16.mxu1 %v1938_v1  ;;  %v1888_v53 = vld [vmem:[%s1996_s28 + $0x94] ss:$8 sps:$4 sm:$0xff]   ;;  %v1892_v55 = vld [vmem:[%s1996_s28 + $0x90] ss:$8 sps:$4 sm:$0xff]   ;;  %v1894_v57 = vld [vmem:[%s1996_s28 + $0xa4] ss:$8 sps:$4 sm:$0xff]  }
  0x1d   : > { %v1890_v54 = vld [vmem:[%s1996_s28 + $0x194] ss:$8 sps:$4 sm:$0xff]   ;;  %v1893_v56 = vld [vmem:[%s1996_s28 + $0x190] ss:$8 sps:$4 sm:$0xff]   ;;  %v1896_v58 = vld [vmem:[%s1996_s28 + $0x1a4] ss:$8 sps:$4 sm:$0xff]  }
  0x1e   : > { %v1898_v59 = vld [vmem:[%s1996_s28 + $0xa0] ss:$8 sps:$4 sm:$0xff]   ;;  %v1900_v61 = vld [vmem:[%s1996_s28 + $0xb4] ss:$8 sps:$4 sm:$0xff]   ;;  %v1904_v63 = vld [vmem:[%s1996_s28 + $0xb0] ss:$8 sps:$4 sm:$0xff]  }
  0x1f   : > { %710 = vmatpush1.bf16.msra.mxu0 %v1824_v9  ;;  %1799 = vmatpush1.bf16.msra.mxu1 %v1824_v9  ;;  %v1899_v60 = vld [vmem:[%s1996_s28 + $0x1a0] ss:$8 sps:$4 sm:$0xff]   ;;  %v1902_v62 = vld [vmem:[%s1996_s28 + $0x1b4] ss:$8 sps:$4 sm:$0xff]   ;;  %v1905_v0 = vld [vmem:[%s1996_s28 + $0x1b0] ss:$8 sps:$4 sm:$0xff]  }
  0x20   : > { %711 = vmatprep.subr.bf16.mxu0 %v1938_v1  ;;  %1784 = vmatprep.subr.bf16.mxu1 %v1938_v1  ;;  %v1908_v2 = vld [vmem:[%s1996_s28 + $0x1c4] ss:$8 sps:$4 sm:$0xff]   ;;  %v1910_v3 = vld [vmem:[%s1996_s28 + $0xc0] ss:$8 sps:$4 sm:$0xff]   ;;  %v1912_v5 = vld [vmem:[%s1996_s28 + $0xd4] ss:$8 sps:$4 sm:$0xff]  }
  0x21   : > { %v1911_v4 = vld [vmem:[%s1996_s28 + $0x1c0] ss:$8 sps:$4 sm:$0xff]   ;;  %v1914_v6 = vld [vmem:[%s1996_s28 + $0x1d4] ss:$8 sps:$4 sm:$0xff]   ;;  %v1916_v7 = vld [vmem:[%s1996_s28 + $0xd0] ss:$8 sps:$4 sm:$0xff]  }
  0x22   : > { %v1917_v8 = vld [vmem:[%s1996_s28 + $0x1d0] ss:$8 sps:$4 sm:$0xff]   ;;  %v1918_v9 = vld [vmem:[%s1996_s28 + $0xe4] ss:$8 sps:$4 sm:$0xff]  }
  0x23   : > { %712 = vmatpush1.bf16.msra.mxu0 %v1825_v10  ;;  %1800 = vmatpush1.bf16.msra.mxu1 %v1825_v10  ;;  %v1920_v10 = vld [vmem:[%s1996_s28 + $0x1e4] ss:$8 sps:$4 sm:$0xff]  }
  0x24   : > { %713 = vmatprep.subr.bf16.mxu0 %v1938_v1  ;;  %1785 = vmatprep.subr.bf16.mxu1 %v1938_v1 }
  0x27   : > { %714 = vmatpush1.bf16.msra.mxu0 %v1826_v11  ;;  %1801 = vmatpush1.bf16.msra.mxu1 %v1826_v11  ;;  %v1922_v11 = vld [vmem:[%s1996_s28 + $0xe0] ss:$8 sps:$4 sm:$0xff]  }
  0x28   : > { %715 = vmatprep.subr.bf16.mxu0 %v1938_v1  ;;  %1786 = vmatprep.subr.bf16.mxu1 %v1938_v1 }
  0x2b   : > { %716 = vmatpush1.bf16.msra.mxu0 %v1827_v12  ;;  %1802 = vmatpush1.bf16.msra.mxu1 %v1827_v12  ;;  %v1923_v12 = vld [vmem:[%s1996_s28 + $0x1e0] ss:$8 sps:$4 sm:$0xff]  }
  0x2c   : > { %717 = vmatprep.subr.bf16.mxu0 %v1938_v1  ;;  %1787 = vmatprep.subr.bf16.mxu1 %v1938_v1 }
  0x2f   : > { %718 = vmatpush1.bf16.msra.mxu0 %v1828_v13  ;;  %1803 = vmatpush1.bf16.msra.mxu1 %v1828_v13  ;;  %v1924_v13 = vld [vmem:[%s1996_s28 + $0xf4] ss:$8 sps:$4 sm:$0xff]  }
  0x30   : > { %719 = vmatprep.subr.bf16.mxu0 %v1938_v1  ;;  %1788 = vmatprep.subr.bf16.mxu1 %v1938_v1 }
  0x33   : > { %720 = vmatpush1.bf16.msra.mxu0 %v1829_v14  ;;  %1804 = vmatpush1.bf16.msra.mxu1 %v1829_v14  ;;  %v1926_v14 = vld [vmem:[%s1996_s28 + $0x1f4] ss:$8 sps:$4 sm:$0xff]  }
  0x34   : > { %721 = vmatprep.subr.bf16.mxu0 %v1938_v1  ;;  %1789 = vmatprep.subr.bf16.mxu1 %v1938_v1 }
  0x37   : > { %722 = vmatpush1.bf16.msra.mxu0 %v1830_v15  ;;  %1805 = vmatpush1.bf16.msra.mxu1 %v1830_v15  ;;  %v1928_v15 = vld [vmem:[%s1996_s28 + $0xf0] ss:$8 sps:$4 sm:$0xff]  }
  0x38   : > { %723 = vmatprep.subr.bf16.mxu0 %v1938_v1  ;;  %1790 = vmatprep.subr.bf16.mxu1 %v1938_v1 }
  0x3b   : > { %724 = vmatpush1.bf16.msra.mxu0 %v1831_v16  ;;  %1806 = vmatpush1.bf16.msra.mxu1 %v1831_v16  ;;  %v1929_v16 = vld [vmem:[%s1996_s28 + $0x1f0] ss:$8 sps:$4 sm:$0xff]  }
  0x3c   : > { %725 = vmatprep.subr.bf16.mxu0 %v1938_v1  ;;  %1791 = vmatprep.subr.bf16.mxu1 %v1938_v1 }
  0x3f   : > { %726 = vmatpush1.bf16.msra.mxu0 %v1832_v17  ;;  %1807 = vmatpush1.bf16.msra.mxu1 %v1832_v17  ;;  %v2122_v17 = vld [vmem:[%s2327_s2] ss:$0 sm:$0xff] }
  0x40   : > { %727 = vmatprep.subr.bf16.mxu0 %v1938_v1  ;;  %1792 = vmatprep.subr.bf16.mxu1 %v1938_v1  ;;  %v1906_v1 = vld [vmem:[%s1996_s28 + $0xc4] ss:$8 sps:$4 sm:$0xff]  }
  0x43   : > { %728 = vmatpush1.bf16.msra.mxu0 %v1833_v18  ;;  %1808 = vmatpush1.bf16.msra.mxu1 %v1833_v18 }
  0x46   : > { %730 = vmatmul.mubr.bf16.vlgmr.msra.gmra.mrb[0].mxu0 %v1834_v19  ;;  %858 = vmatmul.mubr.bf16.vlgmr.msra.gmra.mrb[0].mxu1 %v1837_v20 }
  0x47   : > { %737 = vmatprep.mubr.bf16.mxu0 %v1840_v21  ;;  %865 = vmatprep.mubr.bf16.mxu1 %v1842_v22 }
  0x4e   : > { %738 = vmatmul.mubr.bf16.gmra.mrb[4].mxu0 %v1844_v23  ;;  %866 = vmatmul.mubr.bf16.gmra.mrb[4].mxu1 %v1845_v24 }
  0x4f   : > { %745 = vmatprep.mubr.bf16.mxu0 %v1846_v25  ;;  %873 = vmatprep.mubr.bf16.mxu1 %v1848_v26 }
  0x56   : > { %746 = vmatmul.mubr.bf16.gmra.mrb[8].mxu0 %v1850_v27  ;;  %874 = vmatmul.mubr.bf16.gmra.mrb[8].mxu1 %v1851_v28 }
  0x57   : > { %753 = vmatprep.mubr.bf16.mxu0 %v1852_v29  ;;  %881 = vmatprep.mubr.bf16.mxu1 %v1854_v30 }
  0x5e   : > { %754 = vmatmul.mubr.bf16.gmra.mrb[12].mxu0 %v1856_v31  ;;  %882 = vmatmul.mubr.bf16.gmra.mrb[12].mxu1 %v1857_v32 }
  0x5f   : > { %761 = vmatprep.mubr.bf16.mxu0 %v1858_v33  ;;  %889 = vmatprep.mubr.bf16.mxu1 %v1860_v34 }
  0x66   : > { %762 = vmatmul.mubr.bf16.gmra.mrb[16].mxu0 %v1862_v35  ;;  %890 = vmatmul.mubr.bf16.gmra.mrb[16].mxu1 %v1863_v36 }
  0x67   : > { %769 = vmatprep.mubr.bf16.mxu0 %v1864_v37  ;;  %897 = vmatprep.mubr.bf16.mxu1 %v1866_v38 }
  0x6e   : > { %770 = vmatmul.mubr.bf16.gmra.mrb[20].mxu0 %v1868_v39  ;;  %898 = vmatmul.mubr.bf16.gmra.mrb[20].mxu1 %v1869_v40 }
  0x6f   : > { %777 = vmatprep.mubr.bf16.mxu0 %v1870_v41  ;;  %905 = vmatprep.mubr.bf16.mxu1 %v1872_v42 }
  0x76   : > { %778 = vmatmul.mubr.bf16.gmra.mrb[24].mxu0 %v1874_v43  ;;  %906 = vmatmul.mubr.bf16.gmra.mrb[24].mxu1 %v1875_v44 }
  0x77   : > { %785 = vmatprep.mubr.bf16.mxu0 %v1876_v45  ;;  %913 = vmatprep.mubr.bf16.mxu1 %v1878_v46 }
  0x7e   : > { %786 = vmatmul.mubr.bf16.gmra.mrb[28].mxu0 %v1880_v47  ;;  %914 = vmatmul.mubr.bf16.gmra.mrb[28].mxu1 %v1881_v48 }
  0x7f   : > { %793 = vmatprep.mubr.bf16.mxu0 %v1882_v49  ;;  %921 = vmatprep.mubr.bf16.mxu1 %v1884_v50 }
  0x86   : > { %794 = vmatmul.mubr.bf16.gmra.mrb[32].mxu0 %v1886_v51  ;;  %922 = vmatmul.mubr.bf16.gmra.mrb[32].mxu1 %v1887_v52 }
  0x87   : > { %801 = vmatprep.mubr.bf16.mxu0 %v1888_v53  ;;  %929 = vmatprep.mubr.bf16.mxu1 %v1890_v54 }
  0x8e   : > { %802 = vmatmul.mubr.bf16.gmra.mrb[36].mxu0 %v1892_v55  ;;  %930 = vmatmul.mubr.bf16.gmra.mrb[36].mxu1 %v1893_v56 }
  0x8f   : > { %809 = vmatprep.mubr.bf16.mxu0 %v1894_v57  ;;  %937 = vmatprep.mubr.bf16.mxu1 %v1896_v58 }
  0x96   : > { %810 = vmatmul.mubr.bf16.gmra.mrb[40].mxu0 %v1898_v59  ;;  %938 = vmatmul.mubr.bf16.gmra.mrb[40].mxu1 %v1899_v60 }
  0x97   : > { %817 = vmatprep.mubr.bf16.mxu0 %v1900_v61  ;;  %945 = vmatprep.mubr.bf16.mxu1 %v1902_v62 }
  0x9e   : > { %818 = vmatmul.mubr.bf16.gmra.mrb[44].mxu0 %v1904_v63  ;;  %946 = vmatmul.mubr.bf16.gmra.mrb[44].mxu1 %v1905_v0 }
  0x9f   : > { %825 = vmatprep.mubr.bf16.mxu0 %v1906_v1  ;;  %953 = vmatprep.mubr.bf16.mxu1 %v1908_v2 }
  0xa6   : > { %826 = vmatmul.mubr.bf16.gmra.mrb[48].mxu0 %v1910_v3  ;;  %954 = vmatmul.mubr.bf16.gmra.mrb[48].mxu1 %v1911_v4 }
  0xa7   : > { %833 = vmatprep.mubr.bf16.mxu0 %v1912_v5  ;;  %961 = vmatprep.mubr.bf16.mxu1 %v1914_v6 }
  0xae   : > { %834 = vmatmul.mubr.bf16.gmra.mrb[52].mxu0 %v1916_v7  ;;  %962 = vmatmul.mubr.bf16.gmra.mrb[52].mxu1 %v1917_v8 }
  0xaf   : > { %841 = vmatprep.mubr.bf16.mxu0 %v1918_v9  ;;  %969 = vmatprep.mubr.bf16.mxu1 %v1920_v10 }
  0xb6   : > { %842 = vmatmul.mubr.bf16.gmra.mrb[56].mxu0 %v1922_v11  ;;  %970 = vmatmul.mubr.bf16.gmra.mrb[56].mxu1 %v1923_v12 }
  0xb7   : > { %849 = vmatprep.mubr.bf16.mxu0 %v1924_v13  ;;  %977 = vmatprep.mubr.bf16.mxu1 %v1926_v14 }
  0xbe   : > { %850 = vmatmul.mubr.bf16.gmra.mrb[60].mxu0 %v1928_v15  ;;  %978 = vmatmul.mubr.bf16.gmra.mrb[60].mxu1 %v1929_v16 }
 0x119   : > { %v731_v18 = vpop.f32.mrb[0].mxu0  ;;  %v859_v19 = vpop.f32.mrb[0].mxu1 }
 0x11a   : > { %v732_v20 = vadd.f32 %v2122_v17, %v731_v18  ;;  %v860_v21 = vadd.f32 %v2122_v17, %v859_v19  ;;  %v733_v22 = vpop.f32.mrb[1].mxu0  ;;  %v861_v23 = vpop.f32.mrb[1].mxu1 }
 0x11b   : > { %v734_v24 = vpop.f32.mrb[2].mxu0  ;;  %v862_v25 = vpop.f32.mrb[2].mxu1 }
 0x11c   : > { %vm986_vm0 = vcmp.ge.f32.partialorder %v732_v20, 0.0  ;;  %v1050_v26 = vmul.f32 0.2, %v732_v20  ;;  %vm1018_vm1 = vcmp.ge.f32.partialorder %v860_v21, 0.0  ;;  %v1082_v27 = vmul.f32 0.2, %v860_v21 }
 0x11d   : > { %v735_v28 = vadd.f32 %v2122_v17, %v734_v24  ;;  %v863_v29 = vadd.f32 %v2122_v17, %v862_v25  ;;  %v736_v30 = vpop.f32.mrb[3].mxu0  ;;  %v864_v31 = vpop.f32.mrb[3].mxu1 }
 0x11e   : > { %v1114_v32 = vsel %vm986_vm0, %v732_v20, %v1050_v26  ;;  %v1146_v33 = vsel %vm1018_vm1, %v860_v21, %v1082_v27 }
 0x11f   : > { %v1713_v34 = vpack.c.bf16 %v1114_v32, %v1114_v32  ;;  %v1745_v35 = vpack.c.bf16 %v1146_v33, %v1146_v33  ;;  %vm987_vm3 = vcmp.ge.f32.partialorder %v735_v28, 0.0  ;;  %v1051_v36 = vmul.f32 0.2, %v735_v28 }
 0x120   : > { %vm1019_vm4 = vcmp.ge.f32.partialorder %v863_v29, 0.0  ;;  %v1083_v37 = vmul.f32 0.2, %v863_v29 }
 0x121   : > { %1435 = vst.msk [vmem:[%s2132_s4] sm:$0xf] %vm1434_vm2, %v1713_v34  ;;  %1467 = vst.msk [vmem:[%s2132_s4 + $0x80] sm:$0xf] %vm1434_vm2, %v1745_v35  ;;  %v1115_v38 = vsel %vm987_vm3, %v735_v28, %v1051_v36  ;;  %v739_v39 = vpop.f32.mrb[4].mxu0  ;;  %v867_v40 = vpop.f32.mrb[4].mxu1 }
 0x122   : > { %v1714_v41 = vpack.c.bf16 %v1115_v38, %v1115_v38  ;;  %v1147_v42 = vsel %vm1019_vm4, %v863_v29, %v1083_v37  ;;  %v740_v43 = vadd.f32 %v2122_v17, %v739_v39  ;;  %v868_v44 = vadd.f32 %v2122_v17, %v867_v40  ;;  %v741_v45 = vpop.f32.mrb[5].mxu0  ;;  %v869_v46 = vpop.f32.mrb[5].mxu1 }
 0x123   : > { %v1746_v47 = vpack.c.bf16 %v1147_v42, %v1147_v42  ;;  %v742_v48 = vpop.f32.mrb[6].mxu0  ;;  %v870_v49 = vpop.f32.mrb[6].mxu1 }
 0x124   : > { %1436 = vst.msk [vmem:[%s2132_s4 + $0x4] sm:$0xf] %vm1434_vm2, %v1714_v41  ;;  %vm988_vm5 = vcmp.ge.f32.partialorder %v740_v43, 0.0  ;;  %v1052_v50 = vmul.f32 0.2, %v740_v43  ;;  %vm1020_vm6 = vcmp.ge.f32.partialorder %v868_v44, 0.0  ;;  %v743_v52 = vadd.f32 %v2122_v17, %v742_v48 }
 0x125   : > { %v1084_v51 = vmul.f32 0.2, %v868_v44  ;;  %1468 = vst.msk [vmem:[%s2132_s4 + $0x84] sm:$0xf] %vm1434_vm2, %v1746_v47  ;;  %v871_v53 = vadd.f32 %v2122_v17, %v870_v49  ;;  %v744_v54 = vpop.f32.mrb[7].mxu0  ;;  %v872_v55 = vpop.f32.mrb[7].mxu1 }
 0x126   : > { %v1116_v56 = vsel %vm988_vm5, %v740_v43, %v1052_v50  ;;  %vm989_vm7 = vcmp.ge.f32.partialorder %v743_v52, 0.0  ;;  %v1053_v60 = vmul.f32 0.2, %v743_v52 }
 0x127   : > { %v1148_v57 = vsel %vm1020_vm6, %v868_v44, %v1084_v51  ;;  %v1715_v58 = vpack.c.bf16 %v1116_v56, %v1116_v56  ;;  %vm1021_vm8 = vcmp.ge.f32.partialorder %v871_v53, 0.0  ;;  %v1085_v61 = vmul.f32 0.2, %v871_v53 }
 0x128   : > { %v1747_v59 = vpack.c.bf16 %v1148_v57, %v1148_v57  ;;  %v1117_v62 = vsel %vm989_vm7, %v743_v52, %v1053_v60 }
 0x129   : > { %1437 = vst.msk [vmem:[%s2132_s4 + $0x8] sm:$0xf] %vm1434_vm2, %v1715_v58  ;;  %v747_v63 = vpop.f32.mrb[8].mxu0  ;;  %v875_v0 = vpop.f32.mrb[8].mxu1  ;;  %v1716_v1 = vpack.c.bf16 %v1117_v62, %v1117_v62  ;;  %v1149_v2 = vsel %vm1021_vm8, %v871_v53, %v1085_v61 }
 0x12a   : > { %1469 = vst.msk [vmem:[%s2132_s4 + $0x88] sm:$0xf] %vm1434_vm2, %v1747_v59  ;;  %v748_v3 = vadd.f32 %v2122_v17, %v747_v63  ;;  %v876_v4 = vadd.f32 %v2122_v17, %v875_v0  ;;  %v749_v5 = vpop.f32.mrb[9].mxu0  ;;  %v877_v6 = vpop.f32.mrb[9].mxu1  ;;  %v1748_v7 = vpack.c.bf16 %v1149_v2, %v1149_v2 }
 0x12b   : > { %v750_v8 = vpop.f32.mrb[10].mxu0  ;;  %v878_v9 = vpop.f32.mrb[10].mxu1  ;;  %1438 = vst.msk [vmem:[%s2132_s4 + $0xc] sm:$0xf] %vm1434_vm2, %v1716_v1 }
 0x12c   : > { %vm990_vm9 = vcmp.ge.f32.partialorder %v748_v3, 0.0  ;;  %v1054_v10 = vmul.f32 0.2, %v748_v3  ;;  %vm1022_vm10 = vcmp.ge.f32.partialorder %v876_v4, 0.0  ;;  %v1086_v11 = vmul.f32 0.2, %v876_v4 }
 0x12d   : > { %1470 = vst.msk [vmem:[%s2132_s4 + $0x8c] sm:$0xf] %vm1434_vm2, %v1748_v7  ;;  %v751_v12 = vadd.f32 %v2122_v17, %v750_v8  ;;  %v879_v13 = vadd.f32 %v2122_v17, %v878_v9  ;;  %v752_v14 = vpop.f32.mrb[11].mxu0  ;;  %v880_v15 = vpop.f32.mrb[11].mxu1 }
 0x12e   : > { %v1118_v16 = vsel %vm990_vm9, %v748_v3, %v1054_v10  ;;  %v1150_v18 = vsel %vm1022_vm10, %v876_v4, %v1086_v11 }
 0x12f   : > { %v1717_v19 = vpack.c.bf16 %v1118_v16, %v1118_v16  ;;  %v1749_v20 = vpack.c.bf16 %v1150_v18, %v1150_v18  ;;  %vm991_vm11 = vcmp.ge.f32.partialorder %v751_v12, 0.0  ;;  %v1055_v21 = vmul.f32 0.2, %v751_v12 }
 0x130   : > { %vm1023_vm12 = vcmp.ge.f32.partialorder %v879_v13, 0.0  ;;  %v1087_v22 = vmul.f32 0.2, %v879_v13 }
 0x131   : > { %1439 = vst.msk [vmem:[%s2132_s4 + $0x10] sm:$0xf] %vm1434_vm2, %v1717_v19  ;;  %1471 = vst.msk [vmem:[%s2132_s4 + $0x90] sm:$0xf] %vm1434_vm2, %v1749_v20  ;;  %v1119_v23 = vsel %vm991_vm11, %v751_v12, %v1055_v21  ;;  %v755_v24 = vpop.f32.mrb[12].mxu0  ;;  %v883_v25 = vpop.f32.mrb[12].mxu1 }
 0x132   : > { %v1718_v26 = vpack.c.bf16 %v1119_v23, %v1119_v23  ;;  %v1151_v27 = vsel %vm1023_vm12, %v879_v13, %v1087_v22  ;;  %v756_v28 = vadd.f32 %v2122_v17, %v755_v24  ;;  %v884_v29 = vadd.f32 %v2122_v17, %v883_v25  ;;  %v757_v30 = vpop.f32.mrb[13].mxu0  ;;  %v885_v31 = vpop.f32.mrb[13].mxu1 }
 0x133   : > { %v1750_v32 = vpack.c.bf16 %v1151_v27, %v1151_v27  ;;  %v758_v33 = vpop.f32.mrb[14].mxu0  ;;  %v886_v34 = vpop.f32.mrb[14].mxu1 }
 0x134   : > { %1440 = vst.msk [vmem:[%s2132_s4 + $0x14] sm:$0xf] %vm1434_vm2, %v1718_v26  ;;  %vm992_vm13 = vcmp.ge.f32.partialorder %v756_v28, 0.0  ;;  %v1056_v35 = vmul.f32 0.2, %v756_v28  ;;  %vm1024_vm14 = vcmp.ge.f32.partialorder %v884_v29, 0.0  ;;  %v759_v37 = vadd.f32 %v2122_v17, %v758_v33 }
 0x135   : > { %v1088_v36 = vmul.f32 0.2, %v884_v29  ;;  %1472 = vst.msk [vmem:[%s2132_s4 + $0x94] sm:$0xf] %vm1434_vm2, %v1750_v32  ;;  %v887_v38 = vadd.f32 %v2122_v17, %v886_v34  ;;  %v760_v39 = vpop.f32.mrb[15].mxu0  ;;  %v888_v40 = vpop.f32.mrb[15].mxu1 }
 0x136   : > { %v1120_v41 = vsel %vm992_vm13, %v756_v28, %v1056_v35  ;;  %vm993_vm15 = vcmp.ge.f32.partialorder %v759_v37, 0.0  ;;  %v1057_v45 = vmul.f32 0.2, %v759_v37 }
 0x137   : > { %v1152_v42 = vsel %vm1024_vm14, %v884_v29, %v1088_v36  ;;  %v1719_v43 = vpack.c.bf16 %v1120_v41, %v1120_v41  ;;  %vm1025_vm0 = vcmp.ge.f32.partialorder %v887_v38, 0.0  ;;  %v1089_v46 = vmul.f32 0.2, %v887_v38 }
 0x138   : > { %v1751_v44 = vpack.c.bf16 %v1152_v42, %v1152_v42  ;;  %v1121_v47 = vsel %vm993_vm15, %v759_v37, %v1057_v45 }
 0x139   : > { %1441 = vst.msk [vmem:[%s2132_s4 + $0x18] sm:$0xf] %vm1434_vm2, %v1719_v43  ;;  %v763_v48 = vpop.f32.mrb[16].mxu0  ;;  %v891_v49 = vpop.f32.mrb[16].mxu1  ;;  %v1720_v50 = vpack.c.bf16 %v1121_v47, %v1121_v47  ;;  %v1153_v51 = vsel %vm1025_vm0, %v887_v38, %v1089_v46 }
 0x13a   : > { %1473 = vst.msk [vmem:[%s2132_s4 + $0x98] sm:$0xf] %vm1434_vm2, %v1751_v44  ;;  %v764_v52 = vadd.f32 %v2122_v17, %v763_v48  ;;  %v892_v53 = vadd.f32 %v2122_v17, %v891_v49  ;;  %v765_v54 = vpop.f32.mrb[17].mxu0  ;;  %v893_v55 = vpop.f32.mrb[17].mxu1  ;;  %v1752_v56 = vpack.c.bf16 %v1153_v51, %v1153_v51 }
 0x13b   : > { %v766_v57 = vpop.f32.mrb[18].mxu0  ;;  %v894_v58 = vpop.f32.mrb[18].mxu1  ;;  %1442 = vst.msk [vmem:[%s2132_s4 + $0x1c] sm:$0xf] %vm1434_vm2, %v1720_v50 }
 0x13c   : > { %vm994_vm1 = vcmp.ge.f32.partialorder %v764_v52, 0.0  ;;  %v1058_v59 = vmul.f32 0.2, %v764_v52  ;;  %vm1026_vm3 = vcmp.ge.f32.partialorder %v892_v53, 0.0  ;;  %v1090_v60 = vmul.f32 0.2, %v892_v53 }
 0x13d   : > { %1474 = vst.msk [vmem:[%s2132_s4 + $0x9c] sm:$0xf] %vm1434_vm2, %v1752_v56  ;;  %v767_v61 = vadd.f32 %v2122_v17, %v766_v57  ;;  %v895_v62 = vadd.f32 %v2122_v17, %v894_v58  ;;  %v768_v63 = vpop.f32.mrb[19].mxu0  ;;  %v896_v0 = vpop.f32.mrb[19].mxu1 }
 0x13e   : > { %v1122_v1 = vsel %vm994_vm1, %v764_v52, %v1058_v59  ;;  %v1154_v2 = vsel %vm1026_vm3, %v892_v53, %v1090_v60 }
 0x13f   : > { %v1721_v3 = vpack.c.bf16 %v1122_v1, %v1122_v1  ;;  %v1753_v4 = vpack.c.bf16 %v1154_v2, %v1154_v2  ;;  %vm995_vm4 = vcmp.ge.f32.partialorder %v767_v61, 0.0  ;;  %v1059_v5 = vmul.f32 0.2, %v767_v61 }
 0x140   : > { %vm1027_vm5 = vcmp.ge.f32.partialorder %v895_v62, 0.0  ;;  %v1091_v6 = vmul.f32 0.2, %v895_v62 }
 0x141   : > { %1443 = vst.msk [vmem:[%s2132_s4 + $0x20] sm:$0xf] %vm1434_vm2, %v1721_v3  ;;  %1475 = vst.msk [vmem:[%s2132_s4 + $0xa0] sm:$0xf] %vm1434_vm2, %v1753_v4  ;;  %v1123_v7 = vsel %vm995_vm4, %v767_v61, %v1059_v5  ;;  %v771_v8 = vpop.f32.mrb[20].mxu0  ;;  %v899_v9 = vpop.f32.mrb[20].mxu1 }
 0x142   : > { %v1722_v10 = vpack.c.bf16 %v1123_v7, %v1123_v7  ;;  %v1155_v11 = vsel %vm1027_vm5, %v895_v62, %v1091_v6  ;;  %v772_v12 = vadd.f32 %v2122_v17, %v771_v8  ;;  %v900_v13 = vadd.f32 %v2122_v17, %v899_v9  ;;  %v773_v14 = vpop.f32.mrb[21].mxu0  ;;  %v901_v15 = vpop.f32.mrb[21].mxu1 }
 0x143   : > { %v1754_v16 = vpack.c.bf16 %v1155_v11, %v1155_v11  ;;  %v774_v18 = vpop.f32.mrb[22].mxu0  ;;  %v902_v19 = vpop.f32.mrb[22].mxu1 }
 0x144   : > { %1444 = vst.msk [vmem:[%s2132_s4 + $0x24] sm:$0xf] %vm1434_vm2, %v1722_v10  ;;  %vm996_vm6 = vcmp.ge.f32.partialorder %v772_v12, 0.0  ;;  %v1060_v20 = vmul.f32 0.2, %v772_v12  ;;  %vm1028_vm7 = vcmp.ge.f32.partialorder %v900_v13, 0.0  ;;  %v775_v22 = vadd.f32 %v2122_v17, %v774_v18 }
 0x145   : > { %v1092_v21 = vmul.f32 0.2, %v900_v13  ;;  %1476 = vst.msk [vmem:[%s2132_s4 + $0xa4] sm:$0xf] %vm1434_vm2, %v1754_v16  ;;  %v903_v23 = vadd.f32 %v2122_v17, %v902_v19  ;;  %v776_v24 = vpop.f32.mrb[23].mxu0  ;;  %v904_v25 = vpop.f32.mrb[23].mxu1 }
 0x146   : > { %v1124_v26 = vsel %vm996_vm6, %v772_v12, %v1060_v20  ;;  %vm997_vm8 = vcmp.ge.f32.partialorder %v775_v22, 0.0  ;;  %v1061_v30 = vmul.f32 0.2, %v775_v22 }
 0x147   : > { %v1156_v27 = vsel %vm1028_vm7, %v900_v13, %v1092_v21  ;;  %v1723_v28 = vpack.c.bf16 %v1124_v26, %v1124_v26  ;;  %vm1029_vm9 = vcmp.ge.f32.partialorder %v903_v23, 0.0  ;;  %v1093_v31 = vmul.f32 0.2, %v903_v23 }
 0x148   : > { %v1755_v29 = vpack.c.bf16 %v1156_v27, %v1156_v27  ;;  %v1125_v32 = vsel %vm997_vm8, %v775_v22, %v1061_v30 }
 0x149   : > { %1445 = vst.msk [vmem:[%s2132_s4 + $0x28] sm:$0xf] %vm1434_vm2, %v1723_v28  ;;  %v779_v33 = vpop.f32.mrb[24].mxu0  ;;  %v907_v34 = vpop.f32.mrb[24].mxu1  ;;  %v1724_v35 = vpack.c.bf16 %v1125_v32, %v1125_v32  ;;  %v1157_v36 = vsel %vm1029_vm9, %v903_v23, %v1093_v31 }
 0x14a   : > { %1477 = vst.msk [vmem:[%s2132_s4 + $0xa8] sm:$0xf] %vm1434_vm2, %v1755_v29  ;;  %v780_v37 = vadd.f32 %v2122_v17, %v779_v33  ;;  %v908_v38 = vadd.f32 %v2122_v17, %v907_v34  ;;  %v781_v39 = vpop.f32.mrb[25].mxu0  ;;  %v909_v40 = vpop.f32.mrb[25].mxu1  ;;  %v1756_v41 = vpack.c.bf16 %v1157_v36, %v1157_v36 }
 0x14b   : > { %v782_v42 = vpop.f32.mrb[26].mxu0  ;;  %v910_v43 = vpop.f32.mrb[26].mxu1  ;;  %1446 = vst.msk [vmem:[%s2132_s4 + $0x2c] sm:$0xf] %vm1434_vm2, %v1724_v35 }
 0x14c   : > { %vm998_vm10 = vcmp.ge.f32.partialorder %v780_v37, 0.0  ;;  %v1062_v44 = vmul.f32 0.2, %v780_v37  ;;  %vm1030_vm11 = vcmp.ge.f32.partialorder %v908_v38, 0.0  ;;  %v1094_v45 = vmul.f32 0.2, %v908_v38 }
 0x14d   : > { %1478 = vst.msk [vmem:[%s2132_s4 + $0xac] sm:$0xf] %vm1434_vm2, %v1756_v41  ;;  %v783_v46 = vadd.f32 %v2122_v17, %v782_v42  ;;  %v911_v47 = vadd.f32 %v2122_v17, %v910_v43  ;;  %v784_v48 = vpop.f32.mrb[27].mxu0  ;;  %v912_v49 = vpop.f32.mrb[27].mxu1 }
 0x14e   : > { %v1126_v50 = vsel %vm998_vm10, %v780_v37, %v1062_v44  ;;  %v1158_v51 = vsel %vm1030_vm11, %v908_v38, %v1094_v45 }
 0x14f   : > { %v1725_v52 = vpack.c.bf16 %v1126_v50, %v1126_v50  ;;  %v1757_v53 = vpack.c.bf16 %v1158_v51, %v1158_v51  ;;  %vm999_vm12 = vcmp.ge.f32.partialorder %v783_v46, 0.0  ;;  %v1063_v54 = vmul.f32 0.2, %v783_v46 }
 0x150   : > { %vm1031_vm13 = vcmp.ge.f32.partialorder %v911_v47, 0.0  ;;  %v1095_v55 = vmul.f32 0.2, %v911_v47 }
 0x151   : > { %1447 = vst.msk [vmem:[%s2132_s4 + $0x30] sm:$0xf] %vm1434_vm2, %v1725_v52  ;;  %1479 = vst.msk [vmem:[%s2132_s4 + $0xb0] sm:$0xf] %vm1434_vm2, %v1757_v53  ;;  %v1127_v56 = vsel %vm999_vm12, %v783_v46, %v1063_v54  ;;  %v787_v57 = vpop.f32.mrb[28].mxu0  ;;  %v915_v58 = vpop.f32.mrb[28].mxu1 }
 0x152   : > { %v1726_v59 = vpack.c.bf16 %v1127_v56, %v1127_v56  ;;  %v1159_v60 = vsel %vm1031_vm13, %v911_v47, %v1095_v55  ;;  %v788_v61 = vadd.f32 %v2122_v17, %v787_v57  ;;  %v916_v62 = vadd.f32 %v2122_v17, %v915_v58  ;;  %v789_v63 = vpop.f32.mrb[29].mxu0  ;;  %v917_v0 = vpop.f32.mrb[29].mxu1 }
 0x153   : > { %v1758_v1 = vpack.c.bf16 %v1159_v60, %v1159_v60  ;;  %v790_v2 = vpop.f32.mrb[30].mxu0  ;;  %v918_v3 = vpop.f32.mrb[30].mxu1 }
 0x154   : > { %1448 = vst.msk [vmem:[%s2132_s4 + $0x34] sm:$0xf] %vm1434_vm2, %v1726_v59  ;;  %vm1000_vm14 = vcmp.ge.f32.partialorder %v788_v61, 0.0  ;;  %v1064_v4 = vmul.f32 0.2, %v788_v61  ;;  %vm1032_vm15 = vcmp.ge.f32.partialorder %v916_v62, 0.0  ;;  %v791_v6 = vadd.f32 %v2122_v17, %v790_v2 }
 0x155   : > { %v1096_v5 = vmul.f32 0.2, %v916_v62  ;;  %1480 = vst.msk [vmem:[%s2132_s4 + $0xb4] sm:$0xf] %vm1434_vm2, %v1758_v1  ;;  %v919_v7 = vadd.f32 %v2122_v17, %v918_v3  ;;  %v792_v8 = vpop.f32.mrb[31].mxu0  ;;  %v920_v9 = vpop.f32.mrb[31].mxu1 }
 0x156   : > { %v1128_v10 = vsel %vm1000_vm14, %v788_v61, %v1064_v4  ;;  %vm1001_vm0 = vcmp.ge.f32.partialorder %v791_v6, 0.0  ;;  %v1065_v14 = vmul.f32 0.2, %v791_v6 }
 0x157   : > { %v1160_v11 = vsel %vm1032_vm15, %v916_v62, %v1096_v5  ;;  %v1727_v12 = vpack.c.bf16 %v1128_v10, %v1128_v10  ;;  %vm1033_vm1 = vcmp.ge.f32.partialorder %v919_v7, 0.0  ;;  %v1097_v15 = vmul.f32 0.2, %v919_v7 }
 0x158   : > { %v1759_v13 = vpack.c.bf16 %v1160_v11, %v1160_v11  ;;  %v1129_v16 = vsel %vm1001_vm0, %v791_v6, %v1065_v14 }
 0x159   : > { %1449 = vst.msk [vmem:[%s2132_s4 + $0x38] sm:$0xf] %vm1434_vm2, %v1727_v12  ;;  %v795_v18 = vpop.f32.mrb[32].mxu0  ;;  %v923_v19 = vpop.f32.mrb[32].mxu1  ;;  %v1728_v20 = vpack.c.bf16 %v1129_v16, %v1129_v16  ;;  %v1161_v21 = vsel %vm1033_vm1, %v919_v7, %v1097_v15 }
 0x15a   : > { %1481 = vst.msk [vmem:[%s2132_s4 + $0xb8] sm:$0xf] %vm1434_vm2, %v1759_v13  ;;  %v796_v22 = vadd.f32 %v2122_v17, %v795_v18  ;;  %v924_v23 = vadd.f32 %v2122_v17, %v923_v19  ;;  %v797_v24 = vpop.f32.mrb[33].mxu0  ;;  %v925_v25 = vpop.f32.mrb[33].mxu1  ;;  %v1760_v26 = vpack.c.bf16 %v1161_v21, %v1161_v21 }
 0x15b   : > { %v798_v27 = vpop.f32.mrb[34].mxu0  ;;  %v926_v28 = vpop.f32.mrb[34].mxu1  ;;  %1450 = vst.msk [vmem:[%s2132_s4 + $0x3c] sm:$0xf] %vm1434_vm2, %v1728_v20 }
 0x15c   : > { %vm1002_vm3 = vcmp.ge.f32.partialorder %v796_v22, 0.0  ;;  %v1066_v29 = vmul.f32 0.2, %v796_v22  ;;  %vm1034_vm4 = vcmp.ge.f32.partialorder %v924_v23, 0.0  ;;  %v1098_v30 = vmul.f32 0.2, %v924_v23 }
 0x15d   : > { %1482 = vst.msk [vmem:[%s2132_s4 + $0xbc] sm:$0xf] %vm1434_vm2, %v1760_v26  ;;  %v799_v31 = vadd.f32 %v2122_v17, %v798_v27  ;;  %v927_v32 = vadd.f32 %v2122_v17, %v926_v28  ;;  %v800_v33 = vpop.f32.mrb[35].mxu0  ;;  %v928_v34 = vpop.f32.mrb[35].mxu1 }
 0x15e   : > { %v1130_v35 = vsel %vm1002_vm3, %v796_v22, %v1066_v29  ;;  %v1162_v36 = vsel %vm1034_vm4, %v924_v23, %v1098_v30 }
 0x15f   : > { %v1729_v37 = vpack.c.bf16 %v1130_v35, %v1130_v35  ;;  %v1761_v38 = vpack.c.bf16 %v1162_v36, %v1162_v36  ;;  %vm1003_vm5 = vcmp.ge.f32.partialorder %v799_v31, 0.0  ;;  %v1067_v39 = vmul.f32 0.2, %v799_v31 }
 0x160   : > { %vm1035_vm6 = vcmp.ge.f32.partialorder %v927_v32, 0.0  ;;  %v1099_v40 = vmul.f32 0.2, %v927_v32 }
 0x161   : > { %1451 = vst.msk [vmem:[%s2132_s4 + $0x40] sm:$0xf] %vm1434_vm2, %v1729_v37  ;;  %1483 = vst.msk [vmem:[%s2132_s4 + $0xc0] sm:$0xf] %vm1434_vm2, %v1761_v38  ;;  %v1131_v41 = vsel %vm1003_vm5, %v799_v31, %v1067_v39  ;;  %v803_v42 = vpop.f32.mrb[36].mxu0  ;;  %v931_v43 = vpop.f32.mrb[36].mxu1 }
 0x162   : > { %v1730_v44 = vpack.c.bf16 %v1131_v41, %v1131_v41  ;;  %v1163_v45 = vsel %vm1035_vm6, %v927_v32, %v1099_v40  ;;  %v804_v46 = vadd.f32 %v2122_v17, %v803_v42  ;;  %v932_v47 = vadd.f32 %v2122_v17, %v931_v43  ;;  %v805_v48 = vpop.f32.mrb[37].mxu0  ;;  %v933_v49 = vpop.f32.mrb[37].mxu1 }
 0x163   : > { %v1762_v50 = vpack.c.bf16 %v1163_v45, %v1163_v45  ;;  %v806_v51 = vpop.f32.mrb[38].mxu0  ;;  %v934_v52 = vpop.f32.mrb[38].mxu1 }
 0x164   : > { %1452 = vst.msk [vmem:[%s2132_s4 + $0x44] sm:$0xf] %vm1434_vm2, %v1730_v44  ;;  %vm1004_vm7 = vcmp.ge.f32.partialorder %v804_v46, 0.0  ;;  %v1068_v53 = vmul.f32 0.2, %v804_v46  ;;  %vm1036_vm8 = vcmp.ge.f32.partialorder %v932_v47, 0.0  ;;  %v807_v55 = vadd.f32 %v2122_v17, %v806_v51 }
 0x165   : > { %v1100_v54 = vmul.f32 0.2, %v932_v47  ;;  %1484 = vst.msk [vmem:[%s2132_s4 + $0xc4] sm:$0xf] %vm1434_vm2, %v1762_v50  ;;  %v935_v56 = vadd.f32 %v2122_v17, %v934_v52  ;;  %v808_v57 = vpop.f32.mrb[39].mxu0  ;;  %v936_v58 = vpop.f32.mrb[39].mxu1 }
 0x166   : > { %v1132_v59 = vsel %vm1004_vm7, %v804_v46, %v1068_v53  ;;  %vm1005_vm9 = vcmp.ge.f32.partialorder %v807_v55, 0.0  ;;  %v1069_v63 = vmul.f32 0.2, %v807_v55 }
 0x167   : > { %v1164_v60 = vsel %vm1036_vm8, %v932_v47, %v1100_v54  ;;  %v1731_v61 = vpack.c.bf16 %v1132_v59, %v1132_v59  ;;  %vm1037_vm10 = vcmp.ge.f32.partialorder %v935_v56, 0.0  ;;  %v1101_v0 = vmul.f32 0.2, %v935_v56 }
 0x168   : > { %v1763_v62 = vpack.c.bf16 %v1164_v60, %v1164_v60  ;;  %v1133_v1 = vsel %vm1005_vm9, %v807_v55, %v1069_v63 }
 0x169   : > { %1453 = vst.msk [vmem:[%s2132_s4 + $0x48] sm:$0xf] %vm1434_vm2, %v1731_v61  ;;  %v811_v2 = vpop.f32.mrb[40].mxu0  ;;  %v939_v3 = vpop.f32.mrb[40].mxu1  ;;  %v1732_v4 = vpack.c.bf16 %v1133_v1, %v1133_v1  ;;  %v1165_v5 = vsel %vm1037_vm10, %v935_v56, %v1101_v0 }
 0x16a   : > { %1485 = vst.msk [vmem:[%s2132_s4 + $0xc8] sm:$0xf] %vm1434_vm2, %v1763_v62  ;;  %v812_v6 = vadd.f32 %v2122_v17, %v811_v2  ;;  %v940_v7 = vadd.f32 %v2122_v17, %v939_v3  ;;  %v813_v8 = vpop.f32.mrb[41].mxu0  ;;  %v941_v9 = vpop.f32.mrb[41].mxu1  ;;  %v1764_v10 = vpack.c.bf16 %v1165_v5, %v1165_v5 }
 0x16b   : > { %v814_v11 = vpop.f32.mrb[42].mxu0  ;;  %v942_v12 = vpop.f32.mrb[42].mxu1  ;;  %1454 = vst.msk [vmem:[%s2132_s4 + $0x4c] sm:$0xf] %vm1434_vm2, %v1732_v4 }
 0x16c   : > { %vm1006_vm11 = vcmp.ge.f32.partialorder %v812_v6, 0.0  ;;  %v1070_v13 = vmul.f32 0.2, %v812_v6  ;;  %vm1038_vm12 = vcmp.ge.f32.partialorder %v940_v7, 0.0  ;;  %v1102_v14 = vmul.f32 0.2, %v940_v7 }
 0x16d   : > { %1486 = vst.msk [vmem:[%s2132_s4 + $0xcc] sm:$0xf] %vm1434_vm2, %v1764_v10  ;;  %v815_v15 = vadd.f32 %v2122_v17, %v814_v11  ;;  %v943_v16 = vadd.f32 %v2122_v17, %v942_v12  ;;  %v816_v18 = vpop.f32.mrb[43].mxu0  ;;  %v944_v19 = vpop.f32.mrb[43].mxu1 }
 0x16e   : > { %v1134_v20 = vsel %vm1006_vm11, %v812_v6, %v1070_v13  ;;  %v1166_v21 = vsel %vm1038_vm12, %v940_v7, %v1102_v14 }
 0x16f   : > { %v1733_v22 = vpack.c.bf16 %v1134_v20, %v1134_v20  ;;  %v1765_v23 = vpack.c.bf16 %v1166_v21, %v1166_v21  ;;  %vm1007_vm13 = vcmp.ge.f32.partialorder %v815_v15, 0.0  ;;  %v1071_v24 = vmul.f32 0.2, %v815_v15 }
 0x170   : > { %vm1039_vm14 = vcmp.ge.f32.partialorder %v943_v16, 0.0  ;;  %v1103_v25 = vmul.f32 0.2, %v943_v16 }
 0x171   : > { %1455 = vst.msk [vmem:[%s2132_s4 + $0x50] sm:$0xf] %vm1434_vm2, %v1733_v22  ;;  %1487 = vst.msk [vmem:[%s2132_s4 + $0xd0] sm:$0xf] %vm1434_vm2, %v1765_v23  ;;  %v1135_v26 = vsel %vm1007_vm13, %v815_v15, %v1071_v24  ;;  %v819_v27 = vpop.f32.mrb[44].mxu0  ;;  %v947_v28 = vpop.f32.mrb[44].mxu1 }
 0x172   : > { %v1734_v29 = vpack.c.bf16 %v1135_v26, %v1135_v26  ;;  %v1167_v30 = vsel %vm1039_vm14, %v943_v16, %v1103_v25  ;;  %v820_v31 = vadd.f32 %v2122_v17, %v819_v27  ;;  %v948_v32 = vadd.f32 %v2122_v17, %v947_v28  ;;  %v821_v33 = vpop.f32.mrb[45].mxu0  ;;  %v949_v34 = vpop.f32.mrb[45].mxu1 }
 0x173   : > { %v1766_v35 = vpack.c.bf16 %v1167_v30, %v1167_v30  ;;  %v822_v36 = vpop.f32.mrb[46].mxu0  ;;  %v950_v37 = vpop.f32.mrb[46].mxu1 }
 0x174   : > { %1456 = vst.msk [vmem:[%s2132_s4 + $0x54] sm:$0xf] %vm1434_vm2, %v1734_v29  ;;  %vm1008_vm15 = vcmp.ge.f32.partialorder %v820_v31, 0.0  ;;  %v1072_v38 = vmul.f32 0.2, %v820_v31  ;;  %vm1040_vm0 = vcmp.ge.f32.partialorder %v948_v32, 0.0  ;;  %v823_v40 = vadd.f32 %v2122_v17, %v822_v36 }
 0x175   : > { %v1104_v39 = vmul.f32 0.2, %v948_v32  ;;  %1488 = vst.msk [vmem:[%s2132_s4 + $0xd4] sm:$0xf] %vm1434_vm2, %v1766_v35  ;;  %v951_v41 = vadd.f32 %v2122_v17, %v950_v37  ;;  %v824_v42 = vpop.f32.mrb[47].mxu0  ;;  %v952_v43 = vpop.f32.mrb[47].mxu1 }
 0x176   : > { %v1136_v44 = vsel %vm1008_vm15, %v820_v31, %v1072_v38  ;;  %vm1009_vm1 = vcmp.ge.f32.partialorder %v823_v40, 0.0  ;;  %v1073_v48 = vmul.f32 0.2, %v823_v40 }
 0x177   : > { %v1168_v45 = vsel %vm1040_vm0, %v948_v32, %v1104_v39  ;;  %v1735_v46 = vpack.c.bf16 %v1136_v44, %v1136_v44  ;;  %vm1041_vm3 = vcmp.ge.f32.partialorder %v951_v41, 0.0  ;;  %v1105_v49 = vmul.f32 0.2, %v951_v41 }
 0x178   : > { %v1767_v47 = vpack.c.bf16 %v1168_v45, %v1168_v45  ;;  %v1137_v50 = vsel %vm1009_vm1, %v823_v40, %v1073_v48 }
 0x179   : > { %1457 = vst.msk [vmem:[%s2132_s4 + $0x58] sm:$0xf] %vm1434_vm2, %v1735_v46  ;;  %v827_v51 = vpop.f32.mrb[48].mxu0  ;;  %v955_v52 = vpop.f32.mrb[48].mxu1  ;;  %v1736_v53 = vpack.c.bf16 %v1137_v50, %v1137_v50  ;;  %v1169_v54 = vsel %vm1041_vm3, %v951_v41, %v1105_v49 }
 0x17a   : > { %1489 = vst.msk [vmem:[%s2132_s4 + $0xd8] sm:$0xf] %vm1434_vm2, %v1767_v47  ;;  %v828_v55 = vadd.f32 %v2122_v17, %v827_v51  ;;  %v956_v56 = vadd.f32 %v2122_v17, %v955_v52  ;;  %v829_v57 = vpop.f32.mrb[49].mxu0  ;;  %v957_v58 = vpop.f32.mrb[49].mxu1  ;;  %v1768_v59 = vpack.c.bf16 %v1169_v54, %v1169_v54 }
 0x17b   : > { %v830_v60 = vpop.f32.mrb[50].mxu0  ;;  %v958_v61 = vpop.f32.mrb[50].mxu1  ;;  %1458 = vst.msk [vmem:[%s2132_s4 + $0x5c] sm:$0xf] %vm1434_vm2, %v1736_v53 }
 0x17c   : > { %vm1010_vm4 = vcmp.ge.f32.partialorder %v828_v55, 0.0  ;;  %v1074_v62 = vmul.f32 0.2, %v828_v55  ;;  %vm1042_vm5 = vcmp.ge.f32.partialorder %v956_v56, 0.0  ;;  %v1106_v63 = vmul.f32 0.2, %v956_v56 }
 0x17d   : > { %1490 = vst.msk [vmem:[%s2132_s4 + $0xdc] sm:$0xf] %vm1434_vm2, %v1768_v59  ;;  %v831_v0 = vadd.f32 %v2122_v17, %v830_v60  ;;  %v959_v1 = vadd.f32 %v2122_v17, %v958_v61  ;;  %v832_v2 = vpop.f32.mrb[51].mxu0  ;;  %v960_v3 = vpop.f32.mrb[51].mxu1 }
 0x17e   : > { %v1138_v4 = vsel %vm1010_vm4, %v828_v55, %v1074_v62  ;;  %v1170_v5 = vsel %vm1042_vm5, %v956_v56, %v1106_v63 }
 0x17f   : > { %v1737_v6 = vpack.c.bf16 %v1138_v4, %v1138_v4  ;;  %v1769_v7 = vpack.c.bf16 %v1170_v5, %v1170_v5  ;;  %vm1011_vm6 = vcmp.ge.f32.partialorder %v831_v0, 0.0  ;;  %v1075_v8 = vmul.f32 0.2, %v831_v0 }
 0x180   : > { %vm1043_vm7 = vcmp.ge.f32.partialorder %v959_v1, 0.0  ;;  %v1107_v9 = vmul.f32 0.2, %v959_v1 }
 0x181   : > { %1459 = vst.msk [vmem:[%s2132_s4 + $0x60] sm:$0xf] %vm1434_vm2, %v1737_v6  ;;  %1491 = vst.msk [vmem:[%s2132_s4 + $0xe0] sm:$0xf] %vm1434_vm2, %v1769_v7  ;;  %v1139_v10 = vsel %vm1011_vm6, %v831_v0, %v1075_v8  ;;  %v835_v11 = vpop.f32.mrb[52].mxu0  ;;  %v963_v12 = vpop.f32.mrb[52].mxu1 }
 0x182   : > { %v1738_v13 = vpack.c.bf16 %v1139_v10, %v1139_v10  ;;  %v1171_v14 = vsel %vm1043_vm7, %v959_v1, %v1107_v9  ;;  %v836_v15 = vadd.f32 %v2122_v17, %v835_v11  ;;  %v964_v16 = vadd.f32 %v2122_v17, %v963_v12  ;;  %v837_v18 = vpop.f32.mrb[53].mxu0  ;;  %v965_v19 = vpop.f32.mrb[53].mxu1 }
 0x183   : > { %v1770_v20 = vpack.c.bf16 %v1171_v14, %v1171_v14  ;;  %v838_v21 = vpop.f32.mrb[54].mxu0  ;;  %v966_v22 = vpop.f32.mrb[54].mxu1 }
 0x184   : > { %1460 = vst.msk [vmem:[%s2132_s4 + $0x64] sm:$0xf] %vm1434_vm2, %v1738_v13  ;;  %vm1012_vm8 = vcmp.ge.f32.partialorder %v836_v15, 0.0  ;;  %v1076_v23 = vmul.f32 0.2, %v836_v15  ;;  %vm1044_vm9 = vcmp.ge.f32.partialorder %v964_v16, 0.0  ;;  %v839_v25 = vadd.f32 %v2122_v17, %v838_v21 }
 0x185   : > { %v1108_v24 = vmul.f32 0.2, %v964_v16  ;;  %1492 = vst.msk [vmem:[%s2132_s4 + $0xe4] sm:$0xf] %vm1434_vm2, %v1770_v20  ;;  %v967_v26 = vadd.f32 %v2122_v17, %v966_v22  ;;  %v840_v27 = vpop.f32.mrb[55].mxu0  ;;  %v968_v28 = vpop.f32.mrb[55].mxu1 }
 0x186   : > { %v1140_v29 = vsel %vm1012_vm8, %v836_v15, %v1076_v23  ;;  %vm1013_vm10 = vcmp.ge.f32.partialorder %v839_v25, 0.0  ;;  %v1077_v33 = vmul.f32 0.2, %v839_v25 }
 0x187   : > { %v1172_v30 = vsel %vm1044_vm9, %v964_v16, %v1108_v24  ;;  %v1739_v31 = vpack.c.bf16 %v1140_v29, %v1140_v29  ;;  %vm1045_vm11 = vcmp.ge.f32.partialorder %v967_v26, 0.0  ;;  %v1109_v34 = vmul.f32 0.2, %v967_v26 }
 0x188   : > { %v1771_v32 = vpack.c.bf16 %v1172_v30, %v1172_v30  ;;  %v1141_v35 = vsel %vm1013_vm10, %v839_v25, %v1077_v33 }
 0x189   : > { %1461 = vst.msk [vmem:[%s2132_s4 + $0x68] sm:$0xf] %vm1434_vm2, %v1739_v31  ;;  %v843_v36 = vpop.f32.mrb[56].mxu0  ;;  %v971_v37 = vpop.f32.mrb[56].mxu1  ;;  %v1740_v38 = vpack.c.bf16 %v1141_v35, %v1141_v35  ;;  %v1173_v39 = vsel %vm1045_vm11, %v967_v26, %v1109_v34 }
 0x18a   : > { %1493 = vst.msk [vmem:[%s2132_s4 + $0xe8] sm:$0xf] %vm1434_vm2, %v1771_v32  ;;  %v844_v40 = vadd.f32 %v2122_v17, %v843_v36  ;;  %v972_v41 = vadd.f32 %v2122_v17, %v971_v37  ;;  %v845_v42 = vpop.f32.mrb[57].mxu0  ;;  %v973_v43 = vpop.f32.mrb[57].mxu1  ;;  %v1772_v44 = vpack.c.bf16 %v1173_v39, %v1173_v39 }
 0x18b   : > { %v846_v45 = vpop.f32.mrb[58].mxu0  ;;  %v974_v46 = vpop.f32.mrb[58].mxu1  ;;  %1462 = vst.msk [vmem:[%s2132_s4 + $0x6c] sm:$0xf] %vm1434_vm2, %v1740_v38 }
 0x18c   : > { %vm1014_vm12 = vcmp.ge.f32.partialorder %v844_v40, 0.0  ;;  %v1078_v47 = vmul.f32 0.2, %v844_v40  ;;  %vm1046_vm13 = vcmp.ge.f32.partialorder %v972_v41, 0.0  ;;  %v1110_v48 = vmul.f32 0.2, %v972_v41 }
 0x18d   : > { %1494 = vst.msk [vmem:[%s2132_s4 + $0xec] sm:$0xf] %vm1434_vm2, %v1772_v44  ;;  %v847_v49 = vadd.f32 %v2122_v17, %v846_v45  ;;  %v975_v50 = vadd.f32 %v2122_v17, %v974_v46  ;;  %v848_v51 = vpop.f32.mrb[59].mxu0  ;;  %v976_v52 = vpop.f32.mrb[59].mxu1 }
 0x18e   : > { %v1142_v53 = vsel %vm1014_vm12, %v844_v40, %v1078_v47  ;;  %v1174_v54 = vsel %vm1046_vm13, %v972_v41, %v1110_v48 }
 0x18f   : > { %v1741_v55 = vpack.c.bf16 %v1142_v53, %v1142_v53  ;;  %v1773_v56 = vpack.c.bf16 %v1174_v54, %v1174_v54  ;;  %vm1015_vm14 = vcmp.ge.f32.partialorder %v847_v49, 0.0  ;;  %v1079_v57 = vmul.f32 0.2, %v847_v49 }
 0x190   : > { %vm1047_vm15 = vcmp.ge.f32.partialorder %v975_v50, 0.0  ;;  %v1111_v58 = vmul.f32 0.2, %v975_v50 }
 0x191   : > { %1463 = vst.msk [vmem:[%s2132_s4 + $0x70] sm:$0xf] %vm1434_vm2, %v1741_v55  ;;  %1495 = vst.msk [vmem:[%s2132_s4 + $0xf0] sm:$0xf] %vm1434_vm2, %v1773_v56  ;;  %v1143_v59 = vsel %vm1015_vm14, %v847_v49, %v1079_v57  ;;  %v851_v60 = vpop.f32.mrb[60].mxu0  ;;  %v979_v61 = vpop.f32.mrb[60].mxu1 }
 0x192   : > { %v1742_v62 = vpack.c.bf16 %v1143_v59, %v1143_v59  ;;  %v1175_v63 = vsel %vm1047_vm15, %v975_v50, %v1111_v58  ;;  %v852_v0 = vadd.f32 %v2122_v17, %v851_v60  ;;  %v980_v1 = vadd.f32 %v2122_v17, %v979_v61  ;;  %v853_v2 = vpop.f32.mrb[61].mxu0  ;;  %v981_v3 = vpop.f32.mrb[61].mxu1 }
 0x193   : > { %v1774_v4 = vpack.c.bf16 %v1175_v63, %v1175_v63  ;;  %v854_v5 = vpop.f32.mrb[62].mxu0  ;;  %v982_v6 = vpop.f32.mrb[62].mxu1 }
 0x194   : > { %1464 = vst.msk [vmem:[%s2132_s4 + $0x74] sm:$0xf] %vm1434_vm2, %v1742_v62  ;;  %vm1016_vm0 = vcmp.ge.f32.partialorder %v852_v0, 0.0  ;;  %v1080_v7 = vmul.f32 0.2, %v852_v0  ;;  %vm1048_vm1 = vcmp.ge.f32.partialorder %v980_v1, 0.0  ;;  %v855_v9 = vadd.f32 %v2122_v17, %v854_v5 }
 0x195   : > { %v1112_v8 = vmul.f32 0.2, %v980_v1  ;;  %1496 = vst.msk [vmem:[%s2132_s4 + $0xf4] sm:$0xf] %vm1434_vm2, %v1774_v4  ;;  %v983_v10 = vadd.f32 %v2122_v17, %v982_v6  ;;  %v856_v11 = vpop.f32.mrb[63].mxu0  ;;  %v984_v12 = vpop.f32.mrb[63].mxu1 }
 0x196   : > { %v1144_v13 = vsel %vm1016_vm0, %v852_v0, %v1080_v7  ;;  %vm1017_vm3 = vcmp.ge.f32.partialorder %v855_v9, 0.0  ;;  %v1081_v18 = vmul.f32 0.2, %v855_v9 }
 0x197   : > { %v1176_v14 = vsel %vm1048_vm1, %v980_v1, %v1112_v8  ;;  %v1743_v15 = vpack.c.bf16 %v1144_v13, %v1144_v13  ;;  %vm1049_vm4 = vcmp.ge.f32.partialorder %v983_v10, 0.0  ;;  %v1113_v19 = vmul.f32 0.2, %v983_v10 }
 0x198   : > { %v1775_v16 = vpack.c.bf16 %v1176_v14, %v1176_v14  ;;  %v1145_v20 = vsel %vm1017_vm3, %v855_v9, %v1081_v18 }
 0x199   : > { %1465 = vst.msk [vmem:[%s2132_s4 + $0x78] sm:$0xf] %vm1434_vm2, %v1743_v15  ;;  %v1744_v21 = vpack.c.bf16 %v1145_v20, %v1145_v20  ;;  %v1177_v22 = vsel %vm1049_vm4, %v983_v10, %v1113_v19 }
 0x19a   : > { %1497 = vst.msk [vmem:[%s2132_s4 + $0xf8] sm:$0xf] %vm1434_vm2, %v1775_v16  ;;  %v1776_v17 = vpack.c.bf16 %v1177_v22, %v1177_v22 }
 0x19b   : > { %1466 = vst.msk [vmem:[%s2132_s4 + $0x7c] sm:$0xf] %vm1434_vm2, %v1744_v21 }
 0x19c   : > { %1498 = vst.msk [vmem:[%s2132_s4 + $0xfc] sm:$0xf] %vm1434_vm2, %v1776_v17 }
 0x19d PF: > { %s13_s12 = sadd.s32 1, %s1936_s12  }
 0x19e   : > { %p10_p4 = scmp.ge.s32.totalorder %s13_s12, 6  }
 0x1a0   :  { %12 = sbr.rel (!%p10_p4) target bundleno = 1 (0x1), region = 62 }

// kernel: multiclass_discriminator_forward.6
= control target key start
LH: loop header
LB: loop body
LE: loop exit
PB: predicated region body
PF: predicated region fallthrough
CT: control target
= control target key end

     0   :  { %v2784_v0 = vmov 0   ;;  %vm2072_vm1 = vcmask 519168   ;;  %s3647_s1 = inlined_call_operand.vmem [shape: bf16[512,64], index: 1, kind: input, shape index: {}]   ;;  %s3648_s0 = inlined_call_operand.vmem [shape: bf16[512,512], index: 0, kind: input, shape index: {}]   ;;  %s3649_s2 = inlined_call_operand.vmem [shape: f32[1,64], index: 2, kind: input, shape index: {}]   ;;  %s3650_s3 = inlined_call_operand.vmem [shape: bf16[512,64], index: 3, kind: output, shape index: {}]  }
   0x1   :  { %1046 = vmatprep.subr.bf16.mxu1 %v2784_v0  ;;  %1335 = vmatprep.subr.bf16.mxu0 %v2784_v0  ;;  %v2559_v1 = vld [vmem:[%s3647_s1] sm:$0xff]   ;;  %v2561_v3 = vld [vmem:[%s3647_s1 + $0x8] sm:$0xff]   ;;  %v2563_v5 = vld [vmem:[%s3647_s1 + $0x10] sm:$0xff]  }
   0x2   :  { %v2560_v2 = vld [vmem:[%s3647_s1 + $0x80] sm:$0xff]   ;;  %1047 = vmatpush1.bf16.msra.mxu1 %v2559_v1  ;;  %v2562_v4 = vld [vmem:[%s3647_s1 + $0x88] sm:$0xff]   ;;  %v2564_v6 = vld [vmem:[%s3647_s1 + $0x90] sm:$0xff]  }
   0x3   :  { %1336 = vmatpush1.bf16.msra.mxu0 %v2560_v2  ;;  %1048 = vmatprep.subr.bf16.mxu1 %v2784_v0  ;;  %v2565_v7 = vld [vmem:[%s3647_s1 + $0x18] sm:$0xff]   ;;  %v2567_v9 = vld [vmem:[%s3647_s1 + $0x20] sm:$0xff]   ;;  %v2569_v11 = vld [vmem:[%s3647_s1 + $0x28] sm:$0xff]  }
   0x4   :  { %1337 = vmatprep.subr.bf16.mxu0 %v2784_v0  ;;  %v2566_v8 = vld [vmem:[%s3647_s1 + $0x98] sm:$0xff]   ;;  %v2568_v10 = vld [vmem:[%s3647_s1 + $0xa0] sm:$0xff]   ;;  %v2570_v12 = vld [vmem:[%s3647_s1 + $0xa8] sm:$0xff]  }
   0x5   :  { %v2571_v13 = vld [vmem:[%s3647_s1 + $0x30] sm:$0xff]   ;;  %v2573_v15 = vld [vmem:[%s3647_s1 + $0x38] sm:$0xff]   ;;  %v2575_v17 = vld [vmem:[%s3647_s1 + $0x40] sm:$0xff]  }
   0x6   :  { %1049 = vmatpush1.bf16.msra.mxu1 %v2561_v3  ;;  %v2572_v14 = vld [vmem:[%s3647_s1 + $0xb0] sm:$0xff]   ;;  %v2574_v16 = vld [vmem:[%s3647_s1 + $0xb8] sm:$0xff]   ;;  %v2576_v18 = vld [vmem:[%s3647_s1 + $0xc0] sm:$0xff]  }
   0x7   :  { %1338 = vmatpush1.bf16.msra.mxu0 %v2562_v4  ;;  %1050 = vmatprep.subr.bf16.mxu1 %v2784_v0  ;;  %v2593_v19 = vld [vmem:[%s3648_s0 + $0x4] ss:$16 sps:$4 sm:$0xff]   ;;  %v2577_v20 = vld [vmem:[%s3647_s1 + $0x48] sm:$0xff]   ;;  %v2581_v25 = vld [vmem:[%s3647_s1 + $0x58] sm:$0xff]  }
   0x8   :  { %1339 = vmatprep.subr.bf16.mxu0 %v2784_v0  ;;  %v2596_v21 = vld [vmem:[%s3648_s0 + $0xc] ss:$16 sps:$4 sm:$0xff]   ;;  %1078 = vmatprep.mubr.bf16.mxu1 %v2593_v19  ;;  %v2579_v23 = vld [vmem:[%s3647_s1 + $0x50] sm:$0xff]   ;;  %v2583_v27 = vld [vmem:[%s3647_s1 + $0x60] sm:$0xff]  }
   0x9   :  { %v2578_v22 = vld [vmem:[%s3647_s1 + $0xc8] sm:$0xff]   ;;  %1367 = vmatprep.mubr.bf16.mxu0 %v2596_v21  ;;  %v2580_v24 = vld [vmem:[%s3647_s1 + $0xd0] sm:$0xff]   ;;  %v2582_v26 = vld [vmem:[%s3647_s1 + $0xd8] sm:$0xff]  }
   0xa   :  { %1051 = vmatpush1.bf16.msra.mxu1 %v2563_v5  ;;  %v2584_v28 = vld [vmem:[%s3647_s1 + $0xe0] sm:$0xff]   ;;  %v2585_v29 = vld [vmem:[%s3647_s1 + $0x68] sm:$0xff]   ;;  %v2587_v31 = vld [vmem:[%s3647_s1 + $0x70] sm:$0xff]  }
   0xb   :  { %1340 = vmatpush1.bf16.msra.mxu0 %v2564_v6  ;;  %1052 = vmatprep.subr.bf16.mxu1 %v2784_v0  ;;  %v2586_v30 = vld [vmem:[%s3647_s1 + $0xe8] sm:$0xff]   ;;  %v2588_v32 = vld [vmem:[%s3647_s1 + $0xf0] sm:$0xff]   ;;  %v2589_v33 = vld [vmem:[%s3647_s1 + $0x78] sm:$0xff]  }
   0xc   :  { %1341 = vmatprep.subr.bf16.mxu0 %v2784_v0  ;;  %v2590_v34 = vld [vmem:[%s3647_s1 + $0xf8] sm:$0xff]   ;;  %v2591_v35 = vld [vmem:[%s3648_s0] ss:$16 sps:$4 sm:$0xff]   ;;  %v2597_v37 = vld [vmem:[%s3648_s0 + $0x24] ss:$16 sps:$4 sm:$0xff]  }
   0xd   :  { %v2594_v36 = vld [vmem:[%s3648_s0 + $0x8] ss:$16 sps:$4 sm:$0xff]   ;;  %v2599_v38 = vld [vmem:[%s3648_s0 + $0x2c] ss:$16 sps:$4 sm:$0xff]   ;;  %v2601_v39 = vld [vmem:[%s3648_s0 + $0x20] ss:$16 sps:$4 sm:$0xff]  }
   0xe   :  { %1053 = vmatpush1.bf16.msra.mxu1 %v2565_v7  ;;  %v2602_v40 = vld [vmem:[%s3648_s0 + $0x28] ss:$16 sps:$4 sm:$0xff]   ;;  %v2603_v41 = vld [vmem:[%s3648_s0 + $0x44] ss:$16 sps:$4 sm:$0xff]   ;;  %v2605_v42 = vld [vmem:[%s3648_s0 + $0x4c] ss:$16 sps:$4 sm:$0xff]  }
   0xf   :  { %1342 = vmatpush1.bf16.msra.mxu0 %v2566_v8  ;;  %1054 = vmatprep.subr.bf16.mxu1 %v2784_v0  ;;  %v2607_v43 = vld [vmem:[%s3648_s0 + $0x40] ss:$16 sps:$4 sm:$0xff]   ;;  %v2608_v44 = vld [vmem:[%s3648_s0 + $0x48] ss:$16 sps:$4 sm:$0xff]   ;;  %v2609_v45 = vld [vmem:[%s3648_s0 + $0x64] ss:$16 sps:$4 sm:$0xff]  }
  0x10   :  { %1343 = vmatprep.subr.bf16.mxu0 %v2784_v0  ;;  %v2611_v46 = vld [vmem:[%s3648_s0 + $0x6c] ss:$16 sps:$4 sm:$0xff]   ;;  %v2613_v47 = vld [vmem:[%s3648_s0 + $0x60] ss:$16 sps:$4 sm:$0xff]   ;;  %v2614_v48 = vld [vmem:[%s3648_s0 + $0x68] ss:$16 sps:$4 sm:$0xff]  }
  0x11   :  { %v2615_v49 = vld [vmem:[%s3648_s0 + $0x84] ss:$16 sps:$4 sm:$0xff]   ;;  %v2617_v50 = vld [vmem:[%s3648_s0 + $0x8c] ss:$16 sps:$4 sm:$0xff]   ;;  %v2619_v51 = vld [vmem:[%s3648_s0 + $0x80] ss:$16 sps:$4 sm:$0xff]  }
  0x12   :  { %1055 = vmatpush1.bf16.msra.mxu1 %v2567_v9  ;;  %v2620_v52 = vld [vmem:[%s3648_s0 + $0x88] ss:$16 sps:$4 sm:$0xff]   ;;  %v2621_v53 = vld [vmem:[%s3648_s0 + $0xa4] ss:$16 sps:$4 sm:$0xff]   ;;  %v2623_v54 = vld [vmem:[%s3648_s0 + $0xac] ss:$16 sps:$4 sm:$0xff]  }
  0x13   :  { %1344 = vmatpush1.bf16.msra.mxu0 %v2568_v10  ;;  %1056 = vmatprep.subr.bf16.mxu1 %v2784_v0  ;;  %v2625_v55 = vld [vmem:[%s3648_s0 + $0xa0] ss:$16 sps:$4 sm:$0xff]   ;;  %v2626_v56 = vld [vmem:[%s3648_s0 + $0xa8] ss:$16 sps:$4 sm:$0xff]   ;;  %v2627_v57 = vld [vmem:[%s3648_s0 + $0xc4] ss:$16 sps:$4 sm:$0xff]  }
  0x14   :  { %1345 = vmatprep.subr.bf16.mxu0 %v2784_v0  ;;  %v2629_v58 = vld [vmem:[%s3648_s0 + $0xcc] ss:$16 sps:$4 sm:$0xff]   ;;  %v2631_v59 = vld [vmem:[%s3648_s0 + $0xc0] ss:$16 sps:$4 sm:$0xff]   ;;  %v2632_v60 = vld [vmem:[%s3648_s0 + $0xc8] ss:$16 sps:$4 sm:$0xff]  }
  0x15   :  { %v2633_v61 = vld [vmem:[%s3648_s0 + $0xe4] ss:$16 sps:$4 sm:$0xff]   ;;  %v2635_v62 = vld [vmem:[%s3648_s0 + $0xec] ss:$16 sps:$4 sm:$0xff]   ;;  %v2637_v63 = vld [vmem:[%s3648_s0 + $0xe0] ss:$16 sps:$4 sm:$0xff]  }
  0x16   :  { %1057 = vmatpush1.bf16.msra.mxu1 %v2569_v11  ;;  %v2639_v1 = vld [vmem:[%s3648_s0 + $0x104] ss:$16 sps:$4 sm:$0xff]   ;;  %v2641_v2 = vld [vmem:[%s3648_s0 + $0x10c] ss:$16 sps:$4 sm:$0xff]   ;;  %v2643_v3 = vld [vmem:[%s3648_s0 + $0x100] ss:$16 sps:$4 sm:$0xff]  }
  0x17   :  { %1346 = vmatpush1.bf16.msra.mxu0 %v2570_v12  ;;  %1058 = vmatprep.subr.bf16.mxu1 %v2784_v0  ;;  %v2644_v4 = vld [vmem:[%s3648_s0 + $0x108] ss:$16 sps:$4 sm:$0xff]   ;;  %v2645_v5 = vld [vmem:[%s3648_s0 + $0x124] ss:$16 sps:$4 sm:$0xff]   ;;  %v2647_v6 = vld [vmem:[%s3648_s0 + $0x12c] ss:$16 sps:$4 sm:$0xff]  }
  0x18   :  { %1347 = vmatprep.subr.bf16.mxu0 %v2784_v0  ;;  %v2649_v7 = vld [vmem:[%s3648_s0 + $0x120] ss:$16 sps:$4 sm:$0xff]   ;;  %v2650_v8 = vld [vmem:[%s3648_s0 + $0x128] ss:$16 sps:$4 sm:$0xff]   ;;  %v2651_v9 = vld [vmem:[%s3648_s0 + $0x144] ss:$16 sps:$4 sm:$0xff]  }
  0x19   :  { %v2653_v10 = vld [vmem:[%s3648_s0 + $0x14c] ss:$16 sps:$4 sm:$0xff]   ;;  %v2655_v11 = vld [vmem:[%s3648_s0 + $0x140] ss:$16 sps:$4 sm:$0xff]   ;;  %v2656_v12 = vld [vmem:[%s3648_s0 + $0x148] ss:$16 sps:$4 sm:$0xff]  }
  0x1a   :  { %1059 = vmatpush1.bf16.msra.mxu1 %v2571_v13  ;;  %v2657_v13 = vld [vmem:[%s3648_s0 + $0x164] ss:$16 sps:$4 sm:$0xff]   ;;  %v2667_v19 = vld [vmem:[%s3648_s0 + $0x180] ss:$16 sps:$4 sm:$0xff]  }
  0x1b   :  { %1348 = vmatpush1.bf16.msra.mxu0 %v2572_v14  ;;  %1060 = vmatprep.subr.bf16.mxu1 %v2784_v0  ;;  %v2659_v14 = vld [vmem:[%s3648_s0 + $0x16c] ss:$16 sps:$4 sm:$0xff]   ;;  %v2669_v21 = vld [vmem:[%s3648_s0 + $0x1a4] ss:$16 sps:$4 sm:$0xff]  }
  0x1c   :  { %1349 = vmatprep.subr.bf16.mxu0 %v2784_v0 }
  0x1e   :  { %1061 = vmatpush1.bf16.msra.mxu1 %v2573_v15  ;;  %v2661_v15 = vld [vmem:[%s3648_s0 + $0x160] ss:$16 sps:$4 sm:$0xff]  }
  0x1f   :  { %1350 = vmatpush1.bf16.msra.mxu0 %v2574_v16  ;;  %1062 = vmatprep.subr.bf16.mxu1 %v2784_v0  ;;  %v2662_v16 = vld [vmem:[%s3648_s0 + $0x168] ss:$16 sps:$4 sm:$0xff]  }
  0x20   :  { %1351 = vmatprep.subr.bf16.mxu0 %v2784_v0 }
  0x22   :  { %1063 = vmatpush1.bf16.msra.mxu1 %v2575_v17  ;;  %v2663_v17 = vld [vmem:[%s3648_s0 + $0x184] ss:$16 sps:$4 sm:$0xff]  }
  0x23   :  { %1352 = vmatpush1.bf16.msra.mxu0 %v2576_v18  ;;  %1064 = vmatprep.subr.bf16.mxu1 %v2784_v0  ;;  %v2665_v18 = vld [vmem:[%s3648_s0 + $0x18c] ss:$16 sps:$4 sm:$0xff]  }
  0x24   :  { %1353 = vmatprep.subr.bf16.mxu0 %v2784_v0 }
  0x26   :  { %1065 = vmatpush1.bf16.msra.mxu1 %v2577_v20  ;;  %v2668_v20 = vld [vmem:[%s3648_s0 + $0x188] ss:$16 sps:$4 sm:$0xff]  }
  0x27   :  { %1354 = vmatpush1.bf16.msra.mxu0 %v2578_v22  ;;  %1066 = vmatprep.subr.bf16.mxu1 %v2784_v0  ;;  %v2671_v22 = vld [vmem:[%s3648_s0 + $0x1ac] ss:$16 sps:$4 sm:$0xff]  }
  0x28   :  { %1355 = vmatprep.subr.bf16.mxu0 %v2784_v0 }
  0x2a   :  { %1067 = vmatpush1.bf16.msra.mxu1 %v2579_v23  ;;  %v2673_v23 = vld [vmem:[%s3648_s0 + $0x1a0] ss:$16 sps:$4 sm:$0xff]  }
  0x2b   :  { %1356 = vmatpush1.bf16.msra.mxu0 %v2580_v24  ;;  %1068 = vmatprep.subr.bf16.mxu1 %v2784_v0  ;;  %v2674_v24 = vld [vmem:[%s3648_s0 + $0x1a8] ss:$16 sps:$4 sm:$0xff]  }
  0x2c   :  { %1357 = vmatprep.subr.bf16.mxu0 %v2784_v0 }
  0x2e   :  { %1069 = vmatpush1.bf16.msra.mxu1 %v2581_v25  ;;  %v2675_v25 = vld [vmem:[%s3648_s0 + $0x1c4] ss:$16 sps:$4 sm:$0xff]  }
  0x2f   :  { %1358 = vmatpush1.bf16.msra.mxu0 %v2582_v26  ;;  %1070 = vmatprep.subr.bf16.mxu1 %v2784_v0  ;;  %v2677_v26 = vld [vmem:[%s3648_s0 + $0x1cc] ss:$16 sps:$4 sm:$0xff]  }
  0x30   :  { %1359 = vmatprep.subr.bf16.mxu0 %v2784_v0 }
  0x32   :  { %1071 = vmatpush1.bf16.msra.mxu1 %v2583_v27  ;;  %v2679_v27 = vld [vmem:[%s3648_s0 + $0x1c0] ss:$16 sps:$4 sm:$0xff]  }
  0x33   :  { %1360 = vmatpush1.bf16.msra.mxu0 %v2584_v28  ;;  %1072 = vmatprep.subr.bf16.mxu1 %v2784_v0  ;;  %v2680_v28 = vld [vmem:[%s3648_s0 + $0x1c8] ss:$16 sps:$4 sm:$0xff]  }
  0x34   :  { %1361 = vmatprep.subr.bf16.mxu0 %v2784_v0 }
  0x36   :  { %1073 = vmatpush1.bf16.msra.mxu1 %v2585_v29  ;;  %v2681_v29 = vld [vmem:[%s3648_s0 + $0x1e4] ss:$16 sps:$4 sm:$0xff]  }
  0x37   :  { %1362 = vmatpush1.bf16.msra.mxu0 %v2586_v30  ;;  %1074 = vmatprep.subr.bf16.mxu1 %v2784_v0  ;;  %v2683_v30 = vld [vmem:[%s3648_s0 + $0x1ec] ss:$16 sps:$4 sm:$0xff]  }
  0x38   :  { %1363 = vmatprep.subr.bf16.mxu0 %v2784_v0 }
  0x3a   :  { %1075 = vmatpush1.bf16.msra.mxu1 %v2587_v31  ;;  %v2685_v31 = vld [vmem:[%s3648_s0 + $0x1e0] ss:$16 sps:$4 sm:$0xff]  }
  0x3b   :  { %1364 = vmatpush1.bf16.msra.mxu0 %v2588_v32  ;;  %1076 = vmatprep.subr.bf16.mxu1 %v2784_v0  ;;  %v2686_v32 = vld [vmem:[%s3648_s0 + $0x1e8] ss:$16 sps:$4 sm:$0xff]  }
  0x3c   :  { %1365 = vmatprep.subr.bf16.mxu0 %v2784_v0  ;;  %v2638_v0 = vld [vmem:[%s3648_s0 + $0xe8] ss:$16 sps:$4 sm:$0xff]  }
  0x3e   :  { %1077 = vmatpush1.bf16.msra.mxu1 %v2589_v33  ;;  %v2687_v33 = vld [vmem:[%s3648_s0 + $0x204] ss:$16 sps:$4 sm:$0xff]  }
  0x3f   :  { %1366 = vmatpush1.bf16.msra.mxu0 %v2590_v34  ;;  %v2689_v34 = vld [vmem:[%s3648_s0 + $0x20c] ss:$16 sps:$4 sm:$0xff]  }
  0x41   :  { %1079 = vmatmul.mubr.bf16.vlgmr.msra.gmra.mrb[0].mxu1 %v2591_v35  ;;  %v2691_v35 = vld [vmem:[%s3648_s0 + $0x200] ss:$16 sps:$4 sm:$0xff]  }
  0x42   :  { %1368 = vmatmul.mubr.bf16.vlgmr.msra.gmra.mrb[0].mxu0 %v2594_v36  ;;  %1086 = vmatprep.mubr.bf16.mxu1 %v2597_v37  ;;  %v2692_v36 = vld [vmem:[%s3648_s0 + $0x208] ss:$16 sps:$4 sm:$0xff]   ;;  %v2693_v37 = vld [vmem:[%s3648_s0 + $0x224] ss:$16 sps:$4 sm:$0xff]  }
  0x43   :  { %1375 = vmatprep.mubr.bf16.mxu0 %v2599_v38  ;;  %v2695_v38 = vld [vmem:[%s3648_s0 + $0x22c] ss:$16 sps:$4 sm:$0xff]  }
  0x49   :  { %1087 = vmatmul.mubr.bf16.gmra.mrb[4].mxu1 %v2601_v39  ;;  %v2697_v39 = vld [vmem:[%s3648_s0 + $0x220] ss:$16 sps:$4 sm:$0xff]  }
  0x4a   :  { %1376 = vmatmul.mubr.bf16.gmra.mrb[4].mxu0 %v2602_v40  ;;  %1094 = vmatprep.mubr.bf16.mxu1 %v2603_v41  ;;  %v2698_v40 = vld [vmem:[%s3648_s0 + $0x228] ss:$16 sps:$4 sm:$0xff]   ;;  %v2699_v41 = vld [vmem:[%s3648_s0 + $0x244] ss:$16 sps:$4 sm:$0xff]  }
  0x4b   :  { %1383 = vmatprep.mubr.bf16.mxu0 %v2605_v42  ;;  %v2701_v42 = vld [vmem:[%s3648_s0 + $0x24c] ss:$16 sps:$4 sm:$0xff]  }
  0x51   :  { %1095 = vmatmul.mubr.bf16.gmra.mrb[8].mxu1 %v2607_v43  ;;  %v2703_v43 = vld [vmem:[%s3648_s0 + $0x240] ss:$16 sps:$4 sm:$0xff]  }
  0x52   :  { %1384 = vmatmul.mubr.bf16.gmra.mrb[8].mxu0 %v2608_v44  ;;  %1102 = vmatprep.mubr.bf16.mxu1 %v2609_v45  ;;  %v2704_v44 = vld [vmem:[%s3648_s0 + $0x248] ss:$16 sps:$4 sm:$0xff]   ;;  %v2705_v45 = vld [vmem:[%s3648_s0 + $0x264] ss:$16 sps:$4 sm:$0xff]  }
  0x53   :  { %1391 = vmatprep.mubr.bf16.mxu0 %v2611_v46  ;;  %v2707_v46 = vld [vmem:[%s3648_s0 + $0x26c] ss:$16 sps:$4 sm:$0xff]  }
  0x59   :  { %1103 = vmatmul.mubr.bf16.gmra.mrb[12].mxu1 %v2613_v47  ;;  %v2709_v47 = vld [vmem:[%s3648_s0 + $0x260] ss:$16 sps:$4 sm:$0xff]  }
  0x5a   :  { %1392 = vmatmul.mubr.bf16.gmra.mrb[12].mxu0 %v2614_v48  ;;  %1110 = vmatprep.mubr.bf16.mxu1 %v2615_v49  ;;  %v2710_v48 = vld [vmem:[%s3648_s0 + $0x268] ss:$16 sps:$4 sm:$0xff]   ;;  %v2711_v49 = vld [vmem:[%s3648_s0 + $0x284] ss:$16 sps:$4 sm:$0xff]  }
  0x5b   :  { %1399 = vmatprep.mubr.bf16.mxu0 %v2617_v50  ;;  %v2713_v50 = vld [vmem:[%s3648_s0 + $0x28c] ss:$16 sps:$4 sm:$0xff]  }
  0x61   :  { %1111 = vmatmul.mubr.bf16.gmra.mrb[16].mxu1 %v2619_v51  ;;  %v2715_v51 = vld [vmem:[%s3648_s0 + $0x280] ss:$16 sps:$4 sm:$0xff]  }
  0x62   :  { %1400 = vmatmul.mubr.bf16.gmra.mrb[16].mxu0 %v2620_v52  ;;  %1118 = vmatprep.mubr.bf16.mxu1 %v2621_v53  ;;  %v2716_v52 = vld [vmem:[%s3648_s0 + $0x288] ss:$16 sps:$4 sm:$0xff]   ;;  %v2717_v53 = vld [vmem:[%s3648_s0 + $0x2a4] ss:$16 sps:$4 sm:$0xff]  }
  0x63   :  { %1407 = vmatprep.mubr.bf16.mxu0 %v2623_v54  ;;  %v2719_v54 = vld [vmem:[%s3648_s0 + $0x2ac] ss:$16 sps:$4 sm:$0xff]  }
  0x69   :  { %1119 = vmatmul.mubr.bf16.gmra.mrb[20].mxu1 %v2625_v55  ;;  %v2721_v55 = vld [vmem:[%s3648_s0 + $0x2a0] ss:$16 sps:$4 sm:$0xff]  }
  0x6a   :  { %1408 = vmatmul.mubr.bf16.gmra.mrb[20].mxu0 %v2626_v56  ;;  %1126 = vmatprep.mubr.bf16.mxu1 %v2627_v57  ;;  %v2722_v56 = vld [vmem:[%s3648_s0 + $0x2a8] ss:$16 sps:$4 sm:$0xff]   ;;  %v2723_v57 = vld [vmem:[%s3648_s0 + $0x2c4] ss:$16 sps:$4 sm:$0xff]  }
  0x6b   :  { %1415 = vmatprep.mubr.bf16.mxu0 %v2629_v58  ;;  %v2725_v58 = vld [vmem:[%s3648_s0 + $0x2cc] ss:$16 sps:$4 sm:$0xff]  }
  0x71   :  { %1127 = vmatmul.mubr.bf16.gmra.mrb[24].mxu1 %v2631_v59  ;;  %v2727_v59 = vld [vmem:[%s3648_s0 + $0x2c0] ss:$16 sps:$4 sm:$0xff]  }
  0x72   :  { %1416 = vmatmul.mubr.bf16.gmra.mrb[24].mxu0 %v2632_v60  ;;  %1134 = vmatprep.mubr.bf16.mxu1 %v2633_v61  ;;  %v2728_v60 = vld [vmem:[%s3648_s0 + $0x2c8] ss:$16 sps:$4 sm:$0xff]   ;;  %v2729_v61 = vld [vmem:[%s3648_s0 + $0x2e4] ss:$16 sps:$4 sm:$0xff]  }
  0x73   :  { %1423 = vmatprep.mubr.bf16.mxu0 %v2635_v62  ;;  %v2731_v62 = vld [vmem:[%s3648_s0 + $0x2ec] ss:$16 sps:$4 sm:$0xff]  }
  0x79   :  { %1135 = vmatmul.mubr.bf16.gmra.mrb[28].mxu1 %v2637_v63  ;;  %v2733_v63 = vld [vmem:[%s3648_s0 + $0x2e0] ss:$16 sps:$4 sm:$0xff]  }
  0x7a   :  { %1424 = vmatmul.mubr.bf16.gmra.mrb[28].mxu0 %v2638_v0  ;;  %1142 = vmatprep.mubr.bf16.mxu1 %v2639_v1  ;;  %v2734_v0 = vld [vmem:[%s3648_s0 + $0x2e8] ss:$16 sps:$4 sm:$0xff]   ;;  %v2735_v1 = vld [vmem:[%s3648_s0 + $0x304] ss:$16 sps:$4 sm:$0xff]  }
  0x7b   :  { %1431 = vmatprep.mubr.bf16.mxu0 %v2641_v2  ;;  %v2737_v2 = vld [vmem:[%s3648_s0 + $0x30c] ss:$16 sps:$4 sm:$0xff]  }
  0x81   :  { %1143 = vmatmul.mubr.bf16.gmra.mrb[32].mxu1 %v2643_v3  ;;  %v2739_v3 = vld [vmem:[%s3648_s0 + $0x300] ss:$16 sps:$4 sm:$0xff]  }
  0x82   :  { %1432 = vmatmul.mubr.bf16.gmra.mrb[32].mxu0 %v2644_v4  ;;  %1150 = vmatprep.mubr.bf16.mxu1 %v2645_v5  ;;  %v2740_v4 = vld [vmem:[%s3648_s0 + $0x308] ss:$16 sps:$4 sm:$0xff]   ;;  %v2741_v5 = vld [vmem:[%s3648_s0 + $0x324] ss:$16 sps:$4 sm:$0xff]  }
  0x83   :  { %1439 = vmatprep.mubr.bf16.mxu0 %v2647_v6  ;;  %v2743_v6 = vld [vmem:[%s3648_s0 + $0x32c] ss:$16 sps:$4 sm:$0xff]  }
  0x89   :  { %1151 = vmatmul.mubr.bf16.gmra.mrb[36].mxu1 %v2649_v7  ;;  %v2745_v7 = vld [vmem:[%s3648_s0 + $0x320] ss:$16 sps:$4 sm:$0xff]  }
  0x8a   :  { %1440 = vmatmul.mubr.bf16.gmra.mrb[36].mxu0 %v2650_v8  ;;  %1158 = vmatprep.mubr.bf16.mxu1 %v2651_v9  ;;  %v2746_v8 = vld [vmem:[%s3648_s0 + $0x328] ss:$16 sps:$4 sm:$0xff]   ;;  %v2747_v9 = vld [vmem:[%s3648_s0 + $0x344] ss:$16 sps:$4 sm:$0xff]  }
  0x8b   :  { %1447 = vmatprep.mubr.bf16.mxu0 %v2653_v10  ;;  %v2749_v10 = vld [vmem:[%s3648_s0 + $0x34c] ss:$16 sps:$4 sm:$0xff]  }
  0x91   :  { %1159 = vmatmul.mubr.bf16.gmra.mrb[40].mxu1 %v2655_v11  ;;  %v2751_v11 = vld [vmem:[%s3648_s0 + $0x340] ss:$16 sps:$4 sm:$0xff]  }
  0x92   :  { %1448 = vmatmul.mubr.bf16.gmra.mrb[40].mxu0 %v2656_v12  ;;  %1166 = vmatprep.mubr.bf16.mxu1 %v2657_v13  ;;  %v2752_v12 = vld [vmem:[%s3648_s0 + $0x348] ss:$16 sps:$4 sm:$0xff]   ;;  %v2753_v13 = vld [vmem:[%s3648_s0 + $0x364] ss:$16 sps:$4 sm:$0xff]  }
  0x93   :  { %1455 = vmatprep.mubr.bf16.mxu0 %v2659_v14  ;;  %v2755_v14 = vld [vmem:[%s3648_s0 + $0x36c] ss:$16 sps:$4 sm:$0xff]  }
  0x99   :  { %1167 = vmatmul.mubr.bf16.gmra.mrb[44].mxu1 %v2661_v15  ;;  %v3266_v15 = vld [vmem:[%s3649_s2] ss:$0 sm:$0xff] }
  0x9a   :  { %1456 = vmatmul.mubr.bf16.gmra.mrb[44].mxu0 %v2662_v16  ;;  %1174 = vmatprep.mubr.bf16.mxu1 %v2663_v17 }
  0x9b   :  { %1463 = vmatprep.mubr.bf16.mxu0 %v2665_v18 }
  0xa1   :  { %1175 = vmatmul.mubr.bf16.gmra.mrb[48].mxu1 %v2667_v19 }
  0xa2   :  { %1464 = vmatmul.mubr.bf16.gmra.mrb[48].mxu0 %v2668_v20  ;;  %1182 = vmatprep.mubr.bf16.mxu1 %v2669_v21  ;;  %v2757_v20 = vld [vmem:[%s3648_s0 + $0x360] ss:$16 sps:$4 sm:$0xff]  }
  0xa3   :  { %1471 = vmatprep.mubr.bf16.mxu0 %v2671_v22 }
  0xa9   :  { %1183 = vmatmul.mubr.bf16.gmra.mrb[52].mxu1 %v2673_v23  ;;  %v2758_v23 = vld [vmem:[%s3648_s0 + $0x368] ss:$16 sps:$4 sm:$0xff]  }
  0xaa   :  { %1472 = vmatmul.mubr.bf16.gmra.mrb[52].mxu0 %v2674_v24  ;;  %1190 = vmatprep.mubr.bf16.mxu1 %v2675_v25  ;;  %v2759_v24 = vld [vmem:[%s3648_s0 + $0x384] ss:$16 sps:$4 sm:$0xff]  }
  0xab   :  { %1479 = vmatprep.mubr.bf16.mxu0 %v2677_v26 }
  0xb1   :  { %1191 = vmatmul.mubr.bf16.gmra.mrb[56].mxu1 %v2679_v27 }
  0xb2   :  { %1480 = vmatmul.mubr.bf16.gmra.mrb[56].mxu0 %v2680_v28  ;;  %1198 = vmatprep.mubr.bf16.mxu1 %v2681_v29  ;;  %v2761_v29 = vld [vmem:[%s3648_s0 + $0x38c] ss:$16 sps:$4 sm:$0xff]  }
  0xb3   :  { %1487 = vmatprep.mubr.bf16.mxu0 %v2683_v30 }
  0xb9   :  { %1199 = vmatmul.mubr.bf16.gmra.mrb[60].mxu1 %v2685_v31 }
  0xba   :  { %1488 = vmatmul.mubr.bf16.gmra.mrb[60].mxu0 %v2686_v32  ;;  %1206 = vmatprep.mubr.bf16.mxu1 %v2687_v33 }
  0xbb   :  { %1495 = vmatprep.mubr.bf16.mxu0 %v2689_v34 }
  0xc1   :  { %1207 = vmatmul.mubr.bf16.gmra.mrb[64].mxu1 %v2691_v35 }
  0xc2   :  { %1496 = vmatmul.mubr.bf16.gmra.mrb[64].mxu0 %v2692_v36  ;;  %1214 = vmatprep.mubr.bf16.mxu1 %v2693_v37 }
  0xc3   :  { %1503 = vmatprep.mubr.bf16.mxu0 %v2695_v38 }
  0xc9   :  { %1215 = vmatmul.mubr.bf16.gmra.mrb[68].mxu1 %v2697_v39 }
  0xca   :  { %1504 = vmatmul.mubr.bf16.gmra.mrb[68].mxu0 %v2698_v40  ;;  %1222 = vmatprep.mubr.bf16.mxu1 %v2699_v41  ;;  %v2763_v41 = vld [vmem:[%s3648_s0 + $0x380] ss:$16 sps:$4 sm:$0xff]  }
  0xcb   :  { %1511 = vmatprep.mubr.bf16.mxu0 %v2701_v42 }
  0xd1   :  { %1223 = vmatmul.mubr.bf16.gmra.mrb[72].mxu1 %v2703_v43 }
  0xd2   :  { %1512 = vmatmul.mubr.bf16.gmra.mrb[72].mxu0 %v2704_v44  ;;  %1230 = vmatprep.mubr.bf16.mxu1 %v2705_v45  ;;  %v2764_v45 = vld [vmem:[%s3648_s0 + $0x388] ss:$16 sps:$4 sm:$0xff]  }
  0xd3   :  { %1519 = vmatprep.mubr.bf16.mxu0 %v2707_v46  ;;  %v2765_v46 = vld [vmem:[%s3648_s0 + $0x3a4] ss:$16 sps:$4 sm:$0xff]  }
  0xd9   :  { %1231 = vmatmul.mubr.bf16.gmra.mrb[76].mxu1 %v2709_v47 }
  0xda   :  { %1520 = vmatmul.mubr.bf16.gmra.mrb[76].mxu0 %v2710_v48  ;;  %1238 = vmatprep.mubr.bf16.mxu1 %v2711_v49 }
  0xdb   :  { %1527 = vmatprep.mubr.bf16.mxu0 %v2713_v50 }
  0xe1   :  { %1239 = vmatmul.mubr.bf16.gmra.mrb[80].mxu1 %v2715_v51  ;;  %v2767_v51 = vld [vmem:[%s3648_s0 + $0x3ac] ss:$16 sps:$4 sm:$0xff]  }
  0xe2   :  { %1528 = vmatmul.mubr.bf16.gmra.mrb[80].mxu0 %v2716_v52  ;;  %1246 = vmatprep.mubr.bf16.mxu1 %v2717_v53 }
  0xe3   :  { %1535 = vmatprep.mubr.bf16.mxu0 %v2719_v54 }
  0xe9   :  { %1247 = vmatmul.mubr.bf16.gmra.mrb[84].mxu1 %v2721_v55 }
  0xea   :  { %1536 = vmatmul.mubr.bf16.gmra.mrb[84].mxu0 %v2722_v56  ;;  %1254 = vmatprep.mubr.bf16.mxu1 %v2723_v57 }
  0xeb   :  { %1543 = vmatprep.mubr.bf16.mxu0 %v2725_v58 }
  0xf1   :  { %1255 = vmatmul.mubr.bf16.gmra.mrb[88].mxu1 %v2727_v59 }
  0xf2   :  { %1544 = vmatmul.mubr.bf16.gmra.mrb[88].mxu0 %v2728_v60  ;;  %1262 = vmatprep.mubr.bf16.mxu1 %v2729_v61 }
  0xf3   :  { %1551 = vmatprep.mubr.bf16.mxu0 %v2731_v62 }
  0xf9   :  { %1263 = vmatmul.mubr.bf16.gmra.mrb[92].mxu1 %v2733_v63  ;;  %v2769_v63 = vld [vmem:[%s3648_s0 + $0x3a0] ss:$16 sps:$4 sm:$0xff]  }
  0xfa   :  { %1552 = vmatmul.mubr.bf16.gmra.mrb[92].mxu0 %v2734_v0  ;;  %1270 = vmatprep.mubr.bf16.mxu1 %v2735_v1 }
  0xfb   :  { %1559 = vmatprep.mubr.bf16.mxu0 %v2737_v2 }
 0x101   :  { %1271 = vmatmul.mubr.bf16.gmra.mrb[96].mxu1 %v2739_v3  ;;  %v2770_v3 = vld [vmem:[%s3648_s0 + $0x3a8] ss:$16 sps:$4 sm:$0xff]  }
 0x102   :  { %1560 = vmatmul.mubr.bf16.gmra.mrb[96].mxu0 %v2740_v4  ;;  %1278 = vmatprep.mubr.bf16.mxu1 %v2741_v5  ;;  %v2771_v4 = vld [vmem:[%s3648_s0 + $0x3c4] ss:$16 sps:$4 sm:$0xff]  }
 0x103   :  { %1567 = vmatprep.mubr.bf16.mxu0 %v2743_v6 }
 0x109   :  { %1279 = vmatmul.mubr.bf16.gmra.mrb[100].mxu1 %v2745_v7 }
 0x10a   :  { %1568 = vmatmul.mubr.bf16.gmra.mrb[100].mxu0 %v2746_v8  ;;  %1286 = vmatprep.mubr.bf16.mxu1 %v2747_v9  ;;  %v2773_v9 = vld [vmem:[%s3648_s0 + $0x3cc] ss:$16 sps:$4 sm:$0xff]  }
 0x10b   :  { %1575 = vmatprep.mubr.bf16.mxu0 %v2749_v10 }
 0x111   :  { %1287 = vmatmul.mubr.bf16.gmra.mrb[104].mxu1 %v2751_v11 }
 0x112   :  { %1576 = vmatmul.mubr.bf16.gmra.mrb[104].mxu0 %v2752_v12  ;;  %1294 = vmatprep.mubr.bf16.mxu1 %v2753_v13 }
 0x113   :  { %1583 = vmatprep.mubr.bf16.mxu0 %v2755_v14 }
 0x114   :  { %v1080_v16 = vpop.f32.mrb[0].mxu1 }
 0x115   :  { %v1081_v17 = vadd.f32 %v3266_v15, %v1080_v16  ;;  %v1369_v18 = vpop.f32.mrb[0].mxu0  ;;  %v1082_v19 = vpop.f32.mrb[1].mxu1 }
 0x116   :  { %v1371_v21 = vpop.f32.mrb[1].mxu0  ;;  %v1083_v22 = vpop.f32.mrb[2].mxu1 }
 0x117   :  { %v1370_v25 = vadd.f32 %v1369_v18, %v1081_v17  ;;  %v1084_v26 = vadd.f32 %v3266_v15, %v1083_v22  ;;  %v1372_v27 = vpop.f32.mrb[2].mxu0  ;;  %v1085_v28 = vpop.f32.mrb[3].mxu1  ;;  %v2775_v22 = vld [vmem:[%s3648_s0 + $0x3c0] ss:$16 sps:$4 sm:$0xff]  }
 0x118   :  { %v1374_v30 = vpop.f32.mrb[3].mxu0 }
 0x119   :  { %vm1624_vm0 = vcmp.ge.f32.partialorder %v1370_v25, 0.0  ;;  %v1688_v31 = vmul.f32 0.2, %v1370_v25  ;;  %v1373_v32 = vadd.f32 %v1372_v27, %v1084_v26  ;;  %1295 = vmatmul.mubr.bf16.gmra.mrb[108].mxu1 %v2757_v20  ;;  %v2776_v26 = vld [vmem:[%s3648_s0 + $0x3c8] ss:$16 sps:$4 sm:$0xff]  }
 0x11a   :  { %1584 = vmatmul.mubr.bf16.gmra.mrb[108].mxu0 %v2758_v23  ;;  %1302 = vmatprep.mubr.bf16.mxu1 %v2759_v24  ;;  %v2777_v27 = vld [vmem:[%s3648_s0 + $0x3e4] ss:$16 sps:$4 sm:$0xff]  }
 0x11b   :  { %v1752_v33 = vsel %vm1624_vm0, %v1370_v25, %v1688_v31  ;;  %vm1625_vm2 = vcmp.ge.f32.partialorder %v1373_v32, 0.0  ;;  %v1689_v34 = vmul.f32 0.2, %v1373_v32  ;;  %1591 = vmatprep.mubr.bf16.mxu0 %v2761_v29 }
 0x11c   :  { %v2366_v35 = vpack.c.bf16 %v1752_v33, %v1752_v33  ;;  %v1088_v36 = vpop.f32.mrb[4].mxu1 }
 0x11d   :  { %v1753_v37 = vsel %vm1625_vm2, %v1373_v32, %v1689_v34  ;;  %v1089_v38 = vadd.f32 %v3266_v15, %v1088_v36  ;;  %v1377_v39 = vpop.f32.mrb[4].mxu0  ;;  %v1090_v40 = vpop.f32.mrb[5].mxu1  ;;  %v2779_v32 = vld [vmem:[%s3648_s0 + $0x3ec] ss:$16 sps:$4 sm:$0xff]  }
 0x11e   :  { %2073 = vst.msk [vmem:[%s3650_s3] sm:$0xf] %vm2072_vm1, %v2366_v35  ;;  %v2367_v42 = vpack.c.bf16 %v1753_v37, %v1753_v37  ;;  %v1379_v43 = vpop.f32.mrb[5].mxu0  ;;  %v1091_v44 = vpop.f32.mrb[6].mxu1 }
 0x11f   :  { %v1378_v47 = vadd.f32 %v1377_v39, %v1089_v38  ;;  %v1092_v48 = vadd.f32 %v3266_v15, %v1091_v44  ;;  %v1380_v49 = vpop.f32.mrb[6].mxu0  ;;  %v1093_v50 = vpop.f32.mrb[7].mxu1  ;;  %v2781_v44 = vld [vmem:[%s3648_s0 + $0x3e0] ss:$16 sps:$4 sm:$0xff]  }
 0x120   :  { %2074 = vst.msk [vmem:[%s3650_s3 + $0x4] sm:$0xf] %vm2072_vm1, %v2367_v42  ;;  %v1382_v52 = vpop.f32.mrb[7].mxu0 }
 0x121   :  { %vm1626_vm3 = vcmp.ge.f32.partialorder %v1378_v47, 0.0  ;;  %v1690_v53 = vmul.f32 0.2, %v1378_v47  ;;  %v1381_v54 = vadd.f32 %v1380_v49, %v1092_v48  ;;  %1303 = vmatmul.mubr.bf16.gmra.mrb[112].mxu1 %v2763_v41  ;;  %v2782_v48 = vld [vmem:[%s3648_s0 + $0x3e8] ss:$16 sps:$4 sm:$0xff]  }
 0x122   :  { %1592 = vmatmul.mubr.bf16.gmra.mrb[112].mxu0 %v2764_v45  ;;  %1310 = vmatprep.mubr.bf16.mxu1 %v2765_v46 }
 0x123   :  { %v1754_v55 = vsel %vm1626_vm3, %v1378_v47, %v1690_v53  ;;  %vm1627_vm4 = vcmp.ge.f32.partialorder %v1381_v54, 0.0  ;;  %v1691_v56 = vmul.f32 0.2, %v1381_v54  ;;  %1599 = vmatprep.mubr.bf16.mxu0 %v2767_v51 }
 0x124   :  { %v2368_v57 = vpack.c.bf16 %v1754_v55, %v1754_v55  ;;  %v1096_v58 = vpop.f32.mrb[8].mxu1 }
 0x125   :  { %v1755_v59 = vsel %vm1627_vm4, %v1381_v54, %v1691_v56  ;;  %v1097_v60 = vadd.f32 %v3266_v15, %v1096_v58  ;;  %v1385_v61 = vpop.f32.mrb[8].mxu0  ;;  %v1098_v62 = vpop.f32.mrb[9].mxu1 }
 0x126   :  { %2075 = vst.msk [vmem:[%s3650_s3 + $0x8] sm:$0xf] %vm2072_vm1, %v2368_v57  ;;  %v2369_v0 = vpack.c.bf16 %v1755_v59, %v1755_v59  ;;  %v1387_v1 = vpop.f32.mrb[9].mxu0  ;;  %v1099_v2 = vpop.f32.mrb[10].mxu1 }
 0x127   :  { %v1386_v5 = vadd.f32 %v1385_v61, %v1097_v60  ;;  %v1100_v6 = vadd.f32 %v3266_v15, %v1099_v2  ;;  %v1388_v7 = vpop.f32.mrb[10].mxu0  ;;  %v1101_v8 = vpop.f32.mrb[11].mxu1 }
 0x128   :  { %2076 = vst.msk [vmem:[%s3650_s3 + $0xc] sm:$0xf] %vm2072_vm1, %v2369_v0  ;;  %v1390_v10 = vpop.f32.mrb[11].mxu0 }
 0x129   :  { %vm1628_vm5 = vcmp.ge.f32.partialorder %v1386_v5, 0.0  ;;  %v1692_v11 = vmul.f32 0.2, %v1386_v5  ;;  %v1389_v12 = vadd.f32 %v1388_v7, %v1100_v6  ;;  %1311 = vmatmul.mubr.bf16.gmra.mrb[116].mxu1 %v2769_v63 }
 0x12a   :  { %1600 = vmatmul.mubr.bf16.gmra.mrb[116].mxu0 %v2770_v3  ;;  %1318 = vmatprep.mubr.bf16.mxu1 %v2771_v4 }
 0x12b   :  { %v1756_v13 = vsel %vm1628_vm5, %v1386_v5, %v1692_v11  ;;  %vm1629_vm6 = vcmp.ge.f32.partialorder %v1389_v12, 0.0  ;;  %v1693_v14 = vmul.f32 0.2, %v1389_v12  ;;  %1607 = vmatprep.mubr.bf16.mxu0 %v2773_v9 }
 0x12c   :  { %v2370_v16 = vpack.c.bf16 %v1756_v13, %v1756_v13  ;;  %v1104_v17 = vpop.f32.mrb[12].mxu1 }
 0x12d   :  { %v1757_v18 = vsel %vm1629_vm6, %v1389_v12, %v1693_v14  ;;  %v1105_v19 = vadd.f32 %v3266_v15, %v1104_v17  ;;  %v1393_v20 = vpop.f32.mrb[12].mxu0  ;;  %v1106_v21 = vpop.f32.mrb[13].mxu1 }
 0x12e   :  { %2077 = vst.msk [vmem:[%s3650_s3 + $0x10] sm:$0xf] %vm2072_vm1, %v2370_v16  ;;  %v2371_v23 = vpack.c.bf16 %v1757_v18, %v1757_v18  ;;  %v1395_v24 = vpop.f32.mrb[13].mxu0  ;;  %v1107_v25 = vpop.f32.mrb[14].mxu1 }
 0x12f   :  { %v1394_v28 = vadd.f32 %v1393_v20, %v1105_v19  ;;  %v1108_v29 = vadd.f32 %v3266_v15, %v1107_v25  ;;  %v1396_v30 = vpop.f32.mrb[14].mxu0  ;;  %v1109_v31 = vpop.f32.mrb[15].mxu1 }
 0x130   :  { %2078 = vst.msk [vmem:[%s3650_s3 + $0x14] sm:$0xf] %vm2072_vm1, %v2371_v23  ;;  %v1398_v33 = vpop.f32.mrb[15].mxu0 }
 0x131   :  { %vm1630_vm7 = vcmp.ge.f32.partialorder %v1394_v28, 0.0  ;;  %v1694_v34 = vmul.f32 0.2, %v1394_v28  ;;  %v1397_v35 = vadd.f32 %v1396_v30, %v1108_v29  ;;  %1319 = vmatmul.mubr.bf16.gmra.mrb[120].mxu1 %v2775_v22 }
 0x132   :  { %1608 = vmatmul.mubr.bf16.gmra.mrb[120].mxu0 %v2776_v26  ;;  %1326 = vmatprep.mubr.bf16.mxu1 %v2777_v27 }
 0x133   :  { %v1758_v36 = vsel %vm1630_vm7, %v1394_v28, %v1694_v34  ;;  %vm1631_vm8 = vcmp.ge.f32.partialorder %v1397_v35, 0.0  ;;  %v1695_v37 = vmul.f32 0.2, %v1397_v35  ;;  %1615 = vmatprep.mubr.bf16.mxu0 %v2779_v32 }
 0x134   :  { %v2372_v38 = vpack.c.bf16 %v1758_v36, %v1758_v36  ;;  %v1112_v39 = vpop.f32.mrb[16].mxu1 }
 0x135   :  { %v1759_v40 = vsel %vm1631_vm8, %v1397_v35, %v1695_v37  ;;  %v1113_v41 = vadd.f32 %v3266_v15, %v1112_v39  ;;  %v1401_v42 = vpop.f32.mrb[16].mxu0  ;;  %v1114_v43 = vpop.f32.mrb[17].mxu1 }
 0x136   :  { %2079 = vst.msk [vmem:[%s3650_s3 + $0x18] sm:$0xf] %vm2072_vm1, %v2372_v38  ;;  %v2373_v45 = vpack.c.bf16 %v1759_v40, %v1759_v40  ;;  %v1403_v46 = vpop.f32.mrb[17].mxu0  ;;  %v1115_v47 = vpop.f32.mrb[18].mxu1 }
 0x137   :  { %v1402_v49 = vadd.f32 %v1401_v42, %v1113_v41  ;;  %v1116_v50 = vadd.f32 %v3266_v15, %v1115_v47  ;;  %v1404_v51 = vpop.f32.mrb[18].mxu0  ;;  %v1117_v52 = vpop.f32.mrb[19].mxu1 }
 0x138   :  { %2080 = vst.msk [vmem:[%s3650_s3 + $0x1c] sm:$0xf] %vm2072_vm1, %v2373_v45  ;;  %v1406_v53 = vpop.f32.mrb[19].mxu0 }
 0x139   :  { %vm1632_vm9 = vcmp.ge.f32.partialorder %v1402_v49, 0.0  ;;  %v1696_v54 = vmul.f32 0.2, %v1402_v49  ;;  %v1405_v55 = vadd.f32 %v1404_v51, %v1116_v50  ;;  %1327 = vmatmul.mubr.bf16.gmra.mrb[124].mxu1 %v2781_v44 }
 0x13a   :  { %1616 = vmatmul.mubr.bf16.gmra.mrb[124].mxu0 %v2782_v48 }
 0x13b   :  { %v1760_v56 = vsel %vm1632_vm9, %v1402_v49, %v1696_v54  ;;  %vm1633_vm10 = vcmp.ge.f32.partialorder %v1405_v55, 0.0  ;;  %v1697_v57 = vmul.f32 0.2, %v1405_v55 }
 0x13c   :  { %v2374_v58 = vpack.c.bf16 %v1760_v56, %v1760_v56  ;;  %v1120_v59 = vpop.f32.mrb[20].mxu1 }
 0x13d   :  { %v1761_v60 = vsel %vm1633_vm10, %v1405_v55, %v1697_v57  ;;  %v1121_v61 = vadd.f32 %v3266_v15, %v1120_v59  ;;  %v1409_v62 = vpop.f32.mrb[20].mxu0  ;;  %v1122_v63 = vpop.f32.mrb[21].mxu1 }
 0x13e   :  { %2081 = vst.msk [vmem:[%s3650_s3 + $0x20] sm:$0xf] %vm2072_vm1, %v2374_v58  ;;  %v2375_v0 = vpack.c.bf16 %v1761_v60, %v1761_v60  ;;  %v1411_v1 = vpop.f32.mrb[21].mxu0  ;;  %v1123_v2 = vpop.f32.mrb[22].mxu1 }
 0x13f   :  { %v1410_v3 = vadd.f32 %v1409_v62, %v1121_v61  ;;  %v1124_v4 = vadd.f32 %v3266_v15, %v1123_v2  ;;  %v1412_v5 = vpop.f32.mrb[22].mxu0  ;;  %v1125_v6 = vpop.f32.mrb[23].mxu1 }
 0x140   :  { %2082 = vst.msk [vmem:[%s3650_s3 + $0x24] sm:$0xf] %vm2072_vm1, %v2375_v0  ;;  %v1414_v7 = vpop.f32.mrb[23].mxu0 }
 0x141   :  { %vm1634_vm11 = vcmp.ge.f32.partialorder %v1410_v3, 0.0  ;;  %v1698_v8 = vmul.f32 0.2, %v1410_v3  ;;  %v1413_v9 = vadd.f32 %v1412_v5, %v1124_v4 }
 0x143   :  { %v1762_v10 = vsel %vm1634_vm11, %v1410_v3, %v1698_v8  ;;  %vm1635_vm12 = vcmp.ge.f32.partialorder %v1413_v9, 0.0  ;;  %v1699_v11 = vmul.f32 0.2, %v1413_v9 }
 0x144   :  { %v2376_v12 = vpack.c.bf16 %v1762_v10, %v1762_v10  ;;  %v1128_v13 = vpop.f32.mrb[24].mxu1 }
 0x145   :  { %v1763_v14 = vsel %vm1635_vm12, %v1413_v9, %v1699_v11  ;;  %v1129_v16 = vadd.f32 %v3266_v15, %v1128_v13  ;;  %v1417_v17 = vpop.f32.mrb[24].mxu0  ;;  %v1130_v18 = vpop.f32.mrb[25].mxu1 }
 0x146   :  { %2083 = vst.msk [vmem:[%s3650_s3 + $0x28] sm:$0xf] %vm2072_vm1, %v2376_v12  ;;  %v2377_v19 = vpack.c.bf16 %v1763_v14, %v1763_v14  ;;  %v1419_v20 = vpop.f32.mrb[25].mxu0  ;;  %v1131_v21 = vpop.f32.mrb[26].mxu1 }
 0x147   :  { %v1418_v22 = vadd.f32 %v1417_v17, %v1129_v16  ;;  %v1132_v23 = vadd.f32 %v3266_v15, %v1131_v21  ;;  %v1420_v24 = vpop.f32.mrb[26].mxu0  ;;  %v1133_v25 = vpop.f32.mrb[27].mxu1 }
 0x148   :  { %2084 = vst.msk [vmem:[%s3650_s3 + $0x2c] sm:$0xf] %vm2072_vm1, %v2377_v19  ;;  %v1422_v26 = vpop.f32.mrb[27].mxu0 }
 0x149   :  { %vm1636_vm13 = vcmp.ge.f32.partialorder %v1418_v22, 0.0  ;;  %v1700_v27 = vmul.f32 0.2, %v1418_v22  ;;  %v1421_v28 = vadd.f32 %v1420_v24, %v1132_v23 }
 0x14b   :  { %v1764_v29 = vsel %vm1636_vm13, %v1418_v22, %v1700_v27  ;;  %vm1637_vm14 = vcmp.ge.f32.partialorder %v1421_v28, 0.0  ;;  %v1701_v30 = vmul.f32 0.2, %v1421_v28 }
 0x14c   :  { %v2378_v31 = vpack.c.bf16 %v1764_v29, %v1764_v29  ;;  %v1136_v32 = vpop.f32.mrb[28].mxu1 }
 0x14d   :  { %v1765_v33 = vsel %vm1637_vm14, %v1421_v28, %v1701_v30  ;;  %v1137_v34 = vadd.f32 %v3266_v15, %v1136_v32  ;;  %v1425_v35 = vpop.f32.mrb[28].mxu0  ;;  %v1138_v36 = vpop.f32.mrb[29].mxu1 }
 0x14e   :  { %2085 = vst.msk [vmem:[%s3650_s3 + $0x30] sm:$0xf] %vm2072_vm1, %v2378_v31  ;;  %v2379_v37 = vpack.c.bf16 %v1765_v33, %v1765_v33  ;;  %v1427_v38 = vpop.f32.mrb[29].mxu0  ;;  %v1139_v39 = vpop.f32.mrb[30].mxu1 }
 0x14f   :  { %v1426_v40 = vadd.f32 %v1425_v35, %v1137_v34  ;;  %v1140_v41 = vadd.f32 %v3266_v15, %v1139_v39  ;;  %v1428_v42 = vpop.f32.mrb[30].mxu0  ;;  %v1141_v43 = vpop.f32.mrb[31].mxu1 }
 0x150   :  { %2086 = vst.msk [vmem:[%s3650_s3 + $0x34] sm:$0xf] %vm2072_vm1, %v2379_v37  ;;  %v1430_v44 = vpop.f32.mrb[31].mxu0 }
 0x151   :  { %vm1638_vm15 = vcmp.ge.f32.partialorder %v1426_v40, 0.0  ;;  %v1702_v45 = vmul.f32 0.2, %v1426_v40  ;;  %v1429_v46 = vadd.f32 %v1428_v42, %v1140_v41 }
 0x153   :  { %v1766_v47 = vsel %vm1638_vm15, %v1426_v40, %v1702_v45  ;;  %vm1639_vm0 = vcmp.ge.f32.partialorder %v1429_v46, 0.0  ;;  %v1703_v48 = vmul.f32 0.2, %v1429_v46 }
 0x154   :  { %v2380_v49 = vpack.c.bf16 %v1766_v47, %v1766_v47  ;;  %v1144_v50 = vpop.f32.mrb[32].mxu1 }
 0x155   :  { %v1767_v51 = vsel %vm1639_vm0, %v1429_v46, %v1703_v48  ;;  %v1145_v52 = vadd.f32 %v3266_v15, %v1144_v50  ;;  %v1433_v53 = vpop.f32.mrb[32].mxu0  ;;  %v1146_v54 = vpop.f32.mrb[33].mxu1 }
 0x156   :  { %2087 = vst.msk [vmem:[%s3650_s3 + $0x38] sm:$0xf] %vm2072_vm1, %v2380_v49  ;;  %v2381_v55 = vpack.c.bf16 %v1767_v51, %v1767_v51  ;;  %v1435_v56 = vpop.f32.mrb[33].mxu0  ;;  %v1147_v57 = vpop.f32.mrb[34].mxu1 }
 0x157   :  { %v1434_v58 = vadd.f32 %v1433_v53, %v1145_v52  ;;  %v1148_v59 = vadd.f32 %v3266_v15, %v1147_v57  ;;  %v1436_v60 = vpop.f32.mrb[34].mxu0  ;;  %v1149_v61 = vpop.f32.mrb[35].mxu1 }
 0x158   :  { %2088 = vst.msk [vmem:[%s3650_s3 + $0x3c] sm:$0xf] %vm2072_vm1, %v2381_v55  ;;  %v1438_v62 = vpop.f32.mrb[35].mxu0 }
 0x159   :  { %vm1640_vm2 = vcmp.ge.f32.partialorder %v1434_v58, 0.0  ;;  %v1704_v63 = vmul.f32 0.2, %v1434_v58  ;;  %v1437_v0 = vadd.f32 %v1436_v60, %v1148_v59 }
 0x15b   :  { %v1768_v1 = vsel %vm1640_vm2, %v1434_v58, %v1704_v63  ;;  %vm1641_vm3 = vcmp.ge.f32.partialorder %v1437_v0, 0.0  ;;  %v1705_v2 = vmul.f32 0.2, %v1437_v0 }
 0x15c   :  { %v2382_v3 = vpack.c.bf16 %v1768_v1, %v1768_v1  ;;  %v1152_v4 = vpop.f32.mrb[36].mxu1 }
 0x15d   :  { %v1769_v5 = vsel %vm1641_vm3, %v1437_v0, %v1705_v2  ;;  %v1153_v6 = vadd.f32 %v3266_v15, %v1152_v4  ;;  %v1441_v7 = vpop.f32.mrb[36].mxu0  ;;  %v1154_v8 = vpop.f32.mrb[37].mxu1 }
 0x15e   :  { %2089 = vst.msk [vmem:[%s3650_s3 + $0x40] sm:$0xf] %vm2072_vm1, %v2382_v3  ;;  %v2383_v9 = vpack.c.bf16 %v1769_v5, %v1769_v5  ;;  %v1443_v10 = vpop.f32.mrb[37].mxu0  ;;  %v1155_v11 = vpop.f32.mrb[38].mxu1 }
 0x15f   :  { %v1442_v12 = vadd.f32 %v1441_v7, %v1153_v6  ;;  %v1156_v13 = vadd.f32 %v3266_v15, %v1155_v11  ;;  %v1444_v14 = vpop.f32.mrb[38].mxu0  ;;  %v1157_v16 = vpop.f32.mrb[39].mxu1 }
 0x160   :  { %2090 = vst.msk [vmem:[%s3650_s3 + $0x44] sm:$0xf] %vm2072_vm1, %v2383_v9  ;;  %v1446_v17 = vpop.f32.mrb[39].mxu0 }
 0x161   :  { %vm1642_vm4 = vcmp.ge.f32.partialorder %v1442_v12, 0.0  ;;  %v1706_v18 = vmul.f32 0.2, %v1442_v12  ;;  %v1445_v19 = vadd.f32 %v1444_v14, %v1156_v13 }
 0x163   :  { %v1770_v20 = vsel %vm1642_vm4, %v1442_v12, %v1706_v18  ;;  %vm1643_vm5 = vcmp.ge.f32.partialorder %v1445_v19, 0.0  ;;  %v1707_v21 = vmul.f32 0.2, %v1445_v19 }
 0x164   :  { %v2384_v22 = vpack.c.bf16 %v1770_v20, %v1770_v20  ;;  %v1160_v23 = vpop.f32.mrb[40].mxu1 }
 0x165   :  { %v1771_v24 = vsel %vm1643_vm5, %v1445_v19, %v1707_v21  ;;  %v1161_v25 = vadd.f32 %v3266_v15, %v1160_v23  ;;  %v1449_v26 = vpop.f32.mrb[40].mxu0  ;;  %v1162_v27 = vpop.f32.mrb[41].mxu1 }
 0x166   :  { %2091 = vst.msk [vmem:[%s3650_s3 + $0x48] sm:$0xf] %vm2072_vm1, %v2384_v22  ;;  %v2385_v28 = vpack.c.bf16 %v1771_v24, %v1771_v24  ;;  %v1451_v29 = vpop.f32.mrb[41].mxu0  ;;  %v1163_v30 = vpop.f32.mrb[42].mxu1 }
 0x167   :  { %v1450_v31 = vadd.f32 %v1449_v26, %v1161_v25  ;;  %v1164_v32 = vadd.f32 %v3266_v15, %v1163_v30  ;;  %v1452_v33 = vpop.f32.mrb[42].mxu0  ;;  %v1165_v34 = vpop.f32.mrb[43].mxu1 }
 0x168   :  { %2092 = vst.msk [vmem:[%s3650_s3 + $0x4c] sm:$0xf] %vm2072_vm1, %v2385_v28  ;;  %v1454_v35 = vpop.f32.mrb[43].mxu0 }
 0x169   :  { %vm1644_vm6 = vcmp.ge.f32.partialorder %v1450_v31, 0.0  ;;  %v1708_v36 = vmul.f32 0.2, %v1450_v31  ;;  %v1453_v37 = vadd.f32 %v1452_v33, %v1164_v32 }
 0x16b   :  { %v1772_v38 = vsel %vm1644_vm6, %v1450_v31, %v1708_v36  ;;  %vm1645_vm7 = vcmp.ge.f32.partialorder %v1453_v37, 0.0  ;;  %v1709_v39 = vmul.f32 0.2, %v1453_v37 }
 0x16c   :  { %v2386_v40 = vpack.c.bf16 %v1772_v38, %v1772_v38  ;;  %v1168_v41 = vpop.f32.mrb[44].mxu1 }
 0x16d   :  { %v1773_v42 = vsel %vm1645_vm7, %v1453_v37, %v1709_v39  ;;  %v1169_v43 = vadd.f32 %v3266_v15, %v1168_v41  ;;  %v1457_v44 = vpop.f32.mrb[44].mxu0  ;;  %v1170_v45 = vpop.f32.mrb[45].mxu1 }
 0x16e   :  { %2093 = vst.msk [vmem:[%s3650_s3 + $0x50] sm:$0xf] %vm2072_vm1, %v2386_v40  ;;  %v2387_v46 = vpack.c.bf16 %v1773_v42, %v1773_v42  ;;  %v1459_v47 = vpop.f32.mrb[45].mxu0  ;;  %v1171_v48 = vpop.f32.mrb[46].mxu1 }
 0x16f   :  { %v1458_v49 = vadd.f32 %v1457_v44, %v1169_v43  ;;  %v1172_v50 = vadd.f32 %v3266_v15, %v1171_v48  ;;  %v1460_v51 = vpop.f32.mrb[46].mxu0  ;;  %v1173_v52 = vpop.f32.mrb[47].mxu1 }
 0x170   :  { %2094 = vst.msk [vmem:[%s3650_s3 + $0x54] sm:$0xf] %vm2072_vm1, %v2387_v46  ;;  %v1462_v53 = vpop.f32.mrb[47].mxu0 }
 0x171   :  { %vm1646_vm8 = vcmp.ge.f32.partialorder %v1458_v49, 0.0  ;;  %v1710_v54 = vmul.f32 0.2, %v1458_v49  ;;  %v1461_v55 = vadd.f32 %v1460_v51, %v1172_v50 }
 0x173   :  { %v1774_v56 = vsel %vm1646_vm8, %v1458_v49, %v1710_v54  ;;  %vm1647_vm9 = vcmp.ge.f32.partialorder %v1461_v55, 0.0  ;;  %v1711_v57 = vmul.f32 0.2, %v1461_v55 }
 0x174   :  { %v2388_v58 = vpack.c.bf16 %v1774_v56, %v1774_v56  ;;  %v1176_v59 = vpop.f32.mrb[48].mxu1 }
 0x175   :  { %v1775_v60 = vsel %vm1647_vm9, %v1461_v55, %v1711_v57  ;;  %v1177_v61 = vadd.f32 %v3266_v15, %v1176_v59  ;;  %v1465_v62 = vpop.f32.mrb[48].mxu0  ;;  %v1178_v63 = vpop.f32.mrb[49].mxu1 }
 0x176   :  { %2095 = vst.msk [vmem:[%s3650_s3 + $0x58] sm:$0xf] %vm2072_vm1, %v2388_v58  ;;  %v2389_v0 = vpack.c.bf16 %v1775_v60, %v1775_v60  ;;  %v1467_v1 = vpop.f32.mrb[49].mxu0  ;;  %v1179_v2 = vpop.f32.mrb[50].mxu1 }
 0x177   :  { %v1466_v3 = vadd.f32 %v1465_v62, %v1177_v61  ;;  %v1180_v4 = vadd.f32 %v3266_v15, %v1179_v2  ;;  %v1468_v5 = vpop.f32.mrb[50].mxu0  ;;  %v1181_v6 = vpop.f32.mrb[51].mxu1 }
 0x178   :  { %2096 = vst.msk [vmem:[%s3650_s3 + $0x5c] sm:$0xf] %vm2072_vm1, %v2389_v0  ;;  %v1470_v7 = vpop.f32.mrb[51].mxu0 }
 0x179   :  { %vm1648_vm10 = vcmp.ge.f32.partialorder %v1466_v3, 0.0  ;;  %v1712_v8 = vmul.f32 0.2, %v1466_v3  ;;  %v1469_v9 = vadd.f32 %v1468_v5, %v1180_v4 }
 0x17b   :  { %v1776_v10 = vsel %vm1648_vm10, %v1466_v3, %v1712_v8  ;;  %vm1649_vm11 = vcmp.ge.f32.partialorder %v1469_v9, 0.0  ;;  %v1713_v11 = vmul.f32 0.2, %v1469_v9 }
 0x17c   :  { %v2390_v12 = vpack.c.bf16 %v1776_v10, %v1776_v10  ;;  %v1184_v13 = vpop.f32.mrb[52].mxu1 }
 0x17d   :  { %v1777_v14 = vsel %vm1649_vm11, %v1469_v9, %v1713_v11  ;;  %v1185_v16 = vadd.f32 %v3266_v15, %v1184_v13  ;;  %v1473_v17 = vpop.f32.mrb[52].mxu0  ;;  %v1186_v18 = vpop.f32.mrb[53].mxu1 }
 0x17e   :  { %2097 = vst.msk [vmem:[%s3650_s3 + $0x60] sm:$0xf] %vm2072_vm1, %v2390_v12  ;;  %v2391_v19 = vpack.c.bf16 %v1777_v14, %v1777_v14  ;;  %v1475_v20 = vpop.f32.mrb[53].mxu0  ;;  %v1187_v21 = vpop.f32.mrb[54].mxu1 }
 0x17f   :  { %v1474_v22 = vadd.f32 %v1473_v17, %v1185_v16  ;;  %v1188_v23 = vadd.f32 %v3266_v15, %v1187_v21  ;;  %v1476_v24 = vpop.f32.mrb[54].mxu0  ;;  %v1189_v25 = vpop.f32.mrb[55].mxu1 }
 0x180   :  { %2098 = vst.msk [vmem:[%s3650_s3 + $0x64] sm:$0xf] %vm2072_vm1, %v2391_v19  ;;  %v1478_v26 = vpop.f32.mrb[55].mxu0 }
 0x181   :  { %vm1650_vm12 = vcmp.ge.f32.partialorder %v1474_v22, 0.0  ;;  %v1714_v27 = vmul.f32 0.2, %v1474_v22  ;;  %v1477_v28 = vadd.f32 %v1476_v24, %v1188_v23 }
 0x183   :  { %v1778_v29 = vsel %vm1650_vm12, %v1474_v22, %v1714_v27  ;;  %vm1651_vm13 = vcmp.ge.f32.partialorder %v1477_v28, 0.0  ;;  %v1715_v30 = vmul.f32 0.2, %v1477_v28 }
 0x184   :  { %v2392_v31 = vpack.c.bf16 %v1778_v29, %v1778_v29  ;;  %v1192_v32 = vpop.f32.mrb[56].mxu1 }
 0x185   :  { %v1779_v33 = vsel %vm1651_vm13, %v1477_v28, %v1715_v30  ;;  %v1193_v34 = vadd.f32 %v3266_v15, %v1192_v32  ;;  %v1481_v35 = vpop.f32.mrb[56].mxu0  ;;  %v1194_v36 = vpop.f32.mrb[57].mxu1 }
 0x186   :  { %2099 = vst.msk [vmem:[%s3650_s3 + $0x68] sm:$0xf] %vm2072_vm1, %v2392_v31  ;;  %v2393_v37 = vpack.c.bf16 %v1779_v33, %v1779_v33  ;;  %v1483_v38 = vpop.f32.mrb[57].mxu0  ;;  %v1195_v39 = vpop.f32.mrb[58].mxu1 }
 0x187   :  { %v1482_v40 = vadd.f32 %v1481_v35, %v1193_v34  ;;  %v1196_v41 = vadd.f32 %v3266_v15, %v1195_v39  ;;  %v1484_v42 = vpop.f32.mrb[58].mxu0  ;;  %v1197_v43 = vpop.f32.mrb[59].mxu1 }
 0x188   :  { %2100 = vst.msk [vmem:[%s3650_s3 + $0x6c] sm:$0xf] %vm2072_vm1, %v2393_v37  ;;  %v1486_v44 = vpop.f32.mrb[59].mxu0 }
 0x189   :  { %vm1652_vm14 = vcmp.ge.f32.partialorder %v1482_v40, 0.0  ;;  %v1716_v45 = vmul.f32 0.2, %v1482_v40  ;;  %v1485_v46 = vadd.f32 %v1484_v42, %v1196_v41 }
 0x18b   :  { %v1780_v47 = vsel %vm1652_vm14, %v1482_v40, %v1716_v45  ;;  %vm1653_vm15 = vcmp.ge.f32.partialorder %v1485_v46, 0.0  ;;  %v1717_v48 = vmul.f32 0.2, %v1485_v46 }
 0x18c   :  { %v2394_v49 = vpack.c.bf16 %v1780_v47, %v1780_v47  ;;  %v1200_v50 = vpop.f32.mrb[60].mxu1 }
 0x18d   :  { %v1781_v51 = vsel %vm1653_vm15, %v1485_v46, %v1717_v48  ;;  %v1201_v52 = vadd.f32 %v3266_v15, %v1200_v50  ;;  %v1489_v53 = vpop.f32.mrb[60].mxu0  ;;  %v1202_v54 = vpop.f32.mrb[61].mxu1 }
 0x18e   :  { %2101 = vst.msk [vmem:[%s3650_s3 + $0x70] sm:$0xf] %vm2072_vm1, %v2394_v49  ;;  %v2395_v55 = vpack.c.bf16 %v1781_v51, %v1781_v51  ;;  %v1491_v56 = vpop.f32.mrb[61].mxu0  ;;  %v1203_v57 = vpop.f32.mrb[62].mxu1 }
 0x18f   :  { %v1490_v58 = vadd.f32 %v1489_v53, %v1201_v52  ;;  %v1204_v59 = vadd.f32 %v3266_v15, %v1203_v57  ;;  %v1492_v60 = vpop.f32.mrb[62].mxu0  ;;  %v1205_v61 = vpop.f32.mrb[63].mxu1 }
 0x190   :  { %2102 = vst.msk [vmem:[%s3650_s3 + $0x74] sm:$0xf] %vm2072_vm1, %v2395_v55  ;;  %v1494_v62 = vpop.f32.mrb[63].mxu0 }
 0x191   :  { %vm1654_vm0 = vcmp.ge.f32.partialorder %v1490_v58, 0.0  ;;  %v1718_v63 = vmul.f32 0.2, %v1490_v58  ;;  %v1493_v0 = vadd.f32 %v1492_v60, %v1204_v59 }
 0x193   :  { %v1782_v1 = vsel %vm1654_vm0, %v1490_v58, %v1718_v63  ;;  %vm1655_vm2 = vcmp.ge.f32.partialorder %v1493_v0, 0.0  ;;  %v1719_v2 = vmul.f32 0.2, %v1493_v0 }
 0x194   :  { %v2396_v3 = vpack.c.bf16 %v1782_v1, %v1782_v1  ;;  %v1208_v4 = vpop.f32.mrb[64].mxu1 }
 0x195   :  { %v1783_v5 = vsel %vm1655_vm2, %v1493_v0, %v1719_v2  ;;  %v1209_v6 = vadd.f32 %v3266_v15, %v1208_v4  ;;  %v1497_v7 = vpop.f32.mrb[64].mxu0  ;;  %v1210_v8 = vpop.f32.mrb[65].mxu1 }
 0x196   :  { %2103 = vst.msk [vmem:[%s3650_s3 + $0x78] sm:$0xf] %vm2072_vm1, %v2396_v3  ;;  %v2397_v9 = vpack.c.bf16 %v1783_v5, %v1783_v5  ;;  %v1499_v10 = vpop.f32.mrb[65].mxu0  ;;  %v1211_v11 = vpop.f32.mrb[66].mxu1 }
 0x197   :  { %v1498_v12 = vadd.f32 %v1497_v7, %v1209_v6  ;;  %v1212_v13 = vadd.f32 %v3266_v15, %v1211_v11  ;;  %v1500_v14 = vpop.f32.mrb[66].mxu0  ;;  %v1213_v16 = vpop.f32.mrb[67].mxu1 }
 0x198   :  { %2104 = vst.msk [vmem:[%s3650_s3 + $0x7c] sm:$0xf] %vm2072_vm1, %v2397_v9  ;;  %v1502_v17 = vpop.f32.mrb[67].mxu0 }
 0x199   :  { %vm1656_vm3 = vcmp.ge.f32.partialorder %v1498_v12, 0.0  ;;  %v1720_v18 = vmul.f32 0.2, %v1498_v12  ;;  %v1501_v19 = vadd.f32 %v1500_v14, %v1212_v13 }
 0x19b   :  { %v1784_v20 = vsel %vm1656_vm3, %v1498_v12, %v1720_v18  ;;  %vm1657_vm4 = vcmp.ge.f32.partialorder %v1501_v19, 0.0  ;;  %v1721_v21 = vmul.f32 0.2, %v1501_v19 }
 0x19c   :  { %v2398_v22 = vpack.c.bf16 %v1784_v20, %v1784_v20  ;;  %v1216_v23 = vpop.f32.mrb[68].mxu1 }
 0x19d   :  { %v1785_v24 = vsel %vm1657_vm4, %v1501_v19, %v1721_v21  ;;  %v1217_v25 = vadd.f32 %v3266_v15, %v1216_v23  ;;  %v1505_v26 = vpop.f32.mrb[68].mxu0  ;;  %v1218_v27 = vpop.f32.mrb[69].mxu1 }
 0x19e   :  { %2105 = vst.msk [vmem:[%s3650_s3 + $0x80] sm:$0xf] %vm2072_vm1, %v2398_v22  ;;  %v2399_v28 = vpack.c.bf16 %v1785_v24, %v1785_v24  ;;  %v1507_v29 = vpop.f32.mrb[69].mxu0  ;;  %v1219_v30 = vpop.f32.mrb[70].mxu1 }
 0x19f   :  { %v1506_v31 = vadd.f32 %v1505_v26, %v1217_v25  ;;  %v1220_v32 = vadd.f32 %v3266_v15, %v1219_v30  ;;  %v1508_v33 = vpop.f32.mrb[70].mxu0  ;;  %v1221_v34 = vpop.f32.mrb[71].mxu1 }
 0x1a0   :  { %2106 = vst.msk [vmem:[%s3650_s3 + $0x84] sm:$0xf] %vm2072_vm1, %v2399_v28  ;;  %v1510_v35 = vpop.f32.mrb[71].mxu0 }
 0x1a1   :  { %vm1658_vm5 = vcmp.ge.f32.partialorder %v1506_v31, 0.0  ;;  %v1722_v36 = vmul.f32 0.2, %v1506_v31  ;;  %v1509_v37 = vadd.f32 %v1508_v33, %v1220_v32 }
 0x1a3   :  { %v1786_v38 = vsel %vm1658_vm5, %v1506_v31, %v1722_v36  ;;  %vm1659_vm6 = vcmp.ge.f32.partialorder %v1509_v37, 0.0  ;;  %v1723_v39 = vmul.f32 0.2, %v1509_v37 }
 0x1a4   :  { %v2400_v40 = vpack.c.bf16 %v1786_v38, %v1786_v38  ;;  %v1224_v41 = vpop.f32.mrb[72].mxu1 }
 0x1a5   :  { %v1787_v42 = vsel %vm1659_vm6, %v1509_v37, %v1723_v39  ;;  %v1225_v43 = vadd.f32 %v3266_v15, %v1224_v41  ;;  %v1513_v44 = vpop.f32.mrb[72].mxu0  ;;  %v1226_v45 = vpop.f32.mrb[73].mxu1 }
 0x1a6   :  { %2107 = vst.msk [vmem:[%s3650_s3 + $0x88] sm:$0xf] %vm2072_vm1, %v2400_v40  ;;  %v2401_v46 = vpack.c.bf16 %v1787_v42, %v1787_v42  ;;  %v1515_v47 = vpop.f32.mrb[73].mxu0  ;;  %v1227_v48 = vpop.f32.mrb[74].mxu1 }
 0x1a7   :  { %v1514_v49 = vadd.f32 %v1513_v44, %v1225_v43  ;;  %v1228_v50 = vadd.f32 %v3266_v15, %v1227_v48  ;;  %v1516_v51 = vpop.f32.mrb[74].mxu0  ;;  %v1229_v52 = vpop.f32.mrb[75].mxu1 }
 0x1a8   :  { %2108 = vst.msk [vmem:[%s3650_s3 + $0x8c] sm:$0xf] %vm2072_vm1, %v2401_v46  ;;  %v1518_v53 = vpop.f32.mrb[75].mxu0 }
 0x1a9   :  { %vm1660_vm7 = vcmp.ge.f32.partialorder %v1514_v49, 0.0  ;;  %v1724_v54 = vmul.f32 0.2, %v1514_v49  ;;  %v1517_v55 = vadd.f32 %v1516_v51, %v1228_v50 }
 0x1ab   :  { %v1788_v56 = vsel %vm1660_vm7, %v1514_v49, %v1724_v54  ;;  %vm1661_vm8 = vcmp.ge.f32.partialorder %v1517_v55, 0.0  ;;  %v1725_v57 = vmul.f32 0.2, %v1517_v55 }
 0x1ac   :  { %v2402_v58 = vpack.c.bf16 %v1788_v56, %v1788_v56  ;;  %v1232_v59 = vpop.f32.mrb[76].mxu1 }
 0x1ad   :  { %v1789_v60 = vsel %vm1661_vm8, %v1517_v55, %v1725_v57  ;;  %v1233_v61 = vadd.f32 %v3266_v15, %v1232_v59  ;;  %v1521_v62 = vpop.f32.mrb[76].mxu0  ;;  %v1234_v63 = vpop.f32.mrb[77].mxu1 }
 0x1ae   :  { %2109 = vst.msk [vmem:[%s3650_s3 + $0x90] sm:$0xf] %vm2072_vm1, %v2402_v58  ;;  %v2403_v0 = vpack.c.bf16 %v1789_v60, %v1789_v60  ;;  %v1523_v1 = vpop.f32.mrb[77].mxu0  ;;  %v1235_v2 = vpop.f32.mrb[78].mxu1 }
 0x1af   :  { %v1522_v3 = vadd.f32 %v1521_v62, %v1233_v61  ;;  %v1236_v4 = vadd.f32 %v3266_v15, %v1235_v2  ;;  %v1524_v5 = vpop.f32.mrb[78].mxu0  ;;  %v1237_v6 = vpop.f32.mrb[79].mxu1 }
 0x1b0   :  { %2110 = vst.msk [vmem:[%s3650_s3 + $0x94] sm:$0xf] %vm2072_vm1, %v2403_v0  ;;  %v1526_v7 = vpop.f32.mrb[79].mxu0 }
 0x1b1   :  { %vm1662_vm9 = vcmp.ge.f32.partialorder %v1522_v3, 0.0  ;;  %v1726_v8 = vmul.f32 0.2, %v1522_v3  ;;  %v1525_v9 = vadd.f32 %v1524_v5, %v1236_v4 }
 0x1b3   :  { %v1790_v10 = vsel %vm1662_vm9, %v1522_v3, %v1726_v8  ;;  %vm1663_vm10 = vcmp.ge.f32.partialorder %v1525_v9, 0.0  ;;  %v1727_v11 = vmul.f32 0.2, %v1525_v9 }
 0x1b4   :  { %v2404_v12 = vpack.c.bf16 %v1790_v10, %v1790_v10  ;;  %v1240_v13 = vpop.f32.mrb[80].mxu1 }
 0x1b5   :  { %v1791_v14 = vsel %vm1663_vm10, %v1525_v9, %v1727_v11  ;;  %v1241_v16 = vadd.f32 %v3266_v15, %v1240_v13  ;;  %v1529_v17 = vpop.f32.mrb[80].mxu0  ;;  %v1242_v18 = vpop.f32.mrb[81].mxu1 }
 0x1b6   :  { %2111 = vst.msk [vmem:[%s3650_s3 + $0x98] sm:$0xf] %vm2072_vm1, %v2404_v12  ;;  %v2405_v19 = vpack.c.bf16 %v1791_v14, %v1791_v14  ;;  %v1531_v20 = vpop.f32.mrb[81].mxu0  ;;  %v1243_v21 = vpop.f32.mrb[82].mxu1 }
 0x1b7   :  { %v1530_v22 = vadd.f32 %v1529_v17, %v1241_v16  ;;  %v1244_v23 = vadd.f32 %v3266_v15, %v1243_v21  ;;  %v1532_v24 = vpop.f32.mrb[82].mxu0  ;;  %v1245_v25 = vpop.f32.mrb[83].mxu1 }
 0x1b8   :  { %2112 = vst.msk [vmem:[%s3650_s3 + $0x9c] sm:$0xf] %vm2072_vm1, %v2405_v19  ;;  %v1534_v26 = vpop.f32.mrb[83].mxu0 }
 0x1b9   :  { %vm1664_vm11 = vcmp.ge.f32.partialorder %v1530_v22, 0.0  ;;  %v1728_v27 = vmul.f32 0.2, %v1530_v22  ;;  %v1533_v28 = vadd.f32 %v1532_v24, %v1244_v23 }
 0x1bb   :  { %v1792_v29 = vsel %vm1664_vm11, %v1530_v22, %v1728_v27  ;;  %vm1665_vm12 = vcmp.ge.f32.partialorder %v1533_v28, 0.0  ;;  %v1729_v30 = vmul.f32 0.2, %v1533_v28 }
 0x1bc   :  { %v2406_v31 = vpack.c.bf16 %v1792_v29, %v1792_v29  ;;  %v1248_v32 = vpop.f32.mrb[84].mxu1 }
 0x1bd   :  { %v1793_v33 = vsel %vm1665_vm12, %v1533_v28, %v1729_v30  ;;  %v1249_v34 = vadd.f32 %v3266_v15, %v1248_v32  ;;  %v1537_v35 = vpop.f32.mrb[84].mxu0  ;;  %v1250_v36 = vpop.f32.mrb[85].mxu1 }
 0x1be   :  { %2113 = vst.msk [vmem:[%s3650_s3 + $0xa0] sm:$0xf] %vm2072_vm1, %v2406_v31  ;;  %v2407_v37 = vpack.c.bf16 %v1793_v33, %v1793_v33  ;;  %v1539_v38 = vpop.f32.mrb[85].mxu0  ;;  %v1251_v39 = vpop.f32.mrb[86].mxu1 }
 0x1bf   :  { %v1538_v40 = vadd.f32 %v1537_v35, %v1249_v34  ;;  %v1252_v41 = vadd.f32 %v3266_v15, %v1251_v39  ;;  %v1540_v42 = vpop.f32.mrb[86].mxu0  ;;  %v1253_v43 = vpop.f32.mrb[87].mxu1  ;;  %v3537_v15 = vld [vmem:[%s3649_s2] ss:$0 sm:$0xff] }
 0x1c0   :  { %2114 = vst.msk [vmem:[%s3650_s3 + $0xa4] sm:$0xf] %vm2072_vm1, %v2407_v37  ;;  %v1542_v44 = vpop.f32.mrb[87].mxu0 }
 0x1c1   :  { %vm1666_vm13 = vcmp.ge.f32.partialorder %v1538_v40, 0.0  ;;  %v1730_v45 = vmul.f32 0.2, %v1538_v40  ;;  %v1541_v46 = vadd.f32 %v1540_v42, %v1252_v41 }
 0x1c3   :  { %v1794_v47 = vsel %vm1666_vm13, %v1538_v40, %v1730_v45  ;;  %vm1667_vm14 = vcmp.ge.f32.partialorder %v1541_v46, 0.0  ;;  %v1731_v48 = vmul.f32 0.2, %v1541_v46 }
 0x1c4   :  { %v2408_v49 = vpack.c.bf16 %v1794_v47, %v1794_v47  ;;  %v1256_v50 = vpop.f32.mrb[88].mxu1 }
 0x1c5   :  { %v1795_v51 = vsel %vm1667_vm14, %v1541_v46, %v1731_v48  ;;  %v1257_v52 = vadd.f32 %v3537_v15, %v1256_v50  ;;  %v1545_v53 = vpop.f32.mrb[88].mxu0  ;;  %v1258_v54 = vpop.f32.mrb[89].mxu1 }
 0x1c6   :  { %2115 = vst.msk [vmem:[%s3650_s3 + $0xa8] sm:$0xf] %vm2072_vm1, %v2408_v49  ;;  %v2409_v55 = vpack.c.bf16 %v1795_v51, %v1795_v51  ;;  %v1547_v56 = vpop.f32.mrb[89].mxu0  ;;  %v1259_v57 = vpop.f32.mrb[90].mxu1 }
 0x1c7   :  { %v1546_v58 = vadd.f32 %v1545_v53, %v1257_v52  ;;  %v1260_v59 = vadd.f32 %v3537_v15, %v1259_v57  ;;  %v1548_v60 = vpop.f32.mrb[90].mxu0  ;;  %v1261_v61 = vpop.f32.mrb[91].mxu1 }
 0x1c8   :  { %2116 = vst.msk [vmem:[%s3650_s3 + $0xac] sm:$0xf] %vm2072_vm1, %v2409_v55  ;;  %v1550_v62 = vpop.f32.mrb[91].mxu0 }
 0x1c9   :  { %vm1668_vm15 = vcmp.ge.f32.partialorder %v1546_v58, 0.0  ;;  %v1732_v63 = vmul.f32 0.2, %v1546_v58  ;;  %v1549_v0 = vadd.f32 %v1548_v60, %v1260_v59 }
 0x1cb   :  { %v1796_v1 = vsel %vm1668_vm15, %v1546_v58, %v1732_v63  ;;  %vm1669_vm0 = vcmp.ge.f32.partialorder %v1549_v0, 0.0  ;;  %v1733_v2 = vmul.f32 0.2, %v1549_v0 }
 0x1cc   :  { %v2410_v3 = vpack.c.bf16 %v1796_v1, %v1796_v1  ;;  %v1264_v4 = vpop.f32.mrb[92].mxu1 }
 0x1cd   :  { %v1797_v5 = vsel %vm1669_vm0, %v1549_v0, %v1733_v2  ;;  %v1265_v6 = vadd.f32 %v3537_v15, %v1264_v4  ;;  %v1553_v7 = vpop.f32.mrb[92].mxu0  ;;  %v1266_v8 = vpop.f32.mrb[93].mxu1 }
 0x1ce   :  { %2117 = vst.msk [vmem:[%s3650_s3 + $0xb0] sm:$0xf] %vm2072_vm1, %v2410_v3  ;;  %v2411_v9 = vpack.c.bf16 %v1797_v5, %v1797_v5  ;;  %v1555_v10 = vpop.f32.mrb[93].mxu0  ;;  %v1267_v11 = vpop.f32.mrb[94].mxu1 }
 0x1cf   :  { %v1554_v12 = vadd.f32 %v1553_v7, %v1265_v6  ;;  %v1268_v13 = vadd.f32 %v3537_v15, %v1267_v11  ;;  %v1556_v14 = vpop.f32.mrb[94].mxu0  ;;  %v1269_v16 = vpop.f32.mrb[95].mxu1 }
 0x1d0   :  { %2118 = vst.msk [vmem:[%s3650_s3 + $0xb4] sm:$0xf] %vm2072_vm1, %v2411_v9  ;;  %v1558_v17 = vpop.f32.mrb[95].mxu0 }
 0x1d1   :  { %vm1670_vm2 = vcmp.ge.f32.partialorder %v1554_v12, 0.0  ;;  %v1734_v18 = vmul.f32 0.2, %v1554_v12  ;;  %v1557_v19 = vadd.f32 %v1556_v14, %v1268_v13 }
 0x1d3   :  { %v1798_v20 = vsel %vm1670_vm2, %v1554_v12, %v1734_v18  ;;  %vm1671_vm3 = vcmp.ge.f32.partialorder %v1557_v19, 0.0  ;;  %v1735_v21 = vmul.f32 0.2, %v1557_v19 }
 0x1d4   :  { %v2412_v22 = vpack.c.bf16 %v1798_v20, %v1798_v20  ;;  %v1272_v23 = vpop.f32.mrb[96].mxu1 }
 0x1d5   :  { %v1799_v24 = vsel %vm1671_vm3, %v1557_v19, %v1735_v21  ;;  %v1273_v25 = vadd.f32 %v3537_v15, %v1272_v23  ;;  %v1561_v26 = vpop.f32.mrb[96].mxu0  ;;  %v1274_v27 = vpop.f32.mrb[97].mxu1 }
 0x1d6   :  { %2119 = vst.msk [vmem:[%s3650_s3 + $0xb8] sm:$0xf] %vm2072_vm1, %v2412_v22  ;;  %v2413_v28 = vpack.c.bf16 %v1799_v24, %v1799_v24  ;;  %v1563_v29 = vpop.f32.mrb[97].mxu0  ;;  %v1275_v30 = vpop.f32.mrb[98].mxu1 }
 0x1d7   :  { %v1562_v31 = vadd.f32 %v1561_v26, %v1273_v25  ;;  %v1276_v32 = vadd.f32 %v3537_v15, %v1275_v30  ;;  %v1564_v33 = vpop.f32.mrb[98].mxu0  ;;  %v1277_v34 = vpop.f32.mrb[99].mxu1 }
 0x1d8   :  { %2120 = vst.msk [vmem:[%s3650_s3 + $0xbc] sm:$0xf] %vm2072_vm1, %v2413_v28  ;;  %v1566_v35 = vpop.f32.mrb[99].mxu0 }
 0x1d9   :  { %vm1672_vm4 = vcmp.ge.f32.partialorder %v1562_v31, 0.0  ;;  %v1736_v36 = vmul.f32 0.2, %v1562_v31  ;;  %v1565_v37 = vadd.f32 %v1564_v33, %v1276_v32 }
 0x1db   :  { %v1800_v38 = vsel %vm1672_vm4, %v1562_v31, %v1736_v36  ;;  %vm1673_vm5 = vcmp.ge.f32.partialorder %v1565_v37, 0.0  ;;  %v1737_v39 = vmul.f32 0.2, %v1565_v37 }
 0x1dc   :  { %v2414_v40 = vpack.c.bf16 %v1800_v38, %v1800_v38  ;;  %v1280_v41 = vpop.f32.mrb[100].mxu1 }
 0x1dd   :  { %v1801_v42 = vsel %vm1673_vm5, %v1565_v37, %v1737_v39  ;;  %v1281_v43 = vadd.f32 %v3537_v15, %v1280_v41  ;;  %v1569_v44 = vpop.f32.mrb[100].mxu0  ;;  %v1282_v45 = vpop.f32.mrb[101].mxu1 }
 0x1de   :  { %2121 = vst.msk [vmem:[%s3650_s3 + $0xc0] sm:$0xf] %vm2072_vm1, %v2414_v40  ;;  %v2415_v46 = vpack.c.bf16 %v1801_v42, %v1801_v42  ;;  %v1571_v47 = vpop.f32.mrb[101].mxu0  ;;  %v1283_v48 = vpop.f32.mrb[102].mxu1 }
 0x1df   :  { %v1570_v49 = vadd.f32 %v1569_v44, %v1281_v43  ;;  %v1284_v50 = vadd.f32 %v3537_v15, %v1283_v48  ;;  %v1572_v51 = vpop.f32.mrb[102].mxu0  ;;  %v1285_v52 = vpop.f32.mrb[103].mxu1 }
 0x1e0   :  { %2122 = vst.msk [vmem:[%s3650_s3 + $0xc4] sm:$0xf] %vm2072_vm1, %v2415_v46  ;;  %v1574_v53 = vpop.f32.mrb[103].mxu0 }
 0x1e1   :  { %vm1674_vm6 = vcmp.ge.f32.partialorder %v1570_v49, 0.0  ;;  %v1738_v54 = vmul.f32 0.2, %v1570_v49  ;;  %v1573_v55 = vadd.f32 %v1572_v51, %v1284_v50 }
 0x1e3   :  { %v1802_v56 = vsel %vm1674_vm6, %v1570_v49, %v1738_v54  ;;  %vm1675_vm7 = vcmp.ge.f32.partialorder %v1573_v55, 0.0  ;;  %v1739_v57 = vmul.f32 0.2, %v1573_v55 }
 0x1e4   :  { %v2416_v58 = vpack.c.bf16 %v1802_v56, %v1802_v56  ;;  %v1288_v59 = vpop.f32.mrb[104].mxu1 }
 0x1e5   :  { %v1803_v60 = vsel %vm1675_vm7, %v1573_v55, %v1739_v57  ;;  %v1289_v61 = vadd.f32 %v3537_v15, %v1288_v59  ;;  %v1577_v62 = vpop.f32.mrb[104].mxu0  ;;  %v1290_v63 = vpop.f32.mrb[105].mxu1 }
 0x1e6   :  { %2123 = vst.msk [vmem:[%s3650_s3 + $0xc8] sm:$0xf] %vm2072_vm1, %v2416_v58  ;;  %v2417_v0 = vpack.c.bf16 %v1803_v60, %v1803_v60  ;;  %v1579_v1 = vpop.f32.mrb[105].mxu0  ;;  %v1291_v2 = vpop.f32.mrb[106].mxu1 }
 0x1e7   :  { %v1578_v3 = vadd.f32 %v1577_v62, %v1289_v61  ;;  %v1292_v4 = vadd.f32 %v3537_v15, %v1291_v2  ;;  %v1580_v5 = vpop.f32.mrb[106].mxu0  ;;  %v1293_v6 = vpop.f32.mrb[107].mxu1 }
 0x1e8   :  { %2124 = vst.msk [vmem:[%s3650_s3 + $0xcc] sm:$0xf] %vm2072_vm1, %v2417_v0  ;;  %v1582_v7 = vpop.f32.mrb[107].mxu0 }
 0x1e9   :  { %vm1676_vm8 = vcmp.ge.f32.partialorder %v1578_v3, 0.0  ;;  %v1740_v8 = vmul.f32 0.2, %v1578_v3  ;;  %v1581_v9 = vadd.f32 %v1580_v5, %v1292_v4 }
 0x1eb   :  { %v1804_v10 = vsel %vm1676_vm8, %v1578_v3, %v1740_v8  ;;  %vm1677_vm9 = vcmp.ge.f32.partialorder %v1581_v9, 0.0  ;;  %v1741_v11 = vmul.f32 0.2, %v1581_v9 }
 0x1ec   :  { %v2418_v12 = vpack.c.bf16 %v1804_v10, %v1804_v10  ;;  %v1296_v13 = vpop.f32.mrb[108].mxu1 }
 0x1ed   :  { %v1805_v14 = vsel %vm1677_vm9, %v1581_v9, %v1741_v11  ;;  %v1297_v16 = vadd.f32 %v3537_v15, %v1296_v13  ;;  %v1585_v17 = vpop.f32.mrb[108].mxu0  ;;  %v1298_v18 = vpop.f32.mrb[109].mxu1 }
 0x1ee   :  { %2125 = vst.msk [vmem:[%s3650_s3 + $0xd0] sm:$0xf] %vm2072_vm1, %v2418_v12  ;;  %v2419_v19 = vpack.c.bf16 %v1805_v14, %v1805_v14  ;;  %v1587_v20 = vpop.f32.mrb[109].mxu0  ;;  %v1299_v21 = vpop.f32.mrb[110].mxu1 }
 0x1ef   :  { %v1586_v22 = vadd.f32 %v1585_v17, %v1297_v16  ;;  %v1300_v23 = vadd.f32 %v3537_v15, %v1299_v21  ;;  %v1588_v24 = vpop.f32.mrb[110].mxu0  ;;  %v1301_v25 = vpop.f32.mrb[111].mxu1 }
 0x1f0   :  { %2126 = vst.msk [vmem:[%s3650_s3 + $0xd4] sm:$0xf] %vm2072_vm1, %v2419_v19  ;;  %v1590_v26 = vpop.f32.mrb[111].mxu0 }
 0x1f1   :  { %vm1678_vm10 = vcmp.ge.f32.partialorder %v1586_v22, 0.0  ;;  %v1742_v27 = vmul.f32 0.2, %v1586_v22  ;;  %v1589_v28 = vadd.f32 %v1588_v24, %v1300_v23 }
 0x1f3   :  { %v1806_v29 = vsel %vm1678_vm10, %v1586_v22, %v1742_v27  ;;  %vm1679_vm11 = vcmp.ge.f32.partialorder %v1589_v28, 0.0  ;;  %v1743_v30 = vmul.f32 0.2, %v1589_v28 }
 0x1f4   :  { %v2420_v31 = vpack.c.bf16 %v1806_v29, %v1806_v29  ;;  %v1304_v32 = vpop.f32.mrb[112].mxu1 }
 0x1f5   :  { %v1807_v33 = vsel %vm1679_vm11, %v1589_v28, %v1743_v30  ;;  %v1305_v34 = vadd.f32 %v3537_v15, %v1304_v32  ;;  %v1593_v35 = vpop.f32.mrb[112].mxu0  ;;  %v1306_v36 = vpop.f32.mrb[113].mxu1 }
 0x1f6   :  { %2127 = vst.msk [vmem:[%s3650_s3 + $0xd8] sm:$0xf] %vm2072_vm1, %v2420_v31  ;;  %v2421_v37 = vpack.c.bf16 %v1807_v33, %v1807_v33  ;;  %v1595_v38 = vpop.f32.mrb[113].mxu0  ;;  %v1307_v39 = vpop.f32.mrb[114].mxu1 }
 0x1f7   :  { %v1594_v40 = vadd.f32 %v1593_v35, %v1305_v34  ;;  %v1308_v41 = vadd.f32 %v3537_v15, %v1307_v39  ;;  %v1596_v42 = vpop.f32.mrb[114].mxu0  ;;  %v1309_v43 = vpop.f32.mrb[115].mxu1 }
 0x1f8   :  { %2128 = vst.msk [vmem:[%s3650_s3 + $0xdc] sm:$0xf] %vm2072_vm1, %v2421_v37  ;;  %v1598_v44 = vpop.f32.mrb[115].mxu0 }
 0x1f9   :  { %vm1680_vm12 = vcmp.ge.f32.partialorder %v1594_v40, 0.0  ;;  %v1744_v45 = vmul.f32 0.2, %v1594_v40  ;;  %v1597_v46 = vadd.f32 %v1596_v42, %v1308_v41 }
 0x1fb   :  { %v1808_v47 = vsel %vm1680_vm12, %v1594_v40, %v1744_v45  ;;  %vm1681_vm13 = vcmp.ge.f32.partialorder %v1597_v46, 0.0  ;;  %v1745_v48 = vmul.f32 0.2, %v1597_v46 }
 0x1fc   :  { %v2422_v49 = vpack.c.bf16 %v1808_v47, %v1808_v47  ;;  %v1312_v50 = vpop.f32.mrb[116].mxu1 }
 0x1fd   :  { %v1809_v51 = vsel %vm1681_vm13, %v1597_v46, %v1745_v48  ;;  %v1313_v52 = vadd.f32 %v3537_v15, %v1312_v50  ;;  %v1601_v53 = vpop.f32.mrb[116].mxu0  ;;  %v1314_v54 = vpop.f32.mrb[117].mxu1 }
 0x1fe   :  { %2129 = vst.msk [vmem:[%s3650_s3 + $0xe0] sm:$0xf] %vm2072_vm1, %v2422_v49  ;;  %v2423_v55 = vpack.c.bf16 %v1809_v51, %v1809_v51  ;;  %v1603_v56 = vpop.f32.mrb[117].mxu0  ;;  %v1315_v57 = vpop.f32.mrb[118].mxu1 }
 0x1ff   :  { %v1602_v58 = vadd.f32 %v1601_v53, %v1313_v52  ;;  %v1316_v59 = vadd.f32 %v3537_v15, %v1315_v57  ;;  %v1604_v60 = vpop.f32.mrb[118].mxu0  ;;  %v1317_v61 = vpop.f32.mrb[119].mxu1 }
 0x200   :  { %2130 = vst.msk [vmem:[%s3650_s3 + $0xe4] sm:$0xf] %vm2072_vm1, %v2423_v55  ;;  %v1606_v62 = vpop.f32.mrb[119].mxu0 }
 0x201   :  { %vm1682_vm14 = vcmp.ge.f32.partialorder %v1602_v58, 0.0  ;;  %v1746_v63 = vmul.f32 0.2, %v1602_v58  ;;  %v1605_v0 = vadd.f32 %v1604_v60, %v1316_v59 }
 0x203   :  { %v1810_v1 = vsel %vm1682_vm14, %v1602_v58, %v1746_v63  ;;  %vm1683_vm15 = vcmp.ge.f32.partialorder %v1605_v0, 0.0  ;;  %v1747_v2 = vmul.f32 0.2, %v1605_v0 }
 0x204   :  { %v2424_v3 = vpack.c.bf16 %v1810_v1, %v1810_v1  ;;  %v1320_v4 = vpop.f32.mrb[120].mxu1 }
 0x205   :  { %v1811_v5 = vsel %vm1683_vm15, %v1605_v0, %v1747_v2  ;;  %v1321_v6 = vadd.f32 %v3537_v15, %v1320_v4  ;;  %v1609_v7 = vpop.f32.mrb[120].mxu0  ;;  %v1322_v8 = vpop.f32.mrb[121].mxu1 }
 0x206   :  { %2131 = vst.msk [vmem:[%s3650_s3 + $0xe8] sm:$0xf] %vm2072_vm1, %v2424_v3  ;;  %v2425_v9 = vpack.c.bf16 %v1811_v5, %v1811_v5  ;;  %v1611_v10 = vpop.f32.mrb[121].mxu0  ;;  %v1323_v11 = vpop.f32.mrb[122].mxu1 }
 0x207   :  { %v1610_v12 = vadd.f32 %v1609_v7, %v1321_v6  ;;  %v1324_v13 = vadd.f32 %v3537_v15, %v1323_v11  ;;  %v1612_v14 = vpop.f32.mrb[122].mxu0  ;;  %v1325_v16 = vpop.f32.mrb[123].mxu1 }
 0x208   :  { %2132 = vst.msk [vmem:[%s3650_s3 + $0xec] sm:$0xf] %vm2072_vm1, %v2425_v9  ;;  %v1614_v17 = vpop.f32.mrb[123].mxu0 }
 0x209   :  { %vm1684_vm0 = vcmp.ge.f32.partialorder %v1610_v12, 0.0  ;;  %v1748_v18 = vmul.f32 0.2, %v1610_v12  ;;  %v1613_v19 = vadd.f32 %v1612_v14, %v1324_v13 }
 0x20b   :  { %v1812_v20 = vsel %vm1684_vm0, %v1610_v12, %v1748_v18  ;;  %vm1685_vm2 = vcmp.ge.f32.partialorder %v1613_v19, 0.0  ;;  %v1749_v21 = vmul.f32 0.2, %v1613_v19 }
 0x20c   :  { %v2426_v22 = vpack.c.bf16 %v1812_v20, %v1812_v20  ;;  %v1328_v23 = vpop.f32.mrb[124].mxu1 }
 0x20d   :  { %v1813_v24 = vsel %vm1685_vm2, %v1613_v19, %v1749_v21  ;;  %v1329_v25 = vadd.f32 %v3537_v15, %v1328_v23  ;;  %v1617_v26 = vpop.f32.mrb[124].mxu0  ;;  %v1330_v27 = vpop.f32.mrb[125].mxu1 }
 0x20e   :  { %2133 = vst.msk [vmem:[%s3650_s3 + $0xf0] sm:$0xf] %vm2072_vm1, %v2426_v22  ;;  %v2427_v28 = vpack.c.bf16 %v1813_v24, %v1813_v24  ;;  %v1619_v29 = vpop.f32.mrb[125].mxu0  ;;  %v1331_v30 = vpop.f32.mrb[126].mxu1 }
 0x20f   :  { %v1618_v31 = vadd.f32 %v1617_v26, %v1329_v25  ;;  %v1332_v32 = vadd.f32 %v3537_v15, %v1331_v30  ;;  %v1620_v33 = vpop.f32.mrb[126].mxu0  ;;  %v1333_v34 = vpop.f32.mrb[127].mxu1 }
 0x210   :  { %2134 = vst.msk [vmem:[%s3650_s3 + $0xf4] sm:$0xf] %vm2072_vm1, %v2427_v28  ;;  %v1622_v35 = vpop.f32.mrb[127].mxu0 }
 0x211   :  { %vm1686_vm3 = vcmp.ge.f32.partialorder %v1618_v31, 0.0  ;;  %v1750_v36 = vmul.f32 0.2, %v1618_v31  ;;  %v1621_v37 = vadd.f32 %v1620_v33, %v1332_v32 }
 0x213   :  { %v1814_v38 = vsel %vm1686_vm3, %v1618_v31, %v1750_v36  ;;  %vm1687_vm4 = vcmp.ge.f32.partialorder %v1621_v37, 0.0  ;;  %v1751_v39 = vmul.f32 0.2, %v1621_v37 }
 0x214   :  { %v2428_v40 = vpack.c.bf16 %v1814_v38, %v1814_v38 }
 0x215   :  { %v1815_v41 = vsel %vm1687_vm4, %v1621_v37, %v1751_v39 }
 0x216   :  { %2135 = vst.msk [vmem:[%s3650_s3 + $0xf8] sm:$0xf] %vm2072_vm1, %v2428_v40  ;;  %v2429_v15 = vpack.c.bf16 %v1815_v41, %v1815_v41 }
 0x218   :  { %2136 = vst.msk [vmem:[%s3650_s3 + $0xfc] sm:$0xf] %vm2072_vm1, %v2429_v15 }

// kernel: multiclass_discriminator_forward.7
= control target key start
LH: loop header
LB: loop body
LE: loop exit
PB: predicated region body
PF: predicated region fallthrough
CT: control target
= control target key end

     0   :  { %s2463_s1 = inlined_call_operand.vmem [shape: bf16[1024,128], index: 1, kind: input, shape index: {}]   ;;  %s2464_s0 = inlined_call_operand.vmem [shape: bf16[128,1024], index: 0, kind: input, shape index: {}]   ;;  %s2465_s2 = inlined_call_operand.vmem [shape: f32[1,128], index: 2, kind: input, shape index: {}]   ;;  %s2466_s3 = inlined_call_operand.vmem [shape: bf16[128,128], index: 3, kind: output, shape index: {}]  }
   0x1   :  { %v1902_v0 = vld [vmem:[%s2463_s1 + $0x40] sm:$0xff]   ;;  %v1906_v4 = vld [vmem:[%s2463_s1 + $0x48] sm:$0xff]   ;;  %v1910_v8 = vld [vmem:[%s2463_s1 + $0x50] sm:$0xff]  }
   0x2   :  { %v1903_v1 = vld [vmem:[%s2463_s1 + $0xc0] sm:$0xff]   ;;  %1646 = vmatprep.subr.bf16.mxu0 %v1902_v0  ;;  %v1907_v5 = vld [vmem:[%s2463_s1 + $0xc8] sm:$0xff]   ;;  %v1911_v9 = vld [vmem:[%s2463_s1 + $0xd0] sm:$0xff]  }
   0x3   :  { %v1904_v2 = vld [vmem:[%s2463_s1] sm:$0xff]   ;;  %1710 = vmatprep.subr.bf16.mxu1 %v1903_v1  ;;  %v1908_v6 = vld [vmem:[%s2463_s1 + $0x8] sm:$0xff]   ;;  %v1912_v10 = vld [vmem:[%s2463_s1 + $0x10] sm:$0xff]  }
   0x4   :  { %v1905_v3 = vld [vmem:[%s2463_s1 + $0x80] sm:$0xff]   ;;  %1647 = vmatpush3.bf16.msra.mxu0 %v1904_v2  ;;  %v1909_v7 = vld [vmem:[%s2463_s1 + $0x88] sm:$0xff]   ;;  %v1913_v11 = vld [vmem:[%s2463_s1 + $0x90] sm:$0xff]  }
   0x5   :  { %1711 = vmatpush3.bf16.msra.mxu1 %v1905_v3  ;;  %1648 = vmatprep.subr.bf16.mxu0 %v1906_v4  ;;  %v1914_v12 = vld [vmem:[%s2463_s1 + $0x58] sm:$0xff]   ;;  %v1918_v16 = vld [vmem:[%s2463_s1 + $0x60] sm:$0xff]   ;;  %v1922_v20 = vld [vmem:[%s2463_s1 + $0x68] sm:$0xff]  }
   0x6   :  { %1712 = vmatprep.subr.bf16.mxu1 %v1907_v5  ;;  %v1915_v13 = vld [vmem:[%s2463_s1 + $0xd8] sm:$0xff]   ;;  %v1919_v17 = vld [vmem:[%s2463_s1 + $0xe0] sm:$0xff]   ;;  %v1923_v21 = vld [vmem:[%s2463_s1 + $0xe8] sm:$0xff]  }
   0x7   :  { %v1916_v14 = vld [vmem:[%s2463_s1 + $0x18] sm:$0xff]   ;;  %v1920_v18 = vld [vmem:[%s2463_s1 + $0x20] sm:$0xff]   ;;  %v1924_v22 = vld [vmem:[%s2463_s1 + $0x28] sm:$0xff]  }
   0x8   :  { %1649 = vmatpush3.bf16.msra.mxu0 %v1908_v6  ;;  %v1917_v15 = vld [vmem:[%s2463_s1 + $0x98] sm:$0xff]   ;;  %v1921_v19 = vld [vmem:[%s2463_s1 + $0xa0] sm:$0xff]   ;;  %v1925_v23 = vld [vmem:[%s2463_s1 + $0xa8] sm:$0xff]  }
   0x9   :  { %1713 = vmatpush3.bf16.msra.mxu1 %v1909_v7  ;;  %1650 = vmatprep.subr.bf16.mxu0 %v1910_v8  ;;  %v1926_v24 = vld [vmem:[%s2463_s1 + $0x70] sm:$0xff]   ;;  %v1930_v28 = vld [vmem:[%s2463_s1 + $0x78] sm:$0xff]   ;;  %v15_v32 = vld [vmem:[%s2464_s0] sm:$0xff] }
   0xa   :  { %1714 = vmatprep.subr.bf16.mxu1 %v1911_v9  ;;  %v1927_v25 = vld [vmem:[%s2463_s1 + $0xf0] sm:$0xff]   ;;  %v1931_v29 = vld [vmem:[%s2463_s1 + $0xf8] sm:$0xff]   ;;  %v19_v33 = vld [vmem:[%s2464_s0 + $0x20] sm:$0xff] }
   0xb   :  { %v1928_v26 = vld [vmem:[%s2463_s1 + $0x30] sm:$0xff]   ;;  %v1932_v30 = vld [vmem:[%s2463_s1 + $0x38] sm:$0xff]   ;;  %v16_v34 = vld [vmem:[%s2464_s0 + $0x8] sm:$0xff]  ;;  %v1439_v35 = vcombine.low %v15_v32, %v19_v33  ;;  %v1440_v36 = vcombine.high %v15_v32, %v19_v33 }
   0xc   :  { %1651 = vmatpush3.bf16.msra.mxu0 %v1912_v10  ;;  %v1929_v27 = vld [vmem:[%s2463_s1 + $0xb0] sm:$0xff]   ;;  %v1933_v31 = vld [vmem:[%s2463_s1 + $0xb8] sm:$0xff]   ;;  %v20_v37 = vld [vmem:[%s2464_s0 + $0x28] sm:$0xff] }
   0xd   :  { %1715 = vmatpush3.bf16.msra.mxu1 %v1913_v11  ;;  %1652 = vmatprep.subr.bf16.mxu0 %v1914_v12  ;;  %v1441_v38 = vcombine.low %v16_v34, %v20_v37  ;;  %v1442_v39 = vcombine.high %v16_v34, %v20_v37  ;;  %v1934_v40 = vld [vmem:[%s2463_s1 + $0x140] sm:$0xff]   ;;  %v24_v47 = vld [vmem:[%s2464_s0 + $0x48] sm:$0xff]  ;;  %v1942_v62 = vld [vmem:[%s2463_s1 + $0x150] sm:$0xff]  }
   0xe   :  { %1716 = vmatprep.subr.bf16.mxu1 %v1915_v13  ;;  %950 = vmatprep.mubr.bf16.mxu0 %v1440_v36  ;;  %v1935_v41 = vld [vmem:[%s2463_s1 + $0x100] sm:$0xff]   ;;  %v28_v48 = vld [vmem:[%s2464_s0 + $0x68] sm:$0xff]  ;;  %v1943_v63 = vld [vmem:[%s2463_s1 + $0x110] sm:$0xff]  }
   0xf   :  { %1047 = vmatprep.mubr.bf16.mxu1 %v1442_v39  ;;  %v1936_v42 = vld [vmem:[%s2463_s1 + $0x1c0] sm:$0xff]   ;;  %v1450_v49 = vcombine.high %v24_v47, %v28_v48  ;;  %v1938_v50 = vld [vmem:[%s2463_s1 + $0x148] sm:$0xff]   ;;  %v1449_v53 = vcombine.low %v24_v47, %v28_v48  ;;  %v1944_v0 = vld [vmem:[%s2463_s1 + $0x1d0] sm:$0xff]  }
  0x10   :  { %1653 = vmatpush3.bf16.msra.mxu0 %v1916_v14  ;;  %v1937_v43 = vld [vmem:[%s2463_s1 + $0x180] sm:$0xff]   ;;  %v1939_v52 = vld [vmem:[%s2463_s1 + $0x108] sm:$0xff]   ;;  %v1945_v1 = vld [vmem:[%s2463_s1 + $0x190] sm:$0xff]  }
  0x11   :  { %1717 = vmatpush3.bf16.msra.mxu1 %v1917_v15  ;;  %1654 = vmatprep.subr.bf16.mxu0 %v1918_v16  ;;  %v23_v44 = vld [vmem:[%s2464_s0 + $0x40] sm:$0xff]  ;;  %v1940_v54 = vld [vmem:[%s2463_s1 + $0x1c8] sm:$0xff]   ;;  %v1946_v10 = vld [vmem:[%s2463_s1 + $0x158] sm:$0xff]  }
  0x12   :  { %1718 = vmatprep.subr.bf16.mxu1 %v1919_v17  ;;  %v27_v45 = vld [vmem:[%s2464_s0 + $0x60] sm:$0xff]  ;;  %v1941_v55 = vld [vmem:[%s2463_s1 + $0x188] sm:$0xff]   ;;  %v1947_v11 = vld [vmem:[%s2463_s1 + $0x118] sm:$0xff]  }
  0x13   :  { %v1448_v46 = vcombine.high %v23_v44, %v27_v45  ;;  %v1447_v51 = vcombine.low %v23_v44, %v27_v45  ;;  %v31_v56 = vld [vmem:[%s2464_s0 + $0x80] sm:$0xff]  ;;  %v32_v58 = vld [vmem:[%s2464_s0 + $0x88] sm:$0xff]  ;;  %v1948_v12 = vld [vmem:[%s2463_s1 + $0x1d8] sm:$0xff]  }
  0x14   :  { %1655 = vmatpush3.bf16.msra.mxu0 %v1920_v18  ;;  %v35_v57 = vld [vmem:[%s2464_s0 + $0xa0] sm:$0xff]  ;;  %v36_v59 = vld [vmem:[%s2464_s0 + $0xa8] sm:$0xff]  ;;  %v1949_v13 = vld [vmem:[%s2463_s1 + $0x198] sm:$0xff]  }
  0x15   :  { %1719 = vmatpush3.bf16.msra.mxu1 %v1921_v19  ;;  %1656 = vmatprep.subr.bf16.mxu0 %v1922_v20  ;;  %v1456_v60 = vcombine.high %v31_v56, %v35_v57  ;;  %v1458_v61 = vcombine.high %v32_v58, %v36_v59  ;;  %v1455_v2 = vcombine.low %v31_v56, %v35_v57  ;;  %v39_v3 = vld [vmem:[%s2464_s0 + $0xc0] sm:$0xff]  ;;  %v40_v5 = vld [vmem:[%s2464_s0 + $0xc8] sm:$0xff]  ;;  %v1959_v39 = vld [vmem:[%s2463_s1 + $0x130] sm:$0xff]  }
  0x16   :  { %1720 = vmatprep.subr.bf16.mxu1 %v1923_v21  ;;  %v43_v4 = vld [vmem:[%s2464_s0 + $0xe0] sm:$0xff]  ;;  %v1457_v6 = vcombine.low %v32_v58, %v36_v59  ;;  %v44_v8 = vld [vmem:[%s2464_s0 + $0xe8] sm:$0xff]  ;;  %v1963_v48 = vld [vmem:[%s2463_s1 + $0x138] sm:$0xff]  }
  0x17   :  { %v1464_v7 = vcombine.high %v39_v3, %v43_v4  ;;  %v1466_v9 = vcombine.high %v40_v5, %v44_v8  ;;  %v47_v14 = vld [vmem:[%s2464_s0 + $0x100] sm:$0xff]  ;;  %v48_v16 = vld [vmem:[%s2464_s0 + $0x108] sm:$0xff]  ;;  %v1463_v19 = vcombine.low %v39_v3, %v43_v4  ;;  %v1465_v21 = vcombine.low %v40_v5, %v44_v8  ;;  %v26_v8 = vld [vmem:[%s2464_s0 + $0x58] sm:$0xff] }
  0x18   :  { %1657 = vmatpush3.bf16.msra.mxu0 %v1924_v22  ;;  %v51_v15 = vld [vmem:[%s2464_s0 + $0x120] sm:$0xff]  ;;  %v52_v17 = vld [vmem:[%s2464_s0 + $0x128] sm:$0xff] }
  0x19   :  { %1721 = vmatpush3.bf16.msra.mxu1 %v1925_v23  ;;  %1658 = vmatprep.subr.bf16.mxu0 %v1926_v24  ;;  %v1950_v18 = vld [vmem:[%s2463_s1 + $0x160] sm:$0xff]   ;;  %v1472_v22 = vcombine.high %v47_v14, %v51_v15  ;;  %v1474_v24 = vcombine.high %v48_v16, %v52_v17  ;;  %v1956_v32 = vld [vmem:[%s2463_s1 + $0x1e8] sm:$0xff]   ;;  %v1471_v34 = vcombine.low %v47_v14, %v51_v15  ;;  %v33_v14 = vld [vmem:[%s2464_s0 + $0x90] sm:$0xff] }
  0x1a   :  { %1722 = vmatprep.subr.bf16.mxu1 %v1927_v25  ;;  %v1951_v20 = vld [vmem:[%s2463_s1 + $0x120] sm:$0xff]   ;;  %v1957_v33 = vld [vmem:[%s2463_s1 + $0x1a8] sm:$0xff]   ;;  %v37_v15 = vld [vmem:[%s2464_s0 + $0xb0] sm:$0xff] }
  0x1b   :  { %v1952_v23 = vld [vmem:[%s2463_s1 + $0x1e0] sm:$0xff]   ;;  %v64_v44 = vld [vmem:[%s2464_s0 + $0x188] sm:$0xff] }
  0x1c   :  { %1659 = vmatpush3.bf16.msra.mxu0 %v1928_v26  ;;  %v1953_v25 = vld [vmem:[%s2463_s1 + $0x1a0] sm:$0xff]   ;;  %v68_v45 = vld [vmem:[%s2464_s0 + $0x1a8] sm:$0xff] }
  0x1d   :  { %1723 = vmatpush3.bf16.msra.mxu1 %v1929_v27  ;;  %1660 = vmatprep.subr.bf16.mxu0 %v1930_v28  ;;  %v55_v26 = vld [vmem:[%s2464_s0 + $0x140] sm:$0xff]  ;;  %v1954_v28 = vld [vmem:[%s2463_s1 + $0x168] sm:$0xff]   ;;  %v1489_v59 = vcombine.low %v64_v44, %v68_v45 }
  0x1e   :  { %1724 = vmatprep.subr.bf16.mxu1 %v1931_v29  ;;  %v59_v27 = vld [vmem:[%s2464_s0 + $0x160] sm:$0xff]  ;;  %v56_v29 = vld [vmem:[%s2464_s0 + $0x148] sm:$0xff] }
  0x1f   :  { %v1480_v36 = vcombine.high %v55_v26, %v59_v27  ;;  %v1479_v47 = vcombine.low %v55_v26, %v59_v27  ;;  %v72_v56 = vld [vmem:[%s2464_s0 + $0x1c8] sm:$0xff]  ;;  %v1459_v26 = vcombine.low %v33_v14, %v37_v15 }
  0x20   :  { %1661 = vmatpush3.bf16.msra.mxu0 %v1932_v30  ;;  %v60_v30 = vld [vmem:[%s2464_s0 + $0x168] sm:$0xff] }
  0x21   :  { %1725 = vmatpush3.bf16.msra.mxu1 %v1933_v31  ;;  %1774 = vmatprep.subr.bf16.mxu0 %v1934_v40  ;;  %v1955_v31 = vld [vmem:[%s2463_s1 + $0x128] sm:$0xff]   ;;  %v1482_v37 = vcombine.high %v56_v29, %v60_v30  ;;  %v1960_v40 = vld [vmem:[%s2463_s1 + $0x1f0] sm:$0xff]  }
  0x22   :  { %1838 = vmatprep.subr.bf16.mxu1 %v1936_v42  ;;  %v67_v42 = vld [vmem:[%s2464_s0 + $0x1a0] sm:$0xff]  ;;  %v76_v57 = vld [vmem:[%s2464_s0 + $0x1e8] sm:$0xff] }
  0x23   :  { %951 = vmatmul.mubr.bf16.vlgmr.msra.gmra.mrb[0].mxu0 %v1439_v35  ;;  %v1473_v35 = vcombine.low %v48_v16, %v52_v17  ;;  %v1497_v3 = vcombine.low %v72_v56, %v76_v57  ;;  %v34_v16 = vld [vmem:[%s2464_s0 + $0x98] sm:$0xff] }
  0x24   :  { %1048 = vmatmul.mubr.bf16.vlgmr.msra.gmra.mrb[0].mxu1 %v1441_v38  ;;  %1775 = vmatpush3.bf16.msra.mxu0 %v1935_v41  ;;  %v1958_v38 = vld [vmem:[%s2463_s1 + $0x170] sm:$0xff]   ;;  %v63_v41 = vld [vmem:[%s2464_s0 + $0x180] sm:$0xff]  ;;  %v38_v17 = vld [vmem:[%s2464_s0 + $0xb8] sm:$0xff] }
  0x25   :  { %1839 = vmatpush3.bf16.msra.mxu1 %v1937_v43  ;;  %958 = vmatprep.mubr.bf16.mxu0 %v1448_v46  ;;  %v1961_v43 = vld [vmem:[%s2463_s1 + $0x1b0] sm:$0xff]   ;;  %v1962_v46 = vld [vmem:[%s2463_s1 + $0x178] sm:$0xff]   ;;  %v1487_v58 = vcombine.low %v63_v41, %v67_v42  ;;  %v1461_v27 = vcombine.low %v34_v16, %v38_v17 }
  0x26   :  { %1055 = vmatprep.mubr.bf16.mxu1 %v1450_v49  ;;  %1776 = vmatprep.subr.bf16.mxu0 %v1938_v50  ;;  %v1481_v49 = vcombine.low %v56_v29, %v60_v30  ;;  %v1488_v50 = vcombine.high %v63_v41, %v67_v42  ;;  %v49_v30 = vld [vmem:[%s2464_s0 + $0x110] sm:$0xff]  ;;  %v62_v41 = vld [vmem:[%s2464_s0 + $0x178] sm:$0xff] }
  0x27   :  { %1840 = vmatprep.subr.bf16.mxu1 %v1940_v54  ;;  %v71_v54 = vld [vmem:[%s2464_s0 + $0x1c0] sm:$0xff] }
  0x28   :  { %1777 = vmatpush3.bf16.msra.mxu0 %v1939_v52  ;;  %v1490_v52 = vcombine.high %v64_v44, %v68_v45 }
  0x29   :  { %1841 = vmatpush3.bf16.msra.mxu1 %v1941_v55  ;;  %1778 = vmatprep.subr.bf16.mxu0 %v1942_v62  ;;  %v75_v55 = vld [vmem:[%s2464_s0 + $0x1e0] sm:$0xff]  ;;  %v17_v62 = vld [vmem:[%s2464_s0 + $0x10] sm:$0xff] }
  0x2a   :  { %1842 = vmatprep.subr.bf16.mxu1 %v1944_v0  ;;  %v18_v0 = vld [vmem:[%s2464_s0 + $0x18] sm:$0xff] }
  0x2b   :  { %959 = vmatmul.mubr.bf16.gmra.mrb[4].mxu0 %v1447_v51  ;;  %v1964_v51 = vld [vmem:[%s2463_s1 + $0x1f8] sm:$0xff]  }
  0x2c   :  { %1056 = vmatmul.mubr.bf16.gmra.mrb[4].mxu1 %v1449_v53  ;;  %966 = vmatprep.mubr.bf16.mxu0 %v1456_v60  ;;  %v1965_v53 = vld [vmem:[%s2463_s1 + $0x1b8] sm:$0xff]   ;;  %v1496_v60 = vcombine.high %v71_v54, %v75_v55 }
  0x2d   :  { %1063 = vmatprep.mubr.bf16.mxu1 %v1458_v61  ;;  %1779 = vmatpush3.bf16.msra.mxu0 %v1943_v63  ;;  %v1498_v61 = vcombine.high %v72_v56, %v76_v57  ;;  %v21_v63 = vld [vmem:[%s2464_s0 + $0x30] sm:$0xff]  ;;  %v74_v56 = vld [vmem:[%s2464_s0 + $0x1d8] sm:$0xff] }
  0x2e   :  { %1843 = vmatpush3.bf16.msra.mxu1 %v1945_v1  ;;  %1780 = vmatprep.subr.bf16.mxu0 %v1946_v10  ;;  %v22_v1 = vld [vmem:[%s2464_s0 + $0x38] sm:$0xff]  ;;  %v1444_v4 = vcombine.high %v17_v62, %v21_v63  ;;  %v1443_v10 = vcombine.low %v17_v62, %v21_v63 }
  0x2f   :  { %1844 = vmatprep.subr.bf16.mxu1 %v1948_v12  ;;  %v1446_v5 = vcombine.high %v18_v0, %v22_v1  ;;  %v78_v57 = vld [vmem:[%s2464_s0 + $0x1f8] sm:$0xff] }
  0x30   :  { %v1501_v63 = vcombine.low %v74_v56, %v78_v57 }
  0x31   :  { %1781 = vmatpush3.bf16.msra.mxu0 %v1947_v11  ;;  %v1445_v11 = vcombine.low %v18_v0, %v22_v1 }
  0x32   :  { %1845 = vmatpush3.bf16.msra.mxu1 %v1949_v13  ;;  %1782 = vmatprep.subr.bf16.mxu0 %v1950_v18 }
  0x33   :  { %967 = vmatmul.mubr.bf16.gmra.mrb[8].mxu0 %v1455_v2  ;;  %1846 = vmatprep.subr.bf16.mxu1 %v1952_v23  ;;  %v1495_v2 = vcombine.low %v71_v54, %v75_v55  ;;  %v45_v23 = vld [vmem:[%s2464_s0 + $0xf0] sm:$0xff] }
  0x34   :  { %1064 = vmatmul.mubr.bf16.gmra.mrb[8].mxu1 %v1457_v6  ;;  %974 = vmatprep.mubr.bf16.mxu0 %v1464_v7  ;;  %v25_v6 = vld [vmem:[%s2464_s0 + $0x50] sm:$0xff] }
  0x35   :  { %1071 = vmatprep.mubr.bf16.mxu1 %v1466_v9  ;;  %1783 = vmatpush3.bf16.msra.mxu0 %v1951_v20  ;;  %v29_v7 = vld [vmem:[%s2464_s0 + $0x70] sm:$0xff]  ;;  %v30_v9 = vld [vmem:[%s2464_s0 + $0x78] sm:$0xff]  ;;  %v1460_v20 = vcombine.high %v33_v14, %v37_v15 }
  0x36   :  { %1847 = vmatpush3.bf16.msra.mxu1 %v1953_v25  ;;  %1784 = vmatprep.subr.bf16.mxu0 %v1954_v28  ;;  %v1452_v12 = vcombine.high %v25_v6, %v29_v7  ;;  %v1454_v13 = vcombine.high %v26_v8, %v30_v9  ;;  %v1451_v18 = vcombine.low %v25_v6, %v29_v7  ;;  %v46_v25 = vld [vmem:[%s2464_s0 + $0xf8] sm:$0xff]  ;;  %v73_v54 = vld [vmem:[%s2464_s0 + $0x1d0] sm:$0xff] }
  0x37   :  { %1848 = vmatprep.subr.bf16.mxu1 %v1956_v32  ;;  %v50_v32 = vld [vmem:[%s2464_s0 + $0x118] sm:$0xff]  ;;  %v77_v55 = vld [vmem:[%s2464_s0 + $0x1f0] sm:$0xff] }
  0x38   :  { %v1499_v62 = vcombine.low %v73_v54, %v77_v55 }
  0x39   :  { %1785 = vmatpush3.bf16.msra.mxu0 %v1955_v31  ;;  %v53_v31 = vld [vmem:[%s2464_s0 + $0x130] sm:$0xff] }
  0x3a   :  { %1849 = vmatpush3.bf16.msra.mxu1 %v1957_v33  ;;  %1786 = vmatprep.subr.bf16.mxu0 %v1958_v38  ;;  %v54_v33 = vld [vmem:[%s2464_s0 + $0x138] sm:$0xff]  ;;  %v57_v38 = vld [vmem:[%s2464_s0 + $0x150] sm:$0xff]  ;;  %v1475_v42 = vcombine.low %v49_v30, %v53_v31 }
  0x3b   :  { %975 = vmatmul.mubr.bf16.gmra.mrb[12].mxu0 %v1463_v19  ;;  %1850 = vmatprep.subr.bf16.mxu1 %v1960_v40  ;;  %v1453_v19 = vcombine.low %v26_v8, %v30_v9  ;;  %v58_v40 = vld [vmem:[%s2464_s0 + $0x158] sm:$0xff] }
  0x3c   :  { %1072 = vmatmul.mubr.bf16.gmra.mrb[12].mxu1 %v1465_v21  ;;  %982 = vmatprep.mubr.bf16.mxu0 %v1472_v22  ;;  %v1462_v21 = vcombine.high %v34_v16, %v38_v17  ;;  %v41_v22 = vld [vmem:[%s2464_s0 + $0xd0] sm:$0xff]  ;;  %v1486_v45 = vcombine.high %v58_v40, %v62_v41 }
  0x3d   :  { %1079 = vmatprep.mubr.bf16.mxu1 %v1474_v24  ;;  %1787 = vmatpush3.bf16.msra.mxu0 %v1959_v39  ;;  %v42_v24 = vld [vmem:[%s2464_s0 + $0xd8] sm:$0xff]  ;;  %v1468_v28 = vcombine.high %v41_v22, %v45_v23  ;;  %v61_v39 = vld [vmem:[%s2464_s0 + $0x170] sm:$0xff] }
  0x3e   :  { %1851 = vmatpush3.bf16.msra.mxu1 %v1961_v43  ;;  %1788 = vmatprep.subr.bf16.mxu0 %v1962_v46  ;;  %v1470_v29 = vcombine.high %v42_v24, %v46_v25  ;;  %v1477_v43 = vcombine.low %v50_v32, %v54_v33  ;;  %v1484_v44 = vcombine.high %v57_v38, %v61_v39  ;;  %v65_v46 = vld [vmem:[%s2464_s0 + $0x190] sm:$0xff] }
  0x3f   :  { %1852 = vmatprep.subr.bf16.mxu1 %v1964_v51  ;;  %v1485_v51 = vcombine.low %v58_v40, %v62_v41 }
  0x41   :  { %1789 = vmatpush3.bf16.msra.mxu0 %v1963_v48  ;;  %v66_v48 = vld [vmem:[%s2464_s0 + $0x198] sm:$0xff] }
  0x42   :  { %1853 = vmatpush3.bf16.msra.mxu1 %v1965_v53 }
  0x43   :  { %983 = vmatmul.mubr.bf16.gmra.mrb[16].mxu0 %v1471_v34  ;;  %v1467_v34 = vcombine.low %v41_v22, %v45_v23 }
  0x44   :  { %1080 = vmatmul.mubr.bf16.gmra.mrb[16].mxu1 %v1473_v35  ;;  %990 = vmatprep.mubr.bf16.mxu0 %v1480_v36  ;;  %v1469_v35 = vcombine.low %v42_v24, %v46_v25  ;;  %v1476_v36 = vcombine.high %v49_v30, %v53_v31 }
  0x45   :  { %1087 = vmatprep.mubr.bf16.mxu1 %v1482_v37  ;;  %v1478_v37 = vcombine.high %v50_v32, %v54_v33 }
  0x4b   :  { %991 = vmatmul.mubr.bf16.gmra.mrb[20].mxu0 %v1479_v47  ;;  %v69_v47 = vld [vmem:[%s2464_s0 + $0x1b0] sm:$0xff] }
  0x4c   :  { %1088 = vmatmul.mubr.bf16.gmra.mrb[20].mxu1 %v1481_v49  ;;  %998 = vmatprep.mubr.bf16.mxu0 %v1488_v50  ;;  %v70_v49 = vld [vmem:[%s2464_s0 + $0x1b8] sm:$0xff]  ;;  %v1483_v50 = vcombine.low %v57_v38, %v61_v39 }
  0x4d   :  { %1095 = vmatprep.mubr.bf16.mxu1 %v1490_v52  ;;  %v1492_v52 = vcombine.high %v65_v46, %v69_v47  ;;  %v1494_v53 = vcombine.high %v66_v48, %v70_v49 }
  0x53   :  { %999 = vmatmul.mubr.bf16.gmra.mrb[24].mxu0 %v1487_v58  ;;  %v1491_v58 = vcombine.low %v65_v46, %v69_v47 }
  0x54   :  { %1096 = vmatmul.mubr.bf16.gmra.mrb[24].mxu1 %v1489_v59  ;;  %1006 = vmatprep.mubr.bf16.mxu0 %v1496_v60  ;;  %v1493_v59 = vcombine.low %v66_v48, %v70_v49  ;;  %v1500_v60 = vcombine.high %v73_v54, %v77_v55 }
  0x55   :  { %1103 = vmatprep.mubr.bf16.mxu1 %v1498_v61  ;;  %v1502_v61 = vcombine.high %v74_v56, %v78_v57 }
  0x5b   :  { %1007 = vmatmul.mubr.bf16.gmra.mrb[28].mxu0 %v1495_v2  ;;  %v2373_v2 = vld [vmem:[%s2465_s2] ss:$0 sm:$0xff] }
  0x5c   :  { %1104 = vmatmul.mubr.bf16.gmra.mrb[28].mxu1 %v1497_v3  ;;  %1144 = vmatprep.mubr.bf16.mxu0 %v1444_v4 }
  0x5d   :  { %1241 = vmatprep.mubr.bf16.mxu1 %v1446_v5 }
  0x63   :  { %1145 = vmatmul.mubr.bf16.vlgmr.msra.gmra.mrb[32].mxu0 %v1443_v10 }
  0x64   :  { %1242 = vmatmul.mubr.bf16.vlgmr.msra.gmra.mrb[32].mxu1 %v1445_v11  ;;  %1152 = vmatprep.mubr.bf16.mxu0 %v1452_v12 }
  0x65   :  { %1249 = vmatprep.mubr.bf16.mxu1 %v1454_v13 }
  0x6b   :  { %1153 = vmatmul.mubr.bf16.gmra.mrb[36].mxu0 %v1451_v18 }
  0x6c   :  { %1250 = vmatmul.mubr.bf16.gmra.mrb[36].mxu1 %v1453_v19  ;;  %1160 = vmatprep.mubr.bf16.mxu0 %v1460_v20 }
  0x6d   :  { %1257 = vmatprep.mubr.bf16.mxu1 %v1462_v21 }
  0x73   :  { %1161 = vmatmul.mubr.bf16.gmra.mrb[40].mxu0 %v1459_v26 }
  0x74   :  { %1258 = vmatmul.mubr.bf16.gmra.mrb[40].mxu1 %v1461_v27  ;;  %1168 = vmatprep.mubr.bf16.mxu0 %v1468_v28 }
  0x75   :  { %1265 = vmatprep.mubr.bf16.mxu1 %v1470_v29 }
  0x7b   :  { %1169 = vmatmul.mubr.bf16.gmra.mrb[44].mxu0 %v1467_v34 }
  0x7c   :  { %1266 = vmatmul.mubr.bf16.gmra.mrb[44].mxu1 %v1469_v35  ;;  %1176 = vmatprep.mubr.bf16.mxu0 %v1476_v36 }
  0x7d   :  { %1273 = vmatprep.mubr.bf16.mxu1 %v1478_v37 }
  0x83   :  { %1177 = vmatmul.mubr.bf16.gmra.mrb[48].mxu0 %v1475_v42 }
  0x84   :  { %1274 = vmatmul.mubr.bf16.gmra.mrb[48].mxu1 %v1477_v43  ;;  %1184 = vmatprep.mubr.bf16.mxu0 %v1484_v44 }
  0x85   :  { %1281 = vmatprep.mubr.bf16.mxu1 %v1486_v45 }
  0x8b   :  { %1185 = vmatmul.mubr.bf16.gmra.mrb[52].mxu0 %v1483_v50 }
  0x8c   :  { %1282 = vmatmul.mubr.bf16.gmra.mrb[52].mxu1 %v1485_v51  ;;  %1192 = vmatprep.mubr.bf16.mxu0 %v1492_v52 }
  0x8d   :  { %1289 = vmatprep.mubr.bf16.mxu1 %v1494_v53 }
  0x93   :  { %1193 = vmatmul.mubr.bf16.gmra.mrb[56].mxu0 %v1491_v58 }
  0x94   :  { %1290 = vmatmul.mubr.bf16.gmra.mrb[56].mxu1 %v1493_v59  ;;  %1200 = vmatprep.mubr.bf16.mxu0 %v1500_v60 }
  0x95   :  { %1297 = vmatprep.mubr.bf16.mxu1 %v1502_v61 }
  0x9b   :  { %1201 = vmatmul.mubr.bf16.gmra.mrb[60].mxu0 %v1499_v62 }
  0x9c   :  { %1298 = vmatmul.mubr.bf16.gmra.mrb[60].mxu1 %v1501_v63 }
  0xf6   :  { %v1662_v0 = vpop.f32.mrb[0].mxu0 }
  0xf7   :  { %v1726_v1 = vpop.f32.mrb[0].mxu1  ;;  %v1663_v3 = vpop.f32.mrb[1].mxu0 }
  0xf8   :  { %v1664_v4 = vadd.f32 %v1663_v3, %v1662_v0  ;;  %v1727_v5 = vpop.f32.mrb[1].mxu1  ;;  %v1665_v6 = vpop.f32.mrb[2].mxu0 }
  0xf9   :  { %v1728_v7 = vadd.f32 %v1727_v5, %v1726_v1  ;;  %v1729_v8 = vpop.f32.mrb[2].mxu1  ;;  %v1666_v9 = vpop.f32.mrb[3].mxu0 }
  0xfa   :  { %v953_v10 = vadd.f32 %v1664_v4, %v2373_v2  ;;  %v1667_v11 = vadd.f32 %v1666_v9, %v1665_v6  ;;  %v1730_v12 = vpop.f32.mrb[3].mxu1 }
  0xfb   :  { %v1731_v13 = vadd.f32 %v1730_v12, %v1729_v8 }
  0xfc   :  { %v2376_v14 = vadd.f32 %v1728_v7, %v953_v10  ;;  %v956_v15 = vadd.f32 %v1667_v11, %v2373_v2 }
  0xfe   :  { %v2379_v16 = vadd.f32 %v1731_v13, %v956_v15  ;;  %v1668_v17 = vpop.f32.mrb[4].mxu0 }
  0xff   :  { %v1732_v18 = vpop.f32.mrb[4].mxu1  ;;  %v1669_v19 = vpop.f32.mrb[5].mxu0 }
 0x100   :  { %v1670_v20 = vadd.f32 %v1669_v19, %v1668_v17  ;;  %v1733_v21 = vpop.f32.mrb[5].mxu1  ;;  %v1671_v22 = vpop.f32.mrb[6].mxu0 }
 0x101   :  { %v1734_v23 = vadd.f32 %v1733_v21, %v1732_v18  ;;  %v1735_v24 = vpop.f32.mrb[6].mxu1  ;;  %v1672_v25 = vpop.f32.mrb[7].mxu0 }
 0x102   :  { %v961_v26 = vadd.f32 %v1670_v20, %v2373_v2  ;;  %v1673_v27 = vadd.f32 %v1672_v25, %v1671_v22  ;;  %v1736_v28 = vpop.f32.mrb[7].mxu1 }
 0x103   :  { %v1737_v29 = vadd.f32 %v1736_v28, %v1735_v24 }
 0x104   :  { %v2382_v30 = vadd.f32 %v1734_v23, %v961_v26  ;;  %v964_v31 = vadd.f32 %v1673_v27, %v2373_v2 }
 0x106   :  { %v2385_v32 = vadd.f32 %v1737_v29, %v964_v31  ;;  %v1674_v33 = vpop.f32.mrb[8].mxu0 }
 0x107   :  { %v1738_v34 = vpop.f32.mrb[8].mxu1  ;;  %v1675_v35 = vpop.f32.mrb[9].mxu0 }
 0x108   :  { %v1676_v36 = vadd.f32 %v1675_v35, %v1674_v33  ;;  %v1739_v37 = vpop.f32.mrb[9].mxu1  ;;  %v1677_v38 = vpop.f32.mrb[10].mxu0 }
 0x109   :  { %v1740_v39 = vadd.f32 %v1739_v37, %v1738_v34  ;;  %v1741_v40 = vpop.f32.mrb[10].mxu1  ;;  %v1678_v41 = vpop.f32.mrb[11].mxu0 }
 0x10a   :  { %v969_v42 = vadd.f32 %v1676_v36, %v2373_v2  ;;  %v1679_v43 = vadd.f32 %v1678_v41, %v1677_v38  ;;  %v1742_v44 = vpop.f32.mrb[11].mxu1 }
 0x10b   :  { %v1743_v45 = vadd.f32 %v1742_v44, %v1741_v40 }
 0x10c   :  { %v2388_v46 = vadd.f32 %v1740_v39, %v969_v42  ;;  %v972_v47 = vadd.f32 %v1679_v43, %v2373_v2 }
 0x10e   :  { %v2391_v48 = vadd.f32 %v1743_v45, %v972_v47  ;;  %v1680_v49 = vpop.f32.mrb[12].mxu0 }
 0x10f   :  { %v1744_v50 = vpop.f32.mrb[12].mxu1  ;;  %v1681_v51 = vpop.f32.mrb[13].mxu0 }
 0x110   :  { %v1682_v52 = vadd.f32 %v1681_v51, %v1680_v49  ;;  %v1745_v53 = vpop.f32.mrb[13].mxu1  ;;  %v1683_v54 = vpop.f32.mrb[14].mxu0 }
 0x111   :  { %v1746_v55 = vadd.f32 %v1745_v53, %v1744_v50  ;;  %v1747_v56 = vpop.f32.mrb[14].mxu1  ;;  %v1684_v57 = vpop.f32.mrb[15].mxu0 }
 0x112   :  { %v977_v58 = vadd.f32 %v1682_v52, %v2373_v2  ;;  %v1685_v59 = vadd.f32 %v1684_v57, %v1683_v54  ;;  %v1748_v60 = vpop.f32.mrb[15].mxu1 }
 0x113   :  { %v1749_v61 = vadd.f32 %v1748_v60, %v1747_v56 }
 0x114   :  { %v2394_v62 = vadd.f32 %v1746_v55, %v977_v58  ;;  %v980_v63 = vadd.f32 %v1685_v59, %v2373_v2 }
 0x116   :  { %v2397_v0 = vadd.f32 %v1749_v61, %v980_v63  ;;  %v1686_v1 = vpop.f32.mrb[16].mxu0 }
 0x117   :  { %v1750_v3 = vpop.f32.mrb[16].mxu1  ;;  %v1687_v4 = vpop.f32.mrb[17].mxu0 }
 0x118   :  { %v1688_v5 = vadd.f32 %v1687_v4, %v1686_v1  ;;  %v1751_v6 = vpop.f32.mrb[17].mxu1  ;;  %v1689_v7 = vpop.f32.mrb[18].mxu0 }
 0x119   :  { %v1752_v8 = vadd.f32 %v1751_v6, %v1750_v3  ;;  %v1753_v9 = vpop.f32.mrb[18].mxu1  ;;  %v1690_v10 = vpop.f32.mrb[19].mxu0 }
 0x11a   :  { %v985_v11 = vadd.f32 %v1688_v5, %v2373_v2  ;;  %v1691_v12 = vadd.f32 %v1690_v10, %v1689_v7  ;;  %v1754_v13 = vpop.f32.mrb[19].mxu1 }
 0x11b   :  { %v1755_v15 = vadd.f32 %v1754_v13, %v1753_v9 }
 0x11c   :  { %v2400_v17 = vadd.f32 %v1752_v8, %v985_v11  ;;  %v988_v18 = vadd.f32 %v1691_v12, %v2373_v2 }
 0x11e   :  { %v2403_v19 = vadd.f32 %v1755_v15, %v988_v18  ;;  %v1692_v20 = vpop.f32.mrb[20].mxu0 }
 0x11f   :  { %v1756_v21 = vpop.f32.mrb[20].mxu1  ;;  %v1693_v22 = vpop.f32.mrb[21].mxu0 }
 0x120   :  { %v1694_v23 = vadd.f32 %v1693_v22, %v1692_v20  ;;  %v1757_v24 = vpop.f32.mrb[21].mxu1  ;;  %v1695_v25 = vpop.f32.mrb[22].mxu0 }
 0x121   :  { %v1758_v26 = vadd.f32 %v1757_v24, %v1756_v21  ;;  %v1759_v27 = vpop.f32.mrb[22].mxu1  ;;  %v1696_v28 = vpop.f32.mrb[23].mxu0 }
 0x122   :  { %v993_v29 = vadd.f32 %v1694_v23, %v2373_v2  ;;  %v1697_v31 = vadd.f32 %v1696_v28, %v1695_v25  ;;  %v1760_v33 = vpop.f32.mrb[23].mxu1 }
 0x123   :  { %v1761_v34 = vadd.f32 %v1760_v33, %v1759_v27 }
 0x124   :  { %v2406_v35 = vadd.f32 %v1758_v26, %v993_v29  ;;  %v996_v36 = vadd.f32 %v1697_v31, %v2373_v2 }
 0x126   :  { %v2409_v37 = vadd.f32 %v1761_v34, %v996_v36  ;;  %v1698_v38 = vpop.f32.mrb[24].mxu0 }
 0x127   :  { %v1762_v39 = vpop.f32.mrb[24].mxu1  ;;  %v1699_v40 = vpop.f32.mrb[25].mxu0 }
 0x128   :  { %v1700_v41 = vadd.f32 %v1699_v40, %v1698_v38  ;;  %v1763_v42 = vpop.f32.mrb[25].mxu1  ;;  %v1701_v43 = vpop.f32.mrb[26].mxu0 }
 0x129   :  { %v1764_v44 = vadd.f32 %v1763_v42, %v1762_v39  ;;  %v1765_v45 = vpop.f32.mrb[26].mxu1  ;;  %v1702_v47 = vpop.f32.mrb[27].mxu0 }
 0x12a   :  { %v1001_v49 = vadd.f32 %v1700_v41, %v2373_v2  ;;  %v1703_v50 = vadd.f32 %v1702_v47, %v1701_v43  ;;  %v1766_v51 = vpop.f32.mrb[27].mxu1 }
 0x12b   :  { %v1767_v52 = vadd.f32 %v1766_v51, %v1765_v45 }
 0x12c   :  { %v2412_v53 = vadd.f32 %v1764_v44, %v1001_v49  ;;  %v1004_v54 = vadd.f32 %v1703_v50, %v2373_v2 }
 0x12e   :  { %v2415_v55 = vadd.f32 %v1767_v52, %v1004_v54  ;;  %v1704_v56 = vpop.f32.mrb[28].mxu0 }
 0x12f   :  { %v1768_v57 = vpop.f32.mrb[28].mxu1  ;;  %v1705_v58 = vpop.f32.mrb[29].mxu0 }
 0x130   :  { %v1706_v59 = vadd.f32 %v1705_v58, %v1704_v56  ;;  %v1769_v60 = vpop.f32.mrb[29].mxu1  ;;  %v1707_v61 = vpop.f32.mrb[30].mxu0 }
 0x131   :  { %v1770_v63 = vadd.f32 %v1769_v60, %v1768_v57  ;;  %v1771_v1 = vpop.f32.mrb[30].mxu1  ;;  %v1708_v3 = vpop.f32.mrb[31].mxu0 }
 0x132   :  { %v1009_v4 = vadd.f32 %v1706_v59, %v2373_v2  ;;  %v1709_v5 = vadd.f32 %v1708_v3, %v1707_v61  ;;  %v1772_v6 = vpop.f32.mrb[31].mxu1 }
 0x133   :  { %v1773_v7 = vadd.f32 %v1772_v6, %v1771_v1 }
 0x134   :  { %v2418_v8 = vadd.f32 %v1770_v63, %v1009_v4  ;;  %v1012_v9 = vadd.f32 %v1709_v5, %v2373_v2 }
 0x136   :  { %v2421_v10 = vadd.f32 %v1773_v7, %v1012_v9  ;;  %v1790_v11 = vpop.f32.mrb[32].mxu0 }
 0x137   :  { %v1854_v12 = vpop.f32.mrb[32].mxu1  ;;  %v1791_v13 = vpop.f32.mrb[33].mxu0 }
 0x138   :  { %v1792_v15 = vadd.f32 %v1791_v13, %v1790_v11  ;;  %v1855_v18 = vpop.f32.mrb[33].mxu1  ;;  %v1793_v20 = vpop.f32.mrb[34].mxu0 }
 0x139   :  { %v1856_v21 = vadd.f32 %v1855_v18, %v1854_v12  ;;  %v1857_v22 = vpop.f32.mrb[34].mxu1  ;;  %v1794_v23 = vpop.f32.mrb[35].mxu0 }
 0x13a   :  { %v1147_v24 = vadd.f32 %v1792_v15, %v2376_v14  ;;  %v1795_v25 = vadd.f32 %v1794_v23, %v1793_v20  ;;  %v1858_v26 = vpop.f32.mrb[35].mxu1 }
 0x13b   :  { %v1859_v27 = vadd.f32 %v1858_v26, %v1857_v22 }
 0x13c   :  { %v1244_v28 = vadd.f32 %v1856_v21, %v1147_v24  ;;  %v1150_v29 = vadd.f32 %v1795_v25, %v2379_v16 }
 0x13e   :  { %v1322_v2 = vmul.f32 0.2, %v1244_v28  ;;  %v1247_v31 = vadd.f32 %v1859_v27, %v1150_v29  ;;  %v1796_v33 = vpop.f32.mrb[36].mxu0  ;;  %vm1306_vm0 = vcmp.ge.f32.partialorder %v1244_v28, 0.0 }
 0x13f   :  { %v1860_v34 = vpop.f32.mrb[36].mxu1  ;;  %v1797_v36 = vpop.f32.mrb[37].mxu0 }
 0x140   :  { %vm1307_vm1 = vcmp.ge.f32.partialorder %v1247_v31, 0.0  ;;  %v1323_v38 = vmul.f32 0.2, %v1247_v31  ;;  %v1798_v39 = vadd.f32 %v1797_v36, %v1796_v33  ;;  %v1861_v40 = vpop.f32.mrb[37].mxu1  ;;  %v1799_v41 = vpop.f32.mrb[38].mxu0  ;;  %v1338_v44 = vsel %vm1306_vm0, %v1244_v28, %v1322_v2 }
 0x141   :  { %v1862_v42 = vadd.f32 %v1861_v40, %v1860_v34  ;;  %v1863_v43 = vpop.f32.mrb[38].mxu1  ;;  %v1800_v14 = vpop.f32.mrb[39].mxu0 }
 0x142   :  { %v1339_v45 = vsel %vm1307_vm1, %v1247_v31, %v1323_v38  ;;  %v1155_v47 = vadd.f32 %v1798_v39, %v2382_v30  ;;  %v1801_v49 = vadd.f32 %v1800_v14, %v1799_v41  ;;  %v1864_v16 = vpop.f32.mrb[39].mxu1 }
 0x143   :  { %v1602_v50 = vpack.c.bf16 %v1339_v45, %v1338_v44  ;;  %v1865_v51 = vadd.f32 %v1864_v16, %v1863_v43 }
 0x144   :  { %v1252_v52 = vadd.f32 %v1862_v42, %v1155_v47  ;;  %v1158_v54 = vadd.f32 %v1801_v49, %v2385_v32 }
 0x145   :  { %1603 = vst [vmem:[%s2466_s3] sm:$0xff] %v1602_v50  }
 0x146   :  { %v1324_v56 = vmul.f32 0.2, %v1252_v52  ;;  %v1255_v57 = vadd.f32 %v1865_v51, %v1158_v54  ;;  %v1802_v58 = vpop.f32.mrb[40].mxu0  ;;  %vm1308_vm2 = vcmp.ge.f32.partialorder %v1252_v52, 0.0 }
 0x147   :  { %v1866_v59 = vpop.f32.mrb[40].mxu1  ;;  %v1803_v60 = vpop.f32.mrb[41].mxu0 }
 0x148   :  { %vm1309_vm3 = vcmp.ge.f32.partialorder %v1255_v57, 0.0  ;;  %v1325_v61 = vmul.f32 0.2, %v1255_v57  ;;  %v1804_v30 = vadd.f32 %v1803_v60, %v1802_v58  ;;  %v1867_v63 = vpop.f32.mrb[41].mxu1  ;;  %v1805_v1 = vpop.f32.mrb[42].mxu0  ;;  %v1340_v6 = vsel %vm1308_vm2, %v1252_v52, %v1324_v56 }
 0x149   :  { %v1868_v3 = vadd.f32 %v1867_v63, %v1866_v59  ;;  %v1869_v4 = vpop.f32.mrb[42].mxu1  ;;  %v1806_v5 = vpop.f32.mrb[43].mxu0 }
 0x14a   :  { %v1341_v32 = vsel %vm1309_vm3, %v1255_v57, %v1325_v61  ;;  %v1163_v7 = vadd.f32 %v1804_v30, %v2388_v46  ;;  %v1807_v9 = vadd.f32 %v1806_v5, %v1805_v1  ;;  %v1870_v11 = vpop.f32.mrb[43].mxu1 }
 0x14b   :  { %v1607_v12 = vpack.c.bf16 %v1341_v32, %v1340_v6  ;;  %v1871_v13 = vadd.f32 %v1870_v11, %v1869_v4 }
 0x14c   :  { %v1260_v15 = vadd.f32 %v1868_v3, %v1163_v7  ;;  %v1166_v18 = vadd.f32 %v1807_v9, %v2391_v48 }
 0x14d   :  { %1639 = vst [vmem:[%s2466_s3 + $0x8] sm:$0xff] %v1607_v12  }
 0x14e   :  { %v1326_v20 = vmul.f32 0.2, %v1260_v15  ;;  %v1263_v21 = vadd.f32 %v1871_v13, %v1166_v18  ;;  %v1808_v22 = vpop.f32.mrb[44].mxu0  ;;  %vm1310_vm4 = vcmp.ge.f32.partialorder %v1260_v15, 0.0 }
 0x14f   :  { %v1872_v23 = vpop.f32.mrb[44].mxu1  ;;  %v1809_v24 = vpop.f32.mrb[45].mxu0 }
 0x150   :  { %vm1311_vm5 = vcmp.ge.f32.partialorder %v1263_v21, 0.0  ;;  %v1327_v25 = vmul.f32 0.2, %v1263_v21  ;;  %v1810_v46 = vadd.f32 %v1809_v24, %v1808_v22  ;;  %v1873_v26 = vpop.f32.mrb[45].mxu1  ;;  %v1811_v27 = vpop.f32.mrb[46].mxu0  ;;  %v1342_v31 = vsel %vm1310_vm4, %v1260_v15, %v1326_v20 }
 0x151   :  { %v1874_v28 = vadd.f32 %v1873_v26, %v1872_v23  ;;  %v1875_v29 = vpop.f32.mrb[46].mxu1  ;;  %v1812_v2 = vpop.f32.mrb[47].mxu0 }
 0x152   :  { %v1343_v48 = vsel %vm1311_vm5, %v1263_v21, %v1327_v25  ;;  %v1171_v33 = vadd.f32 %v1810_v46, %v2394_v62  ;;  %v1813_v34 = vadd.f32 %v1812_v2, %v1811_v27  ;;  %v1876_v36 = vpop.f32.mrb[47].mxu1 }
 0x153   :  { %v1612_v38 = vpack.c.bf16 %v1343_v48, %v1342_v31  ;;  %v1877_v39 = vadd.f32 %v1876_v36, %v1875_v29 }
 0x154   :  { %v1268_v40 = vadd.f32 %v1874_v28, %v1171_v33  ;;  %v1174_v41 = vadd.f32 %v1813_v34, %v2397_v0 }
 0x155   :  { %1640 = vst [vmem:[%s2466_s3 + $0x10] sm:$0xff] %v1612_v38  }
 0x156   :  { %v1328_v42 = vmul.f32 0.2, %v1268_v40  ;;  %v1271_v43 = vadd.f32 %v1877_v39, %v1174_v41  ;;  %v1814_v14 = vpop.f32.mrb[48].mxu0  ;;  %vm1312_vm6 = vcmp.ge.f32.partialorder %v1268_v40, 0.0 }
 0x157   :  { %v1878_v44 = vpop.f32.mrb[48].mxu1  ;;  %v1815_v45 = vpop.f32.mrb[49].mxu0 }
 0x158   :  { %vm1313_vm7 = vcmp.ge.f32.partialorder %v1271_v43, 0.0  ;;  %v1329_v47 = vmul.f32 0.2, %v1271_v43  ;;  %v1816_v62 = vadd.f32 %v1815_v45, %v1814_v14  ;;  %v1879_v49 = vpop.f32.mrb[49].mxu1  ;;  %v1817_v16 = vpop.f32.mrb[50].mxu0  ;;  %v1344_v54 = vsel %vm1312_vm6, %v1268_v40, %v1328_v42 }
 0x159   :  { %v1880_v50 = vadd.f32 %v1879_v49, %v1878_v44  ;;  %v1881_v51 = vpop.f32.mrb[50].mxu1  ;;  %v1818_v52 = vpop.f32.mrb[51].mxu0 }
 0x15a   :  { %v1345_v0 = vsel %vm1313_vm7, %v1271_v43, %v1329_v47  ;;  %v1179_v56 = vadd.f32 %v1816_v62, %v2400_v17  ;;  %v1819_v57 = vadd.f32 %v1818_v52, %v1817_v16  ;;  %v1882_v58 = vpop.f32.mrb[51].mxu1 }
 0x15b   :  { %v1617_v59 = vpack.c.bf16 %v1345_v0, %v1344_v54  ;;  %v1883_v60 = vadd.f32 %v1882_v58, %v1881_v51 }
 0x15c   :  { %v1276_v61 = vadd.f32 %v1880_v50, %v1179_v56  ;;  %v1182_v30 = vadd.f32 %v1819_v57, %v2403_v19 }
 0x15d   :  { %1641 = vst [vmem:[%s2466_s3 + $0x18] sm:$0xff] %v1617_v59  }
 0x15e   :  { %v1330_v63 = vmul.f32 0.2, %v1276_v61  ;;  %v1279_v1 = vadd.f32 %v1883_v60, %v1182_v30  ;;  %v1820_v3 = vpop.f32.mrb[52].mxu0  ;;  %vm1314_vm8 = vcmp.ge.f32.partialorder %v1276_v61, 0.0 }
 0x15f   :  { %v1884_v4 = vpop.f32.mrb[52].mxu1  ;;  %v1821_v5 = vpop.f32.mrb[53].mxu0 }
 0x160   :  { %vm1315_vm9 = vcmp.ge.f32.partialorder %v1279_v1, 0.0  ;;  %v1331_v6 = vmul.f32 0.2, %v1279_v1  ;;  %v1822_v17 = vadd.f32 %v1821_v5, %v1820_v3  ;;  %v1885_v32 = vpop.f32.mrb[53].mxu1  ;;  %v1823_v7 = vpop.f32.mrb[54].mxu0  ;;  %v1346_v13 = vsel %vm1314_vm8, %v1276_v61, %v1330_v63 }
 0x161   :  { %v1886_v9 = vadd.f32 %v1885_v32, %v1884_v4  ;;  %v1887_v11 = vpop.f32.mrb[54].mxu1  ;;  %v1824_v12 = vpop.f32.mrb[55].mxu0 }
 0x162   :  { %v1347_v19 = vsel %vm1315_vm9, %v1279_v1, %v1331_v6  ;;  %v1187_v15 = vadd.f32 %v1822_v17, %v2406_v35  ;;  %v1825_v18 = vadd.f32 %v1824_v12, %v1823_v7  ;;  %v1888_v20 = vpop.f32.mrb[55].mxu1 }
 0x163   :  { %v1622_v21 = vpack.c.bf16 %v1347_v19, %v1346_v13  ;;  %v1889_v22 = vadd.f32 %v1888_v20, %v1887_v11 }
 0x164   :  { %v1284_v23 = vadd.f32 %v1886_v9, %v1187_v15  ;;  %v1190_v24 = vadd.f32 %v1825_v18, %v2409_v37 }
 0x165   :  { %1642 = vst [vmem:[%s2466_s3 + $0x20] sm:$0xff] %v1622_v21  }
 0x166   :  { %v1332_v25 = vmul.f32 0.2, %v1284_v23  ;;  %v1287_v46 = vadd.f32 %v1889_v22, %v1190_v24  ;;  %v1826_v26 = vpop.f32.mrb[56].mxu0  ;;  %vm1316_vm10 = vcmp.ge.f32.partialorder %v1284_v23, 0.0 }
 0x167   :  { %v1890_v27 = vpop.f32.mrb[56].mxu1  ;;  %v1827_v28 = vpop.f32.mrb[57].mxu0 }
 0x168   :  { %vm1317_vm11 = vcmp.ge.f32.partialorder %v1287_v46, 0.0  ;;  %v1333_v29 = vmul.f32 0.2, %v1287_v46  ;;  %v1828_v35 = vadd.f32 %v1827_v28, %v1826_v26  ;;  %v1891_v2 = vpop.f32.mrb[57].mxu1  ;;  %v1829_v31 = vpop.f32.mrb[58].mxu0  ;;  %v1348_v36 = vsel %vm1316_vm10, %v1284_v23, %v1332_v25 }
 0x169   :  { %v1892_v48 = vadd.f32 %v1891_v2, %v1890_v27  ;;  %v1893_v33 = vpop.f32.mrb[58].mxu1  ;;  %v1830_v34 = vpop.f32.mrb[59].mxu0 }
 0x16a   :  { %v1349_v37 = vsel %vm1317_vm11, %v1287_v46, %v1333_v29  ;;  %v1195_v38 = vadd.f32 %v1828_v35, %v2412_v53  ;;  %v1831_v39 = vadd.f32 %v1830_v34, %v1829_v31  ;;  %v1894_v40 = vpop.f32.mrb[59].mxu1 }
 0x16b   :  { %v1627_v41 = vpack.c.bf16 %v1349_v37, %v1348_v36  ;;  %v1895_v42 = vadd.f32 %v1894_v40, %v1893_v33 }
 0x16c   :  { %v1292_v43 = vadd.f32 %v1892_v48, %v1195_v38  ;;  %v1198_v14 = vadd.f32 %v1831_v39, %v2415_v55 }
 0x16d   :  { %1643 = vst [vmem:[%s2466_s3 + $0x28] sm:$0xff] %v1627_v41  }
 0x16e   :  { %v1334_v44 = vmul.f32 0.2, %v1292_v43  ;;  %v1295_v45 = vadd.f32 %v1895_v42, %v1198_v14  ;;  %v1832_v47 = vpop.f32.mrb[60].mxu0  ;;  %vm1318_vm12 = vcmp.ge.f32.partialorder %v1292_v43, 0.0 }
 0x16f   :  { %v1896_v62 = vpop.f32.mrb[60].mxu1  ;;  %v1833_v49 = vpop.f32.mrb[61].mxu0 }
 0x170   :  { %vm1319_vm13 = vcmp.ge.f32.partialorder %v1295_v45, 0.0  ;;  %v1335_v16 = vmul.f32 0.2, %v1295_v45  ;;  %v1834_v53 = vadd.f32 %v1833_v49, %v1832_v47  ;;  %v1897_v50 = vpop.f32.mrb[61].mxu1  ;;  %v1835_v51 = vpop.f32.mrb[62].mxu0  ;;  %v1350_v56 = vsel %vm1318_vm12, %v1292_v43, %v1334_v44 }
 0x171   :  { %v1898_v52 = vadd.f32 %v1897_v50, %v1896_v62  ;;  %v1899_v54 = vpop.f32.mrb[62].mxu1  ;;  %v1836_v0 = vpop.f32.mrb[63].mxu0 }
 0x172   :  { %v1351_v55 = vsel %vm1319_vm13, %v1295_v45, %v1335_v16  ;;  %v1203_v57 = vadd.f32 %v1834_v53, %v2418_v8  ;;  %v1837_v58 = vadd.f32 %v1836_v0, %v1835_v51  ;;  %v1900_v59 = vpop.f32.mrb[63].mxu1 }
 0x173   :  { %v1632_v60 = vpack.c.bf16 %v1351_v55, %v1350_v56  ;;  %v1901_v61 = vadd.f32 %v1900_v59, %v1899_v54 }
 0x174   :  { %v1300_v30 = vadd.f32 %v1898_v52, %v1203_v57  ;;  %v1206_v63 = vadd.f32 %v1837_v58, %v2421_v10 }
 0x175   :  { %1644 = vst [vmem:[%s2466_s3 + $0x30] sm:$0xff] %v1632_v60  }
 0x176   :  { %v1336_v1 = vmul.f32 0.2, %v1300_v30  ;;  %v1303_v3 = vadd.f32 %v1901_v61, %v1206_v63  ;;  %vm1320_vm14 = vcmp.ge.f32.partialorder %v1300_v30, 0.0 }
 0x178   :  { %vm1321_vm15 = vcmp.ge.f32.partialorder %v1303_v3, 0.0  ;;  %v1337_v4 = vmul.f32 0.2, %v1303_v3  ;;  %v1352_v5 = vsel %vm1320_vm14, %v1300_v30, %v1336_v1 }
 0x17a   :  { %v1353_v6 = vsel %vm1321_vm15, %v1303_v3, %v1337_v4 }
 0x17b   :  { %v1637_v17 = vpack.c.bf16 %v1353_v6, %v1352_v5 }
 0x17d   :  { %1645 = vst [vmem:[%s2466_s3 + $0x38] sm:$0xff] %v1637_v17  }

// kernel: multiclass_discriminator_forward.8
= control target key start
LH: loop header
LB: loop body
LE: loop exit
PB: predicated region body
PF: predicated region fallthrough
CT: control target
= control target key end

     0   :  { %s3925_s1 = inlined_call_operand.vmem [shape: bf16[2048,256], index: 1, kind: input, shape index: {}]   ;;  %s3926_s0 = inlined_call_operand.vmem [shape: bf16[32,2048], index: 0, kind: input, shape index: {}]   ;;  %s3927_s2 = inlined_call_operand.vmem [shape: f32[1,256], index: 2, kind: input, shape index: {}]   ;;  %s3928_s3 = inlined_call_operand.vmem [shape: bf16[32,256], index: 3, kind: output, shape index: {}]  }
   0x1   :  { %v2594_v0 = vld [vmem:[%s3925_s1 + $0x4] ss:$8 sps:$4 sm:$0xff]   ;;  %v2598_v2 = vld [vmem:[%s3925_s1] ss:$8 sps:$4 sm:$0xff]   ;;  %v2600_v4 = vld [vmem:[%s3925_s1 + $0x14] ss:$8 sps:$4 sm:$0xff]  }
   0x2   :  { %v2596_v1 = vld [vmem:[%s3925_s1 + $0x404] ss:$8 sps:$4 sm:$0xff]   ;;  %1754 = vmatprep.subr.bf16.mxu1 %v2594_v0  ;;  %v2599_v3 = vld [vmem:[%s3925_s1 + $0x400] ss:$8 sps:$4 sm:$0xff]   ;;  %v2602_v5 = vld [vmem:[%s3925_s1 + $0x414] ss:$8 sps:$4 sm:$0xff]  }
   0x3   :  { %1966 = vmatprep.subr.bf16.mxu0 %v2596_v1  ;;  %1755 = vmatpush1.bf16.msra.mxu1 %v2598_v2  ;;  %v2604_v6 = vld [vmem:[%s3925_s1 + $0x10] ss:$8 sps:$4 sm:$0xff]   ;;  %v2606_v8 = vld [vmem:[%s3925_s1 + $0x24] ss:$8 sps:$4 sm:$0xff]   ;;  %v2610_v10 = vld [vmem:[%s3925_s1 + $0x20] ss:$8 sps:$4 sm:$0xff]  }
   0x4   :  { %1967 = vmatpush1.bf16.msra.mxu0 %v2599_v3  ;;  %1756 = vmatprep.subr.bf16.mxu1 %v2600_v4  ;;  %v2605_v7 = vld [vmem:[%s3925_s1 + $0x410] ss:$8 sps:$4 sm:$0xff]   ;;  %v2608_v9 = vld [vmem:[%s3925_s1 + $0x424] ss:$8 sps:$4 sm:$0xff]   ;;  %v2611_v11 = vld [vmem:[%s3925_s1 + $0x420] ss:$8 sps:$4 sm:$0xff]  }
   0x5   :  { %1968 = vmatprep.subr.bf16.mxu0 %v2602_v5  ;;  %v2612_v12 = vld [vmem:[%s3925_s1 + $0x34] ss:$8 sps:$4 sm:$0xff]   ;;  %v2616_v14 = vld [vmem:[%s3925_s1 + $0x30] ss:$8 sps:$4 sm:$0xff]   ;;  %v2618_v16 = vld [vmem:[%s3925_s1 + $0x44] ss:$8 sps:$4 sm:$0xff]  }
   0x6   :  { %v2614_v13 = vld [vmem:[%s3925_s1 + $0x434] ss:$8 sps:$4 sm:$0xff]   ;;  %v2617_v15 = vld [vmem:[%s3925_s1 + $0x430] ss:$8 sps:$4 sm:$0xff]   ;;  %v2620_v17 = vld [vmem:[%s3925_s1 + $0x444] ss:$8 sps:$4 sm:$0xff]  }
   0x7   :  { %1757 = vmatpush1.bf16.msra.mxu1 %v2604_v6  ;;  %v2622_v18 = vld [vmem:[%s3925_s1 + $0x40] ss:$8 sps:$4 sm:$0xff]   ;;  %v2624_v20 = vld [vmem:[%s3925_s1 + $0x54] ss:$8 sps:$4 sm:$0xff]   ;;  %v2628_v22 = vld [vmem:[%s3925_s1 + $0x50] ss:$8 sps:$4 sm:$0xff]  }
   0x8   :  { %1969 = vmatpush1.bf16.msra.mxu0 %v2605_v7  ;;  %1758 = vmatprep.subr.bf16.mxu1 %v2606_v8  ;;  %v2623_v19 = vld [vmem:[%s3925_s1 + $0x440] ss:$8 sps:$4 sm:$0xff]   ;;  %v2626_v21 = vld [vmem:[%s3925_s1 + $0x454] ss:$8 sps:$4 sm:$0xff]   ;;  %v2629_v23 = vld [vmem:[%s3925_s1 + $0x450] ss:$8 sps:$4 sm:$0xff]  }
   0x9   :  { %1970 = vmatprep.subr.bf16.mxu0 %v2608_v9  ;;  %v2630_v24 = vld [vmem:[%s3925_s1 + $0x64] ss:$8 sps:$4 sm:$0xff]   ;;  %v2634_v26 = vld [vmem:[%s3925_s1 + $0x60] ss:$8 sps:$4 sm:$0xff]   ;;  %v2636_v28 = vld [vmem:[%s3925_s1 + $0x74] ss:$8 sps:$4 sm:$0xff]  }
   0xa   :  { %v2632_v25 = vld [vmem:[%s3925_s1 + $0x464] ss:$8 sps:$4 sm:$0xff]   ;;  %v2635_v27 = vld [vmem:[%s3925_s1 + $0x460] ss:$8 sps:$4 sm:$0xff]   ;;  %v2638_v29 = vld [vmem:[%s3925_s1 + $0x474] ss:$8 sps:$4 sm:$0xff]  }
   0xb   :  { %1759 = vmatpush1.bf16.msra.mxu1 %v2610_v10  ;;  %v2640_v30 = vld [vmem:[%s3925_s1 + $0x70] ss:$8 sps:$4 sm:$0xff]   ;;  %v2642_v32 = vld [vmem:[%s3925_s1 + $0x84] ss:$8 sps:$4 sm:$0xff]   ;;  %v2646_v34 = vld [vmem:[%s3925_s1 + $0x80] ss:$8 sps:$4 sm:$0xff]  }
   0xc   :  { %1971 = vmatpush1.bf16.msra.mxu0 %v2611_v11  ;;  %1760 = vmatprep.subr.bf16.mxu1 %v2612_v12  ;;  %v2641_v31 = vld [vmem:[%s3925_s1 + $0x470] ss:$8 sps:$4 sm:$0xff]   ;;  %v2644_v33 = vld [vmem:[%s3925_s1 + $0x484] ss:$8 sps:$4 sm:$0xff]   ;;  %v2647_v35 = vld [vmem:[%s3925_s1 + $0x480] ss:$8 sps:$4 sm:$0xff]  }
   0xd   :  { %1972 = vmatprep.subr.bf16.mxu0 %v2614_v13  ;;  %v2648_v36 = vld [vmem:[%s3925_s1 + $0x94] ss:$8 sps:$4 sm:$0xff]   ;;  %v2652_v38 = vld [vmem:[%s3925_s1 + $0x90] ss:$8 sps:$4 sm:$0xff]   ;;  %v2654_v40 = vld [vmem:[%s3925_s1 + $0xa4] ss:$8 sps:$4 sm:$0xff]  }
   0xe   :  { %v2650_v37 = vld [vmem:[%s3925_s1 + $0x494] ss:$8 sps:$4 sm:$0xff]   ;;  %v2653_v39 = vld [vmem:[%s3925_s1 + $0x490] ss:$8 sps:$4 sm:$0xff]   ;;  %v2656_v41 = vld [vmem:[%s3925_s1 + $0x4a4] ss:$8 sps:$4 sm:$0xff]  }
   0xf   :  { %1761 = vmatpush1.bf16.msra.mxu1 %v2616_v14  ;;  %v2658_v42 = vld [vmem:[%s3925_s1 + $0xa0] ss:$8 sps:$4 sm:$0xff]   ;;  %v2660_v44 = vld [vmem:[%s3925_s1 + $0xb4] ss:$8 sps:$4 sm:$0xff]   ;;  %v2664_v46 = vld [vmem:[%s3925_s1 + $0xb0] ss:$8 sps:$4 sm:$0xff]  }
  0x10   :  { %1973 = vmatpush1.bf16.msra.mxu0 %v2617_v15  ;;  %1762 = vmatprep.subr.bf16.mxu1 %v2618_v16  ;;  %v2659_v43 = vld [vmem:[%s3925_s1 + $0x4a0] ss:$8 sps:$4 sm:$0xff]   ;;  %v2662_v45 = vld [vmem:[%s3925_s1 + $0x4b4] ss:$8 sps:$4 sm:$0xff]   ;;  %v2665_v47 = vld [vmem:[%s3925_s1 + $0x4b0] ss:$8 sps:$4 sm:$0xff]  }
  0x11   :  { %1974 = vmatprep.subr.bf16.mxu0 %v2620_v17  ;;  %v14_v48 = vld [vmem:[%s3926_s0] sm:$0xff]  ;;  %v2672_v58 = vld [vmem:[%s3925_s1 + $0xd4] ss:$8 sps:$4 sm:$0xff]   ;;  %v2676_v60 = vld [vmem:[%s3925_s1 + $0xd0] ss:$8 sps:$4 sm:$0xff]  }
  0x12   :  { %v22_v49 = vld [vmem:[%s3926_s0 + $0x40] sm:$0xff]  ;;  %v2674_v59 = vld [vmem:[%s3925_s1 + $0x4d4] ss:$8 sps:$4 sm:$0xff]   ;;  %v2677_v61 = vld [vmem:[%s3925_s1 + $0x4d0] ss:$8 sps:$4 sm:$0xff]  }
  0x13   :  { %1763 = vmatpush1.bf16.msra.mxu1 %v2622_v18  ;;  %v2666_v50 = vld [vmem:[%s3925_s1 + $0xc4] ss:$8 sps:$4 sm:$0xff]   ;;  %v2235_v52 = vcombine.high %v14_v48, %v22_v49  ;;  %v2670_v56 = vld [vmem:[%s3925_s1 + $0xc0] ss:$8 sps:$4 sm:$0xff]   ;;  %v2684_v2 = vld [vmem:[%s3925_s1 + $0xf4] ss:$8 sps:$4 sm:$0xff]   ;;  %v2234_v8 = vcombine.low %v14_v48, %v22_v49 }
  0x14   :  { %1975 = vmatpush1.bf16.msra.mxu0 %v2623_v19  ;;  %1764 = vmatprep.subr.bf16.mxu1 %v2624_v20  ;;  %v2668_v51 = vld [vmem:[%s3925_s1 + $0x4c4] ss:$8 sps:$4 sm:$0xff]   ;;  %v2671_v57 = vld [vmem:[%s3925_s1 + $0x4c0] ss:$8 sps:$4 sm:$0xff]   ;;  %v2686_v3 = vld [vmem:[%s3925_s1 + $0x4f4] ss:$8 sps:$4 sm:$0xff]  }
  0x15   :  { %1976 = vmatprep.subr.bf16.mxu0 %v2626_v21  ;;  %v18_v53 = vld [vmem:[%s3926_s0 + $0x20] sm:$0xff]  ;;  %1786 = vmatprep.mubr.bf16.mxu1 %v2235_v52  ;;  %v2688_v4 = vld [vmem:[%s3925_s1 + $0xf0] ss:$8 sps:$4 sm:$0xff]   ;;  %v2698_v12 = vld [vmem:[%s3925_s1 + $0x114] ss:$8 sps:$4 sm:$0xff]  }
  0x16   :  { %v26_v54 = vld [vmem:[%s3926_s0 + $0x60] sm:$0xff]  ;;  %v2689_v5 = vld [vmem:[%s3925_s1 + $0x4f0] ss:$8 sps:$4 sm:$0xff]   ;;  %v2701_v13 = vld [vmem:[%s3925_s1 + $0x514] ss:$8 sps:$4 sm:$0xff]  }
  0x17   :  { %1765 = vmatpush1.bf16.msra.mxu1 %v2628_v22  ;;  %v2243_v55 = vcombine.high %v18_v53, %v26_v54  ;;  %v2678_v62 = vld [vmem:[%s3925_s1 + $0xe4] ss:$8 sps:$4 sm:$0xff]   ;;  %v2682_v0 = vld [vmem:[%s3925_s1 + $0xe0] ss:$8 sps:$4 sm:$0xff]   ;;  %v2242_v10 = vcombine.low %v18_v53, %v26_v54  ;;  %v2696_v14 = vld [vmem:[%s3925_s1 + $0x110] ss:$8 sps:$4 sm:$0xff]  }
  0x18   :  { %1977 = vmatpush1.bf16.msra.mxu0 %v2629_v23  ;;  %1766 = vmatprep.subr.bf16.mxu1 %v2630_v24  ;;  %v2680_v63 = vld [vmem:[%s3925_s1 + $0x4e4] ss:$8 sps:$4 sm:$0xff]   ;;  %v2683_v1 = vld [vmem:[%s3925_s1 + $0x4e0] ss:$8 sps:$4 sm:$0xff]   ;;  %v2699_v15 = vld [vmem:[%s3925_s1 + $0x510] ss:$8 sps:$4 sm:$0xff]  }
  0x19   :  { %1978 = vmatprep.subr.bf16.mxu0 %v2632_v25  ;;  %1998 = vmatprep.mubr.bf16.mxu0 %v2243_v55  ;;  %v2692_v6 = vld [vmem:[%s3925_s1 + $0x104] ss:$8 sps:$4 sm:$0xff]   ;;  %v2690_v9 = vld [vmem:[%s3925_s1 + $0x100] ss:$8 sps:$4 sm:$0xff]   ;;  %v2710_v20 = vld [vmem:[%s3925_s1 + $0x134] ss:$8 sps:$4 sm:$0xff]  }
  0x1a   :  { %v2695_v7 = vld [vmem:[%s3925_s1 + $0x504] ss:$8 sps:$4 sm:$0xff]   ;;  %v2693_v11 = vld [vmem:[%s3925_s1 + $0x500] ss:$8 sps:$4 sm:$0xff]   ;;  %v2713_v21 = vld [vmem:[%s3925_s1 + $0x534] ss:$8 sps:$4 sm:$0xff]  }
  0x1b   :  { %1767 = vmatpush1.bf16.msra.mxu1 %v2634_v26  ;;  %v2704_v16 = vld [vmem:[%s3925_s1 + $0x124] ss:$8 sps:$4 sm:$0xff]   ;;  %v2702_v18 = vld [vmem:[%s3925_s1 + $0x120] ss:$8 sps:$4 sm:$0xff]   ;;  %v2708_v22 = vld [vmem:[%s3925_s1 + $0x130] ss:$8 sps:$4 sm:$0xff]  }
  0x1c   :  { %1979 = vmatpush1.bf16.msra.mxu0 %v2635_v27  ;;  %1768 = vmatprep.subr.bf16.mxu1 %v2636_v28  ;;  %v2707_v17 = vld [vmem:[%s3925_s1 + $0x524] ss:$8 sps:$4 sm:$0xff]   ;;  %v2705_v19 = vld [vmem:[%s3925_s1 + $0x520] ss:$8 sps:$4 sm:$0xff]   ;;  %v2711_v23 = vld [vmem:[%s3925_s1 + $0x530] ss:$8 sps:$4 sm:$0xff]  }
  0x1d   :  { %1980 = vmatprep.subr.bf16.mxu0 %v2638_v29  ;;  %v2716_v24 = vld [vmem:[%s3925_s1 + $0x144] ss:$8 sps:$4 sm:$0xff]   ;;  %v2714_v26 = vld [vmem:[%s3925_s1 + $0x140] ss:$8 sps:$4 sm:$0xff]   ;;  %v2722_v28 = vld [vmem:[%s3925_s1 + $0x154] ss:$8 sps:$4 sm:$0xff]  }
  0x1e   :  { %v2719_v25 = vld [vmem:[%s3925_s1 + $0x544] ss:$8 sps:$4 sm:$0xff]   ;;  %v2717_v27 = vld [vmem:[%s3925_s1 + $0x540] ss:$8 sps:$4 sm:$0xff]   ;;  %v2725_v29 = vld [vmem:[%s3925_s1 + $0x554] ss:$8 sps:$4 sm:$0xff]  }
  0x1f   :  { %1769 = vmatpush1.bf16.msra.mxu1 %v2640_v30  ;;  %v30_v30 = vld [vmem:[%s3926_s0 + $0x80] sm:$0xff]  ;;  %v3319_v49 = vld [vmem:[%s3926_s0 + $0x28] sm:$0xff]  ;;  %v2735_v52 = vld [vmem:[%s3925_s1 + $0x570] ss:$8 sps:$4 sm:$0xff]  }
  0x20   :  { %1981 = vmatpush1.bf16.msra.mxu0 %v2641_v31  ;;  %1770 = vmatprep.subr.bf16.mxu1 %v2642_v32  ;;  %v38_v31 = vld [vmem:[%s3926_s0 + $0xc0] sm:$0xff]  ;;  %v2720_v32 = vld [vmem:[%s3925_s1 + $0x150] ss:$8 sps:$4 sm:$0xff]  }
  0x21   :  { %1982 = vmatprep.subr.bf16.mxu0 %v2644_v33  ;;  %v2251_v33 = vcombine.high %v30_v30, %v38_v31  ;;  %v2740_v54 = vld [vmem:[%s3925_s1 + $0x184] ss:$8 sps:$4 sm:$0xff]  }
  0x22   :  { %v2743_v55 = vld [vmem:[%s3925_s1 + $0x584] ss:$8 sps:$4 sm:$0xff]  }
  0x23   :  { %1771 = vmatpush1.bf16.msra.mxu1 %v2646_v34  ;;  %v2723_v34 = vld [vmem:[%s3925_s1 + $0x550] ss:$8 sps:$4 sm:$0xff]  }
  0x24   :  { %1983 = vmatpush1.bf16.msra.mxu0 %v2647_v35  ;;  %1772 = vmatprep.subr.bf16.mxu1 %v2648_v36  ;;  %v34_v35 = vld [vmem:[%s3926_s0 + $0xa0] sm:$0xff] }
  0x25   :  { %1984 = vmatprep.subr.bf16.mxu0 %v2650_v37  ;;  %v42_v36 = vld [vmem:[%s3926_s0 + $0xe0] sm:$0xff]  ;;  %v2250_v37 = vcombine.low %v30_v30, %v38_v31  ;;  %v2794_v30 = vld [vmem:[%s3925_s1 + $0x214] ss:$8 sps:$4 sm:$0xff]  }
  0x26   :  { %v2797_v31 = vld [vmem:[%s3925_s1 + $0x614] ss:$8 sps:$4 sm:$0xff]  }
  0x27   :  { %1773 = vmatpush1.bf16.msra.mxu1 %v2652_v38  ;;  %v2728_v38 = vld [vmem:[%s3925_s1 + $0x164] ss:$8 sps:$4 sm:$0xff]  }
  0x28   :  { %1985 = vmatpush1.bf16.msra.mxu0 %v2653_v39  ;;  %1774 = vmatprep.subr.bf16.mxu1 %v2654_v40  ;;  %v2259_v39 = vcombine.high %v34_v35, %v42_v36  ;;  %v2258_v40 = vcombine.low %v34_v35, %v42_v36  ;;  %v2792_v36 = vld [vmem:[%s3925_s1 + $0x210] ss:$8 sps:$4 sm:$0xff]  }
  0x29   :  { %1986 = vmatprep.subr.bf16.mxu0 %v2656_v41  ;;  %v2731_v41 = vld [vmem:[%s3925_s1 + $0x564] ss:$8 sps:$4 sm:$0xff]  }
  0x2b   :  { %1775 = vmatpush1.bf16.msra.mxu1 %v2658_v42  ;;  %v2726_v42 = vld [vmem:[%s3925_s1 + $0x160] ss:$8 sps:$4 sm:$0xff]  }
  0x2c   :  { %1987 = vmatpush1.bf16.msra.mxu0 %v2659_v43  ;;  %1776 = vmatprep.subr.bf16.mxu1 %v2660_v44  ;;  %v2729_v43 = vld [vmem:[%s3925_s1 + $0x560] ss:$8 sps:$4 sm:$0xff]  }
  0x2d   :  { %1988 = vmatprep.subr.bf16.mxu0 %v2662_v45  ;;  %v3301_v44 = vld [vmem:[%s3926_s0 + $0x8] sm:$0xff] }
  0x2e   :  { %v3306_v45 = vld [vmem:[%s3926_s0 + $0x48] sm:$0xff] }
  0x2f   :  { %1777 = vmatpush1.bf16.msra.mxu1 %v2664_v46  ;;  %v2734_v46 = vld [vmem:[%s3925_s1 + $0x174] ss:$8 sps:$4 sm:$0xff]   ;;  %v2237_v48 = vcombine.high %v3301_v44, %v3306_v45 }
  0x30   :  { %1989 = vmatpush1.bf16.msra.mxu0 %v2665_v47  ;;  %1778 = vmatprep.subr.bf16.mxu1 %v2666_v50  ;;  %v2737_v47 = vld [vmem:[%s3925_s1 + $0x574] ss:$8 sps:$4 sm:$0xff]   ;;  %v3324_v50 = vld [vmem:[%s3926_s0 + $0x68] sm:$0xff] }
  0x31   :  { %1990 = vmatprep.subr.bf16.mxu0 %v2668_v51  ;;  %v2732_v51 = vld [vmem:[%s3925_s1 + $0x170] ss:$8 sps:$4 sm:$0xff]   ;;  %v2245_v53 = vcombine.high %v3319_v49, %v3324_v50 }
  0x33   :  { %1779 = vmatpush1.bf16.msra.mxu1 %v2670_v56  ;;  %v2738_v56 = vld [vmem:[%s3925_s1 + $0x180] ss:$8 sps:$4 sm:$0xff]  }
  0x34   :  { %1991 = vmatpush1.bf16.msra.mxu0 %v2671_v57  ;;  %1780 = vmatprep.subr.bf16.mxu1 %v2672_v58  ;;  %v2741_v57 = vld [vmem:[%s3925_s1 + $0x580] ss:$8 sps:$4 sm:$0xff]   ;;  %v2746_v58 = vld [vmem:[%s3925_s1 + $0x194] ss:$8 sps:$4 sm:$0xff]  }
  0x35   :  { %1992 = vmatprep.subr.bf16.mxu0 %v2674_v59  ;;  %v2749_v59 = vld [vmem:[%s3925_s1 + $0x594] ss:$8 sps:$4 sm:$0xff]  }
  0x37   :  { %1781 = vmatpush1.bf16.msra.mxu1 %v2676_v60  ;;  %v2744_v60 = vld [vmem:[%s3925_s1 + $0x190] ss:$8 sps:$4 sm:$0xff]  }
  0x38   :  { %1993 = vmatpush1.bf16.msra.mxu0 %v2677_v61  ;;  %1782 = vmatprep.subr.bf16.mxu1 %v2678_v62  ;;  %v2747_v61 = vld [vmem:[%s3925_s1 + $0x590] ss:$8 sps:$4 sm:$0xff]   ;;  %v2752_v62 = vld [vmem:[%s3925_s1 + $0x1a4] ss:$8 sps:$4 sm:$0xff]  }
  0x39   :  { %1994 = vmatprep.subr.bf16.mxu0 %v2680_v63  ;;  %v2755_v63 = vld [vmem:[%s3925_s1 + $0x5a4] ss:$8 sps:$4 sm:$0xff]  }
  0x3b   :  { %1783 = vmatpush1.bf16.msra.mxu1 %v2682_v0  ;;  %v2750_v0 = vld [vmem:[%s3925_s1 + $0x1a0] ss:$8 sps:$4 sm:$0xff]  }
  0x3c   :  { %1995 = vmatpush1.bf16.msra.mxu0 %v2683_v1  ;;  %1784 = vmatprep.subr.bf16.mxu1 %v2684_v2  ;;  %v2753_v1 = vld [vmem:[%s3925_s1 + $0x5a0] ss:$8 sps:$4 sm:$0xff]   ;;  %v2758_v2 = vld [vmem:[%s3925_s1 + $0x1b4] ss:$8 sps:$4 sm:$0xff]  }
  0x3d   :  { %1996 = vmatprep.subr.bf16.mxu0 %v2686_v3  ;;  %v2761_v3 = vld [vmem:[%s3925_s1 + $0x5b4] ss:$8 sps:$4 sm:$0xff]  }
  0x3f   :  { %1785 = vmatpush1.bf16.msra.mxu1 %v2688_v4  ;;  %v2756_v4 = vld [vmem:[%s3925_s1 + $0x1b0] ss:$8 sps:$4 sm:$0xff]  }
  0x40   :  { %1997 = vmatpush1.bf16.msra.mxu0 %v2689_v5  ;;  %1807 = vmatprep.subr.bf16.mxu1 %v2692_v6  ;;  %v2759_v5 = vld [vmem:[%s3925_s1 + $0x5b0] ss:$8 sps:$4 sm:$0xff]   ;;  %v2764_v6 = vld [vmem:[%s3925_s1 + $0x1c4] ss:$8 sps:$4 sm:$0xff]  }
  0x41   :  { %2019 = vmatprep.subr.bf16.mxu0 %v2695_v7  ;;  %v2767_v7 = vld [vmem:[%s3925_s1 + $0x5c4] ss:$8 sps:$4 sm:$0xff]  }
  0x42   :  { %1787 = vmatmul.mubr.bf16.vlgmr.msra.gmra.mrb[0].mxu1 %v2234_v8  ;;  %v2762_v8 = vld [vmem:[%s3925_s1 + $0x1c0] ss:$8 sps:$4 sm:$0xff]  }
  0x43   :  { %1999 = vmatmul.mubr.bf16.vlgmr.msra.gmra.mrb[0].mxu0 %v2242_v10  ;;  %1808 = vmatpush1.bf16.msra.mxu1 %v2690_v9  ;;  %v2765_v9 = vld [vmem:[%s3925_s1 + $0x5c0] ss:$8 sps:$4 sm:$0xff]   ;;  %v2770_v10 = vld [vmem:[%s3925_s1 + $0x1d4] ss:$8 sps:$4 sm:$0xff]  }
  0x44   :  { %2020 = vmatpush1.bf16.msra.mxu0 %v2693_v11  ;;  %1809 = vmatprep.subr.bf16.mxu1 %v2698_v12  ;;  %v2773_v11 = vld [vmem:[%s3925_s1 + $0x5d4] ss:$8 sps:$4 sm:$0xff]   ;;  %v2768_v12 = vld [vmem:[%s3925_s1 + $0x1d0] ss:$8 sps:$4 sm:$0xff]  }
  0x45   :  { %2021 = vmatprep.subr.bf16.mxu0 %v2701_v13  ;;  %1796 = vmatprep.mubr.bf16.mxu1 %v2251_v33  ;;  %v2771_v13 = vld [vmem:[%s3925_s1 + $0x5d0] ss:$8 sps:$4 sm:$0xff]   ;;  %v43_v33 = vld [vmem:[%s3926_s0 + $0xe8] sm:$0xff] }
  0x46   :  { %2008 = vmatprep.mubr.bf16.mxu0 %v2259_v39  ;;  %v2803_v39 = vld [vmem:[%s3925_s1 + $0x624] ss:$8 sps:$4 sm:$0xff]  }
  0x47   :  { %1810 = vmatpush1.bf16.msra.mxu1 %v2696_v14  ;;  %v2776_v14 = vld [vmem:[%s3925_s1 + $0x1e4] ss:$8 sps:$4 sm:$0xff]  }
  0x48   :  { %2022 = vmatpush1.bf16.msra.mxu0 %v2699_v15  ;;  %1811 = vmatprep.subr.bf16.mxu1 %v2704_v16  ;;  %v2779_v15 = vld [vmem:[%s3925_s1 + $0x5e4] ss:$8 sps:$4 sm:$0xff]   ;;  %v2774_v16 = vld [vmem:[%s3925_s1 + $0x1e0] ss:$8 sps:$4 sm:$0xff]  }
  0x49   :  { %2023 = vmatprep.subr.bf16.mxu0 %v2707_v17  ;;  %v2777_v17 = vld [vmem:[%s3925_s1 + $0x5e0] ss:$8 sps:$4 sm:$0xff]  }
  0x4a   :  { %1797 = vmatmul.mubr.bf16.gmra.mrb[4].mxu1 %v2250_v37  ;;  %v2795_v37 = vld [vmem:[%s3925_s1 + $0x610] ss:$8 sps:$4 sm:$0xff]  }
  0x4b   :  { %1812 = vmatpush1.bf16.msra.mxu1 %v2702_v18  ;;  %2009 = vmatmul.mubr.bf16.gmra.mrb[4].mxu0 %v2258_v40  ;;  %v2782_v18 = vld [vmem:[%s3925_s1 + $0x1f4] ss:$8 sps:$4 sm:$0xff]   ;;  %v2798_v40 = vld [vmem:[%s3925_s1 + $0x220] ss:$8 sps:$4 sm:$0xff]  }
  0x4c   :  { %2024 = vmatpush1.bf16.msra.mxu0 %v2705_v19  ;;  %1813 = vmatprep.subr.bf16.mxu1 %v2710_v20  ;;  %v2785_v19 = vld [vmem:[%s3925_s1 + $0x5f4] ss:$8 sps:$4 sm:$0xff]   ;;  %v2780_v20 = vld [vmem:[%s3925_s1 + $0x1f0] ss:$8 sps:$4 sm:$0xff]  }
  0x4d   :  { %2025 = vmatprep.subr.bf16.mxu0 %v2713_v21  ;;  %1839 = vmatprep.mubr.bf16.mxu1 %v2237_v48  ;;  %v2783_v21 = vld [vmem:[%s3925_s1 + $0x5f0] ss:$8 sps:$4 sm:$0xff]   ;;  %v2806_v48 = vld [vmem:[%s3925_s1 + $0x234] ss:$8 sps:$4 sm:$0xff]  }
  0x4e   :  { %2051 = vmatprep.mubr.bf16.mxu0 %v2245_v53  ;;  %v2807_v53 = vld [vmem:[%s3925_s1 + $0x630] ss:$8 sps:$4 sm:$0xff]  }
  0x4f   :  { %1814 = vmatpush1.bf16.msra.mxu1 %v2708_v22  ;;  %v2788_v22 = vld [vmem:[%s3925_s1 + $0x204] ss:$8 sps:$4 sm:$0xff]  }
  0x50   :  { %2026 = vmatpush1.bf16.msra.mxu0 %v2711_v23  ;;  %1815 = vmatprep.subr.bf16.mxu1 %v2716_v24  ;;  %v2791_v23 = vld [vmem:[%s3925_s1 + $0x604] ss:$8 sps:$4 sm:$0xff]   ;;  %v2786_v24 = vld [vmem:[%s3925_s1 + $0x200] ss:$8 sps:$4 sm:$0xff]  }
  0x51   :  { %2027 = vmatprep.subr.bf16.mxu0 %v2719_v25  ;;  %v2789_v25 = vld [vmem:[%s3925_s1 + $0x600] ss:$8 sps:$4 sm:$0xff]  }
  0x53   :  { %1816 = vmatpush1.bf16.msra.mxu1 %v2714_v26  ;;  %v31_v26 = vld [vmem:[%s3926_s0 + $0x88] sm:$0xff] }
  0x54   :  { %2028 = vmatpush1.bf16.msra.mxu0 %v2717_v27  ;;  %1817 = vmatprep.subr.bf16.mxu1 %v2722_v28  ;;  %v2236_v27 = vcombine.low %v3301_v44, %v3306_v45  ;;  %v2244_v28 = vcombine.low %v3319_v49, %v3324_v50  ;;  %v3490_v45 = vld [vmem:[%s3926_s0 + $0x50] sm:$0xff] }
  0x55   :  { %2029 = vmatprep.subr.bf16.mxu0 %v2725_v29  ;;  %v39_v29 = vld [vmem:[%s3926_s0 + $0xc8] sm:$0xff]  ;;  %v2809_v49 = vld [vmem:[%s3925_s1 + $0x634] ss:$8 sps:$4 sm:$0xff]  }
  0x57   :  { %1818 = vmatpush1.bf16.msra.mxu1 %v2720_v32  ;;  %v35_v32 = vld [vmem:[%s3926_s0 + $0xa8] sm:$0xff] }
  0x58   :  { %2030 = vmatpush1.bf16.msra.mxu0 %v2723_v34  ;;  %1819 = vmatprep.subr.bf16.mxu1 %v2728_v38  ;;  %v2253_v34 = vcombine.high %v31_v26, %v39_v29  ;;  %v2261_v35 = vcombine.high %v35_v32, %v43_v33  ;;  %v2800_v38 = vld [vmem:[%s3925_s1 + $0x224] ss:$8 sps:$4 sm:$0xff]   ;;  %v2260_v44 = vcombine.low %v35_v32, %v43_v33  ;;  %v2870_v32 = vld [vmem:[%s3925_s1 + $0x2e0] ss:$8 sps:$4 sm:$0xff]  }
  0x59   :  { %2031 = vmatprep.subr.bf16.mxu0 %v2731_v41  ;;  %v2801_v41 = vld [vmem:[%s3925_s1 + $0x620] ss:$8 sps:$4 sm:$0xff]  }
  0x5a   :  { %v2873_v33 = vld [vmem:[%s3925_s1 + $0x6e0] ss:$8 sps:$4 sm:$0xff]  }
  0x5b   :  { %1820 = vmatpush1.bf16.msra.mxu1 %v2726_v42  ;;  %v3485_v42 = vld [vmem:[%s3926_s0 + $0x10] sm:$0xff] }
  0x5c   :  { %2032 = vmatpush1.bf16.msra.mxu0 %v2729_v43  ;;  %1821 = vmatprep.subr.bf16.mxu1 %v2734_v46  ;;  %v2252_v43 = vcombine.low %v31_v26, %v39_v29  ;;  %v3495_v46 = vld [vmem:[%s3926_s0 + $0x30] sm:$0xff]  ;;  %v2239_v50 = vcombine.high %v3485_v42, %v3490_v45 }
  0x5d   :  { %2033 = vmatprep.subr.bf16.mxu0 %v2737_v47  ;;  %v3500_v47 = vld [vmem:[%s3926_s0 + $0x70] sm:$0xff] }
  0x5e   :  { %v2866_v26 = vld [vmem:[%s3925_s1 + $0x2d4] ss:$8 sps:$4 sm:$0xff]   ;;  %v2867_v29 = vld [vmem:[%s3925_s1 + $0x6d0] ss:$8 sps:$4 sm:$0xff]  }
  0x5f   :  { %1822 = vmatpush1.bf16.msra.mxu1 %v2732_v51  ;;  %v2247_v51 = vcombine.high %v3495_v46, %v3500_v47 }
  0x60   :  { %2034 = vmatpush1.bf16.msra.mxu0 %v2735_v52  ;;  %1823 = vmatprep.subr.bf16.mxu1 %v2740_v54  ;;  %v2804_v52 = vld [vmem:[%s3925_s1 + $0x230] ss:$8 sps:$4 sm:$0xff]   ;;  %v2812_v54 = vld [vmem:[%s3925_s1 + $0x244] ss:$8 sps:$4 sm:$0xff]  }
  0x61   :  { %2035 = vmatprep.subr.bf16.mxu0 %v2743_v55  ;;  %v2815_v55 = vld [vmem:[%s3925_s1 + $0x644] ss:$8 sps:$4 sm:$0xff]  }
  0x63   :  { %1824 = vmatpush1.bf16.msra.mxu1 %v2738_v56  ;;  %v2810_v56 = vld [vmem:[%s3925_s1 + $0x240] ss:$8 sps:$4 sm:$0xff]  }
  0x64   :  { %2036 = vmatpush1.bf16.msra.mxu0 %v2741_v57  ;;  %1825 = vmatprep.subr.bf16.mxu1 %v2746_v58  ;;  %v2813_v57 = vld [vmem:[%s3925_s1 + $0x640] ss:$8 sps:$4 sm:$0xff]   ;;  %v2818_v58 = vld [vmem:[%s3925_s1 + $0x254] ss:$8 sps:$4 sm:$0xff]  }
  0x65   :  { %2037 = vmatprep.subr.bf16.mxu0 %v2749_v59  ;;  %v2821_v59 = vld [vmem:[%s3925_s1 + $0x654] ss:$8 sps:$4 sm:$0xff]  }
  0x67   :  { %1826 = vmatpush1.bf16.msra.mxu1 %v2744_v60  ;;  %v2816_v60 = vld [vmem:[%s3925_s1 + $0x250] ss:$8 sps:$4 sm:$0xff]  }
  0x68   :  { %2038 = vmatpush1.bf16.msra.mxu0 %v2747_v61  ;;  %1827 = vmatprep.subr.bf16.mxu1 %v2752_v62  ;;  %v2819_v61 = vld [vmem:[%s3925_s1 + $0x650] ss:$8 sps:$4 sm:$0xff]   ;;  %v2824_v62 = vld [vmem:[%s3925_s1 + $0x264] ss:$8 sps:$4 sm:$0xff]  }
  0x69   :  { %2039 = vmatprep.subr.bf16.mxu0 %v2755_v63  ;;  %v2827_v63 = vld [vmem:[%s3925_s1 + $0x664] ss:$8 sps:$4 sm:$0xff]  }
  0x6b   :  { %1828 = vmatpush1.bf16.msra.mxu1 %v2750_v0  ;;  %v2822_v0 = vld [vmem:[%s3925_s1 + $0x260] ss:$8 sps:$4 sm:$0xff]  }
  0x6c   :  { %2040 = vmatpush1.bf16.msra.mxu0 %v2753_v1  ;;  %1829 = vmatprep.subr.bf16.mxu1 %v2758_v2  ;;  %v2825_v1 = vld [vmem:[%s3925_s1 + $0x660] ss:$8 sps:$4 sm:$0xff]   ;;  %v2830_v2 = vld [vmem:[%s3925_s1 + $0x274] ss:$8 sps:$4 sm:$0xff]  }
  0x6d   :  { %2041 = vmatprep.subr.bf16.mxu0 %v2761_v3  ;;  %v2833_v3 = vld [vmem:[%s3925_s1 + $0x674] ss:$8 sps:$4 sm:$0xff]  }
  0x6f   :  { %1830 = vmatpush1.bf16.msra.mxu1 %v2756_v4  ;;  %v2828_v4 = vld [vmem:[%s3925_s1 + $0x270] ss:$8 sps:$4 sm:$0xff]  }
  0x70   :  { %2042 = vmatpush1.bf16.msra.mxu0 %v2759_v5  ;;  %1831 = vmatprep.subr.bf16.mxu1 %v2764_v6  ;;  %v2831_v5 = vld [vmem:[%s3925_s1 + $0x670] ss:$8 sps:$4 sm:$0xff]   ;;  %v2836_v6 = vld [vmem:[%s3925_s1 + $0x284] ss:$8 sps:$4 sm:$0xff]  }
  0x71   :  { %2043 = vmatprep.subr.bf16.mxu0 %v2767_v7  ;;  %v2839_v7 = vld [vmem:[%s3925_s1 + $0x684] ss:$8 sps:$4 sm:$0xff]  }
  0x73   :  { %1832 = vmatpush1.bf16.msra.mxu1 %v2762_v8  ;;  %v2834_v8 = vld [vmem:[%s3925_s1 + $0x280] ss:$8 sps:$4 sm:$0xff]  }
  0x74   :  { %2044 = vmatpush1.bf16.msra.mxu0 %v2765_v9  ;;  %1833 = vmatprep.subr.bf16.mxu1 %v2770_v10  ;;  %v2837_v9 = vld [vmem:[%s3925_s1 + $0x680] ss:$8 sps:$4 sm:$0xff]   ;;  %v2842_v10 = vld [vmem:[%s3925_s1 + $0x294] ss:$8 sps:$4 sm:$0xff]  }
  0x75   :  { %2045 = vmatprep.subr.bf16.mxu0 %v2773_v11  ;;  %v2845_v11 = vld [vmem:[%s3925_s1 + $0x694] ss:$8 sps:$4 sm:$0xff]  }
  0x77   :  { %1834 = vmatpush1.bf16.msra.mxu1 %v2768_v12  ;;  %v2840_v12 = vld [vmem:[%s3925_s1 + $0x290] ss:$8 sps:$4 sm:$0xff]  }
  0x78   :  { %2046 = vmatpush1.bf16.msra.mxu0 %v2771_v13  ;;  %1835 = vmatprep.subr.bf16.mxu1 %v2776_v14  ;;  %v2843_v13 = vld [vmem:[%s3925_s1 + $0x690] ss:$8 sps:$4 sm:$0xff]   ;;  %v2848_v14 = vld [vmem:[%s3925_s1 + $0x2a4] ss:$8 sps:$4 sm:$0xff]  }
  0x79   :  { %2047 = vmatprep.subr.bf16.mxu0 %v2779_v15  ;;  %v2851_v15 = vld [vmem:[%s3925_s1 + $0x6a4] ss:$8 sps:$4 sm:$0xff]  }
  0x7b   :  { %1836 = vmatpush1.bf16.msra.mxu1 %v2774_v16  ;;  %v2846_v16 = vld [vmem:[%s3925_s1 + $0x2a0] ss:$8 sps:$4 sm:$0xff]  }
  0x7c   :  { %2048 = vmatpush1.bf16.msra.mxu0 %v2777_v17  ;;  %1837 = vmatprep.subr.bf16.mxu1 %v2782_v18  ;;  %v2849_v17 = vld [vmem:[%s3925_s1 + $0x6a0] ss:$8 sps:$4 sm:$0xff]   ;;  %v2854_v18 = vld [vmem:[%s3925_s1 + $0x2b4] ss:$8 sps:$4 sm:$0xff]  }
  0x7d   :  { %2049 = vmatprep.subr.bf16.mxu0 %v2785_v19  ;;  %v2857_v19 = vld [vmem:[%s3925_s1 + $0x6b4] ss:$8 sps:$4 sm:$0xff]  }
  0x7f   :  { %1838 = vmatpush1.bf16.msra.mxu1 %v2780_v20  ;;  %v2852_v20 = vld [vmem:[%s3925_s1 + $0x2b0] ss:$8 sps:$4 sm:$0xff]  }
  0x80   :  { %2050 = vmatpush1.bf16.msra.mxu0 %v2783_v21  ;;  %1860 = vmatprep.subr.bf16.mxu1 %v2788_v22  ;;  %v2855_v21 = vld [vmem:[%s3925_s1 + $0x6b0] ss:$8 sps:$4 sm:$0xff]   ;;  %v2860_v22 = vld [vmem:[%s3925_s1 + $0x2c4] ss:$8 sps:$4 sm:$0xff]  }
  0x81   :  { %2072 = vmatprep.subr.bf16.mxu0 %v2791_v23  ;;  %v2863_v23 = vld [vmem:[%s3925_s1 + $0x6c4] ss:$8 sps:$4 sm:$0xff]  }
  0x82   :  { %1840 = vmatmul.mubr.bf16.vlgmr.msra.gmra.mrb[0].mxu1 %v2236_v27  ;;  %v2869_v27 = vld [vmem:[%s3925_s1 + $0x6d4] ss:$8 sps:$4 sm:$0xff]  }
  0x83   :  { %2052 = vmatmul.mubr.bf16.vlgmr.msra.gmra.mrb[0].mxu0 %v2244_v28  ;;  %1861 = vmatpush1.bf16.msra.mxu1 %v2786_v24  ;;  %v2858_v24 = vld [vmem:[%s3925_s1 + $0x2c0] ss:$8 sps:$4 sm:$0xff]   ;;  %v2864_v28 = vld [vmem:[%s3925_s1 + $0x2d0] ss:$8 sps:$4 sm:$0xff]  }
  0x84   :  { %2073 = vmatpush1.bf16.msra.mxu0 %v2789_v25  ;;  %1862 = vmatprep.subr.bf16.mxu1 %v2794_v30  ;;  %v2861_v25 = vld [vmem:[%s3925_s1 + $0x6c0] ss:$8 sps:$4 sm:$0xff]   ;;  %v2872_v30 = vld [vmem:[%s3925_s1 + $0x2e4] ss:$8 sps:$4 sm:$0xff]  }
  0x85   :  { %2074 = vmatprep.subr.bf16.mxu0 %v2797_v31  ;;  %1849 = vmatprep.mubr.bf16.mxu1 %v2253_v34  ;;  %v2875_v31 = vld [vmem:[%s3925_s1 + $0x6e4] ss:$8 sps:$4 sm:$0xff]   ;;  %v2878_v34 = vld [vmem:[%s3925_s1 + $0x2f4] ss:$8 sps:$4 sm:$0xff]  }
  0x86   :  { %2061 = vmatprep.mubr.bf16.mxu0 %v2261_v35  ;;  %v2881_v35 = vld [vmem:[%s3925_s1 + $0x6f4] ss:$8 sps:$4 sm:$0xff]  }
  0x87   :  { %1863 = vmatpush1.bf16.msra.mxu1 %v2792_v36  ;;  %v2876_v36 = vld [vmem:[%s3925_s1 + $0x2f0] ss:$8 sps:$4 sm:$0xff]  }
  0x88   :  { %2075 = vmatpush1.bf16.msra.mxu0 %v2795_v37  ;;  %1864 = vmatprep.subr.bf16.mxu1 %v2800_v38  ;;  %v2879_v37 = vld [vmem:[%s3925_s1 + $0x6f0] ss:$8 sps:$4 sm:$0xff]   ;;  %v2884_v38 = vld [vmem:[%s3925_s1 + $0x304] ss:$8 sps:$4 sm:$0xff]  }
  0x89   :  { %2076 = vmatprep.subr.bf16.mxu0 %v2803_v39  ;;  %v2887_v39 = vld [vmem:[%s3925_s1 + $0x704] ss:$8 sps:$4 sm:$0xff]  }
  0x8a   :  { %1850 = vmatmul.mubr.bf16.gmra.mrb[4].mxu1 %v2252_v43  ;;  %v2246_v43 = vcombine.low %v3495_v46, %v3500_v47  ;;  %v2890_v46 = vld [vmem:[%s3925_s1 + $0x314] ss:$8 sps:$4 sm:$0xff]  }
  0x8b   :  { %2062 = vmatmul.mubr.bf16.gmra.mrb[4].mxu0 %v2260_v44  ;;  %1865 = vmatpush1.bf16.msra.mxu1 %v2798_v40  ;;  %v32_v40 = vld [vmem:[%s3926_s0 + $0x90] sm:$0xff] }
  0x8c   :  { %2077 = vmatpush1.bf16.msra.mxu0 %v2801_v41  ;;  %1866 = vmatprep.subr.bf16.mxu1 %v2806_v48  ;;  %v2238_v41 = vcombine.low %v3485_v42, %v3490_v45  ;;  %v40_v44 = vld [vmem:[%s3926_s0 + $0xd0] sm:$0xff]  ;;  %v2882_v42 = vld [vmem:[%s3925_s1 + $0x300] ss:$8 sps:$4 sm:$0xff]  }
  0x8d   :  { %2078 = vmatprep.subr.bf16.mxu0 %v2809_v49  ;;  %1892 = vmatprep.mubr.bf16.mxu1 %v2239_v50  ;;  %v36_v48 = vld [vmem:[%s3926_s0 + $0xb0] sm:$0xff]  ;;  %v2885_v45 = vld [vmem:[%s3925_s1 + $0x700] ss:$8 sps:$4 sm:$0xff]   ;;  %v2255_v50 = vcombine.high %v32_v40, %v40_v44 }
  0x8e   :  { %2104 = vmatprep.mubr.bf16.mxu0 %v2247_v51  ;;  %v44_v49 = vld [vmem:[%s3926_s0 + $0xf0] sm:$0xff] }
  0x8f   :  { %1867 = vmatpush1.bf16.msra.mxu1 %v2804_v52  ;;  %v2893_v47 = vld [vmem:[%s3925_s1 + $0x714] ss:$8 sps:$4 sm:$0xff]   ;;  %v2263_v51 = vcombine.high %v36_v48, %v44_v49  ;;  %v2888_v52 = vld [vmem:[%s3925_s1 + $0x310] ss:$8 sps:$4 sm:$0xff]  }
  0x90   :  { %2079 = vmatpush1.bf16.msra.mxu0 %v2807_v53  ;;  %1868 = vmatprep.subr.bf16.mxu1 %v2812_v54  ;;  %v2891_v53 = vld [vmem:[%s3925_s1 + $0x710] ss:$8 sps:$4 sm:$0xff]   ;;  %v2896_v54 = vld [vmem:[%s3925_s1 + $0x324] ss:$8 sps:$4 sm:$0xff]  }
  0x91   :  { %2080 = vmatprep.subr.bf16.mxu0 %v2815_v55  ;;  %v2899_v55 = vld [vmem:[%s3925_s1 + $0x724] ss:$8 sps:$4 sm:$0xff]  }
  0x93   :  { %1869 = vmatpush1.bf16.msra.mxu1 %v2810_v56  ;;  %v3711_v56 = vld [vmem:[%s3926_s0 + $0x18] sm:$0xff] }
  0x94   :  { %2081 = vmatpush1.bf16.msra.mxu0 %v2813_v57  ;;  %1870 = vmatprep.subr.bf16.mxu1 %v2818_v58  ;;  %v2254_v57 = vcombine.low %v32_v40, %v40_v44  ;;  %v2262_v58 = vcombine.low %v36_v48, %v44_v49  ;;  %v2954_v40 = vld [vmem:[%s3925_s1 + $0x3c0] ss:$8 sps:$4 sm:$0xff]   ;;  %v2965_v44 = vld [vmem:[%s3925_s1 + $0x7d4] ss:$8 sps:$4 sm:$0xff]   ;;  %v2960_v48 = vld [vmem:[%s3925_s1 + $0x3d0] ss:$8 sps:$4 sm:$0xff]  }
  0x95   :  { %2082 = vmatprep.subr.bf16.mxu0 %v2821_v59  ;;  %v3716_v59 = vld [vmem:[%s3926_s0 + $0x58] sm:$0xff] }
  0x96   :  { %v2963_v49 = vld [vmem:[%s3925_s1 + $0x7d0] ss:$8 sps:$4 sm:$0xff]  }
  0x97   :  { %1871 = vmatpush1.bf16.msra.mxu1 %v2816_v60  ;;  %v3721_v60 = vld [vmem:[%s3926_s0 + $0x38] sm:$0xff] }
  0x98   :  { %2083 = vmatpush1.bf16.msra.mxu0 %v2819_v61  ;;  %1872 = vmatprep.subr.bf16.mxu1 %v2824_v62  ;;  %v3726_v61 = vld [vmem:[%s3926_s0 + $0x78] sm:$0xff]  ;;  %v2894_v62 = vld [vmem:[%s3925_s1 + $0x320] ss:$8 sps:$4 sm:$0xff]  }
  0x99   :  { %2084 = vmatprep.subr.bf16.mxu0 %v2827_v63  ;;  %v2897_v63 = vld [vmem:[%s3925_s1 + $0x720] ss:$8 sps:$4 sm:$0xff]  }
  0x9b   :  { %1873 = vmatpush1.bf16.msra.mxu1 %v2822_v0  ;;  %v2902_v0 = vld [vmem:[%s3925_s1 + $0x334] ss:$8 sps:$4 sm:$0xff]  }
  0x9c   :  { %2085 = vmatpush1.bf16.msra.mxu0 %v2825_v1  ;;  %1874 = vmatprep.subr.bf16.mxu1 %v2830_v2  ;;  %v2905_v1 = vld [vmem:[%s3925_s1 + $0x734] ss:$8 sps:$4 sm:$0xff]   ;;  %v2241_v2 = vcombine.high %v3711_v56, %v3716_v59 }
  0x9d   :  { %2086 = vmatprep.subr.bf16.mxu0 %v2833_v3  ;;  %v2249_v3 = vcombine.high %v3721_v60, %v3726_v61 }
  0x9f   :  { %1875 = vmatpush1.bf16.msra.mxu1 %v2828_v4  ;;  %v2900_v4 = vld [vmem:[%s3925_s1 + $0x330] ss:$8 sps:$4 sm:$0xff]  }
  0xa0   :  { %2087 = vmatpush1.bf16.msra.mxu0 %v2831_v5  ;;  %1876 = vmatprep.subr.bf16.mxu1 %v2836_v6  ;;  %v2903_v5 = vld [vmem:[%s3925_s1 + $0x730] ss:$8 sps:$4 sm:$0xff]   ;;  %v2908_v6 = vld [vmem:[%s3925_s1 + $0x344] ss:$8 sps:$4 sm:$0xff]  }
  0xa1   :  { %2088 = vmatprep.subr.bf16.mxu0 %v2839_v7  ;;  %v2911_v7 = vld [vmem:[%s3925_s1 + $0x744] ss:$8 sps:$4 sm:$0xff]  }
  0xa3   :  { %1877 = vmatpush1.bf16.msra.mxu1 %v2834_v8  ;;  %v2906_v8 = vld [vmem:[%s3925_s1 + $0x340] ss:$8 sps:$4 sm:$0xff]  }
  0xa4   :  { %2089 = vmatpush1.bf16.msra.mxu0 %v2837_v9  ;;  %1878 = vmatprep.subr.bf16.mxu1 %v2842_v10  ;;  %v2909_v9 = vld [vmem:[%s3925_s1 + $0x740] ss:$8 sps:$4 sm:$0xff]   ;;  %v2914_v10 = vld [vmem:[%s3925_s1 + $0x354] ss:$8 sps:$4 sm:$0xff]  }
  0xa5   :  { %2090 = vmatprep.subr.bf16.mxu0 %v2845_v11  ;;  %v2917_v11 = vld [vmem:[%s3925_s1 + $0x754] ss:$8 sps:$4 sm:$0xff]  }
  0xa7   :  { %1879 = vmatpush1.bf16.msra.mxu1 %v2840_v12  ;;  %v2912_v12 = vld [vmem:[%s3925_s1 + $0x350] ss:$8 sps:$4 sm:$0xff]  }
  0xa8   :  { %2091 = vmatpush1.bf16.msra.mxu0 %v2843_v13  ;;  %1880 = vmatprep.subr.bf16.mxu1 %v2848_v14  ;;  %v2915_v13 = vld [vmem:[%s3925_s1 + $0x750] ss:$8 sps:$4 sm:$0xff]   ;;  %v2920_v14 = vld [vmem:[%s3925_s1 + $0x364] ss:$8 sps:$4 sm:$0xff]  }
  0xa9   :  { %2092 = vmatprep.subr.bf16.mxu0 %v2851_v15  ;;  %v2923_v15 = vld [vmem:[%s3925_s1 + $0x764] ss:$8 sps:$4 sm:$0xff]  }
  0xab   :  { %1881 = vmatpush1.bf16.msra.mxu1 %v2846_v16  ;;  %v2918_v16 = vld [vmem:[%s3925_s1 + $0x360] ss:$8 sps:$4 sm:$0xff]  }
  0xac   :  { %2093 = vmatpush1.bf16.msra.mxu0 %v2849_v17  ;;  %1882 = vmatprep.subr.bf16.mxu1 %v2854_v18  ;;  %v2921_v17 = vld [vmem:[%s3925_s1 + $0x760] ss:$8 sps:$4 sm:$0xff]   ;;  %v2926_v18 = vld [vmem:[%s3925_s1 + $0x374] ss:$8 sps:$4 sm:$0xff]  }
  0xad   :  { %2094 = vmatprep.subr.bf16.mxu0 %v2857_v19  ;;  %v2929_v19 = vld [vmem:[%s3925_s1 + $0x774] ss:$8 sps:$4 sm:$0xff]  }
  0xaf   :  { %1883 = vmatpush1.bf16.msra.mxu1 %v2852_v20  ;;  %v2924_v20 = vld [vmem:[%s3925_s1 + $0x370] ss:$8 sps:$4 sm:$0xff]  }
  0xb0   :  { %2095 = vmatpush1.bf16.msra.mxu0 %v2855_v21  ;;  %1884 = vmatprep.subr.bf16.mxu1 %v2860_v22  ;;  %v2927_v21 = vld [vmem:[%s3925_s1 + $0x770] ss:$8 sps:$4 sm:$0xff]   ;;  %v2932_v22 = vld [vmem:[%s3925_s1 + $0x384] ss:$8 sps:$4 sm:$0xff]  }
  0xb1   :  { %2096 = vmatprep.subr.bf16.mxu0 %v2863_v23  ;;  %v2935_v23 = vld [vmem:[%s3925_s1 + $0x784] ss:$8 sps:$4 sm:$0xff]  }
  0xb3   :  { %1885 = vmatpush1.bf16.msra.mxu1 %v2858_v24  ;;  %v2930_v24 = vld [vmem:[%s3925_s1 + $0x380] ss:$8 sps:$4 sm:$0xff]  }
  0xb4   :  { %2097 = vmatpush1.bf16.msra.mxu0 %v2861_v25  ;;  %1886 = vmatprep.subr.bf16.mxu1 %v2866_v26  ;;  %v2933_v25 = vld [vmem:[%s3925_s1 + $0x780] ss:$8 sps:$4 sm:$0xff]   ;;  %v2938_v26 = vld [vmem:[%s3925_s1 + $0x394] ss:$8 sps:$4 sm:$0xff]  }
  0xb5   :  { %2098 = vmatprep.subr.bf16.mxu0 %v2869_v27  ;;  %v2941_v27 = vld [vmem:[%s3925_s1 + $0x794] ss:$8 sps:$4 sm:$0xff]  }
  0xb7   :  { %1887 = vmatpush1.bf16.msra.mxu1 %v2864_v28  ;;  %v2936_v28 = vld [vmem:[%s3925_s1 + $0x390] ss:$8 sps:$4 sm:$0xff]  }
  0xb8   :  { %2099 = vmatpush1.bf16.msra.mxu0 %v2867_v29  ;;  %1888 = vmatprep.subr.bf16.mxu1 %v2872_v30  ;;  %v2939_v29 = vld [vmem:[%s3925_s1 + $0x790] ss:$8 sps:$4 sm:$0xff]   ;;  %v2944_v30 = vld [vmem:[%s3925_s1 + $0x3a4] ss:$8 sps:$4 sm:$0xff]  }
  0xb9   :  { %2100 = vmatprep.subr.bf16.mxu0 %v2875_v31  ;;  %v2947_v31 = vld [vmem:[%s3925_s1 + $0x7a4] ss:$8 sps:$4 sm:$0xff]  }
  0xbb   :  { %1889 = vmatpush1.bf16.msra.mxu1 %v2870_v32  ;;  %v2942_v32 = vld [vmem:[%s3925_s1 + $0x3a0] ss:$8 sps:$4 sm:$0xff]  }
  0xbc   :  { %2101 = vmatpush1.bf16.msra.mxu0 %v2873_v33  ;;  %1890 = vmatprep.subr.bf16.mxu1 %v2878_v34  ;;  %v2945_v33 = vld [vmem:[%s3925_s1 + $0x7a0] ss:$8 sps:$4 sm:$0xff]   ;;  %v2950_v34 = vld [vmem:[%s3925_s1 + $0x3b4] ss:$8 sps:$4 sm:$0xff]  }
  0xbd   :  { %2102 = vmatprep.subr.bf16.mxu0 %v2881_v35  ;;  %v2953_v35 = vld [vmem:[%s3925_s1 + $0x7b4] ss:$8 sps:$4 sm:$0xff]  }
  0xbf   :  { %1891 = vmatpush1.bf16.msra.mxu1 %v2876_v36  ;;  %v2948_v36 = vld [vmem:[%s3925_s1 + $0x3b0] ss:$8 sps:$4 sm:$0xff]  }
  0xc0   :  { %2103 = vmatpush1.bf16.msra.mxu0 %v2879_v37  ;;  %1913 = vmatprep.subr.bf16.mxu1 %v2884_v38  ;;  %v2951_v37 = vld [vmem:[%s3925_s1 + $0x7b0] ss:$8 sps:$4 sm:$0xff]   ;;  %v2956_v38 = vld [vmem:[%s3925_s1 + $0x3c4] ss:$8 sps:$4 sm:$0xff]  }
  0xc1   :  { %2125 = vmatprep.subr.bf16.mxu0 %v2887_v39  ;;  %v2959_v39 = vld [vmem:[%s3925_s1 + $0x7c4] ss:$8 sps:$4 sm:$0xff]  }
  0xc2   :  { %1893 = vmatmul.mubr.bf16.vlgmr.msra.gmra.mrb[0].mxu1 %v2238_v41  ;;  %v2957_v41 = vld [vmem:[%s3925_s1 + $0x7c0] ss:$8 sps:$4 sm:$0xff]  }
  0xc3   :  { %2105 = vmatmul.mubr.bf16.vlgmr.msra.gmra.mrb[0].mxu0 %v2246_v43  ;;  %1914 = vmatpush1.bf16.msra.mxu1 %v2882_v42  ;;  %v2962_v43 = vld [vmem:[%s3925_s1 + $0x3d4] ss:$8 sps:$4 sm:$0xff]   ;;  %v2968_v42 = vld [vmem:[%s3925_s1 + $0x3e4] ss:$8 sps:$4 sm:$0xff]  }
  0xc4   :  { %2126 = vmatpush1.bf16.msra.mxu0 %v2885_v45  ;;  %1915 = vmatprep.subr.bf16.mxu1 %v2890_v46  ;;  %v2971_v45 = vld [vmem:[%s3925_s1 + $0x7e4] ss:$8 sps:$4 sm:$0xff]   ;;  %v2966_v46 = vld [vmem:[%s3925_s1 + $0x3e0] ss:$8 sps:$4 sm:$0xff]  }
  0xc5   :  { %2127 = vmatprep.subr.bf16.mxu0 %v2893_v47  ;;  %1902 = vmatprep.mubr.bf16.mxu1 %v2255_v50  ;;  %v2969_v47 = vld [vmem:[%s3925_s1 + $0x7e0] ss:$8 sps:$4 sm:$0xff]   ;;  %v2974_v50 = vld [vmem:[%s3925_s1 + $0x3f4] ss:$8 sps:$4 sm:$0xff]  }
  0xc6   :  { %2114 = vmatprep.mubr.bf16.mxu0 %v2263_v51  ;;  %v2977_v51 = vld [vmem:[%s3925_s1 + $0x7f4] ss:$8 sps:$4 sm:$0xff]  }
  0xc7   :  { %1916 = vmatpush1.bf16.msra.mxu1 %v2888_v52  ;;  %v2972_v52 = vld [vmem:[%s3925_s1 + $0x3f0] ss:$8 sps:$4 sm:$0xff]  }
  0xc8   :  { %2128 = vmatpush1.bf16.msra.mxu0 %v2891_v53  ;;  %1917 = vmatprep.subr.bf16.mxu1 %v2896_v54  ;;  %v2975_v53 = vld [vmem:[%s3925_s1 + $0x7f0] ss:$8 sps:$4 sm:$0xff]  }
  0xc9   :  { %2129 = vmatprep.subr.bf16.mxu0 %v2899_v55  ;;  %v33_v54 = vld [vmem:[%s3926_s0 + $0x98] sm:$0xff] }
  0xca   :  { %1903 = vmatmul.mubr.bf16.gmra.mrb[4].mxu1 %v2254_v57  ;;  %v41_v55 = vld [vmem:[%s3926_s0 + $0xd8] sm:$0xff] }
  0xcb   :  { %2115 = vmatmul.mubr.bf16.gmra.mrb[4].mxu0 %v2262_v58  ;;  %1918 = vmatpush1.bf16.msra.mxu1 %v2894_v62  ;;  %v37_v57 = vld [vmem:[%s3926_s0 + $0xb8] sm:$0xff]  ;;  %v2240_v62 = vcombine.low %v3711_v56, %v3716_v59  ;;  %v302_v56 = vld [vmem:[%s3927_s2] sm:$0x3] }
  0xcc   :  { %2130 = vmatpush1.bf16.msra.mxu0 %v2897_v63  ;;  %1919 = vmatprep.subr.bf16.mxu1 %v2902_v0  ;;  %v45_v58 = vld [vmem:[%s3926_s0 + $0xf8] sm:$0xff]  ;;  %v2248_v63 = vcombine.low %v3721_v60, %v3726_v61  ;;  %v2257_v0 = vcombine.high %v33_v54, %v41_v55 }
  0xcd   :  { %2131 = vmatprep.subr.bf16.mxu0 %v2905_v1  ;;  %1945 = vmatprep.mubr.bf16.mxu1 %v2241_v2  ;;  %v2265_v1 = vcombine.high %v37_v57, %v45_v58  ;;  %v2256_v2 = vcombine.low %v33_v54, %v41_v55 }
  0xce   :  { %2157 = vmatprep.mubr.bf16.mxu0 %v2249_v3  ;;  %v2264_v3 = vcombine.low %v37_v57, %v45_v58 }
  0xcf   :  { %1920 = vmatpush1.bf16.msra.mxu1 %v2900_v4  ;;  %v304_v4 = vlaneseq }
  0xd0   :  { %2132 = vmatpush1.bf16.msra.mxu0 %v2903_v5  ;;  %1921 = vmatprep.subr.bf16.mxu1 %v2908_v6 }
  0xd1   :  { %2133 = vmatprep.subr.bf16.mxu0 %v2911_v7  ;;  %v305_v5 = vshrl.u32 %v304_v4, 7 }
  0xd3   :  { %1922 = vmatpush1.bf16.msra.mxu1 %v2906_v8  ;;  %v306_v6 = vsub.s32 0, %v305_v5  ;;  %v310_v59 = vsub.s32 1, %v305_v5 }
  0xd4   :  { %2134 = vmatpush1.bf16.msra.mxu0 %v2909_v9  ;;  %1923 = vmatprep.subr.bf16.mxu1 %v2914_v10 }
  0xd5   :  { %2135 = vmatprep.subr.bf16.mxu0 %v2917_v11  ;;  %v307_v60 = vrot.slane %v302_v56, %v306_v6  ;;  %v311_v61 = vrot.slane %v302_v56, %v310_v59 }
  0xd7   :  { %1924 = vmatpush1.bf16.msra.mxu1 %v2912_v12 }
  0xd8   :  { %2136 = vmatpush1.bf16.msra.mxu0 %v2915_v13  ;;  %1925 = vmatprep.subr.bf16.mxu1 %v2920_v14 }
  0xd9   :  { %2137 = vmatprep.subr.bf16.mxu0 %v2923_v15 }
  0xdb   :  { %1926 = vmatpush1.bf16.msra.mxu1 %v2918_v16 }
  0xdc   :  { %2138 = vmatpush1.bf16.msra.mxu0 %v2921_v17  ;;  %1927 = vmatprep.subr.bf16.mxu1 %v2926_v18 }
  0xdd   :  { %2139 = vmatprep.subr.bf16.mxu0 %v2929_v19 }
  0xdf   :  { %1928 = vmatpush1.bf16.msra.mxu1 %v2924_v20 }
  0xe0   :  { %2140 = vmatpush1.bf16.msra.mxu0 %v2927_v21  ;;  %1929 = vmatprep.subr.bf16.mxu1 %v2932_v22 }
  0xe1   :  { %2141 = vmatprep.subr.bf16.mxu0 %v2935_v23 }
  0xe3   :  { %1930 = vmatpush1.bf16.msra.mxu1 %v2930_v24 }
  0xe4   :  { %2142 = vmatpush1.bf16.msra.mxu0 %v2933_v25  ;;  %1931 = vmatprep.subr.bf16.mxu1 %v2938_v26 }
  0xe5   :  { %2143 = vmatprep.subr.bf16.mxu0 %v2941_v27 }
  0xe7   :  { %1932 = vmatpush1.bf16.msra.mxu1 %v2936_v28 }
  0xe8   :  { %2144 = vmatpush1.bf16.msra.mxu0 %v2939_v29  ;;  %1933 = vmatprep.subr.bf16.mxu1 %v2944_v30 }
  0xe9   :  { %2145 = vmatprep.subr.bf16.mxu0 %v2947_v31 }
  0xeb   :  { %1934 = vmatpush1.bf16.msra.mxu1 %v2942_v32 }
  0xec   :  { %2146 = vmatpush1.bf16.msra.mxu0 %v2945_v33  ;;  %1935 = vmatprep.subr.bf16.mxu1 %v2950_v34 }
  0xed   :  { %2147 = vmatprep.subr.bf16.mxu0 %v2953_v35 }
  0xef   :  { %1936 = vmatpush1.bf16.msra.mxu1 %v2948_v36 }
  0xf0   :  { %2148 = vmatpush1.bf16.msra.mxu0 %v2951_v37  ;;  %1937 = vmatprep.subr.bf16.mxu1 %v2956_v38 }
  0xf1   :  { %2149 = vmatprep.subr.bf16.mxu0 %v2959_v39 }
  0xf3   :  { %1938 = vmatpush1.bf16.msra.mxu1 %v2954_v40 }
  0xf4   :  { %2150 = vmatpush1.bf16.msra.mxu0 %v2957_v41  ;;  %1939 = vmatprep.subr.bf16.mxu1 %v2962_v43 }
  0xf5   :  { %2151 = vmatprep.subr.bf16.mxu0 %v2965_v44 }
  0xf7   :  { %1940 = vmatpush1.bf16.msra.mxu1 %v2960_v48 }
  0xf8   :  { %2152 = vmatpush1.bf16.msra.mxu0 %v2963_v49  ;;  %1941 = vmatprep.subr.bf16.mxu1 %v2968_v42 }
  0xf9   :  { %2153 = vmatprep.subr.bf16.mxu0 %v2971_v45 }
  0xfb   :  { %1942 = vmatpush1.bf16.msra.mxu1 %v2966_v46 }
  0xfc   :  { %2154 = vmatpush1.bf16.msra.mxu0 %v2969_v47  ;;  %1943 = vmatprep.subr.bf16.mxu1 %v2974_v50 }
  0xfd   :  { %2155 = vmatprep.subr.bf16.mxu0 %v2977_v51 }
  0xff   :  { %1944 = vmatpush1.bf16.msra.mxu1 %v2972_v52 }
 0x100   :  { %2156 = vmatpush1.bf16.msra.mxu0 %v2975_v53 }
 0x102   :  { %1946 = vmatmul.mubr.bf16.vlgmr.msra.gmra.mrb[0].mxu1 %v2240_v62 }
 0x103   :  { %2158 = vmatmul.mubr.bf16.vlgmr.msra.gmra.mrb[0].mxu0 %v2248_v63  ;;  %1955 = vmatprep.mubr.bf16.mxu1 %v2257_v0 }
 0x104   :  { %2167 = vmatprep.mubr.bf16.mxu0 %v2265_v1 }
 0x10a   :  { %1956 = vmatmul.mubr.bf16.gmra.mrb[4].mxu1 %v2256_v2 }
 0x10b   :  { %2168 = vmatmul.mubr.bf16.gmra.mrb[4].mxu0 %v2264_v3 }
 0x1d5   :  { %v1947_v7 = vpop.f32.mrb[0].mxu1 }
 0x1d6   :  { %v2159_v8 = vpop.f32.mrb[0].mxu0  ;;  %v2530_v9 = vadd.f32 %v1947_v7, %v307_v60  ;;  %v1949_v10 = vpop.f32.mrb[1].mxu1 }
 0x1d7   :  { %v2161_v11 = vpop.f32.mrb[1].mxu0  ;;  %v2532_v12 = vadd.f32 %v1949_v10, %v311_v61  ;;  %v1951_v13 = vpop.f32.mrb[2].mxu1 }
 0x1d8   :  { %v2163_v14 = vpop.f32.mrb[2].mxu0  ;;  %v2531_v15 = vadd.f32 %v2530_v9, %v2159_v8  ;;  %v2534_v16 = vadd.f32 %v1951_v13, %v307_v60  ;;  %v1953_v17 = vpop.f32.mrb[3].mxu1 }
 0x1d9   :  { %v2165_v18 = vpop.f32.mrb[3].mxu0  ;;  %v2533_v19 = vadd.f32 %v2532_v12, %v2161_v11  ;;  %v2536_v20 = vadd.f32 %v1953_v17, %v311_v61 }
 0x1da   :  { %vm2178_vm0 = vcmp.ge.f32.partialorder %v2531_v15, 0.0  ;;  %v2186_v21 = vmul.f32 0.2, %v2531_v15  ;;  %v2535_v22 = vadd.f32 %v2534_v16, %v2163_v14 }
 0x1db   :  { %vm2179_vm1 = vcmp.ge.f32.partialorder %v2533_v19, 0.0  ;;  %v2187_v23 = vmul.f32 0.2, %v2533_v19  ;;  %v2537_v24 = vadd.f32 %v2536_v20, %v2165_v18 }
 0x1dc   :  { %v2194_v25 = vsel %vm2178_vm0, %v2531_v15, %v2186_v21  ;;  %vm2180_vm2 = vcmp.ge.f32.partialorder %v2535_v22, 0.0  ;;  %v2188_v26 = vmul.f32 0.2, %v2535_v22 }
 0x1dd   :  { %v2195_v27 = vsel %vm2179_vm1, %v2533_v19, %v2187_v23  ;;  %vm2181_vm3 = vcmp.ge.f32.partialorder %v2537_v24, 0.0  ;;  %v2189_v28 = vmul.f32 0.2, %v2537_v24  ;;  %v1957_v29 = vpop.f32.mrb[4].mxu1 }
 0x1de   :  { %v2169_v30 = vpop.f32.mrb[4].mxu0  ;;  %v2526_v31 = vpack.c.bf16 %v2195_v27, %v2194_v25  ;;  %v2196_v32 = vsel %vm2180_vm2, %v2535_v22, %v2188_v26  ;;  %v2538_v33 = vadd.f32 %v1957_v29, %v307_v60  ;;  %v1959_v34 = vpop.f32.mrb[5].mxu1 }
 0x1df   :  { %v2171_v35 = vpop.f32.mrb[5].mxu0  ;;  %v2197_v36 = vsel %vm2181_vm3, %v2537_v24, %v2189_v28  ;;  %v2540_v37 = vadd.f32 %v1959_v34, %v311_v61  ;;  %v1961_v38 = vpop.f32.mrb[6].mxu1 }
 0x1e0   :  { %v2173_v39 = vpop.f32.mrb[6].mxu0  ;;  %2226 = vst [vmem:[%s3928_s3] sm:$0xff] %v2526_v31  ;;  %v2527_v40 = vpack.c.bf16 %v2197_v36, %v2196_v32  ;;  %v2539_v41 = vadd.f32 %v2538_v33, %v2169_v30  ;;  %v2542_v43 = vadd.f32 %v1961_v38, %v307_v60  ;;  %v1963_v44 = vpop.f32.mrb[7].mxu1 }
 0x1e1   :  { %v2175_v48 = vpop.f32.mrb[7].mxu0  ;;  %v2541_v49 = vadd.f32 %v2540_v37, %v2171_v35  ;;  %v2544_v42 = vadd.f32 %v1963_v44, %v311_v61 }
 0x1e2   :  { %2227 = vst [vmem:[%s3928_s3 + $0x8] sm:$0xff] %v2527_v40  ;;  %vm2182_vm4 = vcmp.ge.f32.partialorder %v2539_v41, 0.0  ;;  %v2190_v45 = vmul.f32 0.2, %v2539_v41  ;;  %v2543_v46 = vadd.f32 %v2542_v43, %v2173_v39 }
 0x1e3   :  { %vm2183_vm5 = vcmp.ge.f32.partialorder %v2541_v49, 0.0  ;;  %v2191_v47 = vmul.f32 0.2, %v2541_v49  ;;  %v2545_v50 = vadd.f32 %v2544_v42, %v2175_v48 }
 0x1e4   :  { %v2198_v51 = vsel %vm2182_vm4, %v2539_v41, %v2190_v45  ;;  %vm2184_vm6 = vcmp.ge.f32.partialorder %v2543_v46, 0.0  ;;  %v2192_v52 = vmul.f32 0.2, %v2543_v46 }
 0x1e5   :  { %v2199_v53 = vsel %vm2183_vm5, %v2541_v49, %v2191_v47  ;;  %vm2185_vm7 = vcmp.ge.f32.partialorder %v2545_v50, 0.0  ;;  %v2193_v54 = vmul.f32 0.2, %v2545_v50 }
 0x1e6   :  { %v2528_v55 = vpack.c.bf16 %v2199_v53, %v2198_v51  ;;  %v2200_v57 = vsel %vm2184_vm6, %v2543_v46, %v2192_v52 }
 0x1e7   :  { %v2201_v58 = vsel %vm2185_vm7, %v2545_v50, %v2193_v54 }
 0x1e8   :  { %2228 = vst [vmem:[%s3928_s3 + $0x10] sm:$0xff] %v2528_v55  ;;  %v2529_v62 = vpack.c.bf16 %v2201_v58, %v2200_v57 }
 0x1ea   :  { %2229 = vst [vmem:[%s3928_s3 + $0x18] sm:$0xff] %v2529_v62 }

// kernel: multiclass_discriminator_forward.9
= control target key start
LH: loop header
LB: loop body
LE: loop exit
PB: predicated region body
PF: predicated region fallthrough
CT: control target
= control target key end

     0   :  { %s4724_s1 = inlined_call_operand.vmem [shape: bf16[4096,128], index: 1, kind: input, shape index: {}]   ;;  %s4725_s0 = inlined_call_operand.vmem [shape: bf16[16,4096], index: 0, kind: input, shape index: {}]   ;;  %s4726_s2 = inlined_call_operand.vmem [shape: f32[1,128], index: 2, kind: input, shape index: {}]   ;;  %s4727_s3 = inlined_call_operand.vmem [shape: f32[16,128], index: 3, kind: output, shape index: {}]  }
   0x1   :  { %v3571_v0 = vld [vmem:[%s4724_s1 + $0x40] sm:$0xff]   ;;  %v3575_v4 = vld [vmem:[%s4724_s1 + $0x48] sm:$0xff]   ;;  %v3579_v8 = vld [vmem:[%s4724_s1 + $0x50] sm:$0xff]  }
   0x2   :  { %v3572_v1 = vld [vmem:[%s4724_s1 + $0xc0] sm:$0xff]   ;;  %3219 = vmatprep.subr.bf16.mxu0 %v3571_v0  ;;  %v3576_v5 = vld [vmem:[%s4724_s1 + $0xc8] sm:$0xff]   ;;  %v3580_v9 = vld [vmem:[%s4724_s1 + $0xd0] sm:$0xff]  }
   0x3   :  { %v3573_v2 = vld [vmem:[%s4724_s1] sm:$0xff]   ;;  %3241 = vmatprep.subr.bf16.mxu1 %v3572_v1  ;;  %v3577_v6 = vld [vmem:[%s4724_s1 + $0x8] sm:$0xff]   ;;  %v3581_v10 = vld [vmem:[%s4724_s1 + $0x10] sm:$0xff]  }
   0x4   :  { %v3574_v3 = vld [vmem:[%s4724_s1 + $0x80] sm:$0xff]   ;;  %3220 = vmatpush3.bf16.msra.mxu0 %v3573_v2  ;;  %v3578_v7 = vld [vmem:[%s4724_s1 + $0x88] sm:$0xff]   ;;  %v3582_v11 = vld [vmem:[%s4724_s1 + $0x90] sm:$0xff]  }
   0x5   :  { %3242 = vmatpush3.bf16.msra.mxu1 %v3574_v3  ;;  %3221 = vmatprep.subr.bf16.mxu0 %v3575_v4  ;;  %v3583_v12 = vld [vmem:[%s4724_s1 + $0x58] sm:$0xff]   ;;  %v3587_v16 = vld [vmem:[%s4724_s1 + $0x60] sm:$0xff]   ;;  %v3591_v20 = vld [vmem:[%s4724_s1 + $0x68] sm:$0xff]  }
   0x6   :  { %3243 = vmatprep.subr.bf16.mxu1 %v3576_v5  ;;  %v3584_v13 = vld [vmem:[%s4724_s1 + $0xd8] sm:$0xff]   ;;  %v3588_v17 = vld [vmem:[%s4724_s1 + $0xe0] sm:$0xff]   ;;  %v3592_v21 = vld [vmem:[%s4724_s1 + $0xe8] sm:$0xff]  }
   0x7   :  { %v3585_v14 = vld [vmem:[%s4724_s1 + $0x18] sm:$0xff]   ;;  %v3589_v18 = vld [vmem:[%s4724_s1 + $0x20] sm:$0xff]   ;;  %v3593_v22 = vld [vmem:[%s4724_s1 + $0x28] sm:$0xff]  }
   0x8   :  { %3222 = vmatpush3.bf16.msra.mxu0 %v3577_v6  ;;  %v3586_v15 = vld [vmem:[%s4724_s1 + $0x98] sm:$0xff]   ;;  %v3590_v19 = vld [vmem:[%s4724_s1 + $0xa0] sm:$0xff]   ;;  %v3594_v23 = vld [vmem:[%s4724_s1 + $0xa8] sm:$0xff]  }
   0x9   :  { %3244 = vmatpush3.bf16.msra.mxu1 %v3578_v7  ;;  %3223 = vmatprep.subr.bf16.mxu0 %v3579_v8  ;;  %v3595_v24 = vld [vmem:[%s4724_s1 + $0x70] sm:$0xff]   ;;  %v3599_v28 = vld [vmem:[%s4724_s1 + $0x78] sm:$0xff]   ;;  %v15_v32 = vld [vmem:[%s4725_s0] sm:$0xff] }
   0xa   :  { %3245 = vmatprep.subr.bf16.mxu1 %v3580_v9  ;;  %v3596_v25 = vld [vmem:[%s4724_s1 + $0xf0] sm:$0xff]   ;;  %v3600_v29 = vld [vmem:[%s4724_s1 + $0xf8] sm:$0xff]   ;;  %v31_v33 = vld [vmem:[%s4725_s0 + $0x80] sm:$0xff] }
   0xb   :  { %v3597_v26 = vld [vmem:[%s4724_s1 + $0x30] sm:$0xff]   ;;  %v3601_v30 = vld [vmem:[%s4724_s1 + $0x38] sm:$0xff]   ;;  %v16_v34 = vld [vmem:[%s4725_s0 + $0x8] sm:$0xff]  ;;  %v2931_v35 = vcombine.low %v15_v32, %v31_v33  ;;  %v2932_v36 = vcombine.high %v15_v32, %v31_v33 }
   0xc   :  { %3224 = vmatpush3.bf16.msra.mxu0 %v3581_v10  ;;  %v3598_v27 = vld [vmem:[%s4724_s1 + $0xb0] sm:$0xff]   ;;  %v3602_v31 = vld [vmem:[%s4724_s1 + $0xb8] sm:$0xff]   ;;  %v32_v37 = vld [vmem:[%s4725_s0 + $0x88] sm:$0xff] }
   0xd   :  { %3246 = vmatpush3.bf16.msra.mxu1 %v3582_v11  ;;  %3225 = vmatprep.subr.bf16.mxu0 %v3583_v12  ;;  %v2933_v38 = vcombine.low %v16_v34, %v32_v37  ;;  %v2934_v39 = vcombine.high %v16_v34, %v32_v37  ;;  %v3603_v40 = vld [vmem:[%s4724_s1 + $0x140] sm:$0xff]   ;;  %v3607_v44 = vld [vmem:[%s4724_s1 + $0x148] sm:$0xff]   ;;  %v3611_v48 = vld [vmem:[%s4724_s1 + $0x150] sm:$0xff]  }
   0xe   :  { %3247 = vmatprep.subr.bf16.mxu1 %v3584_v13  ;;  %2294 = vmatprep.mubr.bf16.mxu0 %v2932_v36  ;;  %v3604_v41 = vld [vmem:[%s4724_s1 + $0x1c0] sm:$0xff]   ;;  %v3608_v45 = vld [vmem:[%s4724_s1 + $0x1c8] sm:$0xff]   ;;  %v3612_v49 = vld [vmem:[%s4724_s1 + $0x1d0] sm:$0xff]  }
   0xf   :  { %2335 = vmatprep.mubr.bf16.mxu1 %v2934_v39  ;;  %v3605_v42 = vld [vmem:[%s4724_s1 + $0x100] sm:$0xff]   ;;  %v3609_v46 = vld [vmem:[%s4724_s1 + $0x108] sm:$0xff]   ;;  %v3613_v50 = vld [vmem:[%s4724_s1 + $0x110] sm:$0xff]  }
  0x10   :  { %3226 = vmatpush3.bf16.msra.mxu0 %v3585_v14  ;;  %v3606_v43 = vld [vmem:[%s4724_s1 + $0x180] sm:$0xff]   ;;  %v3610_v47 = vld [vmem:[%s4724_s1 + $0x188] sm:$0xff]   ;;  %v3614_v51 = vld [vmem:[%s4724_s1 + $0x190] sm:$0xff]  }
  0x11   :  { %3248 = vmatpush3.bf16.msra.mxu1 %v3586_v15  ;;  %3227 = vmatprep.subr.bf16.mxu0 %v3587_v16  ;;  %v3615_v52 = vld [vmem:[%s4724_s1 + $0x158] sm:$0xff]   ;;  %v3619_v56 = vld [vmem:[%s4724_s1 + $0x160] sm:$0xff]   ;;  %v3623_v60 = vld [vmem:[%s4724_s1 + $0x168] sm:$0xff]  }
  0x12   :  { %3249 = vmatprep.subr.bf16.mxu1 %v3588_v17  ;;  %v3616_v53 = vld [vmem:[%s4724_s1 + $0x1d8] sm:$0xff]   ;;  %v3620_v57 = vld [vmem:[%s4724_s1 + $0x1e0] sm:$0xff]   ;;  %v3624_v61 = vld [vmem:[%s4724_s1 + $0x1e8] sm:$0xff]  }
  0x13   :  { %v3617_v54 = vld [vmem:[%s4724_s1 + $0x118] sm:$0xff]   ;;  %v3621_v58 = vld [vmem:[%s4724_s1 + $0x120] sm:$0xff]   ;;  %v3625_v62 = vld [vmem:[%s4724_s1 + $0x128] sm:$0xff]  }
  0x14   :  { %3228 = vmatpush3.bf16.msra.mxu0 %v3589_v18  ;;  %v3618_v55 = vld [vmem:[%s4724_s1 + $0x198] sm:$0xff]   ;;  %v3622_v59 = vld [vmem:[%s4724_s1 + $0x1a0] sm:$0xff]   ;;  %v3626_v63 = vld [vmem:[%s4724_s1 + $0x1a8] sm:$0xff]  }
  0x15   :  { %3250 = vmatpush3.bf16.msra.mxu1 %v3590_v19  ;;  %3229 = vmatprep.subr.bf16.mxu0 %v3591_v20  ;;  %v3627_v0 = vld [vmem:[%s4724_s1 + $0x170] sm:$0xff]   ;;  %v3631_v4 = vld [vmem:[%s4724_s1 + $0x178] sm:$0xff]   ;;  %v3635_v16 = vld [vmem:[%s4724_s1 + $0x240] sm:$0xff]  }
  0x16   :  { %3251 = vmatprep.subr.bf16.mxu1 %v3592_v21  ;;  %v3628_v1 = vld [vmem:[%s4724_s1 + $0x1f0] sm:$0xff]   ;;  %v3632_v5 = vld [vmem:[%s4724_s1 + $0x1f8] sm:$0xff]   ;;  %v3636_v17 = vld [vmem:[%s4724_s1 + $0x2c0] sm:$0xff]  }
  0x17   :  { %v3629_v2 = vld [vmem:[%s4724_s1 + $0x130] sm:$0xff]   ;;  %v3633_v6 = vld [vmem:[%s4724_s1 + $0x138] sm:$0xff]   ;;  %v3637_v18 = vld [vmem:[%s4724_s1 + $0x200] sm:$0xff]  }
  0x18   :  { %3230 = vmatpush3.bf16.msra.mxu0 %v3593_v22  ;;  %v3630_v3 = vld [vmem:[%s4724_s1 + $0x1b0] sm:$0xff]   ;;  %v3634_v7 = vld [vmem:[%s4724_s1 + $0x1b8] sm:$0xff]   ;;  %v3638_v19 = vld [vmem:[%s4724_s1 + $0x280] sm:$0xff]  }
  0x19   :  { %3252 = vmatpush3.bf16.msra.mxu1 %v3594_v23  ;;  %3231 = vmatprep.subr.bf16.mxu0 %v3595_v24  ;;  %v17_v8 = vld [vmem:[%s4725_s0 + $0x10] sm:$0xff]  ;;  %v18_v12 = vld [vmem:[%s4725_s0 + $0x18] sm:$0xff]  ;;  %v3639_v20 = vld [vmem:[%s4724_s1 + $0x248] sm:$0xff]  }
  0x1a   :  { %3253 = vmatprep.subr.bf16.mxu1 %v3596_v25  ;;  %v33_v9 = vld [vmem:[%s4725_s0 + $0x90] sm:$0xff]  ;;  %v34_v13 = vld [vmem:[%s4725_s0 + $0x98] sm:$0xff]  ;;  %v3640_v21 = vld [vmem:[%s4724_s1 + $0x2c8] sm:$0xff]  }
  0x1b   :  { %v2935_v10 = vcombine.low %v17_v8, %v33_v9  ;;  %v2936_v11 = vcombine.high %v17_v8, %v33_v9  ;;  %v2937_v14 = vcombine.low %v18_v12, %v34_v13  ;;  %v2938_v15 = vcombine.high %v18_v12, %v34_v13  ;;  %v3641_v22 = vld [vmem:[%s4724_s1 + $0x208] sm:$0xff]   ;;  %v3643_v24 = vld [vmem:[%s4724_s1 + $0x250] sm:$0xff]   ;;  %v3651_v32 = vld [vmem:[%s4724_s1 + $0x260] sm:$0xff]  }
  0x1c   :  { %3232 = vmatpush3.bf16.msra.mxu0 %v3597_v26  ;;  %v3642_v23 = vld [vmem:[%s4724_s1 + $0x288] sm:$0xff]   ;;  %v3644_v25 = vld [vmem:[%s4724_s1 + $0x2d0] sm:$0xff]   ;;  %v3652_v33 = vld [vmem:[%s4724_s1 + $0x2e0] sm:$0xff]  }
  0x1d   :  { %3254 = vmatpush3.bf16.msra.mxu1 %v3598_v27  ;;  %3233 = vmatprep.subr.bf16.mxu0 %v3599_v28  ;;  %v3645_v26 = vld [vmem:[%s4724_s1 + $0x210] sm:$0xff]   ;;  %v3647_v28 = vld [vmem:[%s4724_s1 + $0x258] sm:$0xff]   ;;  %v3653_v34 = vld [vmem:[%s4724_s1 + $0x220] sm:$0xff]  }
  0x1e   :  { %3255 = vmatprep.subr.bf16.mxu1 %v3600_v29  ;;  %v3646_v27 = vld [vmem:[%s4724_s1 + $0x290] sm:$0xff]   ;;  %v3648_v29 = vld [vmem:[%s4724_s1 + $0x2d8] sm:$0xff]   ;;  %v3655_v36 = vld [vmem:[%s4724_s1 + $0x268] sm:$0xff]  }
  0x1f   :  { %v3656_v37 = vld [vmem:[%s4724_s1 + $0x2e8] sm:$0xff]   ;;  %v3683_v8 = vld [vmem:[%s4724_s1 + $0x360] sm:$0xff]  }
  0x20   :  { %3234 = vmatpush3.bf16.msra.mxu0 %v3601_v30  ;;  %v3649_v30 = vld [vmem:[%s4724_s1 + $0x218] sm:$0xff]   ;;  %v3658_v39 = vld [vmem:[%s4724_s1 + $0x2a8] sm:$0xff]   ;;  %v3684_v9 = vld [vmem:[%s4724_s1 + $0x3e0] sm:$0xff]  }
  0x21   :  { %3256 = vmatpush3.bf16.msra.mxu1 %v3602_v31  ;;  %3263 = vmatprep.subr.bf16.mxu0 %v3603_v40  ;;  %v3650_v31 = vld [vmem:[%s4724_s1 + $0x298] sm:$0xff]   ;;  %v3659_v40 = vld [vmem:[%s4724_s1 + $0x270] sm:$0xff]   ;;  %v3687_v12 = vld [vmem:[%s4724_s1 + $0x368] sm:$0xff]  }
  0x22   :  { %3285 = vmatprep.subr.bf16.mxu1 %v3604_v41  ;;  %v3660_v41 = vld [vmem:[%s4724_s1 + $0x2f0] sm:$0xff]   ;;  %v3688_v13 = vld [vmem:[%s4724_s1 + $0x3e8] sm:$0xff]  }
  0x23   :  { %2295 = vmatmul.mubr.bf16.vlgmr.msra.gmra.mrb[0].mxu0 %v2931_v35  ;;  %v3654_v35 = vld [vmem:[%s4724_s1 + $0x2a0] sm:$0xff]  }
  0x24   :  { %2336 = vmatmul.mubr.bf16.vlgmr.msra.gmra.mrb[0].mxu1 %v2933_v38  ;;  %3264 = vmatpush3.bf16.msra.mxu0 %v3605_v42  ;;  %v3657_v38 = vld [vmem:[%s4724_s1 + $0x228] sm:$0xff]   ;;  %v3661_v42 = vld [vmem:[%s4724_s1 + $0x230] sm:$0xff]  }
  0x25   :  { %3286 = vmatpush3.bf16.msra.mxu1 %v3606_v43  ;;  %3265 = vmatprep.subr.bf16.mxu0 %v3607_v44  ;;  %v3662_v43 = vld [vmem:[%s4724_s1 + $0x2b0] sm:$0xff]   ;;  %v3663_v44 = vld [vmem:[%s4724_s1 + $0x278] sm:$0xff]  }
  0x26   :  { %3287 = vmatprep.subr.bf16.mxu1 %v3608_v45  ;;  %2376 = vmatprep.mubr.bf16.mxu0 %v2936_v11  ;;  %v3664_v45 = vld [vmem:[%s4724_s1 + $0x2f8] sm:$0xff]   ;;  %v3686_v11 = vld [vmem:[%s4724_s1 + $0x3a0] sm:$0xff]  }
  0x27   :  { %2417 = vmatprep.mubr.bf16.mxu1 %v2938_v15  ;;  %v3690_v15 = vld [vmem:[%s4724_s1 + $0x3a8] sm:$0xff]  }
  0x28   :  { %3266 = vmatpush3.bf16.msra.mxu0 %v3609_v46  ;;  %v3665_v46 = vld [vmem:[%s4724_s1 + $0x238] sm:$0xff]  }
  0x29   :  { %3288 = vmatpush3.bf16.msra.mxu1 %v3610_v47  ;;  %3267 = vmatprep.subr.bf16.mxu0 %v3611_v48  ;;  %v3666_v47 = vld [vmem:[%s4724_s1 + $0x2b8] sm:$0xff]   ;;  %v19_v48 = vld [vmem:[%s4725_s0 + $0x20] sm:$0xff] }
  0x2a   :  { %3289 = vmatprep.subr.bf16.mxu1 %v3612_v49  ;;  %v35_v49 = vld [vmem:[%s4725_s0 + $0xa0] sm:$0xff] }
  0x2c   :  { %3268 = vmatpush3.bf16.msra.mxu0 %v3613_v50  ;;  %v20_v50 = vld [vmem:[%s4725_s0 + $0x28] sm:$0xff] }
  0x2d   :  { %3290 = vmatpush3.bf16.msra.mxu1 %v3614_v51  ;;  %3269 = vmatprep.subr.bf16.mxu0 %v3615_v52  ;;  %v36_v51 = vld [vmem:[%s4725_s0 + $0xa8] sm:$0xff]  ;;  %v2939_v52 = vcombine.low %v19_v48, %v35_v49 }
  0x2e   :  { %3291 = vmatprep.subr.bf16.mxu1 %v3616_v53  ;;  %v2940_v53 = vcombine.high %v19_v48, %v35_v49  ;;  %v3715_v48 = vld [vmem:[%s4724_s1 + $0x460] sm:$0xff]  }
  0x2f   :  { %v3716_v49 = vld [vmem:[%s4724_s1 + $0x4e0] sm:$0xff]  }
  0x30   :  { %3270 = vmatpush3.bf16.msra.mxu0 %v3617_v54  ;;  %v2941_v54 = vcombine.low %v20_v50, %v36_v51 }
  0x31   :  { %3292 = vmatpush3.bf16.msra.mxu1 %v3618_v55  ;;  %3271 = vmatprep.subr.bf16.mxu0 %v3619_v56  ;;  %v2942_v55 = vcombine.high %v20_v50, %v36_v51  ;;  %v3667_v56 = vld [vmem:[%s4724_s1 + $0x340] sm:$0xff]  }
  0x32   :  { %3293 = vmatprep.subr.bf16.mxu1 %v3620_v57  ;;  %v3668_v57 = vld [vmem:[%s4724_s1 + $0x3c0] sm:$0xff]  }
  0x33   :  { %v3717_v50 = vld [vmem:[%s4724_s1 + $0x420] sm:$0xff]  }
  0x34   :  { %3272 = vmatpush3.bf16.msra.mxu0 %v3621_v58  ;;  %v3669_v58 = vld [vmem:[%s4724_s1 + $0x300] sm:$0xff]  }
  0x35   :  { %3294 = vmatpush3.bf16.msra.mxu1 %v3622_v59  ;;  %3273 = vmatprep.subr.bf16.mxu0 %v3623_v60  ;;  %v3670_v59 = vld [vmem:[%s4724_s1 + $0x380] sm:$0xff]   ;;  %v3671_v60 = vld [vmem:[%s4724_s1 + $0x348] sm:$0xff]  }
  0x36   :  { %3295 = vmatprep.subr.bf16.mxu1 %v3624_v61  ;;  %v3672_v61 = vld [vmem:[%s4724_s1 + $0x3c8] sm:$0xff]   ;;  %v3718_v51 = vld [vmem:[%s4724_s1 + $0x4a0] sm:$0xff]  }
  0x38   :  { %3274 = vmatpush3.bf16.msra.mxu0 %v3625_v62  ;;  %v3673_v62 = vld [vmem:[%s4724_s1 + $0x308] sm:$0xff]  }
  0x39   :  { %3296 = vmatpush3.bf16.msra.mxu1 %v3626_v63  ;;  %3275 = vmatprep.subr.bf16.mxu0 %v3627_v0  ;;  %v3674_v63 = vld [vmem:[%s4724_s1 + $0x388] sm:$0xff]   ;;  %v3675_v0 = vld [vmem:[%s4724_s1 + $0x350] sm:$0xff]  }
  0x3a   :  { %3297 = vmatprep.subr.bf16.mxu1 %v3628_v1  ;;  %v3676_v1 = vld [vmem:[%s4724_s1 + $0x3d0] sm:$0xff]  }
  0x3c   :  { %3276 = vmatpush3.bf16.msra.mxu0 %v3629_v2  ;;  %v3677_v2 = vld [vmem:[%s4724_s1 + $0x310] sm:$0xff]  }
  0x3d   :  { %3298 = vmatpush3.bf16.msra.mxu1 %v3630_v3  ;;  %3277 = vmatprep.subr.bf16.mxu0 %v3631_v4  ;;  %v3678_v3 = vld [vmem:[%s4724_s1 + $0x390] sm:$0xff]   ;;  %v3679_v4 = vld [vmem:[%s4724_s1 + $0x358] sm:$0xff]  }
  0x3e   :  { %3299 = vmatprep.subr.bf16.mxu1 %v3632_v5  ;;  %v3680_v5 = vld [vmem:[%s4724_s1 + $0x3d8] sm:$0xff]  }
  0x40   :  { %3278 = vmatpush3.bf16.msra.mxu0 %v3633_v6  ;;  %v3681_v6 = vld [vmem:[%s4724_s1 + $0x318] sm:$0xff]  }
  0x41   :  { %3300 = vmatpush3.bf16.msra.mxu1 %v3634_v7  ;;  %3307 = vmatprep.subr.bf16.mxu0 %v3635_v16  ;;  %v3682_v7 = vld [vmem:[%s4724_s1 + $0x398] sm:$0xff]   ;;  %v3691_v16 = vld [vmem:[%s4724_s1 + $0x370] sm:$0xff]  }
  0x42   :  { %3329 = vmatprep.subr.bf16.mxu1 %v3636_v17  ;;  %v3692_v17 = vld [vmem:[%s4724_s1 + $0x3f0] sm:$0xff]  }
  0x43   :  { %2377 = vmatmul.mubr.bf16.vlgmr.msra.gmra.mrb[4].mxu0 %v2935_v10  ;;  %v3685_v10 = vld [vmem:[%s4724_s1 + $0x320] sm:$0xff]  }
  0x44   :  { %2418 = vmatmul.mubr.bf16.vlgmr.msra.gmra.mrb[4].mxu1 %v2937_v14  ;;  %3308 = vmatpush3.bf16.msra.mxu0 %v3637_v18  ;;  %v3689_v14 = vld [vmem:[%s4724_s1 + $0x328] sm:$0xff]   ;;  %v3693_v18 = vld [vmem:[%s4724_s1 + $0x330] sm:$0xff]  }
  0x45   :  { %3330 = vmatpush3.bf16.msra.mxu1 %v3638_v19  ;;  %3309 = vmatprep.subr.bf16.mxu0 %v3639_v20  ;;  %v3694_v19 = vld [vmem:[%s4724_s1 + $0x3b0] sm:$0xff]   ;;  %v3695_v20 = vld [vmem:[%s4724_s1 + $0x378] sm:$0xff]  }
  0x46   :  { %3331 = vmatprep.subr.bf16.mxu1 %v3640_v21  ;;  %2458 = vmatprep.mubr.bf16.mxu0 %v2940_v53  ;;  %v3696_v21 = vld [vmem:[%s4724_s1 + $0x3f8] sm:$0xff]   ;;  %v3720_v53 = vld [vmem:[%s4724_s1 + $0x4e8] sm:$0xff]  }
  0x47   :  { %2499 = vmatprep.mubr.bf16.mxu1 %v2942_v55  ;;  %v3722_v55 = vld [vmem:[%s4724_s1 + $0x4a8] sm:$0xff]  }
  0x48   :  { %3310 = vmatpush3.bf16.msra.mxu0 %v3641_v22  ;;  %v3697_v22 = vld [vmem:[%s4724_s1 + $0x338] sm:$0xff]  }
  0x49   :  { %3332 = vmatpush3.bf16.msra.mxu1 %v3642_v23  ;;  %3311 = vmatprep.subr.bf16.mxu0 %v3643_v24  ;;  %v3698_v23 = vld [vmem:[%s4724_s1 + $0x3b8] sm:$0xff]   ;;  %v21_v24 = vld [vmem:[%s4725_s0 + $0x30] sm:$0xff] }
  0x4a   :  { %3333 = vmatprep.subr.bf16.mxu1 %v3644_v25  ;;  %v37_v25 = vld [vmem:[%s4725_s0 + $0xb0] sm:$0xff] }
  0x4c   :  { %3312 = vmatpush3.bf16.msra.mxu0 %v3645_v26  ;;  %v22_v26 = vld [vmem:[%s4725_s0 + $0x38] sm:$0xff] }
  0x4d   :  { %3334 = vmatpush3.bf16.msra.mxu1 %v3646_v27  ;;  %3313 = vmatprep.subr.bf16.mxu0 %v3647_v28  ;;  %v2943_v27 = vcombine.low %v21_v24, %v37_v25  ;;  %v2944_v28 = vcombine.high %v21_v24, %v37_v25  ;;  %v3747_v24 = vld [vmem:[%s4724_s1 + $0x560] sm:$0xff]  }
  0x4e   :  { %3335 = vmatprep.subr.bf16.mxu1 %v3648_v29  ;;  %v38_v29 = vld [vmem:[%s4725_s0 + $0xb8] sm:$0xff]  ;;  %v3748_v25 = vld [vmem:[%s4724_s1 + $0x5e0] sm:$0xff]  }
  0x50   :  { %3314 = vmatpush3.bf16.msra.mxu0 %v3649_v30  ;;  %v2945_v30 = vcombine.low %v22_v26, %v38_v29 }
  0x51   :  { %3336 = vmatpush3.bf16.msra.mxu1 %v3650_v31  ;;  %3315 = vmatprep.subr.bf16.mxu0 %v3651_v32  ;;  %v2946_v31 = vcombine.high %v22_v26, %v38_v29  ;;  %v3699_v32 = vld [vmem:[%s4724_s1 + $0x440] sm:$0xff]   ;;  %v3752_v29 = vld [vmem:[%s4724_s1 + $0x5e8] sm:$0xff]  }
  0x52   :  { %3337 = vmatprep.subr.bf16.mxu1 %v3652_v33  ;;  %v3700_v33 = vld [vmem:[%s4724_s1 + $0x4c0] sm:$0xff]  }
  0x53   :  { %v3749_v26 = vld [vmem:[%s4724_s1 + $0x520] sm:$0xff]  }
  0x54   :  { %3316 = vmatpush3.bf16.msra.mxu0 %v3653_v34  ;;  %v3701_v34 = vld [vmem:[%s4724_s1 + $0x400] sm:$0xff]  }
  0x55   :  { %3338 = vmatpush3.bf16.msra.mxu1 %v3654_v35  ;;  %3317 = vmatprep.subr.bf16.mxu0 %v3655_v36  ;;  %v3702_v35 = vld [vmem:[%s4724_s1 + $0x480] sm:$0xff]   ;;  %v3703_v36 = vld [vmem:[%s4724_s1 + $0x448] sm:$0xff]  }
  0x56   :  { %3339 = vmatprep.subr.bf16.mxu1 %v3656_v37  ;;  %v3704_v37 = vld [vmem:[%s4724_s1 + $0x4c8] sm:$0xff]  }
  0x58   :  { %3318 = vmatpush3.bf16.msra.mxu0 %v3657_v38  ;;  %v3705_v38 = vld [vmem:[%s4724_s1 + $0x408] sm:$0xff]  }
  0x59   :  { %3340 = vmatpush3.bf16.msra.mxu1 %v3658_v39  ;;  %3319 = vmatprep.subr.bf16.mxu0 %v3659_v40  ;;  %v3706_v39 = vld [vmem:[%s4724_s1 + $0x488] sm:$0xff]   ;;  %v3707_v40 = vld [vmem:[%s4724_s1 + $0x450] sm:$0xff]  }
  0x5a   :  { %3341 = vmatprep.subr.bf16.mxu1 %v3660_v41  ;;  %v3708_v41 = vld [vmem:[%s4724_s1 + $0x4d0] sm:$0xff]  }
  0x5c   :  { %3320 = vmatpush3.bf16.msra.mxu0 %v3661_v42  ;;  %v3709_v42 = vld [vmem:[%s4724_s1 + $0x410] sm:$0xff]  }
  0x5d   :  { %3342 = vmatpush3.bf16.msra.mxu1 %v3662_v43  ;;  %3321 = vmatprep.subr.bf16.mxu0 %v3663_v44  ;;  %v3710_v43 = vld [vmem:[%s4724_s1 + $0x490] sm:$0xff]   ;;  %v3711_v44 = vld [vmem:[%s4724_s1 + $0x458] sm:$0xff]  }
  0x5e   :  { %3343 = vmatprep.subr.bf16.mxu1 %v3664_v45  ;;  %v3712_v45 = vld [vmem:[%s4724_s1 + $0x4d8] sm:$0xff]  }
  0x60   :  { %3322 = vmatpush3.bf16.msra.mxu0 %v3665_v46  ;;  %v3713_v46 = vld [vmem:[%s4724_s1 + $0x418] sm:$0xff]  }
  0x61   :  { %3344 = vmatpush3.bf16.msra.mxu1 %v3666_v47  ;;  %3351 = vmatprep.subr.bf16.mxu0 %v3667_v56  ;;  %v3714_v47 = vld [vmem:[%s4724_s1 + $0x498] sm:$0xff]   ;;  %v3723_v56 = vld [vmem:[%s4724_s1 + $0x470] sm:$0xff]  }
  0x62   :  { %3373 = vmatprep.subr.bf16.mxu1 %v3668_v57  ;;  %v3724_v57 = vld [vmem:[%s4724_s1 + $0x4f0] sm:$0xff]  }
  0x63   :  { %2459 = vmatmul.mubr.bf16.vlgmr.msra.gmra.mrb[8].mxu0 %v2939_v52  ;;  %v3719_v52 = vld [vmem:[%s4724_s1 + $0x468] sm:$0xff]  }
  0x64   :  { %2500 = vmatmul.mubr.bf16.vlgmr.msra.gmra.mrb[8].mxu1 %v2941_v54  ;;  %3352 = vmatpush3.bf16.msra.mxu0 %v3669_v58  ;;  %v3721_v54 = vld [vmem:[%s4724_s1 + $0x428] sm:$0xff]   ;;  %v3725_v58 = vld [vmem:[%s4724_s1 + $0x430] sm:$0xff]  }
  0x65   :  { %3374 = vmatpush3.bf16.msra.mxu1 %v3670_v59  ;;  %3353 = vmatprep.subr.bf16.mxu0 %v3671_v60  ;;  %v3726_v59 = vld [vmem:[%s4724_s1 + $0x4b0] sm:$0xff]   ;;  %v3727_v60 = vld [vmem:[%s4724_s1 + $0x478] sm:$0xff]  }
  0x66   :  { %3375 = vmatprep.subr.bf16.mxu1 %v3672_v61  ;;  %2540 = vmatprep.mubr.bf16.mxu0 %v2944_v28  ;;  %v3728_v61 = vld [vmem:[%s4724_s1 + $0x4f8] sm:$0xff]   ;;  %v3751_v28 = vld [vmem:[%s4724_s1 + $0x568] sm:$0xff]  }
  0x67   :  { %2581 = vmatprep.mubr.bf16.mxu1 %v2946_v31  ;;  %v3754_v31 = vld [vmem:[%s4724_s1 + $0x5a8] sm:$0xff]  }
  0x68   :  { %3354 = vmatpush3.bf16.msra.mxu0 %v3673_v62  ;;  %v3729_v62 = vld [vmem:[%s4724_s1 + $0x438] sm:$0xff]  }
  0x69   :  { %3376 = vmatpush3.bf16.msra.mxu1 %v3674_v63  ;;  %3355 = vmatprep.subr.bf16.mxu0 %v3675_v0  ;;  %v3730_v63 = vld [vmem:[%s4724_s1 + $0x4b8] sm:$0xff]   ;;  %v23_v0 = vld [vmem:[%s4725_s0 + $0x40] sm:$0xff] }
  0x6a   :  { %3377 = vmatprep.subr.bf16.mxu1 %v3676_v1  ;;  %v39_v1 = vld [vmem:[%s4725_s0 + $0xc0] sm:$0xff] }
  0x6c   :  { %3356 = vmatpush3.bf16.msra.mxu0 %v3677_v2  ;;  %v2947_v2 = vcombine.low %v23_v0, %v39_v1 }
  0x6d   :  { %3378 = vmatpush3.bf16.msra.mxu1 %v3678_v3  ;;  %3357 = vmatprep.subr.bf16.mxu0 %v3679_v4  ;;  %v2948_v3 = vcombine.high %v23_v0, %v39_v1  ;;  %v24_v4 = vld [vmem:[%s4725_s0 + $0x48] sm:$0xff]  ;;  %v3779_v0 = vld [vmem:[%s4724_s1 + $0x660] sm:$0xff]  }
  0x6e   :  { %3379 = vmatprep.subr.bf16.mxu1 %v3680_v5  ;;  %v40_v5 = vld [vmem:[%s4725_s0 + $0xc8] sm:$0xff]  ;;  %v3780_v1 = vld [vmem:[%s4724_s1 + $0x6e0] sm:$0xff]  }
  0x70   :  { %3358 = vmatpush3.bf16.msra.mxu0 %v3681_v6  ;;  %v2949_v6 = vcombine.low %v24_v4, %v40_v5 }
  0x71   :  { %3380 = vmatpush3.bf16.msra.mxu1 %v3682_v7  ;;  %3359 = vmatprep.subr.bf16.mxu0 %v3683_v8  ;;  %v2950_v7 = vcombine.high %v24_v4, %v40_v5  ;;  %v3731_v8 = vld [vmem:[%s4724_s1 + $0x540] sm:$0xff]   ;;  %v3783_v4 = vld [vmem:[%s4724_s1 + $0x668] sm:$0xff]  }
  0x72   :  { %3381 = vmatprep.subr.bf16.mxu1 %v3684_v9  ;;  %v3732_v9 = vld [vmem:[%s4724_s1 + $0x5c0] sm:$0xff]   ;;  %v3784_v5 = vld [vmem:[%s4724_s1 + $0x6e8] sm:$0xff]  }
  0x74   :  { %3360 = vmatpush3.bf16.msra.mxu0 %v3685_v10  ;;  %v3733_v10 = vld [vmem:[%s4724_s1 + $0x500] sm:$0xff]  }
  0x75   :  { %3382 = vmatpush3.bf16.msra.mxu1 %v3686_v11  ;;  %3361 = vmatprep.subr.bf16.mxu0 %v3687_v12  ;;  %v3734_v11 = vld [vmem:[%s4724_s1 + $0x580] sm:$0xff]   ;;  %v3735_v12 = vld [vmem:[%s4724_s1 + $0x548] sm:$0xff]  }
  0x76   :  { %3383 = vmatprep.subr.bf16.mxu1 %v3688_v13  ;;  %v3736_v13 = vld [vmem:[%s4724_s1 + $0x5c8] sm:$0xff]  }
  0x78   :  { %3362 = vmatpush3.bf16.msra.mxu0 %v3689_v14  ;;  %v3737_v14 = vld [vmem:[%s4724_s1 + $0x508] sm:$0xff]  }
  0x79   :  { %3384 = vmatpush3.bf16.msra.mxu1 %v3690_v15  ;;  %3363 = vmatprep.subr.bf16.mxu0 %v3691_v16  ;;  %v3738_v15 = vld [vmem:[%s4724_s1 + $0x588] sm:$0xff]   ;;  %v3739_v16 = vld [vmem:[%s4724_s1 + $0x550] sm:$0xff]  }
  0x7a   :  { %3385 = vmatprep.subr.bf16.mxu1 %v3692_v17  ;;  %v3740_v17 = vld [vmem:[%s4724_s1 + $0x5d0] sm:$0xff]  }
  0x7c   :  { %3364 = vmatpush3.bf16.msra.mxu0 %v3693_v18  ;;  %v3741_v18 = vld [vmem:[%s4724_s1 + $0x510] sm:$0xff]  }
  0x7d   :  { %3386 = vmatpush3.bf16.msra.mxu1 %v3694_v19  ;;  %3365 = vmatprep.subr.bf16.mxu0 %v3695_v20  ;;  %v3742_v19 = vld [vmem:[%s4724_s1 + $0x590] sm:$0xff]   ;;  %v3743_v20 = vld [vmem:[%s4724_s1 + $0x558] sm:$0xff]  }
  0x7e   :  { %3387 = vmatprep.subr.bf16.mxu1 %v3696_v21  ;;  %v3744_v21 = vld [vmem:[%s4724_s1 + $0x5d8] sm:$0xff]  }
  0x80   :  { %3366 = vmatpush3.bf16.msra.mxu0 %v3697_v22  ;;  %v3745_v22 = vld [vmem:[%s4724_s1 + $0x518] sm:$0xff]  }
  0x81   :  { %3388 = vmatpush3.bf16.msra.mxu1 %v3698_v23  ;;  %3395 = vmatprep.subr.bf16.mxu0 %v3699_v32  ;;  %v3746_v23 = vld [vmem:[%s4724_s1 + $0x598] sm:$0xff]   ;;  %v3755_v32 = vld [vmem:[%s4724_s1 + $0x570] sm:$0xff]  }
  0x82   :  { %3417 = vmatprep.subr.bf16.mxu1 %v3700_v33  ;;  %v3756_v33 = vld [vmem:[%s4724_s1 + $0x5f0] sm:$0xff]  }
  0x83   :  { %2541 = vmatmul.mubr.bf16.vlgmr.msra.gmra.mrb[12].mxu0 %v2943_v27  ;;  %v3750_v27 = vld [vmem:[%s4724_s1 + $0x5a0] sm:$0xff]  }
  0x84   :  { %2582 = vmatmul.mubr.bf16.vlgmr.msra.gmra.mrb[12].mxu1 %v2945_v30  ;;  %3396 = vmatpush3.bf16.msra.mxu0 %v3701_v34  ;;  %v3753_v30 = vld [vmem:[%s4724_s1 + $0x528] sm:$0xff]   ;;  %v3757_v34 = vld [vmem:[%s4724_s1 + $0x530] sm:$0xff]  }
  0x85   :  { %3418 = vmatpush3.bf16.msra.mxu1 %v3702_v35  ;;  %3397 = vmatprep.subr.bf16.mxu0 %v3703_v36  ;;  %v3758_v35 = vld [vmem:[%s4724_s1 + $0x5b0] sm:$0xff]   ;;  %v3759_v36 = vld [vmem:[%s4724_s1 + $0x578] sm:$0xff]  }
  0x86   :  { %3419 = vmatprep.subr.bf16.mxu1 %v3704_v37  ;;  %2622 = vmatprep.mubr.bf16.mxu0 %v2948_v3  ;;  %v3760_v37 = vld [vmem:[%s4724_s1 + $0x5f8] sm:$0xff]   ;;  %v3782_v3 = vld [vmem:[%s4724_s1 + $0x6a0] sm:$0xff]  }
  0x87   :  { %2663 = vmatprep.mubr.bf16.mxu1 %v2950_v7  ;;  %v3786_v7 = vld [vmem:[%s4724_s1 + $0x6a8] sm:$0xff]  }
  0x88   :  { %3398 = vmatpush3.bf16.msra.mxu0 %v3705_v38  ;;  %v3761_v38 = vld [vmem:[%s4724_s1 + $0x538] sm:$0xff]  }
  0x89   :  { %3420 = vmatpush3.bf16.msra.mxu1 %v3706_v39  ;;  %3399 = vmatprep.subr.bf16.mxu0 %v3707_v40  ;;  %v3762_v39 = vld [vmem:[%s4724_s1 + $0x5b8] sm:$0xff]   ;;  %v25_v40 = vld [vmem:[%s4725_s0 + $0x50] sm:$0xff] }
  0x8a   :  { %3421 = vmatprep.subr.bf16.mxu1 %v3708_v41  ;;  %v41_v41 = vld [vmem:[%s4725_s0 + $0xd0] sm:$0xff] }
  0x8c   :  { %3400 = vmatpush3.bf16.msra.mxu0 %v3709_v42  ;;  %v26_v42 = vld [vmem:[%s4725_s0 + $0x58] sm:$0xff] }
  0x8d   :  { %3422 = vmatpush3.bf16.msra.mxu1 %v3710_v43  ;;  %3401 = vmatprep.subr.bf16.mxu0 %v3711_v44  ;;  %v42_v43 = vld [vmem:[%s4725_s0 + $0xd8] sm:$0xff]  ;;  %v2951_v44 = vcombine.low %v25_v40, %v41_v41 }
  0x8e   :  { %3423 = vmatprep.subr.bf16.mxu1 %v3712_v45  ;;  %v2952_v45 = vcombine.high %v25_v40, %v41_v41  ;;  %v3810_v41 = vld [vmem:[%s4724_s1 + $0x798] sm:$0xff]  }
  0x90   :  { %3402 = vmatpush3.bf16.msra.mxu0 %v3713_v46  ;;  %v2953_v46 = vcombine.low %v26_v42, %v42_v43 }
  0x91   :  { %3424 = vmatpush3.bf16.msra.mxu1 %v3714_v47  ;;  %3403 = vmatprep.subr.bf16.mxu0 %v3715_v48  ;;  %v2954_v47 = vcombine.high %v26_v42, %v42_v43  ;;  %v3763_v48 = vld [vmem:[%s4724_s1 + $0x640] sm:$0xff]  }
  0x92   :  { %3425 = vmatprep.subr.bf16.mxu1 %v3716_v49  ;;  %v3764_v49 = vld [vmem:[%s4724_s1 + $0x6c0] sm:$0xff]  }
  0x93   :  { %v3811_v43 = vld [vmem:[%s4724_s1 + $0x760] sm:$0xff]  }
  0x94   :  { %3404 = vmatpush3.bf16.msra.mxu0 %v3717_v50  ;;  %v3765_v50 = vld [vmem:[%s4724_s1 + $0x600] sm:$0xff]  }
  0x95   :  { %3426 = vmatpush3.bf16.msra.mxu1 %v3718_v51  ;;  %3405 = vmatprep.subr.bf16.mxu0 %v3719_v52  ;;  %v3766_v51 = vld [vmem:[%s4724_s1 + $0x680] sm:$0xff]   ;;  %v3767_v52 = vld [vmem:[%s4724_s1 + $0x648] sm:$0xff]  }
  0x96   :  { %3427 = vmatprep.subr.bf16.mxu1 %v3720_v53  ;;  %v3768_v53 = vld [vmem:[%s4724_s1 + $0x6c8] sm:$0xff]  }
  0x98   :  { %3406 = vmatpush3.bf16.msra.mxu0 %v3721_v54  ;;  %v3769_v54 = vld [vmem:[%s4724_s1 + $0x608] sm:$0xff]  }
  0x99   :  { %3428 = vmatpush3.bf16.msra.mxu1 %v3722_v55  ;;  %3407 = vmatprep.subr.bf16.mxu0 %v3723_v56  ;;  %v3770_v55 = vld [vmem:[%s4724_s1 + $0x688] sm:$0xff]   ;;  %v3771_v56 = vld [vmem:[%s4724_s1 + $0x650] sm:$0xff]  }
  0x9a   :  { %3429 = vmatprep.subr.bf16.mxu1 %v3724_v57  ;;  %v3772_v57 = vld [vmem:[%s4724_s1 + $0x6d0] sm:$0xff]  }
  0x9c   :  { %3408 = vmatpush3.bf16.msra.mxu0 %v3725_v58  ;;  %v3773_v58 = vld [vmem:[%s4724_s1 + $0x610] sm:$0xff]  }
  0x9d   :  { %3430 = vmatpush3.bf16.msra.mxu1 %v3726_v59  ;;  %3409 = vmatprep.subr.bf16.mxu0 %v3727_v60  ;;  %v3774_v59 = vld [vmem:[%s4724_s1 + $0x690] sm:$0xff]   ;;  %v3775_v60 = vld [vmem:[%s4724_s1 + $0x658] sm:$0xff]  }
  0x9e   :  { %3431 = vmatprep.subr.bf16.mxu1 %v3728_v61  ;;  %v3776_v61 = vld [vmem:[%s4724_s1 + $0x6d8] sm:$0xff]  }
  0xa0   :  { %3410 = vmatpush3.bf16.msra.mxu0 %v3729_v62  ;;  %v3777_v62 = vld [vmem:[%s4724_s1 + $0x618] sm:$0xff]  }
  0xa1   :  { %3432 = vmatpush3.bf16.msra.mxu1 %v3730_v63  ;;  %3439 = vmatprep.subr.bf16.mxu0 %v3731_v8  ;;  %v3778_v63 = vld [vmem:[%s4724_s1 + $0x698] sm:$0xff]   ;;  %v3787_v8 = vld [vmem:[%s4724_s1 + $0x670] sm:$0xff]  }
  0xa2   :  { %3461 = vmatprep.subr.bf16.mxu1 %v3732_v9  ;;  %v3788_v9 = vld [vmem:[%s4724_s1 + $0x6f0] sm:$0xff]  }
  0xa3   :  { %2623 = vmatmul.mubr.bf16.vlgmr.msra.gmra.mrb[16].mxu0 %v2947_v2  ;;  %v3781_v2 = vld [vmem:[%s4724_s1 + $0x620] sm:$0xff]  }
  0xa4   :  { %2664 = vmatmul.mubr.bf16.vlgmr.msra.gmra.mrb[16].mxu1 %v2949_v6  ;;  %3440 = vmatpush3.bf16.msra.mxu0 %v3733_v10  ;;  %v3785_v6 = vld [vmem:[%s4724_s1 + $0x628] sm:$0xff]   ;;  %v3789_v10 = vld [vmem:[%s4724_s1 + $0x630] sm:$0xff]  }
  0xa5   :  { %3462 = vmatpush3.bf16.msra.mxu1 %v3734_v11  ;;  %3441 = vmatprep.subr.bf16.mxu0 %v3735_v12  ;;  %v3790_v11 = vld [vmem:[%s4724_s1 + $0x6b0] sm:$0xff]   ;;  %v3791_v12 = vld [vmem:[%s4724_s1 + $0x678] sm:$0xff]  }
  0xa6   :  { %3463 = vmatprep.subr.bf16.mxu1 %v3736_v13  ;;  %2704 = vmatprep.mubr.bf16.mxu0 %v2952_v45  ;;  %v3792_v13 = vld [vmem:[%s4724_s1 + $0x6f8] sm:$0xff]  }
  0xa7   :  { %2745 = vmatprep.mubr.bf16.mxu1 %v2954_v47 }
  0xa8   :  { %3442 = vmatpush3.bf16.msra.mxu0 %v3737_v14  ;;  %v3793_v14 = vld [vmem:[%s4724_s1 + $0x638] sm:$0xff]  }
  0xa9   :  { %3464 = vmatpush3.bf16.msra.mxu1 %v3738_v15  ;;  %3443 = vmatprep.subr.bf16.mxu0 %v3739_v16  ;;  %v3794_v15 = vld [vmem:[%s4724_s1 + $0x6b8] sm:$0xff]   ;;  %v27_v16 = vld [vmem:[%s4725_s0 + $0x60] sm:$0xff] }
  0xaa   :  { %3465 = vmatprep.subr.bf16.mxu1 %v3740_v17  ;;  %v43_v17 = vld [vmem:[%s4725_s0 + $0xe0] sm:$0xff] }
  0xac   :  { %3444 = vmatpush3.bf16.msra.mxu0 %v3741_v18  ;;  %v28_v18 = vld [vmem:[%s4725_s0 + $0x68] sm:$0xff] }
  0xad   :  { %3466 = vmatpush3.bf16.msra.mxu1 %v3742_v19  ;;  %3445 = vmatprep.subr.bf16.mxu0 %v3743_v20  ;;  %v2955_v19 = vcombine.low %v27_v16, %v43_v17  ;;  %v2956_v20 = vcombine.high %v27_v16, %v43_v17 }
  0xae   :  { %3467 = vmatprep.subr.bf16.mxu1 %v3744_v21  ;;  %v44_v21 = vld [vmem:[%s4725_s0 + $0xe8] sm:$0xff] }
  0xb0   :  { %3446 = vmatpush3.bf16.msra.mxu0 %v3745_v22  ;;  %v2957_v22 = vcombine.low %v28_v18, %v44_v21 }
  0xb1   :  { %3468 = vmatpush3.bf16.msra.mxu1 %v3746_v23  ;;  %3447 = vmatprep.subr.bf16.mxu0 %v3747_v24  ;;  %v2958_v23 = vcombine.high %v28_v18, %v44_v21  ;;  %v3795_v24 = vld [vmem:[%s4724_s1 + $0x740] sm:$0xff]  }
  0xb2   :  { %3469 = vmatprep.subr.bf16.mxu1 %v3748_v25  ;;  %v3796_v25 = vld [vmem:[%s4724_s1 + $0x7c0] sm:$0xff]  }
  0xb4   :  { %3448 = vmatpush3.bf16.msra.mxu0 %v3749_v26  ;;  %v3797_v26 = vld [vmem:[%s4724_s1 + $0x700] sm:$0xff]  }
  0xb5   :  { %3470 = vmatpush3.bf16.msra.mxu1 %v3750_v27  ;;  %3449 = vmatprep.subr.bf16.mxu0 %v3751_v28  ;;  %v3798_v27 = vld [vmem:[%s4724_s1 + $0x780] sm:$0xff]   ;;  %v3799_v28 = vld [vmem:[%s4724_s1 + $0x748] sm:$0xff]  }
  0xb6   :  { %3471 = vmatprep.subr.bf16.mxu1 %v3752_v29  ;;  %v3800_v29 = vld [vmem:[%s4724_s1 + $0x7c8] sm:$0xff]  }
  0xb8   :  { %3450 = vmatpush3.bf16.msra.mxu0 %v3753_v30  ;;  %v3801_v30 = vld [vmem:[%s4724_s1 + $0x708] sm:$0xff]  }
  0xb9   :  { %3472 = vmatpush3.bf16.msra.mxu1 %v3754_v31  ;;  %3451 = vmatprep.subr.bf16.mxu0 %v3755_v32  ;;  %v3802_v31 = vld [vmem:[%s4724_s1 + $0x788] sm:$0xff]   ;;  %v3803_v32 = vld [vmem:[%s4724_s1 + $0x750] sm:$0xff]  }
  0xba   :  { %3473 = vmatprep.subr.bf16.mxu1 %v3756_v33  ;;  %v3804_v33 = vld [vmem:[%s4724_s1 + $0x7d0] sm:$0xff]  }
  0xbc   :  { %3452 = vmatpush3.bf16.msra.mxu0 %v3757_v34  ;;  %v3805_v34 = vld [vmem:[%s4724_s1 + $0x710] sm:$0xff]  }
  0xbd   :  { %3474 = vmatpush3.bf16.msra.mxu1 %v3758_v35  ;;  %3453 = vmatprep.subr.bf16.mxu0 %v3759_v36  ;;  %v3806_v35 = vld [vmem:[%s4724_s1 + $0x790] sm:$0xff]   ;;  %v3807_v36 = vld [vmem:[%s4724_s1 + $0x758] sm:$0xff]  }
  0xbe   :  { %3475 = vmatprep.subr.bf16.mxu1 %v3760_v37  ;;  %v3808_v37 = vld [vmem:[%s4724_s1 + $0x7d8] sm:$0xff]  }
  0xc0   :  { %3454 = vmatpush3.bf16.msra.mxu0 %v3761_v38 }
  0xc1   :  { %3476 = vmatpush3.bf16.msra.mxu1 %v3762_v39  ;;  %3483 = vmatprep.subr.bf16.mxu0 %v3763_v48  ;;  %v3809_v39 = vld [vmem:[%s4724_s1 + $0x718] sm:$0xff]  }
  0xc2   :  { %3505 = vmatprep.subr.bf16.mxu1 %v3764_v49  ;;  %v3813_v49 = vld [vmem:[%s4724_s1 + $0x720] sm:$0xff]  }
  0xc3   :  { %2705 = vmatmul.mubr.bf16.vlgmr.msra.gmra.mrb[20].mxu0 %v2951_v44 }
  0xc4   :  { %2746 = vmatmul.mubr.bf16.vlgmr.msra.gmra.mrb[20].mxu1 %v2953_v46  ;;  %3484 = vmatpush3.bf16.msra.mxu0 %v3765_v50  ;;  %v3812_v46 = vld [vmem:[%s4724_s1 + $0x7e0] sm:$0xff]  }
  0xc5   :  { %3506 = vmatpush3.bf16.msra.mxu1 %v3766_v51  ;;  %3485 = vmatprep.subr.bf16.mxu0 %v3767_v52  ;;  %v3814_v51 = vld [vmem:[%s4724_s1 + $0x7a0] sm:$0xff]  }
  0xc6   :  { %3507 = vmatprep.subr.bf16.mxu1 %v3768_v53  ;;  %2786 = vmatprep.mubr.bf16.mxu0 %v2956_v20  ;;  %v2930_v52 = vld [vmem:[%s4726_s2] ss:$0 sm:$0xff] }
  0xc7   :  { %2827 = vmatprep.mubr.bf16.mxu1 %v2958_v23 }
  0xc8   :  { %3486 = vmatpush3.bf16.msra.mxu0 %v3769_v54 }
  0xc9   :  { %3508 = vmatpush3.bf16.msra.mxu1 %v3770_v55  ;;  %3487 = vmatprep.subr.bf16.mxu0 %v3771_v56  ;;  %v3815_v55 = vld [vmem:[%s4724_s1 + $0x768] sm:$0xff]  }
  0xca   :  { %3509 = vmatprep.subr.bf16.mxu1 %v3772_v57 }
  0xcc   :  { %3488 = vmatpush3.bf16.msra.mxu0 %v3773_v58  ;;  %v3816_v58 = vld [vmem:[%s4724_s1 + $0x7e8] sm:$0xff]  }
  0xcd   :  { %3510 = vmatpush3.bf16.msra.mxu1 %v3774_v59  ;;  %3489 = vmatprep.subr.bf16.mxu0 %v3775_v60 }
  0xce   :  { %3511 = vmatprep.subr.bf16.mxu1 %v3776_v61  ;;  %v3817_v61 = vld [vmem:[%s4724_s1 + $0x728] sm:$0xff]  }
  0xd0   :  { %3490 = vmatpush3.bf16.msra.mxu0 %v3777_v62 }
  0xd1   :  { %3512 = vmatpush3.bf16.msra.mxu1 %v3778_v63  ;;  %3491 = vmatprep.subr.bf16.mxu0 %v3779_v0  ;;  %v3818_v63 = vld [vmem:[%s4724_s1 + $0x7a8] sm:$0xff]  }
  0xd2   :  { %3513 = vmatprep.subr.bf16.mxu1 %v3780_v1  ;;  %v3819_v1 = vld [vmem:[%s4724_s1 + $0x770] sm:$0xff]  }
  0xd4   :  { %3492 = vmatpush3.bf16.msra.mxu0 %v3781_v2  ;;  %v3820_v2 = vld [vmem:[%s4724_s1 + $0x7f0] sm:$0xff]  }
  0xd5   :  { %3514 = vmatpush3.bf16.msra.mxu1 %v3782_v3  ;;  %3493 = vmatprep.subr.bf16.mxu0 %v3783_v4  ;;  %v3821_v3 = vld [vmem:[%s4724_s1 + $0x730] sm:$0xff]  }
  0xd6   :  { %3515 = vmatprep.subr.bf16.mxu1 %v3784_v5  ;;  %v3822_v4 = vld [vmem:[%s4724_s1 + $0x7b0] sm:$0xff]   ;;  %v3823_v5 = vld [vmem:[%s4724_s1 + $0x778] sm:$0xff]  }
  0xd8   :  { %3494 = vmatpush3.bf16.msra.mxu0 %v3785_v6  ;;  %v3824_v6 = vld [vmem:[%s4724_s1 + $0x7f8] sm:$0xff]  }
  0xd9   :  { %3516 = vmatpush3.bf16.msra.mxu1 %v3786_v7  ;;  %3495 = vmatprep.subr.bf16.mxu0 %v3787_v8  ;;  %v3825_v7 = vld [vmem:[%s4724_s1 + $0x738] sm:$0xff]  }
  0xda   :  { %3517 = vmatprep.subr.bf16.mxu1 %v3788_v9  ;;  %v3826_v8 = vld [vmem:[%s4724_s1 + $0x7b8] sm:$0xff]   ;;  %v29_v9 = vld [vmem:[%s4725_s0 + $0x70] sm:$0xff] }
  0xdc   :  { %3496 = vmatpush3.bf16.msra.mxu0 %v3789_v10  ;;  %v45_v10 = vld [vmem:[%s4725_s0 + $0xf0] sm:$0xff] }
  0xdd   :  { %3518 = vmatpush3.bf16.msra.mxu1 %v3790_v11  ;;  %3497 = vmatprep.subr.bf16.mxu0 %v3791_v12  ;;  %v30_v11 = vld [vmem:[%s4725_s0 + $0x78] sm:$0xff] }
  0xde   :  { %3519 = vmatprep.subr.bf16.mxu1 %v3792_v13  ;;  %v46_v12 = vld [vmem:[%s4725_s0 + $0xf8] sm:$0xff]  ;;  %v2959_v13 = vcombine.low %v29_v9, %v45_v10 }
  0xdf   :  { %v2962_v16 = vcombine.high %v30_v11, %v46_v12 }
  0xe0   :  { %3498 = vmatpush3.bf16.msra.mxu0 %v3793_v14  ;;  %v2960_v14 = vcombine.high %v29_v9, %v45_v10 }
  0xe1   :  { %3520 = vmatpush3.bf16.msra.mxu1 %v3794_v15  ;;  %3527 = vmatprep.subr.bf16.mxu0 %v3795_v24  ;;  %v2961_v15 = vcombine.low %v30_v11, %v46_v12 }
  0xe2   :  { %3549 = vmatprep.subr.bf16.mxu1 %v3796_v25 }
  0xe3   :  { %2787 = vmatmul.mubr.bf16.vlgmr.msra.gmra.mrb[24].mxu0 %v2955_v19 }
  0xe4   :  { %2828 = vmatmul.mubr.bf16.vlgmr.msra.gmra.mrb[24].mxu1 %v2957_v22  ;;  %3528 = vmatpush3.bf16.msra.mxu0 %v3797_v26 }
  0xe5   :  { %3550 = vmatpush3.bf16.msra.mxu1 %v3798_v27  ;;  %3529 = vmatprep.subr.bf16.mxu0 %v3799_v28 }
  0xe6   :  { %3551 = vmatprep.subr.bf16.mxu1 %v3800_v29  ;;  %2868 = vmatprep.mubr.bf16.mxu0 %v2960_v14 }
  0xe7   :  { %2909 = vmatprep.mubr.bf16.mxu1 %v2962_v16 }
  0xe8   :  { %3530 = vmatpush3.bf16.msra.mxu0 %v3801_v30 }
  0xe9   :  { %3552 = vmatpush3.bf16.msra.mxu1 %v3802_v31  ;;  %3531 = vmatprep.subr.bf16.mxu0 %v3803_v32 }
  0xea   :  { %3553 = vmatprep.subr.bf16.mxu1 %v3804_v33 }
  0xec   :  { %3532 = vmatpush3.bf16.msra.mxu0 %v3805_v34 }
  0xed   :  { %3554 = vmatpush3.bf16.msra.mxu1 %v3806_v35  ;;  %3533 = vmatprep.subr.bf16.mxu0 %v3807_v36 }
  0xee   :  { %3555 = vmatprep.subr.bf16.mxu1 %v3808_v37 }
  0xf0   :  { %3534 = vmatpush3.bf16.msra.mxu0 %v3809_v39 }
  0xf1   :  { %3556 = vmatpush3.bf16.msra.mxu1 %v3810_v41  ;;  %3535 = vmatprep.subr.bf16.mxu0 %v3811_v43 }
  0xf2   :  { %3557 = vmatprep.subr.bf16.mxu1 %v3812_v46 }
  0xf4   :  { %3536 = vmatpush3.bf16.msra.mxu0 %v3813_v49 }
  0xf5   :  { %3558 = vmatpush3.bf16.msra.mxu1 %v3814_v51  ;;  %3537 = vmatprep.subr.bf16.mxu0 %v3815_v55 }
  0xf6   :  { %v3235_v38 = vpop.f32.mrb[0].mxu0  ;;  %3559 = vmatprep.subr.bf16.mxu1 %v3816_v58 }
  0xf7   :  { %v3257_v40 = vpop.f32.mrb[0].mxu1  ;;  %v3236_v42 = vpop.f32.mrb[1].mxu0 }
  0xf8   :  { %v3237_v44 = vadd.f32 %v3236_v42, %v3235_v38  ;;  %v3258_v45 = vpop.f32.mrb[1].mxu1  ;;  %v3238_v48 = vpop.f32.mrb[2].mxu0  ;;  %3538 = vmatpush3.bf16.msra.mxu0 %v3817_v61 }
  0xf9   :  { %v3259_v47 = vadd.f32 %v3258_v45, %v3257_v40  ;;  %v3260_v50 = vpop.f32.mrb[2].mxu1  ;;  %v3239_v53 = vpop.f32.mrb[3].mxu0  ;;  %3560 = vmatpush3.bf16.msra.mxu1 %v3818_v63  ;;  %3539 = vmatprep.subr.bf16.mxu0 %v3819_v1 }
  0xfa   :  { %v2297_v54 = vadd.f32 %v3237_v44, %v2930_v52  ;;  %v3240_v56 = vadd.f32 %v3239_v53, %v3238_v48  ;;  %v3261_v57 = vpop.f32.mrb[3].mxu1  ;;  %3561 = vmatprep.subr.bf16.mxu1 %v3820_v2 }
  0xfb   :  { %v3262_v59 = vadd.f32 %v3261_v57, %v3260_v50 }
  0xfc   :  { %v2338_v60 = vadd.f32 %v3259_v47, %v2297_v54  ;;  %v2300_v62 = vadd.f32 %v3240_v56, %v2930_v52  ;;  %3540 = vmatpush3.bf16.msra.mxu0 %v3821_v3 }
  0xfd   :  { %3562 = vmatpush3.bf16.msra.mxu1 %v3822_v4  ;;  %3541 = vmatprep.subr.bf16.mxu0 %v3823_v5 }
  0xfe   :  { %v2341_v0 = vadd.f32 %v3262_v59, %v2300_v62  ;;  %3563 = vmatprep.subr.bf16.mxu1 %v3824_v6 }
 0x100   :  { %3542 = vmatpush3.bf16.msra.mxu0 %v3825_v7 }
 0x101   :  { %3564 = vmatpush3.bf16.msra.mxu1 %v3826_v8 }
 0x103   :  { %2869 = vmatmul.mubr.bf16.vlgmr.msra.gmra.mrb[28].mxu0 %v2959_v13 }
 0x104   :  { %2910 = vmatmul.mubr.bf16.vlgmr.msra.gmra.mrb[28].mxu1 %v2961_v15 }
 0x116   :  { %v3279_v17 = vpop.f32.mrb[4].mxu0 }
 0x117   :  { %v3301_v18 = vpop.f32.mrb[4].mxu1  ;;  %v3280_v19 = vpop.f32.mrb[5].mxu0 }
 0x118   :  { %v3281_v20 = vadd.f32 %v3280_v19, %v3279_v17  ;;  %v3302_v21 = vpop.f32.mrb[5].mxu1  ;;  %v3282_v22 = vpop.f32.mrb[6].mxu0 }
 0x119   :  { %v3303_v23 = vadd.f32 %v3302_v21, %v3301_v18  ;;  %v3304_v24 = vpop.f32.mrb[6].mxu1  ;;  %v3283_v25 = vpop.f32.mrb[7].mxu0 }
 0x11a   :  { %v2379_v26 = vadd.f32 %v3281_v20, %v2338_v60  ;;  %v3284_v27 = vadd.f32 %v3283_v25, %v3282_v22  ;;  %v3305_v28 = vpop.f32.mrb[7].mxu1 }
 0x11b   :  { %v3306_v29 = vadd.f32 %v3305_v28, %v3304_v24 }
 0x11c   :  { %v2420_v30 = vadd.f32 %v3303_v23, %v2379_v26  ;;  %v2382_v31 = vadd.f32 %v3284_v27, %v2341_v0 }
 0x11e   :  { %v2423_v32 = vadd.f32 %v3306_v29, %v2382_v31 }
 0x136   :  { %v3323_v33 = vpop.f32.mrb[8].mxu0 }
 0x137   :  { %v3345_v34 = vpop.f32.mrb[8].mxu1  ;;  %v3324_v35 = vpop.f32.mrb[9].mxu0 }
 0x138   :  { %v3346_v36 = vpop.f32.mrb[9].mxu1  ;;  %v3325_v37 = vadd.f32 %v3324_v35, %v3323_v33  ;;  %v3326_v39 = vpop.f32.mrb[10].mxu0 }
 0x139   :  { %v3347_v38 = vadd.f32 %v3346_v36, %v3345_v34  ;;  %v3348_v40 = vpop.f32.mrb[10].mxu1  ;;  %v3327_v41 = vpop.f32.mrb[11].mxu0 }
 0x13a   :  { %v3349_v42 = vpop.f32.mrb[11].mxu1  ;;  %v2461_v43 = vadd.f32 %v3325_v37, %v2420_v30  ;;  %v3328_v44 = vadd.f32 %v3327_v41, %v3326_v39 }
 0x13b   :  { %v3350_v45 = vadd.f32 %v3349_v42, %v3348_v40 }
 0x13c   :  { %v2502_v46 = vadd.f32 %v3347_v38, %v2461_v43  ;;  %v2464_v47 = vadd.f32 %v3328_v44, %v2423_v32 }
 0x13e   :  { %v2505_v48 = vadd.f32 %v3350_v45, %v2464_v47 }
 0x156   :  { %v3367_v49 = vpop.f32.mrb[12].mxu0 }
 0x157   :  { %v3389_v50 = vpop.f32.mrb[12].mxu1  ;;  %v3368_v51 = vpop.f32.mrb[13].mxu0 }
 0x158   :  { %v3369_v52 = vadd.f32 %v3368_v51, %v3367_v49  ;;  %v3390_v53 = vpop.f32.mrb[13].mxu1  ;;  %v3370_v54 = vpop.f32.mrb[14].mxu0 }
 0x159   :  { %v3391_v55 = vadd.f32 %v3390_v53, %v3389_v50  ;;  %v3392_v56 = vpop.f32.mrb[14].mxu1  ;;  %v3371_v57 = vpop.f32.mrb[15].mxu0 }
 0x15a   :  { %v2543_v58 = vadd.f32 %v3369_v52, %v2502_v46  ;;  %v3372_v59 = vadd.f32 %v3371_v57, %v3370_v54  ;;  %v3393_v60 = vpop.f32.mrb[15].mxu1 }
 0x15b   :  { %v3394_v61 = vadd.f32 %v3393_v60, %v3392_v56 }
 0x15c   :  { %v2584_v62 = vadd.f32 %v3391_v55, %v2543_v58  ;;  %v2546_v63 = vadd.f32 %v3372_v59, %v2505_v48 }
 0x15e   :  { %v2587_v0 = vadd.f32 %v3394_v61, %v2546_v63 }
 0x176   :  { %v3411_v1 = vpop.f32.mrb[16].mxu0 }
 0x177   :  { %v3433_v2 = vpop.f32.mrb[16].mxu1  ;;  %v3412_v3 = vpop.f32.mrb[17].mxu0 }
 0x178   :  { %v3413_v4 = vadd.f32 %v3412_v3, %v3411_v1  ;;  %v3434_v5 = vpop.f32.mrb[17].mxu1  ;;  %v3414_v6 = vpop.f32.mrb[18].mxu0 }
 0x179   :  { %v3435_v7 = vadd.f32 %v3434_v5, %v3433_v2  ;;  %v3436_v8 = vpop.f32.mrb[18].mxu1  ;;  %v3415_v9 = vpop.f32.mrb[19].mxu0 }
 0x17a   :  { %v2625_v10 = vadd.f32 %v3413_v4, %v2584_v62  ;;  %v3416_v11 = vadd.f32 %v3415_v9, %v3414_v6  ;;  %v3437_v12 = vpop.f32.mrb[19].mxu1 }
 0x17b   :  { %v3438_v13 = vadd.f32 %v3437_v12, %v3436_v8 }
 0x17c   :  { %v2666_v14 = vadd.f32 %v3435_v7, %v2625_v10  ;;  %v2628_v15 = vadd.f32 %v3416_v11, %v2587_v0 }
 0x17e   :  { %v2669_v16 = vadd.f32 %v3438_v13, %v2628_v15 }
 0x196   :  { %v3455_v17 = vpop.f32.mrb[20].mxu0 }
 0x197   :  { %v3477_v18 = vpop.f32.mrb[20].mxu1  ;;  %v3456_v19 = vpop.f32.mrb[21].mxu0 }
 0x198   :  { %v3478_v20 = vpop.f32.mrb[21].mxu1  ;;  %v3457_v21 = vadd.f32 %v3456_v19, %v3455_v17  ;;  %v3458_v23 = vpop.f32.mrb[22].mxu0 }
 0x199   :  { %v3479_v22 = vadd.f32 %v3478_v20, %v3477_v18  ;;  %v3480_v24 = vpop.f32.mrb[22].mxu1  ;;  %v3459_v25 = vpop.f32.mrb[23].mxu0 }
 0x19a   :  { %v3481_v26 = vpop.f32.mrb[23].mxu1  ;;  %v2707_v27 = vadd.f32 %v3457_v21, %v2666_v14  ;;  %v3460_v28 = vadd.f32 %v3459_v25, %v3458_v23 }
 0x19b   :  { %v3482_v29 = vadd.f32 %v3481_v26, %v3480_v24 }
 0x19c   :  { %v2748_v30 = vadd.f32 %v3479_v22, %v2707_v27  ;;  %v2710_v31 = vadd.f32 %v3460_v28, %v2669_v16 }
 0x19e   :  { %v2751_v32 = vadd.f32 %v3482_v29, %v2710_v31 }
 0x1b6   :  { %v3499_v33 = vpop.f32.mrb[24].mxu0 }
 0x1b7   :  { %v3521_v34 = vpop.f32.mrb[24].mxu1  ;;  %v3500_v35 = vpop.f32.mrb[25].mxu0 }
 0x1b8   :  { %v3501_v36 = vadd.f32 %v3500_v35, %v3499_v33  ;;  %v3522_v37 = vpop.f32.mrb[25].mxu1  ;;  %v3502_v38 = vpop.f32.mrb[26].mxu0 }
 0x1b9   :  { %v3523_v39 = vadd.f32 %v3522_v37, %v3521_v34  ;;  %v3524_v40 = vpop.f32.mrb[26].mxu1  ;;  %v3503_v41 = vpop.f32.mrb[27].mxu0 }
 0x1ba   :  { %v2789_v42 = vadd.f32 %v3501_v36, %v2748_v30  ;;  %v3504_v43 = vadd.f32 %v3503_v41, %v3502_v38  ;;  %v3525_v44 = vpop.f32.mrb[27].mxu1 }
 0x1bb   :  { %v3526_v45 = vadd.f32 %v3525_v44, %v3524_v40 }
 0x1bc   :  { %v2830_v46 = vadd.f32 %v3523_v39, %v2789_v42  ;;  %v2792_v47 = vadd.f32 %v3504_v43, %v2751_v32 }
 0x1be   :  { %v2833_v48 = vadd.f32 %v3526_v45, %v2792_v47 }
 0x1d6   :  { %v3543_v49 = vpop.f32.mrb[28].mxu0 }
 0x1d7   :  { %v3565_v50 = vpop.f32.mrb[28].mxu1  ;;  %v3544_v51 = vpop.f32.mrb[29].mxu0 }
 0x1d8   :  { %v3566_v52 = vpop.f32.mrb[29].mxu1  ;;  %v3545_v53 = vadd.f32 %v3544_v51, %v3543_v49  ;;  %v3546_v55 = vpop.f32.mrb[30].mxu0 }
 0x1d9   :  { %v3567_v54 = vadd.f32 %v3566_v52, %v3565_v50  ;;  %v3568_v56 = vpop.f32.mrb[30].mxu1  ;;  %v3547_v57 = vpop.f32.mrb[31].mxu0 }
 0x1da   :  { %v3569_v58 = vpop.f32.mrb[31].mxu1  ;;  %v2871_v59 = vadd.f32 %v3545_v53, %v2830_v46  ;;  %v3548_v60 = vadd.f32 %v3547_v57, %v3546_v55 }
 0x1db   :  { %v3570_v61 = vadd.f32 %v3569_v58, %v3568_v56 }
 0x1dc   :  { %v2912_v62 = vadd.f32 %v3567_v54, %v2871_v59  ;;  %v2874_v63 = vadd.f32 %v3548_v60, %v2833_v48 }
 0x1de   :  { %v2918_v0 = vsub.f32 %v2912_v62, %v2912_v62  ;;  %v2915_v1 = vadd.f32 %v3570_v61, %v2874_v63 }
 0x1e0   :  { %v2920_v2 = vmul.f32 1.442695, %v2918_v0  ;;  %v2919_v3 = vsub.f32 %v2915_v1, %v2915_v1 }
 0x1e2   :  { %3827 = vpow2.f32 %v2920_v2  ;;  %v2922_v4 = vmul.f32 1.442695, %v2919_v3 }
 0x1e4   :  { %3829 = vpow2.f32 %v2922_v4 }
 0x1ec   :  { %v3828_v5 = vpop.eup %3827 }
 0x1ed   :  { %2924 = vst [vmem:[%s4727_s3] sm:$0xff] %v3828_v5 }
 0x1ee   :  { %v3830_v6 = vpop.eup %3829 }
 0x1ef   :  { %2925 = vst [vmem:[%s4727_s3 + $0x8] sm:$0xff] %v3830_v6 }

</bundles_post_ra>
